<compile_context>
chip_gen: v5e
topology: v5e:2x2
jax: 0.10.0
libtpu: 0.0.40
codegen_flags: <defaults>
</compile_context>

<pallas_src>
import functools
import math

import jax
import jax.numpy as jnp
from jax import lax
from jax.experimental import pallas as pl
from jax.experimental.pallas import tpu as pltpu

HIDDEN = 256          # LSTM hidden size (per direction)
NUM_LAYERS = 2
NUM_CLASSES = 5
B_PAD = 8             # sublane padding for the recurrence state
PREC = jax.lax.Precision.HIGHEST   # reference / tiny fc2 only


# ----------------------------------------------------------------------------
# Pallas kernels
# ----------------------------------------------------------------------------
def _linear_kernel(x_ref, w_ref, b_ref, o_ref, *, apply_relu):
    """(M,K)@(K,tn)+b with optional ReLU; grid = (N//tn,), X VMEM-resident."""
    x = x_ref[...].astype(jnp.bfloat16)          # bf16 operands, f32 accumulate
    r = jnp.dot(x, w_ref[...], preferred_element_type=jnp.float32) + b_ref[...]
    if apply_relu:
        r = jnp.maximum(r, 0.0)
    o_ref[...] = r


def pallas_linear(x, w, b, *, relu, tn=1024):
    M, K = x.shape
    Kw, N = w.shape
    assert K == Kw
    tn = min(tn, N)
    assert N % tn == 0
    b2 = b.reshape(1, N)
    return pl.pallas_call(
        functools.partial(_linear_kernel, apply_relu=relu),
        out_shape=jax.ShapeDtypeStruct((M, N), jnp.float32),
        grid_spec=pltpu.PrefetchScalarGridSpec(
            num_scalar_prefetch=0,
            grid=(N // tn,),
            in_specs=[
                pl.BlockSpec((M, K), lambda j: (0, 0)),    # X resident
                pl.BlockSpec((K, tn), lambda j: (0, j)),   # weight streamed
                pl.BlockSpec((1, tn), lambda j: (0, j)),
            ],
            out_specs=pl.BlockSpec((M, tn), lambda j: (0, j)),
        ),
        compiler_params=pltpu.CompilerParams(
            dimension_semantics=("parallel",),
            vmem_limit_bytes=32 * 1024 * 1024),
    )(x, w, b2)


def _bilstm_kernel(gxf_ref, gxr_ref, whhf_ref, whhr_ref, of_ref, or_ref,
                   *, hidden):
    """Fused forward+reverse LSTM recurrence for one layer.

    gxf/gxr: (S, Bp, 4H) precomputed x @ W_ih + (b_ih + b_hh) per direction.
    whhf/whhr: (H, 4H) bf16.  Outputs of/or: (S, Bp, H) hidden states.
    PyTorch gate order [i, f, g, o].
    """
    S, Bp, _ = gxf_ref.shape
    H = hidden

    def gate_step(gates, c):
        i_g = jax.nn.sigmoid(gates[:, 0 * H:1 * H])
        f_g = jax.nn.sigmoid(gates[:, 1 * H:2 * H])
        g_g = jnp.tanh(gates[:, 2 * H:3 * H])
        o_g = jax.nn.sigmoid(gates[:, 3 * H:4 * H])
        c_new = f_g * c + i_g * g_g
        h_new = o_g * jnp.tanh(c_new)
        return h_new, c_new

    def step(t, carry):
        h_f, c_f, h_r, c_r = carry
        tr = S - 1 - t
        g_f = gxf_ref[t] + jnp.dot(h_f.astype(jnp.bfloat16), whhf_ref[...],
                                   preferred_element_type=jnp.float32)
        g_r = gxr_ref[tr] + jnp.dot(h_r.astype(jnp.bfloat16), whhr_ref[...],
                                    preferred_element_type=jnp.float32)
        h_f, c_f = gate_step(g_f, c_f)
        h_r, c_r = gate_step(g_r, c_r)
        of_ref[t] = h_f
        or_ref[tr] = h_r
        return h_f, c_f, h_r, c_r

    z = jnp.zeros((Bp, H), jnp.float32)
    lax.fori_loop(0, S, step, (z, z, z, z), unroll=min(int(S), 8))


def _fc2_logsoftmax_kernel(x_ref, w_ref, b_ref, o_ref):
    logits = (jnp.dot(x_ref[...], w_ref[...],
                      preferred_element_type=jnp.float32, precision=PREC)
              + b_ref[...])
    z = logits - jnp.max(logits, axis=-1, keepdims=True)
    o_ref[...] = z - jnp.log(jnp.sum(jnp.exp(z), axis=-1, keepdims=True))


# ----------------------------------------------------------------------------
# Parameter setup (deterministic, PyTorch-style shapes)
# ----------------------------------------------------------------------------
def _uniform(key, shape, fan_in):
    bound = 1.0 / math.sqrt(fan_in)
    return jax.random.uniform(key, shape, jnp.float32, -bound, bound)


def init_raw_params(key):
    raw = {}
    fcs = {"fc1": (4000, 2000), "fc3": (2000, 4000), "fc4": (1000, 2000),
           "fc5": (500, 1000), "fc2": (NUM_CLASSES, 2 * HIDDEN)}
    keys = iter(jax.random.split(key, 64))
    for name, (out_f, in_f) in fcs.items():
        raw[name] = (_uniform(next(keys), (out_f, in_f), in_f),
                     _uniform(next(keys), (out_f,), in_f))
    for layer in range(NUM_LAYERS):
        in_f = 500 if layer == 0 else 2 * HIDDEN
        for d in range(2):  # d=0 forward, d=1 reverse
            raw[("lstm", layer, d)] = (
                _uniform(next(keys), (4 * HIDDEN, in_f), HIDDEN),    # W_ih
                _uniform(next(keys), (4 * HIDDEN, HIDDEN), HIDDEN),  # W_hh
                _uniform(next(keys), (4 * HIDDEN,), HIDDEN),         # b_ih
                _uniform(next(keys), (4 * HIDDEN,), HIDDEN),         # b_hh
            )
    return raw


def _round_up(n, m):
    return ((n + m - 1) // m) * m


def _pad_to(a, shape):
    return jnp.pad(a, [(0, s - d) for d, s in zip(a.shape, shape)])


def make_kernel_params(raw):
    kp = {}
    # MLP weights: transposed, zero-padded to 512 multiples, bf16.
    for name in ("fc1", "fc3", "fc4", "fc5"):
        w, b = raw[name]
        out_f, in_f = w.shape
        Kp, Np = _round_up(in_f, 512), _round_up(out_f, 512)
        kp[name] = (_pad_to(w.T, (Kp, Np)).astype(jnp.bfloat16),
                    _pad_to(b, (Np,)))
    w, b = raw["fc2"]
    kp["fc2"] = (w.T, b)  # (512, 5), (5,)  -- kept f32
    # LSTM: fused [fwd | rev] input projection + per-direction W_hh (bf16).
    for layer in range(NUM_LAYERS):
        wih_f, whh_f, bih_f, bhh_f = raw[("lstm", layer, 0)]
        wih_r, whh_r, bih_r, bhh_r = raw[("lstm", layer, 1)]
        in_f = wih_f.shape[1]
        Kp = _round_up(in_f, 128)
        wih_cat = jnp.concatenate(
            [_pad_to(wih_f.T, (Kp, 4 * HIDDEN)),
             _pad_to(wih_r.T, (Kp, 4 * HIDDEN))], axis=1).astype(jnp.bfloat16)
        b_cat = jnp.concatenate([bih_f + bhh_f, bih_r + bhh_r])  # (8H,) f32
        kp[("lstm", layer)] = (wih_cat, b_cat,
                               whh_f.T.astype(jnp.bfloat16),
                               whh_r.T.astype(jnp.bfloat16))
    return kp


# ----------------------------------------------------------------------------
# Forward passes
# ----------------------------------------------------------------------------
def pallas_forward(x, kp):
    B, S, F = x.shape
    M = B * S
    h = _pad_to(x.reshape(M, F), (M, _round_up(F, 512)))
    h = pallas_linear(h, *kp["fc1"], relu=True)
    h = pallas_linear(h, *kp["fc3"], relu=True)
    h = pallas_linear(h, *kp["fc4"], relu=True)
    h = pallas_linear(h, *kp["fc5"], relu=True)   # (M, 512); cols 500: are zero
    # TODO(synk): nn.Dropout branch inactive (drop_state=False default).

    # Time-major, batch padded to 8 sublanes; padded rows are independent
    # garbage through the recurrence and are sliced away at the end.
    xt = jnp.transpose(h.reshape(B, S, -1), (1, 0, 2))       # (S, B, 512)
    xt = jnp.pad(xt, ((0, 0), (0, B_PAD - B), (0, 0)))       # (S, Bp, 512)
    Bp = B_PAD

    for layer in range(NUM_LAYERS):
        wih_cat, b_cat, whh_f, whh_r = kp[("lstm", layer)]
        # Hoisted input projection for BOTH directions: one big matmul.
        gx = pallas_linear(xt.reshape(S * Bp, xt.shape[-1]), wih_cat, b_cat,
                           relu=False)                        # (S*Bp, 8H)
        gx = gx.reshape(S, Bp, 8 * HIDDEN)
        gx_f = gx[:, :, :4 * HIDDEN]
        gx_r = gx[:, :, 4 * HIDDEN:]
        o_f, o_r = pl.pallas_call(
            functools.partial(_bilstm_kernel, hidden=HIDDEN),
            out_shape=(jax.ShapeDtypeStruct((S, Bp, HIDDEN), jnp.float32),
                       jax.ShapeDtypeStruct((S, Bp, HIDDEN), jnp.float32)),
        )(gx_f, gx_r, whh_f, whh_r)
        xt = jnp.concatenate([o_f, o_r], axis=-1)             # (S, Bp, 2H)

    h2 = jnp.transpose(xt[:, :B], (1, 0, 2)).reshape(M, 2 * HIDDEN)

    w2, b2 = kp["fc2"]
    out = pl.pallas_call(
        _fc2_logsoftmax_kernel,
        out_shape=jax.ShapeDtypeStruct((M, NUM_CLASSES), jnp.float32),
    )(h2, w2, b2.reshape(1, NUM_CLASSES))
    return out.reshape(B, S, NUM_CLASSES)


def _lstm_ref_dir(x, wih, whh, bih, bhh, *, reverse):
    xt = jnp.transpose(x, (1, 0, 2))  # (S, B, IN)
    if reverse:
        xt = xt[::-1]
    B = x.shape[0]
    H = HIDDEN

    def step(carry, x_t):
        h, c = carry
        gates = (jnp.dot(x_t, wih.T, precision=PREC)
                 + jnp.dot(h, whh.T, precision=PREC) + bih + bhh)
        i = jax.nn.sigmoid(gates[:, :H])
        f = jax.nn.sigmoid(gates[:, H:2 * H])
        g = jnp.tanh(gates[:, 2 * H:3 * H])
        o = jax.nn.sigmoid(gates[:, 3 * H:])
        c = f * c + i * g
        h = o * jnp.tanh(c)
        return (h, c), h

    h0 = jnp.zeros((B, H), jnp.float32)
    _, hs = lax.scan(step, (h0, h0), xt)
    if reverse:
        hs = hs[::-1]
    return jnp.transpose(hs, (1, 0, 2))


def reference_forward(x, raw):
    h = x
    for name in ("fc1", "fc3", "fc4", "fc5"):
        w, b = raw[name]
        h = jnp.dot(h, w.T, precision=PREC) + b
        h = jnp.maximum(h, 0.0)   # relu follows fc1/fc3/fc4 and also fc5
    layer_in = h  # (B, S, 500)
    for layer in range(NUM_LAYERS):
        outs = []
        for d in range(2):
            wih, whh, bih, bhh = raw[("lstm", layer, d)]
            outs.append(_lstm_ref_dir(layer_in, wih, whh, bih, bhh,
                                      reverse=(d == 1)))
        layer_in = jnp.concatenate(outs, axis=-1)
    w, b = raw["fc2"]
    logits = jnp.dot(layer_in, w.T, precision=PREC) + b
    return jax.nn.log_softmax(logits, axis=-1)


# ----------------------------------------------------------------------------
if __name__ == "__main__":
    key = jax.random.PRNGKey(0)
    kp_key, x_key = jax.random.split(key)

    raw = init_raw_params(kp_key)
    kparams = make_kernel_params(raw)

    B, S = 2, 8
    x = jax.random.normal(x_key, (B, S, 2000), jnp.float32)

    out = jax.block_until_ready(pallas_forward(x, kparams))
    assert out.shape == (B, S, NUM_CLASSES), out.shape

    ref = jax.block_until_ready(reference_forward(x, raw))
    assert jnp.all(jnp.isfinite(out))
    # bf16 weights / single-pass MXU matmuls vs f32 HIGHEST reference:
    # log-prob agreement to a few 1e-2 is expected.
    assert jnp.allclose(out, ref, atol=5e-2, rtol=5e-2), (
        float(jnp.max(jnp.abs(out - ref))))

    print("KERNEL_OK")
</pallas_src>

<mosaic_0001>
module attributes {stable_mosaic.version = 11 : i64} {
  func.func @_linear_kernel(%arg0: i32, %arg1: memref<16x2048xf32, #tpu.memory_space<vmem>>, %arg2: memref<2048x1024xbf16, #tpu.memory_space<vmem>>, %arg3: memref<1x1024xf32, #tpu.memory_space<vmem>>, %arg4: memref<16x1024xf32, #tpu.memory_space<vmem>>) attributes {dimension_semantics = [#tpu.dimension_semantics<parallel>], iteration_bounds = array<i64: 4>, scalar_prefetch = 0 : i64, scratch_operands = 0 : i64, tpu.core_type = #tpu.core_type<tc>, window_params = [{pipeline_mode = #tpu.pipeline_mode<synchronous>, transform_indices = @transform_0, window_bounds = array<i64: 16, 2048>}, {transform_indices = @transform_1, window_bounds = array<i64: 2048, 1024>}, {transform_indices = @transform_2, window_bounds = array<i64: 1, 1024>}, {transform_indices = @transform_3, window_bounds = array<i64: 16, 1024>}]} {
    %c0 = arith.constant 0 : index
    %c0_0 = arith.constant 0 : index
    %0 = vector.load %arg1[%c0, %c0_0] : memref<16x2048xf32, #tpu.memory_space<vmem>>, vector<16x2048xf32>
    %1 = arith.truncf %0 : vector<16x2048xf32> to vector<16x2048xbf16>
    %c0_1 = arith.constant 0 : index
    %c0_2 = arith.constant 0 : index
    %2 = vector.load %arg2[%c0_1, %c0_2] : memref<2048x1024xbf16, #tpu.memory_space<vmem>>, vector<2048x1024xbf16>
    %cst = arith.constant dense<0.000000e+00> : vector<16x1024xf32>
    %3 = tpu.matmul %1, %2, %cst {dimension_numbers = #tpu.dot_dimension_numbers<[1], [0], [0], [1], [0, 0, 1, 1], [], []>} : vector<16x2048xbf16>, vector<2048x1024xbf16>, vector<16x1024xf32> -> vector<16x1024xf32>
    %c0_3 = arith.constant 0 : index
    %c0_4 = arith.constant 0 : index
    %4 = vector.load %arg3[%c0_3, %c0_4] : memref<1x1024xf32, #tpu.memory_space<vmem>>, vector<1x1024xf32>
    %5 = vector.broadcast %4 : vector<1x1024xf32> to vector<16x1024xf32>
    %6 = arith.addf %3, %5 : vector<16x1024xf32>
    %cst_5 = arith.constant 0.000000e+00 : f32
    %7 = vector.broadcast %cst_5 : f32 to vector<16x1024xf32>
    %8 = arith.maximumf %6, %7 : vector<16x1024xf32>
    %c0_6 = arith.constant 0 : index
    %c0_7 = arith.constant 0 : index
    %9 = vector.load %arg4[%c0_6, %c0_7] : memref<16x1024xf32, #tpu.memory_space<vmem>>, vector<16x1024xf32>
    tpu.vector_store %arg4[%c0_6, %c0_7], %8 {strides = array<i32>} : memref<16x1024xf32, #tpu.memory_space<vmem>>, vector<16x1024xf32>,
    return
  }
  func.func @transform_0(%arg0: i32) -> (i32, i32) {
    %c0_i32 = arith.constant 0 : i32
    %c0_i32_0 = arith.constant 0 : i32
    %c0_i32_1 = arith.constant 0 : i32
    return %c0_i32, %c0_i32_0 : i32, i32
  }
  func.func @transform_1(%arg0: i32) -> (i32, i32) {
    %c0_i32 = arith.constant 0 : i32
    %c0_i32_0 = arith.constant 0 : i32
    return %c0_i32, %arg0 : i32, i32
  }
  func.func @transform_2(%arg0: i32) -> (i32, i32) {
    %c0_i32 = arith.constant 0 : i32
    %c0_i32_0 = arith.constant 0 : i32
    return %c0_i32, %arg0 : i32, i32
  }
  func.func @transform_3(%arg0: i32) -> (i32, i32) {
    %c0_i32 = arith.constant 0 : i32
    %c0_i32_0 = arith.constant 0 : i32
    return %c0_i32, %arg0 : i32, i32
  }
}

</mosaic_0001>

<bundles_post_ra>
// kernel: tpu_custom_call.1
= control target key start
LH: loop header
LB: loop body
LE: loop exit
PB: predicated region body
PF: predicated region fallthrough
CT: control target
= control target key end

     0   :  { %s16542_s0 = inlined_call_operand.hbm [shape: f32[16,2048], index: 0, kind: input, shape index: {}]   ;;  %s16543_s1 = inlined_call_operand.hbm [shape: bf16[2048,4096], index: 1, kind: input, shape index: {}]   ;;  %s16544_s2 = inlined_call_operand.hbm [shape: f32[1,4096], index: 2, kind: input, shape index: {}]   ;;  %s16545_s3 = inlined_call_operand.hbm [shape: f32[16,4096], index: 3, kind: output, shape index: {}]  }
   0x1   :  { %16546 = sst [smem:[#allocation12_spill]] %s16542_s0 }
   0x2   :  { %8 = vsyncpa [#allocation3], 0 }
   0x3   :  { %9 = vsyncpa [#allocation6], 0 }
   0x4   :  { %11 = vsyncpa [#allocation6 + $0x1], 0 }
   0x5   :  { %12 = vsyncpa [#allocation4], 0 }
   0x6   :  { %14 = vsyncpa [#allocation4 + $0x1], 0  ;;  %s13808_s12 = smov 0   ;;  %s13810_s13 = smov 0  }
   0x7   :  { %s13812_s14 = smov 0   ;;  %s13814_s15 = smov 0  }
   0x8 LB: > { %s13829_s16 = sadd.s32 1, %s13778_s15   ;;  %s48_s17 = sadd.s32 1, %s13774_s14  ;;  %s13778_s15 = sphi %s13814_s15, %s16556_s15   ;;  %s13774_s14 = sphi %s13812_s14, %s16555_s14   ;;  %s13770_s13 = sphi %s13810_s13, %s16554_s13   ;;  %s13766_s12 = sphi %s13808_s12, %s16553_s12  }
   0x9   : > { %s45_s18 = ssub.s32 %s13778_s15, %s13829_s16  ;;  %p55_p0 = scmp.ne.s32.totalorder %s13774_s14, %s13770_s13 }
   0xa   : > { %p46_p1 = scmp.eq.s32.totalorder %s45_s18, 0  ;;  %p56_p2 = scmp.eq.s32.totalorder %s13778_s15, 0 }
   0xb   : > { %p13569_p4 = scmp.lt.s32.totalorder %s13778_s15, 4  ;;  %s151_s20 = sand.u32 1, %s13778_s15  }
   0xc   : > { %s13838_s19 = scalar_select %p46_p1, %s13774_s14, %s48_s17  }
   0xd   : > { %p57_p3 = por %p56_p2, %p55_p0  ;;  %s153_s21 = sand.u32 1, %s13774_s14  }
   0xe   : > { %s8406_s22 = sshll.u32 %s153_s21, 13  ;;  %s12517_s23 = sshll.u32 %s13778_s15, 5 }
   0xf   : > { %s160_s26 = scalar_lea.hbm %s16543_s1, %s12517_s23  ;;  %s155_s27 = scalar_lea.vmem [#allocation5], %s8406_s22 }
  0x10   : > { %s163_s28 = sshll.u32 %s155_s27, 4  ;;  %s161_s29 = sshll.u32 %s160_s26, 4  ;;  %s164_s28 = int_to_ptr.vmem [resolvable:$true] %s163_s28  ;;  %s162_s29 = int_to_ptr.hbm [resolvable:$true] %s161_s29 }
  0x11   : > { %p13852_p5 = pnand %p13569_p4, %p57_p3  ;;  %s13856_s4 = scalar_lea.sflag [#allocation6], %s151_s20 }
  0x12   : > { %s13618_s5 = sshra.s32 %s162_s29, 4  ;;  %s13625_s9 = scalar_lea.hbm %s16543_s1, 32768  ;;  %s13619_s5 = int_to_ptr.hbm [resolvable:$true] %s13618_s5 }
  0x13   : > { %s13620_s6 = scalar_lea.hbm %s13619_s5, 8192  ;;  %p13622_p7 = pneg %p13852_p5 }
  0x14   : > { %p13621_p6 = scmp.ne.s32.totalorder %s13619_s5, %s13620_s6  ;;  %p13626_p10 = scmp.lt.s32.totalorder %s13619_s5, %s16543_s1 }
  0x15   : > { %p13627_p11 = scmp.lt.s32.totalorder %s13625_s9, %s13620_s6 }
  0x16   : > { %p13623_p8 = pnand %p13622_p7, %p13621_p6 }
  0x17   : > { %p13628_p12 = por %p13627_p11, %p13626_p10 }
  0x18   : > { %p13624_p9 = pneg %p13623_p8 }
  0x1a   : > { %p13629_p13 = pnand %p13628_p12, %p13624_p9 }
  0x1c   : > { %13632 = shalt.err (!%p13629_p13)
}
  0x1d   : > { %s13780_s17 = smov 2048   ;;  %s13781_s18 = smov 512  }
  0x1e   : > { %s13782_s20 = smov 32   ;;  %s13874_s22 = sadd.s32 4294967295, %s13778_s15  }
  0x1f   : > { %13560 = dma.hbm_to_vmem [thread:$0]  (!%p13852_p5), %s162_s29, 131072, %s164_s28, %s13856_s4, %s13780_s17, %s13781_s18, %s13782_s20  }
  0x20   : > { %s8402_s23 = sadd.s32 4294967294, %s13778_s15   ;;  %p61_p1 = scmp.ne.s32.totalorder %s13770_s13, %s13766_s12 }
  0x21   : > { %p62_p2 = scmp.eq.s32.totalorder %s13874_s22, 0  ;;  %p111_p3 = scmp.eq.s32.totalorder %s13874_s22, 3 }
  0x22   : > { %p117_p4 = scmp.eq.s32.totalorder %s8402_s23, 3  ;;  %p8403_p6 = scmp.ge.s32.totalorder %s13778_s15, 1 }
  0x23   : > { %p13884_p8 = por %p62_p2, %p61_p1  ;;  %p13891_p9 = por %p111_p3, %p55_p0 }
  0x24   : > { %p13895_p10 = por %p117_p4, %p61_p1  ;;  %p124_p11 = scmp.lt.s32.totalorder %s13778_s15, 5 }
  0x25   : > { %s16551_s0 = sld [smem:[#allocation12_spill]]  ;;  %s13783_s6 = smov [#allocation2]  }
  0x26   : > { %p13903_p12 = pnand %p8403_p6, %p124_p11  ;;  %s137_s7 = sshll.u32 %s13783_s6, 4  ;;  %s138_s7 = int_to_ptr.vmem [resolvable:$true] %s137_s7 }
  0x27   : > { %s8409_s8 = sshll.u32 %s153_s21, 3  ;;  %s8410_s9 = sshll.u32 %s13778_s15, 3 }
  0x28   : > { %p13553_p0 = pneg %p13903_p12  ;;  %s177_s10 = scalar_lea.vmem [#allocation7], %s8409_s8 }
  0x29   : > { %s185_s11 = sshll.u32 %s177_s10, 4  ;;  %s181_s23 = scalar_lea.hbm %s16544_s2, %s8410_s9  ;;  %s186_s11 = int_to_ptr.vmem [resolvable:$true] %s185_s11 }
  0x2a   : > { %p13554_p13 = pnand %p13553_p0, %p62_p2  ;;  %s13784_s27 = smov 128  }
  0x2b   : > { %s135_s29 = sshll.u32 %s16551_s0, 4  ;;  %s183_s28 = sshll.u32 %s181_s23, 4  ;;  %s136_s29 = int_to_ptr.hbm [resolvable:$true] %s135_s29  ;;  %s184_s28 = int_to_ptr.hbm [resolvable:$true] %s183_s28 }
  0x2c   : > { %13556 = dma.hbm_to_vmem [thread:$0]  (!%p13554_p13), %s136_s29, 4096, %s138_s7, [#allocation3], %s13780_s17, %s13780_s17, %s13784_s27  }
  0x2d   : > { %s13678_s6 = sshra.s32 %s184_s28, 4  ;;  %s13685_s10 = scalar_lea.hbm %s16544_s2, 32  ;;  %s13679_s6 = int_to_ptr.hbm [resolvable:$true] %s13678_s6 }
  0x2e   : > { %s13680_s0 = scalar_lea.hbm %s13679_s6, 8  ;;  %p13686_p6 = scmp.lt.s32.totalorder %s13679_s6, %s16544_s2 }
  0x2f   : > { %p13681_p1 = scmp.ne.s32.totalorder %s13679_s6, %s13680_s0  ;;  %p13687_p11 = scmp.lt.s32.totalorder %s13685_s10, %s13680_s0 }
  0x31   : > { %p13683_p3 = pnand %p13681_p1, %p13622_p7  ;;  %p13688_p0 = por %p13687_p11, %p13686_p6 }
  0x33   : > { %p13684_p4 = pneg %p13683_p3 }
  0x35   : > { %p13689_p13 = pnand %p13688_p0, %p13684_p4 }
  0x37   : > { %13692 = shalt.err (!%p13689_p13)
}
  0x38   : > { %13563 = dma.hbm_to_vmem [thread:$0]  (!%p13852_p5), %s184_s28, 128, %s186_s11, %s13856_s4  }
  0x39   : > { %194 = sbr.rel (%p13903_p12) target bundleno = 2080 (0x820), region = 32 }
  0x3e   : > { %13753 = dma.done.wait (%p62_p2), [#allocation3], 4096  }
  0x3f   : > { %13755 = vsyncadd (%p62_p2), [#allocation3], 4294963200  ;;  %s201_s0 = sand.u32 1, %s13874_s22   ;;  %s13939_s17 = sand.u32 1, %s13770_s13  }
  0x40   : > { %s8413_s29 = sshll.u32 %s13939_s17, 13  ;;  %s202_s30 = scalar_lea.sflag [#allocation6], %s201_s0 }
  0x41   : > { %s13942_s7 = scalar_lea.vmem [#allocation5], %s8413_s29 }
  0x42   : > { %13757 = dma.done.wait (%p13884_p8), %s202_s30, 131200  }
  0x43   : > { %13759 = vsyncadd (%p13884_p8), %s202_s30, 4294836096  ;;  %v8642_v0 = vld [vmem:[%s13942_s7 + $0x1c0] sm:$0xf]  ;;  %s8414_s4 = sshll.u32 %s13939_s17, 3  ;;  %s8415_s5 = sshll.u32 %s13939_s17, 7 }
  0x44   : > { %v12578_v1 = vld [vmem:[%s13942_s7 + $0x1dc] sm:$0xf0]  ;;  %s14443_s24 = scalar_lea.vmem [#allocation7], %s8414_s4  ;;  %s14637_s11 = scalar_lea.vmem [#allocation8], %s8415_s5 }
  0x45   : > { %v8898_v2 = vld [vmem:[%s13942_s7 + $0x3c0] sm:$0xf]  ;;  %v8643_v3 = vor.u32 %v12578_v1, %v8642_v0  ;;  %s13542_s20 = sshll.u32 %s13874_s22, 6  ;;  %s8294_s6 = sshll.u32 %s14637_s11, 4  ;;  %s8295_s6 = int_to_ptr.vmem [resolvable:$true] %s8294_s6 }
  0x46   : > { %v12642_v4 = vld [vmem:[%s13942_s7 + $0x3dc] sm:$0xf0]  ;;  %s8293_s28 = scalar_lea.hbm %s16545_s3, %s13542_s20  ;;  %s8282_s22 = scalar_lea.sflag [#allocation4], %s13939_s17 }
  0x47   : > { %v9154_v5 = vld [vmem:[%s13942_s7 + $0x5c0] sm:$0xf]  ;;  %v8899_v7 = vor.u32 %v12642_v4, %v8898_v2  ;;  %6457 = vmatpush.bf16.msra.mxu0 %v8643_v3  ;;  %s8296_s21 = sshll.u32 %s8293_s28, 4  ;;  %s13728_s0 = scalar_lea.hbm %s16545_s3, 512  ;;  %s8297_s21 = int_to_ptr.hbm [resolvable:$true] %s8296_s21 }
  0x48   : > { %v12706_v6 = vld [vmem:[%s13942_s7 + $0x5dc] sm:$0xf0]  ;;  %s13722_s8 = sshra.s32 %s8297_s21, 4  ;;  %s13723_s8 = int_to_ptr.hbm [resolvable:$true] %s13722_s8 }
  0x49   : > { %v9155_v8 = vor.u32 %v12706_v6, %v9154_v5  ;;  %v9410_v9 = vld [vmem:[%s13942_s7 + $0x7c0] sm:$0xf]  ;;  %6471 = vmatpush.bf16.msra.mxu1 %v8899_v7  ;;  %s13724_s10 = scalar_lea.hbm %s13723_s8, 128  ;;  %p13729_p8 = scmp.lt.s32.totalorder %s13723_s8, %s16545_s3 }
  0x4a   : > { %v12770_v10 = vld [vmem:[%s13942_s7 + $0x7dc] sm:$0xf0]  ;;  %p13725_p5 = scmp.ne.s32.totalorder %s13723_s8, %s13724_s10  ;;  %p13730_p12 = scmp.lt.s32.totalorder %s13728_s0, %s13724_s10 }
  0x4b   : > { %v8610_v11 = vld [vmem:[%s13942_s7 + $0x180] sm:$0xf]  ;;  %v9411_v12 = vor.u32 %v12770_v10, %v9410_v9  ;;  %6485 = vmatpush.bf16.msra.mxu2 %v9155_v8 }
  0x4c   : > { %v12570_v13 = vld [vmem:[%s13942_s7 + $0x19c] sm:$0xf0]  ;;  %p13726_p7 = pnand %p13725_p5, %p13891_p9  ;;  %p13731_p1 = por %p13730_p12, %p13729_p8 }
  0x4d   : > { %v8866_v14 = vld [vmem:[%s13942_s7 + $0x380] sm:$0xf]  ;;  %v8611_v16 = vor.u32 %v12570_v13, %v8610_v11  ;;  %6499 = vmatpush.bf16.msra.mxu3 %v9411_v12 }
  0x4e   : > { %v12634_v15 = vld [vmem:[%s13942_s7 + $0x39c] sm:$0xf0]  ;;  %p13727_p2 = pneg %p13726_p7 }
  0x4f   : > { %v8867_v17 = vor.u32 %v12634_v15, %v8866_v14  ;;  %v9122_v18 = vld [vmem:[%s13942_s7 + $0x580] sm:$0xf]  ;;  %6458 = vmatpush.bf16.msra.mxu0 %v8611_v16 }
  0x50   : > { %v12698_v19 = vld [vmem:[%s13942_s7 + $0x59c] sm:$0xf0]  ;;  %p13732_p3 = pnand %p13731_p1, %p13727_p2 }
  0x51   : > { %v9378_v20 = vld [vmem:[%s13942_s7 + $0x780] sm:$0xf]  ;;  %v9123_v21 = vor.u32 %v12698_v19, %v9122_v18  ;;  %6472 = vmatpush.bf16.msra.mxu1 %v8867_v17 }
  0x52   : > { %v12762_v22 = vld [vmem:[%s13942_s7 + $0x79c] sm:$0xf0] }
  0x53   : > { %v8578_v23 = vld [vmem:[%s13942_s7 + $0x140] sm:$0xf]  ;;  %v9379_v25 = vor.u32 %v12762_v22, %v9378_v20  ;;  %6486 = vmatpush.bf16.msra.mxu2 %v9123_v21 }
  0x54   : > { %v12562_v24 = vld [vmem:[%s13942_s7 + $0x15c] sm:$0xf0] }
  0x55   : > { %v8834_v26 = vld [vmem:[%s13942_s7 + $0x340] sm:$0xf]  ;;  %v8579_v29 = vor.u32 %v12562_v24, %v8578_v23  ;;  %6500 = vmatpush.bf16.msra.mxu3 %v9379_v25 }
  0x56   : > { %v12626_v27 = vld [vmem:[%s13942_s7 + $0x35c] sm:$0xf0] }
  0x57   : > { %v9090_v28 = vld [vmem:[%s13942_s7 + $0x540] sm:$0xf]  ;;  %v8835_v33 = vor.u32 %v12626_v27, %v8834_v26  ;;  %6459 = vmatpush.bf16.msra.mxu0 %v8579_v29 }
  0x58   : > { %v12690_v30 = vld [vmem:[%s13942_s7 + $0x55c] sm:$0xf0] }
  0x59   : > { %v9346_v31 = vld [vmem:[%s13942_s7 + $0x740] sm:$0xf]  ;;  %v9091_v34 = vor.u32 %v12690_v30, %v9090_v28  ;;  %6473 = vmatpush.bf16.msra.mxu1 %v8835_v33 }
  0x5a   : > { %v12754_v32 = vld [vmem:[%s13942_s7 + $0x75c] sm:$0xf0] }
  0x5b   : > { %v8546_v35 = vld [vmem:[%s13942_s7 + $0x100] sm:$0xf]  ;;  %v9347_v38 = vor.u32 %v12754_v32, %v9346_v31  ;;  %6487 = vmatpush.bf16.msra.mxu2 %v9091_v34 }
  0x5c   : > { %v12554_v36 = vld [vmem:[%s13942_s7 + $0x11c] sm:$0xf0] }
  0x5d   : > { %v8802_v37 = vld [vmem:[%s13942_s7 + $0x300] sm:$0xf]  ;;  %v8547_v44 = vor.u32 %v12554_v36, %v8546_v35  ;;  %6501 = vmatpush.bf16.msra.mxu3 %v9347_v38 }
  0x5e   : > { %v12618_v39 = vld [vmem:[%s13942_s7 + $0x31c] sm:$0xf0] }
  0x5f   : > { %v9058_v40 = vld [vmem:[%s13942_s7 + $0x500] sm:$0xf]  ;;  %v8803_v45 = vor.u32 %v12618_v39, %v8802_v37  ;;  %6460 = vmatpush.bf16.msra.mxu0 %v8547_v44 }
  0x60   : > { %v12682_v41 = vld [vmem:[%s13942_s7 + $0x51c] sm:$0xf0] }
  0x61   : > { %v9314_v42 = vld [vmem:[%s13942_s7 + $0x700] sm:$0xf]  ;;  %v9059_v46 = vor.u32 %v12682_v41, %v9058_v40  ;;  %6474 = vmatpush.bf16.msra.mxu1 %v8803_v45 }
  0x62   : > { %v12746_v43 = vld [vmem:[%s13942_s7 + $0x71c] sm:$0xf0] }
  0x63   : > { %v8514_v47 = vld [vmem:[%s13942_s7 + $0xc0] sm:$0xf]  ;;  %v9315_v50 = vor.u32 %v12746_v43, %v9314_v42  ;;  %6488 = vmatpush.bf16.msra.mxu2 %v9059_v46 }
  0x64   : > { %v12546_v48 = vld [vmem:[%s13942_s7 + $0xdc] sm:$0xf0] }
  0x65   : > { %v8770_v49 = vld [vmem:[%s13942_s7 + $0x2c0] sm:$0xf]  ;;  %v8515_v56 = vor.u32 %v12546_v48, %v8514_v47  ;;  %6502 = vmatpush.bf16.msra.mxu3 %v9315_v50 }
  0x66   : > { %v12610_v51 = vld [vmem:[%s13942_s7 + $0x2dc] sm:$0xf0] }
  0x67   : > { %v9026_v52 = vld [vmem:[%s13942_s7 + $0x4c0] sm:$0xf]  ;;  %v8771_v57 = vor.u32 %v12610_v51, %v8770_v49  ;;  %6461 = vmatpush.bf16.msra.mxu0 %v8515_v56 }
  0x68   : > { %v12674_v53 = vld [vmem:[%s13942_s7 + $0x4dc] sm:$0xf0] }
  0x69   : > { %v9282_v54 = vld [vmem:[%s13942_s7 + $0x6c0] sm:$0xf]  ;;  %v9027_v58 = vor.u32 %v12674_v53, %v9026_v52  ;;  %6475 = vmatpush.bf16.msra.mxu1 %v8771_v57 }
  0x6a   : > { %v12738_v55 = vld [vmem:[%s13942_s7 + $0x6dc] sm:$0xf0] }
  0x6b   : > { %v8482_v59 = vld [vmem:[%s13942_s7 + $0x80] sm:$0xf]  ;;  %v9283_v62 = vor.u32 %v12738_v55, %v9282_v54  ;;  %6489 = vmatpush.bf16.msra.mxu2 %v9027_v58  ;;  %v249_v54 = vld [vmem:[#allocation2 + $0x10] sm:$0xff] }
  0x6c   : > { %v12538_v60 = vld [vmem:[%s13942_s7 + $0x9c] sm:$0xf0] }
  0x6d   : > { %v8738_v61 = vld [vmem:[%s13942_s7 + $0x280] sm:$0xf]  ;;  %v8483_v4 = vor.u32 %v12538_v60, %v8482_v59  ;;  %6503 = vmatpush.bf16.msra.mxu3 %v9283_v62  ;;  %v265_v59 = vld [vmem:[#allocation2 + $0x90] sm:$0xff] }
  0x6e   : > { %v12602_v63 = vld [vmem:[%s13942_s7 + $0x29c] sm:$0xf0] }
  0x6f   : > { %v8994_v0 = vld [vmem:[%s13942_s7 + $0x480] sm:$0xf]  ;;  %v8739_v5 = vor.u32 %v12602_v63, %v8738_v61  ;;  %6462 = vmatpush.bf16.msra.mxu0 %v8483_v4 }
  0x70   : > { %v12666_v1 = vld [vmem:[%s13942_s7 + $0x49c] sm:$0xf0] }
  0x71   : > { %v9250_v2 = vld [vmem:[%s13942_s7 + $0x680] sm:$0xf]  ;;  %v8995_v6 = vor.u32 %v12666_v1, %v8994_v0  ;;  %6476 = vmatpush.bf16.msra.mxu1 %v8739_v5  ;;  %v14035_v1 = vpack.c.bf16 %v265_v59, %v249_v54 }
  0x72   : > { %v12730_v3 = vld [vmem:[%s13942_s7 + $0x69c] sm:$0xf0] }
  0x73   : > { %v8450_v7 = vld [vmem:[%s13942_s7 + $0x40] sm:$0xf]  ;;  %v9251_v10 = vor.u32 %v12730_v3, %v9250_v2  ;;  %6490 = vmatpush.bf16.msra.mxu2 %v8995_v6  ;;  %v248_v6 = vld [vmem:[#allocation2 + $0x8] sm:$0xff] }
  0x74   : > { %v12530_v8 = vld [vmem:[%s13942_s7 + $0x5c] sm:$0xf0] }
  0x75   : > { %v8706_v9 = vld [vmem:[%s13942_s7 + $0x240] sm:$0xf]  ;;  %v8451_v16 = vor.u32 %v12530_v8, %v8450_v7  ;;  %6504 = vmatpush.bf16.msra.mxu3 %v9251_v10  ;;  %v264_v7 = vld [vmem:[#allocation2 + $0x88] sm:$0xff]  ;;  %v250_v8 = vld [vmem:[#allocation2 + $0x18] sm:$0xff] }
  0x76   : > { %v12594_v11 = vld [vmem:[%s13942_s7 + $0x25c] sm:$0xf0]  ;;  %v14042_v10 = vpack.c.bf16 %v264_v7, %v248_v6 }
  0x77   : > { %v8962_v12 = vld [vmem:[%s13942_s7 + $0x440] sm:$0xf]  ;;  %v8707_v19 = vor.u32 %v12594_v11, %v8706_v9  ;;  %6463 = vmatpush.bf16.msra.mxu0 %v8451_v16  ;;  %v266_v11 = vld [vmem:[#allocation2 + $0x98] sm:$0xff] }
  0x78   : > { %v12658_v13 = vld [vmem:[%s13942_s7 + $0x45c] sm:$0xf0] }
  0x79   : > { %v9218_v14 = vld [vmem:[%s13942_s7 + $0x640] sm:$0xf]  ;;  %v8963_v20 = vor.u32 %v12658_v13, %v8962_v12  ;;  %6477 = vmatpush.bf16.msra.mxu1 %v8707_v19 }
  0x7a   : > { %v12722_v15 = vld [vmem:[%s13942_s7 + $0x65c] sm:$0xf0] }
  0x7b   : > { %v8418_v17 = vld [vmem:[%s13942_s7] sm:$0xf]  ;;  %v9219_v24 = vor.u32 %v12722_v15, %v9218_v14  ;;  %6491 = vmatpush.bf16.msra.mxu2 %v8963_v20 }
  0x7c   : > { %v12522_v18 = vld [vmem:[%s13942_s7 + $0x1c] sm:$0xf0] }
  0x7d   : > { %v8674_v21 = vld [vmem:[%s13942_s7 + $0x200] sm:$0xf]  ;;  %v8419_v31 = vor.u32 %v12522_v18, %v8418_v17  ;;  %6505 = vmatpush.bf16.msra.mxu3 %v9219_v24  ;;  %v14047_v17 = vpack.c.bf16 %v266_v11, %v250_v8 }
  0x7e   : > { %v12586_v22 = vld [vmem:[%s13942_s7 + $0x21c] sm:$0xf0] }
  0x7f   : > { %v8930_v23 = vld [vmem:[%s13942_s7 + $0x400] sm:$0xf]  ;;  %v8675_v35 = vor.u32 %v12586_v22, %v8674_v21  ;;  %6464 = vmatpush.bf16.msra.mxu0 %v8419_v31 }
  0x80   : > { %v12650_v25 = vld [vmem:[%s13942_s7 + $0x41c] sm:$0xf0] }
  0x81   : > { %v9186_v26 = vld [vmem:[%s13942_s7 + $0x600] sm:$0xf]  ;;  %v8931_v36 = vor.u32 %v12650_v25, %v8930_v23  ;;  %6478 = vmatpush.bf16.msra.mxu1 %v8675_v35 }
  0x82   : > { %v12714_v27 = vld [vmem:[%s13942_s7 + $0x61c] sm:$0xf0] }
  0x83   : > { %v9666_v28 = vld [vmem:[%s13942_s7 + $0x9c0] sm:$0xf]  ;;  %v9187_v39 = vor.u32 %v12714_v27, %v9186_v26  ;;  %6492 = vmatpush.bf16.msra.mxu2 %v8931_v36 }
  0x84   : > { %v12834_v29 = vld [vmem:[%s13942_s7 + $0x9dc] sm:$0xf0]  ;;  %6479 = vmatmul.bf16.vlgmr.msra.gmra.mxu1 %v14042_v10 }
  0x85   : > { %v9922_v30 = vld [vmem:[%s13942_s7 + $0xbc0] sm:$0xf]  ;;  %v9667_v40 = vor.u32 %v12834_v29, %v9666_v28  ;;  %6506 = vmatpush.bf16.msra.mxu3 %v9187_v39 }
  0x86   : > { %v12898_v32 = vld [vmem:[%s13942_s7 + $0xbdc] sm:$0xf0]  ;;  %6493 = vmatmul.bf16.vlgmr.msra.gmra.mxu2 %v14035_v1 }
  0x87   : > { %v10178_v33 = vld [vmem:[%s13942_s7 + $0xdc0] sm:$0xf]  ;;  %v9923_v43 = vor.u32 %v12898_v32, %v9922_v30  ;;  %6513 = vmatpush.bf16.msrb.mxu0 %v9667_v40 }
  0x88   : > { %v12962_v34 = vld [vmem:[%s13942_s7 + $0xddc] sm:$0xf0]  ;;  %6507 = vmatmul.bf16.vlgmr.msra.gmra.mxu3 %v14047_v17 }
  0x89   : > { %v10434_v37 = vld [vmem:[%s13942_s7 + $0xfc0] sm:$0xf]  ;;  %v10179_v44 = vor.u32 %v12962_v34, %v10178_v33  ;;  %6527 = vmatpush.bf16.msrb.mxu1 %v9923_v43 }
  0x8a   : > { %v13026_v38 = vld [vmem:[%s13942_s7 + $0xfdc] sm:$0xf0] }
  0x8b   : > { %v9634_v41 = vld [vmem:[%s13942_s7 + $0x980] sm:$0xf]  ;;  %v10435_v48 = vor.u32 %v13026_v38, %v10434_v37  ;;  %6541 = vmatpush.bf16.msrb.mxu2 %v10179_v44 }
  0x8c   : > { %v12826_v42 = vld [vmem:[%s13942_s7 + $0x99c] sm:$0xf0] }
  0x8d   : > { %v9890_v45 = vld [vmem:[%s13942_s7 + $0xb80] sm:$0xf]  ;;  %v9635_v55 = vor.u32 %v12826_v42, %v9634_v41  ;;  %6555 = vmatpush.bf16.msrb.mxu3 %v10435_v48 }
  0x8e   : > { %v12890_v46 = vld [vmem:[%s13942_s7 + $0xb9c] sm:$0xf0] }
  0x8f   : > { %v10146_v47 = vld [vmem:[%s13942_s7 + $0xd80] sm:$0xf]  ;;  %v9891_v60 = vor.u32 %v12890_v46, %v9890_v45  ;;  %6514 = vmatpush.bf16.msrb.mxu0 %v9635_v55 }
  0x90   : > { %v12954_v49 = vld [vmem:[%s13942_s7 + $0xd9c] sm:$0xf0] }
  0x91   : > { %v10402_v50 = vld [vmem:[%s13942_s7 + $0xf80] sm:$0xf]  ;;  %v10147_v61 = vor.u32 %v12954_v49, %v10146_v47  ;;  %6528 = vmatpush.bf16.msrb.mxu1 %v9891_v60 }
  0x92   : > { %v13018_v51 = vld [vmem:[%s13942_s7 + $0xf9c] sm:$0xf0] }
  0x93   : > { %v247_v52 = vld [vmem:[#allocation2] sm:$0xff]  ;;  %v10403_v2 = vor.u32 %v13018_v51, %v10402_v50  ;;  %6542 = vmatpush.bf16.msrb.mxu2 %v10147_v61 }
  0x94   : > { %v263_v53 = vld [vmem:[#allocation2 + $0x80] sm:$0xff] }
  0x95   : > { %v9602_v56 = vld [vmem:[%s13942_s7 + $0x940] sm:$0xf]  ;;  %v14030_v58 = vpack.c.bf16 %v263_v53, %v247_v52  ;;  %6556 = vmatpush.bf16.msrb.mxu3 %v10403_v2 }
  0x96   : > { %v12818_v57 = vld [vmem:[%s13942_s7 + $0x95c] sm:$0xf0] }
  0x97   : > { %v9858_v62 = vld [vmem:[%s13942_s7 + $0xb40] sm:$0xf]  ;;  %6465 = vmatmul.bf16.vlgmr.msra.gmra.mxu0 %v14030_v58  ;;  %v9603_v9 = vor.u32 %v12818_v57, %v9602_v56 }
  0x98   : > { %v12882_v63 = vld [vmem:[%s13942_s7 + $0xb5c] sm:$0xf0] }
  0x99   : > { %v10114_v0 = vld [vmem:[%s13942_s7 + $0xd40] sm:$0xf]  ;;  %v9859_v12 = vor.u32 %v12882_v63, %v9858_v62  ;;  %6515 = vmatpush.bf16.msrb.mxu0 %v9603_v9 }
  0x9a   : > { %v12946_v3 = vld [vmem:[%s13942_s7 + $0xd5c] sm:$0xf0] }
  0x9b   : > { %v10370_v4 = vld [vmem:[%s13942_s7 + $0xf40] sm:$0xf]  ;;  %v10115_v13 = vor.u32 %v12946_v3, %v10114_v0  ;;  %6529 = vmatpush.bf16.msrb.mxu1 %v9859_v12 }
  0x9c   : > { %v13010_v5 = vld [vmem:[%s13942_s7 + $0xf5c] sm:$0xf0] }
  0x9d   : > { %v9570_v14 = vld [vmem:[%s13942_s7 + $0x900] sm:$0xf]  ;;  %v10371_v18 = vor.u32 %v13010_v5, %v10370_v4  ;;  %6543 = vmatpush.bf16.msrb.mxu2 %v10115_v13 }
  0x9e   : > { %v12810_v15 = vld [vmem:[%s13942_s7 + $0x91c] sm:$0xf0] }
  0x9f   : > { %v9826_v16 = vld [vmem:[%s13942_s7 + $0xb00] sm:$0xf]  ;;  %v9571_v24 = vor.u32 %v12810_v15, %v9570_v14  ;;  %6557 = vmatpush.bf16.msrb.mxu3 %v10371_v18 }
  0xa0   : > { %v12874_v19 = vld [vmem:[%s13942_s7 + $0xb1c] sm:$0xf0] }
  0xa1   : > { %v10082_v20 = vld [vmem:[%s13942_s7 + $0xd00] sm:$0xf]  ;;  %v9827_v25 = vor.u32 %v12874_v19, %v9826_v16  ;;  %6516 = vmatpush.bf16.msrb.mxu0 %v9571_v24 }
  0xa2   : > { %v12938_v21 = vld [vmem:[%s13942_s7 + $0xd1c] sm:$0xf0] }
  0xa3   : > { %v10338_v22 = vld [vmem:[%s13942_s7 + $0xf00] sm:$0xf]  ;;  %v10083_v26 = vor.u32 %v12938_v21, %v10082_v20  ;;  %6530 = vmatpush.bf16.msrb.mxu1 %v9827_v25  ;;  %v253_v25 = vld [vmem:[#allocation2 + $0x30] sm:$0xff] }
  0xa4   : > { %v13002_v23 = vld [vmem:[%s13942_s7 + $0xf1c] sm:$0xf0] }
  0xa5   : > { %v9538_v27 = vld [vmem:[%s13942_s7 + $0x8c0] sm:$0xf]  ;;  %v10339_v30 = vor.u32 %v13002_v23, %v10338_v22  ;;  %6544 = vmatpush.bf16.msrb.mxu2 %v10083_v26  ;;  %v269_v26 = vld [vmem:[#allocation2 + $0xb0] sm:$0xff] }
  0xa6   : > { %v12802_v28 = vld [vmem:[%s13942_s7 + $0x8dc] sm:$0xf0] }
  0xa7   : > { %v9794_v29 = vld [vmem:[%s13942_s7 + $0xac0] sm:$0xf]  ;;  %v9539_v36 = vor.u32 %v12802_v28, %v9538_v27  ;;  %6558 = vmatpush.bf16.msrb.mxu3 %v10339_v30  ;;  %v252_v27 = vld [vmem:[#allocation2 + $0x28] sm:$0xff] }
  0xa8   : > { %v12866_v31 = vld [vmem:[%s13942_s7 + $0xadc] sm:$0xf0]  ;;  %v268_v30 = vld [vmem:[#allocation2 + $0xa8] sm:$0xff] }
  0xa9   : > { %v10050_v32 = vld [vmem:[%s13942_s7 + $0xcc0] sm:$0xf]  ;;  %v9795_v37 = vor.u32 %v12866_v31, %v9794_v29  ;;  %6517 = vmatpush.bf16.msrb.mxu0 %v9539_v36  ;;  %v254_v31 = vld [vmem:[#allocation2 + $0x38] sm:$0xff] }
  0xaa   : > { %v12930_v33 = vld [vmem:[%s13942_s7 + $0xcdc] sm:$0xf0] }
  0xab   : > { %v10306_v34 = vld [vmem:[%s13942_s7 + $0xec0] sm:$0xf]  ;;  %v10051_v38 = vor.u32 %v12930_v33, %v10050_v32  ;;  %6531 = vmatpush.bf16.msrb.mxu1 %v9795_v37  ;;  %v270_v32 = vld [vmem:[#allocation2 + $0xb8] sm:$0xff] }
  0xac   : > { %v12994_v35 = vld [vmem:[%s13942_s7 + $0xedc] sm:$0xf0] }
  0xad   : > { %v9506_v39 = vld [vmem:[%s13942_s7 + $0x880] sm:$0xf]  ;;  %v10307_v42 = vor.u32 %v12994_v35, %v10306_v34  ;;  %6545 = vmatpush.bf16.msrb.mxu2 %v10051_v38 }
  0xae   : > { %v12794_v40 = vld [vmem:[%s13942_s7 + $0x89c] sm:$0xf0] }
  0xaf   : > { %v9762_v41 = vld [vmem:[%s13942_s7 + $0xa80] sm:$0xf]  ;;  %v9507_v48 = vor.u32 %v12794_v40, %v9506_v39  ;;  %6559 = vmatpush.bf16.msrb.mxu3 %v10307_v42 }
  0xb0   : > { %v12858_v43 = vld [vmem:[%s13942_s7 + $0xa9c] sm:$0xf0] }
  0xb1   : > { %v10018_v44 = vld [vmem:[%s13942_s7 + $0xc80] sm:$0xf]  ;;  %v9763_v50 = vor.u32 %v12858_v43, %v9762_v41  ;;  %6518 = vmatpush.bf16.msrb.mxu0 %v9507_v48  ;;  %v14104_v43 = vpack.c.bf16 %v269_v26, %v253_v25 }
  0xb2   : > { %v12922_v45 = vld [vmem:[%s13942_s7 + $0xc9c] sm:$0xf0] }
  0xb3   : > { %v10274_v46 = vld [vmem:[%s13942_s7 + $0xe80] sm:$0xf]  ;;  %v10019_v51 = vor.u32 %v12922_v45, %v10018_v44  ;;  %6532 = vmatpush.bf16.msrb.mxu1 %v9763_v50  ;;  %v14106_v44 = vpack.c.bf16 %v268_v30, %v252_v27 }
  0xb4   : > { %v12986_v47 = vld [vmem:[%s13942_s7 + $0xe9c] sm:$0xf0] }
  0xb5   : > { %v9474_v49 = vld [vmem:[%s13942_s7 + $0x840] sm:$0xf]  ;;  %v10275_v55 = vor.u32 %v12986_v47, %v10274_v46  ;;  %6546 = vmatpush.bf16.msrb.mxu2 %v10019_v51  ;;  %v14110_v47 = vpack.c.bf16 %v270_v32, %v254_v31 }
  0xb6   : > { %v12786_v52 = vld [vmem:[%s13942_s7 + $0x85c] sm:$0xf0] }
  0xb7   : > { %v9730_v53 = vld [vmem:[%s13942_s7 + $0xa40] sm:$0xf]  ;;  %v9475_v63 = vor.u32 %v12786_v52, %v9474_v49  ;;  %6560 = vmatpush.bf16.msrb.mxu3 %v10275_v55 }
  0xb8   : > { %v12850_v54 = vld [vmem:[%s13942_s7 + $0xa5c] sm:$0xf0] }
  0xb9   : > { %v9986_v56 = vld [vmem:[%s13942_s7 + $0xc40] sm:$0xf]  ;;  %v9731_v5 = vor.u32 %v12850_v54, %v9730_v53  ;;  %6519 = vmatpush.bf16.msrb.mxu0 %v9475_v63 }
  0xba   : > { %v12914_v57 = vld [vmem:[%s13942_s7 + $0xc5c] sm:$0xf0] }
  0xbb   : > { %v10242_v59 = vld [vmem:[%s13942_s7 + $0xe40] sm:$0xf]  ;;  %v9987_v6 = vor.u32 %v12914_v57, %v9986_v56  ;;  %6533 = vmatpush.bf16.msrb.mxu1 %v9731_v5 }
  0xbc   : > { %v12978_v60 = vld [vmem:[%s13942_s7 + $0xe5c] sm:$0xf0] }
  0xbd   : > { %v9442_v61 = vld [vmem:[%s13942_s7 + $0x800] sm:$0xf]  ;;  %v10243_v11 = vor.u32 %v12978_v60, %v10242_v59  ;;  %6547 = vmatpush.bf16.msrb.mxu2 %v9987_v6 }
  0xbe   : > { %v12778_v62 = vld [vmem:[%s13942_s7 + $0x81c] sm:$0xf0] }
  0xbf   : > { %v9698_v0 = vld [vmem:[%s13942_s7 + $0xa00] sm:$0xf]  ;;  %v9443_v19 = vor.u32 %v12778_v62, %v9442_v61  ;;  %6561 = vmatpush.bf16.msrb.mxu3 %v10243_v11 }
  0xc0   : > { %v12842_v2 = vld [vmem:[%s13942_s7 + $0xa1c] sm:$0xf0] }
  0xc1   : > { %v9954_v3 = vld [vmem:[%s13942_s7 + $0xc00] sm:$0xf]  ;;  %v9699_v23 = vor.u32 %v12842_v2, %v9698_v0  ;;  %6520 = vmatpush.bf16.msrb.mxu0 %v9443_v19 }
  0xc2   : > { %v12906_v4 = vld [vmem:[%s13942_s7 + $0xc1c] sm:$0xf0] }
  0xc3   : > { %v10210_v7 = vld [vmem:[%s13942_s7 + $0xe00] sm:$0xf]  ;;  %v9955_v24 = vor.u32 %v12906_v4, %v9954_v3  ;;  %6534 = vmatpush.bf16.msrb.mxu1 %v9699_v23 }
  0xc4   : > { %v12970_v8 = vld [vmem:[%s13942_s7 + $0xe1c] sm:$0xf0] }
  0xc5   : > { %v10690_v9 = vld [vmem:[%s13942_s7 + $0x11c0] sm:$0xf]  ;;  %v10211_v28 = vor.u32 %v12970_v8, %v10210_v7  ;;  %6548 = vmatpush.bf16.msrb.mxu2 %v9955_v24 }
  0xc6   : > { %v13090_v12 = vld [vmem:[%s13942_s7 + $0x11dc] sm:$0xf0]  ;;  %6535 = vmatmul.bf16.vlgmr.msrb.gmra.mxu1 %v14106_v44 }
  0xc7   : > { %v10946_v13 = vld [vmem:[%s13942_s7 + $0x13c0] sm:$0xf]  ;;  %v10691_v29 = vor.u32 %v13090_v12, %v10690_v9  ;;  %6562 = vmatpush.bf16.msrb.mxu3 %v10211_v28 }
  0xc8   : > { %v13154_v14 = vld [vmem:[%s13942_s7 + $0x13dc] sm:$0xf0]  ;;  %6549 = vmatmul.bf16.vlgmr.msrb.gmra.mxu2 %v14104_v43 }
  0xc9   : > { %v11202_v15 = vld [vmem:[%s13942_s7 + $0x15c0] sm:$0xf]  ;;  %v10947_v33 = vor.u32 %v13154_v14, %v10946_v13  ;;  %6569 = vmatpush.bf16.msra.mxu0 %v10691_v29 }
  0xca   : > { %v13218_v16 = vld [vmem:[%s13942_s7 + $0x15dc] sm:$0xf0]  ;;  %6563 = vmatmul.bf16.vlgmr.msrb.gmra.mxu3 %v14110_v47 }
  0xcb   : > { %v11458_v18 = vld [vmem:[%s13942_s7 + $0x17c0] sm:$0xf]  ;;  %v11203_v34 = vor.u32 %v13218_v16, %v11202_v15  ;;  %6583 = vmatpush.bf16.msra.mxu1 %v10947_v33 }
  0xcc   : > { %v13282_v20 = vld [vmem:[%s13942_s7 + $0x17dc] sm:$0xf0] }
  0xcd   : > { %v251_v21 = vld [vmem:[#allocation2 + $0x20] sm:$0xff]  ;;  %v11459_v38 = vor.u32 %v13282_v20, %v11458_v18  ;;  %6597 = vmatpush.bf16.msra.mxu2 %v11203_v34 }
  0xce   : > { %v267_v22 = vld [vmem:[#allocation2 + $0xa0] sm:$0xff] }
  0xcf   : > { %v10658_v35 = vld [vmem:[%s13942_s7 + $0x1180] sm:$0xf]  ;;  %v14099_v39 = vpack.c.bf16 %v267_v22, %v251_v21  ;;  %6611 = vmatpush.bf16.msra.mxu3 %v11459_v38 }
  0xd0   : > { %v13082_v36 = vld [vmem:[%s13942_s7 + $0x119c] sm:$0xf0] }
  0xd1   : > { %v10914_v37 = vld [vmem:[%s13942_s7 + $0x1380] sm:$0xf]  ;;  %v10659_v48 = vor.u32 %v13082_v36, %v10658_v35  ;;  %6521 = vmatmul.bf16.vlgmr.msrb.gmra.mxu0 %v14099_v39 }
  0xd2   : > { %v13146_v40 = vld [vmem:[%s13942_s7 + $0x139c] sm:$0xf0] }
  0xd3   : > { %v11170_v41 = vld [vmem:[%s13942_s7 + $0x1580] sm:$0xf]  ;;  %v10915_v49 = vor.u32 %v13146_v40, %v10914_v37  ;;  %6570 = vmatpush.bf16.msra.mxu0 %v10659_v48 }
  0xd4   : > { %v13210_v42 = vld [vmem:[%s13942_s7 + $0x159c] sm:$0xf0] }
  0xd5   : > { %v11426_v45 = vld [vmem:[%s13942_s7 + $0x1780] sm:$0xf]  ;;  %v11171_v50 = vor.u32 %v13210_v42, %v11170_v41  ;;  %6584 = vmatpush.bf16.msra.mxu1 %v10915_v49 }
  0xd6   : > { %v13274_v46 = vld [vmem:[%s13942_s7 + $0x179c] sm:$0xf0] }
  0xd7   : > { %v10626_v51 = vld [vmem:[%s13942_s7 + $0x1140] sm:$0xf]  ;;  %v11427_v54 = vor.u32 %v13274_v46, %v11426_v45  ;;  %6598 = vmatpush.bf16.msra.mxu2 %v11171_v50 }
  0xd8   : > { %v13074_v52 = vld [vmem:[%s13942_s7 + $0x115c] sm:$0xf0] }
  0xd9   : > { %v10882_v53 = vld [vmem:[%s13942_s7 + $0x1340] sm:$0xf]  ;;  %v10627_v61 = vor.u32 %v13074_v52, %v10626_v51  ;;  %6612 = vmatpush.bf16.msra.mxu3 %v11427_v54 }
  0xda   : > { %v13138_v55 = vld [vmem:[%s13942_s7 + $0x135c] sm:$0xf0] }
  0xdb   : > { %v11138_v56 = vld [vmem:[%s13942_s7 + $0x1540] sm:$0xf]  ;;  %v10883_v62 = vor.u32 %v13138_v55, %v10882_v53  ;;  %6571 = vmatpush.bf16.msra.mxu0 %v10627_v61 }
  0xdc   : > { %v13202_v57 = vld [vmem:[%s13942_s7 + $0x155c] sm:$0xf0] }
  0xdd   : > { %v11394_v59 = vld [vmem:[%s13942_s7 + $0x1740] sm:$0xf]  ;;  %v11139_v63 = vor.u32 %v13202_v57, %v11138_v56  ;;  %6585 = vmatpush.bf16.msra.mxu1 %v10883_v62 }
  0xde   : > { %v13266_v60 = vld [vmem:[%s13942_s7 + $0x175c] sm:$0xf0] }
  0xdf   : > { %v10594_v0 = vld [vmem:[%s13942_s7 + $0x1100] sm:$0xf]  ;;  %v11395_v4 = vor.u32 %v13266_v60, %v11394_v59  ;;  %6599 = vmatpush.bf16.msra.mxu2 %v11139_v63 }
  0xe0   : > { %v13066_v2 = vld [vmem:[%s13942_s7 + $0x111c] sm:$0xf0] }
  0xe1   : > { %v10850_v3 = vld [vmem:[%s13942_s7 + $0x1300] sm:$0xf]  ;;  %v10595_v11 = vor.u32 %v13066_v2, %v10594_v0  ;;  %6613 = vmatpush.bf16.msra.mxu3 %v11395_v4 }
  0xe2   : > { %v13130_v5 = vld [vmem:[%s13942_s7 + $0x131c] sm:$0xf0] }
  0xe3   : > { %v11106_v6 = vld [vmem:[%s13942_s7 + $0x1500] sm:$0xf]  ;;  %v10851_v12 = vor.u32 %v13130_v5, %v10850_v3  ;;  %6572 = vmatpush.bf16.msra.mxu0 %v10595_v11 }
  0xe4   : > { %v13194_v7 = vld [vmem:[%s13942_s7 + $0x151c] sm:$0xf0] }
  0xe5   : > { %v11362_v8 = vld [vmem:[%s13942_s7 + $0x1700] sm:$0xf]  ;;  %v11107_v13 = vor.u32 %v13194_v7, %v11106_v6  ;;  %6586 = vmatpush.bf16.msra.mxu1 %v10851_v12 }
  0xe6   : > { %v13258_v9 = vld [vmem:[%s13942_s7 + $0x171c] sm:$0xf0] }
  0xe7   : > { %v10562_v14 = vld [vmem:[%s13942_s7 + $0x10c0] sm:$0xf]  ;;  %v11363_v18 = vor.u32 %v13258_v9, %v11362_v8  ;;  %6600 = vmatpush.bf16.msra.mxu2 %v11107_v13 }
  0xe8   : > { %v13058_v15 = vld [vmem:[%s13942_s7 + $0x10dc] sm:$0xf0] }
  0xe9   : > { %v10818_v16 = vld [vmem:[%s13942_s7 + $0x12c0] sm:$0xf]  ;;  %v10563_v24 = vor.u32 %v13058_v15, %v10562_v14  ;;  %6614 = vmatpush.bf16.msra.mxu3 %v11363_v18  ;;  %v273_v18 = vld [vmem:[#allocation2 + $0xd0] sm:$0xff] }
  0xea   : > { %v13122_v19 = vld [vmem:[%s13942_s7 + $0x12dc] sm:$0xf0] }
  0xeb   : > { %v11074_v20 = vld [vmem:[%s13942_s7 + $0x14c0] sm:$0xf]  ;;  %v10819_v25 = vor.u32 %v13122_v19, %v10818_v16  ;;  %6573 = vmatpush.bf16.msra.mxu0 %v10563_v24  ;;  %v257_v16 = vld [vmem:[#allocation2 + $0x50] sm:$0xff]  ;;  %v256_v19 = vld [vmem:[#allocation2 + $0x48] sm:$0xff] }
  0xec   : > { %v13186_v21 = vld [vmem:[%s13942_s7 + $0x14dc] sm:$0xf0]  ;;  %v274_v24 = vld [vmem:[#allocation2 + $0xd8] sm:$0xff] }
  0xed   : > { %v11330_v22 = vld [vmem:[%s13942_s7 + $0x16c0] sm:$0xf]  ;;  %v11075_v26 = vor.u32 %v13186_v21, %v11074_v20  ;;  %6587 = vmatpush.bf16.msra.mxu1 %v10819_v25 }
  0xee   : > { %v13250_v23 = vld [vmem:[%s13942_s7 + $0x16dc] sm:$0xf0] }
  0xef   : > { %v10530_v27 = vld [vmem:[%s13942_s7 + $0x1080] sm:$0xf]  ;;  %v11331_v30 = vor.u32 %v13250_v23, %v11330_v22  ;;  %6601 = vmatpush.bf16.msra.mxu2 %v11075_v26  ;;  %v272_v22 = vld [vmem:[#allocation2 + $0xc8] sm:$0xff]  ;;  %v258_v23 = vld [vmem:[#allocation2 + $0x58] sm:$0xff] }
  0xf0   : > { %v13050_v28 = vld [vmem:[%s13942_s7 + $0x109c] sm:$0xf0] }
  0xf1   : > { %v10786_v29 = vld [vmem:[%s13942_s7 + $0x1280] sm:$0xf]  ;;  %v10531_v36 = vor.u32 %v13050_v28, %v10530_v27  ;;  %6615 = vmatpush.bf16.msra.mxu3 %v11331_v30 }
  0xf2   : > { %v13114_v31 = vld [vmem:[%s13942_s7 + $0x129c] sm:$0xf0] }
  0xf3   : > { %v11042_v32 = vld [vmem:[%s13942_s7 + $0x1480] sm:$0xf]  ;;  %v10787_v38 = vor.u32 %v13114_v31, %v10786_v29  ;;  %6574 = vmatpush.bf16.msra.mxu0 %v10531_v36  ;;  %v14182_v36 = vpack.c.bf16 %v272_v22, %v256_v19 }
  0xf4   : > { %v13178_v33 = vld [vmem:[%s13942_s7 + $0x149c] sm:$0xf0] }
  0xf5   : > { %v11298_v34 = vld [vmem:[%s13942_s7 + $0x1680] sm:$0xf]  ;;  %v11043_v40 = vor.u32 %v13178_v33, %v11042_v32  ;;  %6588 = vmatpush.bf16.msra.mxu1 %v10787_v38 }
  0xf6   : > { %v13242_v35 = vld [vmem:[%s13942_s7 + $0x169c] sm:$0xf0] }
  0xf7   : > { %v10498_v37 = vld [vmem:[%s13942_s7 + $0x1040] sm:$0xf]  ;;  %v11299_v46 = vor.u32 %v13242_v35, %v11298_v34  ;;  %6602 = vmatpush.bf16.msra.mxu2 %v11043_v40  ;;  %v14180_v35 = vpack.c.bf16 %v273_v18, %v257_v16  ;;  %v14186_v40 = vpack.c.bf16 %v274_v24, %v258_v23 }
  0xf8   : > { %v13042_v41 = vld [vmem:[%s13942_s7 + $0x105c] sm:$0xf0] }
  0xf9   : > { %v10754_v42 = vld [vmem:[%s13942_s7 + $0x1240] sm:$0xf]  ;;  %v10499_v54 = vor.u32 %v13042_v41, %v10498_v37  ;;  %6616 = vmatpush.bf16.msra.mxu3 %v11299_v46 }
  0xfa   : > { %v13106_v45 = vld [vmem:[%s13942_s7 + $0x125c] sm:$0xf0] }
  0xfb   : > { %v11010_v48 = vld [vmem:[%s13942_s7 + $0x1440] sm:$0xf]  ;;  %v10755_v60 = vor.u32 %v13106_v45, %v10754_v42  ;;  %6575 = vmatpush.bf16.msra.mxu0 %v10499_v54 }
  0xfc   : > { %v13170_v49 = vld [vmem:[%s13942_s7 + $0x145c] sm:$0xf0] }
  0xfd   : > { %v11266_v50 = vld [vmem:[%s13942_s7 + $0x1640] sm:$0xf]  ;;  %v11011_v61 = vor.u32 %v13170_v49, %v11010_v48  ;;  %6589 = vmatpush.bf16.msra.mxu1 %v10755_v60 }
  0xfe   : > { %v13234_v51 = vld [vmem:[%s13942_s7 + $0x165c] sm:$0xf0] }
  0xff   : > { %v10466_v52 = vld [vmem:[%s13942_s7 + $0x1000] sm:$0xf]  ;;  %v11267_v2 = vor.u32 %v13234_v51, %v11266_v50  ;;  %6603 = vmatpush.bf16.msra.mxu2 %v11011_v61 }
 0x100   : > { %v13034_v53 = vld [vmem:[%s13942_s7 + $0x101c] sm:$0xf0] }
 0x101   : > { %v10722_v55 = vld [vmem:[%s13942_s7 + $0x1200] sm:$0xf]  ;;  %v10467_v9 = vor.u32 %v13034_v53, %v10466_v52  ;;  %6617 = vmatpush.bf16.msra.mxu3 %v11267_v2 }
 0x102   : > { %v13098_v56 = vld [vmem:[%s13942_s7 + $0x121c] sm:$0xf0] }
 0x103   : > { %v10978_v57 = vld [vmem:[%s13942_s7 + $0x1400] sm:$0xf]  ;;  %v10723_v14 = vor.u32 %v13098_v56, %v10722_v55  ;;  %6576 = vmatpush.bf16.msra.mxu0 %v10467_v9 }
 0x104   : > { %v13162_v59 = vld [vmem:[%s13942_s7 + $0x141c] sm:$0xf0] }
 0x105   : > { %v11234_v62 = vld [vmem:[%s13942_s7 + $0x1600] sm:$0xf]  ;;  %v10979_v15 = vor.u32 %v13162_v59, %v10978_v57  ;;  %6590 = vmatpush.bf16.msra.mxu1 %v10723_v14 }
 0x106   : > { %v13226_v63 = vld [vmem:[%s13942_s7 + $0x161c] sm:$0xf0] }
 0x107   : > { %v11714_v0 = vld [vmem:[%s13942_s7 + $0x19c0] sm:$0xf]  ;;  %v11235_v20 = vor.u32 %v13226_v63, %v11234_v62  ;;  %6604 = vmatpush.bf16.msra.mxu2 %v10979_v15 }
 0x108   : > { %v13346_v3 = vld [vmem:[%s13942_s7 + $0x19dc] sm:$0xf0]  ;;  %6591 = vmatmul.bf16.vlgmr.msra.gmra.mxu1 %v14182_v36 }
 0x109   : > { %v11970_v4 = vld [vmem:[%s13942_s7 + $0x1bc0] sm:$0xf]  ;;  %v11715_v21 = vor.u32 %v13346_v3, %v11714_v0  ;;  %6618 = vmatpush.bf16.msra.mxu3 %v11235_v20 }
 0x10a   : > { %v13410_v5 = vld [vmem:[%s13942_s7 + $0x1bdc] sm:$0xf0]  ;;  %6605 = vmatmul.bf16.vlgmr.msra.gmra.mxu2 %v14180_v35 }
 0x10b   : > { %v12226_v6 = vld [vmem:[%s13942_s7 + $0x1dc0] sm:$0xf]  ;;  %v11971_v25 = vor.u32 %v13410_v5, %v11970_v4  ;;  %6625 = vmatpush.bf16.msrb.mxu0 %v11715_v21 }
 0x10c   : > { %v13474_v7 = vld [vmem:[%s13942_s7 + $0x1ddc] sm:$0xf0]  ;;  %6619 = vmatmul.bf16.vlgmr.msra.gmra.mxu3 %v14186_v40 }
 0x10d   : > { %v12482_v8 = vld [vmem:[%s13942_s7 + $0x1fc0] sm:$0xf]  ;;  %v12227_v26 = vor.u32 %v13474_v7, %v12226_v6  ;;  %6639 = vmatpush.bf16.msrb.mxu1 %v11971_v25 }
 0x10e   : > { %v13538_v11 = vld [vmem:[%s13942_s7 + $0x1fdc] sm:$0xf0] }
 0x10f   : > { %v255_v12 = vld [vmem:[#allocation2 + $0x40] sm:$0xff]  ;;  %v12483_v30 = vor.u32 %v13538_v11, %v12482_v8  ;;  %6653 = vmatpush.bf16.msrb.mxu2 %v12227_v26 }
 0x110   : > { %v271_v13 = vld [vmem:[#allocation2 + $0xc0] sm:$0xff] }
 0x111   : > { %v11682_v27 = vld [vmem:[%s13942_s7 + $0x1980] sm:$0xf]  ;;  %v14175_v31 = vpack.c.bf16 %v271_v13, %v255_v12  ;;  %6667 = vmatpush.bf16.msrb.mxu3 %v12483_v30 }
 0x112   : > { %v13338_v28 = vld [vmem:[%s13942_s7 + $0x199c] sm:$0xf0] }
 0x113   : > { %v11938_v29 = vld [vmem:[%s13942_s7 + $0x1b80] sm:$0xf]  ;;  %v11683_v41 = vor.u32 %v13338_v28, %v11682_v27  ;;  %6577 = vmatmul.bf16.vlgmr.msra.gmra.mxu0 %v14175_v31 }
 0x114   : > { %v13402_v32 = vld [vmem:[%s13942_s7 + $0x1b9c] sm:$0xf0] }
 0x115   : > { %v12194_v33 = vld [vmem:[%s13942_s7 + $0x1d80] sm:$0xf]  ;;  %v11939_v42 = vor.u32 %v13402_v32, %v11938_v29  ;;  %6626 = vmatpush.bf16.msrb.mxu0 %v11683_v41 }
 0x116   : > { %v13466_v34 = vld [vmem:[%s13942_s7 + $0x1d9c] sm:$0xf0] }
 0x117   : > { %v12450_v37 = vld [vmem:[%s13942_s7 + $0x1f80] sm:$0xf]  ;;  %v12195_v45 = vor.u32 %v13466_v34, %v12194_v33  ;;  %6640 = vmatpush.bf16.msrb.mxu1 %v11939_v42 }
 0x118   : > { %v13530_v38 = vld [vmem:[%s13942_s7 + $0x1f9c] sm:$0xf0] }
 0x119   : > { %v11650_v46 = vld [vmem:[%s13942_s7 + $0x1940] sm:$0xf]  ;;  %v12451_v50 = vor.u32 %v13530_v38, %v12450_v37  ;;  %6654 = vmatpush.bf16.msrb.mxu2 %v12195_v45 }
 0x11a   : > { %v13330_v48 = vld [vmem:[%s13942_s7 + $0x195c] sm:$0xf0] }
 0x11b   : > { %v11906_v49 = vld [vmem:[%s13942_s7 + $0x1b40] sm:$0xf]  ;;  %v11651_v56 = vor.u32 %v13330_v48, %v11650_v46  ;;  %6668 = vmatpush.bf16.msrb.mxu3 %v12451_v50 }
 0x11c   : > { %v13394_v51 = vld [vmem:[%s13942_s7 + $0x1b5c] sm:$0xf0] }
 0x11d   : > { %v12162_v52 = vld [vmem:[%s13942_s7 + $0x1d40] sm:$0xf]  ;;  %v11907_v57 = vor.u32 %v13394_v51, %v11906_v49  ;;  %6627 = vmatpush.bf16.msrb.mxu0 %v11651_v56 }
 0x11e   : > { %v13458_v53 = vld [vmem:[%s13942_s7 + $0x1d5c] sm:$0xf0] }
 0x11f   : > { %v12418_v54 = vld [vmem:[%s13942_s7 + $0x1f40] sm:$0xf]  ;;  %v12163_v59 = vor.u32 %v13458_v53, %v12162_v52  ;;  %6641 = vmatpush.bf16.msrb.mxu1 %v11907_v57 }
 0x120   : > { %v13522_v55 = vld [vmem:[%s13942_s7 + $0x1f5c] sm:$0xf0] }
 0x121   : > { %v11618_v60 = vld [vmem:[%s13942_s7 + $0x1900] sm:$0xf]  ;;  %v12419_v63 = vor.u32 %v13522_v55, %v12418_v54  ;;  %6655 = vmatpush.bf16.msrb.mxu2 %v12163_v59 }
 0x122   : > { %v13322_v61 = vld [vmem:[%s13942_s7 + $0x191c] sm:$0xf0] }
 0x123   : > { %v11874_v62 = vld [vmem:[%s13942_s7 + $0x1b00] sm:$0xf]  ;;  %v11619_v6 = vor.u32 %v13322_v61, %v11618_v60  ;;  %6669 = vmatpush.bf16.msrb.mxu3 %v12419_v63 }
 0x124   : > { %v13386_v0 = vld [vmem:[%s13942_s7 + $0x1b1c] sm:$0xf0] }
 0x125   : > { %v12130_v2 = vld [vmem:[%s13942_s7 + $0x1d00] sm:$0xf]  ;;  %v11875_v7 = vor.u32 %v13386_v0, %v11874_v62  ;;  %6628 = vmatpush.bf16.msrb.mxu0 %v11619_v6  ;;  %v12574_v0 = vld [vmem:[%s13942_s7 + $0x1c4] sm:$0xf] }
 0x126   : > { %v13450_v3 = vld [vmem:[%s13942_s7 + $0x1d1c] sm:$0xf0]  ;;  %v12702_v6 = vld [vmem:[%s13942_s7 + $0x5c4] sm:$0xf] }
 0x127   : > { %v12386_v4 = vld [vmem:[%s13942_s7 + $0x1f00] sm:$0xf]  ;;  %v12131_v8 = vor.u32 %v13450_v3, %v12130_v2  ;;  %6642 = vmatpush.bf16.msrb.mxu1 %v11875_v7  ;;  %v8644_v3 = vld [vmem:[%s13942_s7 + $0x1e0] sm:$0xf0] }
 0x128   : > { %v13514_v5 = vld [vmem:[%s13942_s7 + $0x1f1c] sm:$0xf0]  ;;  %v9156_v7 = vld [vmem:[%s13942_s7 + $0x5e0] sm:$0xf0] }
 0x129   : > { %v11586_v9 = vld [vmem:[%s13942_s7 + $0x18c0] sm:$0xf]  ;;  %v12387_v13 = vor.u32 %v13514_v5, %v12386_v4  ;;  %6656 = vmatpush.bf16.msrb.mxu2 %v12131_v8  ;;  %v12638_v4 = vld [vmem:[%s13942_s7 + $0x3c4] sm:$0xf] }
 0x12a   : > { %v13314_v11 = vld [vmem:[%s13942_s7 + $0x18dc] sm:$0xf0]  ;;  %v8900_v5 = vld [vmem:[%s13942_s7 + $0x3e0] sm:$0xf0] }
 0x12b   : > { %v11842_v12 = vld [vmem:[%s13942_s7 + $0x1ac0] sm:$0xf]  ;;  %v11587_v20 = vor.u32 %v13314_v11, %v11586_v9  ;;  %6670 = vmatpush.bf16.msrb.mxu3 %v12387_v13  ;;  %v12766_v8 = vld [vmem:[%s13942_s7 + $0x7c4] sm:$0xf] }
 0x12c   : > { %v13378_v14 = vld [vmem:[%s13942_s7 + $0x1adc] sm:$0xf0]  ;;  %v9412_v11 = vld [vmem:[%s13942_s7 + $0x7e0] sm:$0xf0] }
 0x12d   : > { %v12098_v15 = vld [vmem:[%s13942_s7 + $0x1cc0] sm:$0xf]  ;;  %v11843_v21 = vor.u32 %v13378_v14, %v11842_v12  ;;  %6629 = vmatpush.bf16.msrb.mxu0 %v11587_v20 }
 0x12e   : > { %v13442_v16 = vld [vmem:[%s13942_s7 + $0x1cdc] sm:$0xf0] }
 0x12f   : > { %v12354_v18 = vld [vmem:[%s13942_s7 + $0x1ec0] sm:$0xf]  ;;  %v12099_v22 = vor.u32 %v13442_v16, %v12098_v15  ;;  %6643 = vmatpush.bf16.msrb.mxu1 %v11843_v21  ;;  %v261_v16 = vld [vmem:[#allocation2 + $0x70] sm:$0xff]  ;;  %v8647_v21 = vor.u32 %v12574_v0, %v8644_v3  ;;  %v12550_v0 = vld [vmem:[%s13942_s7 + $0x104] sm:$0xf] }
 0x130   : > { %v13506_v19 = vld [vmem:[%s13942_s7 + $0x1edc] sm:$0xf0]  ;;  %v12614_v3 = vld [vmem:[%s13942_s7 + $0x304] sm:$0xf] }
 0x131   : > { %v11554_v23 = vld [vmem:[%s13942_s7 + $0x1880] sm:$0xf]  ;;  %v12355_v26 = vor.u32 %v13506_v19, %v12354_v18  ;;  %6657 = vmatpush.bf16.msrb.mxu2 %v12099_v22  ;;  %v277_v18 = vld [vmem:[#allocation2 + $0xf0] sm:$0xff]  ;;  %v260_v19 = vld [vmem:[#allocation2 + $0x68] sm:$0xff] }
 0x132   : > { %v13306_v24 = vld [vmem:[%s13942_s7 + $0x189c] sm:$0xf0]  ;;  %v276_v22 = vld [vmem:[#allocation2 + $0xe8] sm:$0xff] }
 0x133   : > { %v11810_v25 = vld [vmem:[%s13942_s7 + $0x1a80] sm:$0xf]  ;;  %v11555_v33 = vor.u32 %v13306_v24, %v11554_v23  ;;  %6671 = vmatpush.bf16.msrb.mxu3 %v12355_v26  ;;  %v262_v23 = vld [vmem:[#allocation2 + $0x78] sm:$0xff]  ;;  %v9159_v26 = vor.u32 %v12702_v6, %v9156_v7  ;;  %v12678_v6 = vld [vmem:[%s13942_s7 + $0x504] sm:$0xf] }
 0x134   : > { %v13370_v27 = vld [vmem:[%s13942_s7 + $0x1a9c] sm:$0xf0]  ;;  %v278_v24 = vld [vmem:[#allocation2 + $0xf8] sm:$0xff]  ;;  %v9060_v7 = vld [vmem:[%s13942_s7 + $0x520] sm:$0xf0] }
 0x135   : > { %v12066_v28 = vld [vmem:[%s13942_s7 + $0x1c80] sm:$0xf]  ;;  %v11811_v37 = vor.u32 %v13370_v27, %v11810_v25  ;;  %6630 = vmatpush.bf16.msrb.mxu0 %v11555_v33  ;;  %v8903_v25 = vor.u32 %v12638_v4, %v8900_v5  ;;  %v12566_v27 = vld [vmem:[%s13942_s7 + $0x184] sm:$0xf] }
 0x136   : > { %v13434_v29 = vld [vmem:[%s13942_s7 + $0x1c9c] sm:$0xf0]  ;;  %v8868_v33 = vld [vmem:[%s13942_s7 + $0x3a0] sm:$0xf0] }
 0x137   : > { %v12322_v30 = vld [vmem:[%s13942_s7 + $0x1e80] sm:$0xf]  ;;  %v12067_v38 = vor.u32 %v13434_v29, %v12066_v28  ;;  %6644 = vmatpush.bf16.msrb.mxu1 %v11811_v37  ;;  %v8612_v28 = vld [vmem:[%s13942_s7 + $0x1a0] sm:$0xf0] }
 0x138   : > { %v13498_v32 = vld [vmem:[%s13942_s7 + $0x1e9c] sm:$0xf0]  ;;  %v12630_v29 = vld [vmem:[%s13942_s7 + $0x384] sm:$0xf] }
 0x139   : > { %v11522_v34 = vld [vmem:[%s13942_s7 + $0x1840] sm:$0xf]  ;;  %v12323_v46 = vor.u32 %v13498_v32, %v12322_v30  ;;  %6658 = vmatpush.bf16.msrb.mxu2 %v12067_v38  ;;  %v9415_v30 = vor.u32 %v12766_v8, %v9412_v11  ;;  %v9124_v37 = vld [vmem:[%s13942_s7 + $0x5a0] sm:$0xf0]  ;;  %v14256_v38 = vpack.c.bf16 %v277_v18, %v261_v16 }
 0x13a   : > { %v13298_v41 = vld [vmem:[%s13942_s7 + $0x185c] sm:$0xf0]  ;;  %v8804_v5 = vld [vmem:[%s13942_s7 + $0x320] sm:$0xf0] }
 0x13b   : > { %v11778_v42 = vld [vmem:[%s13942_s7 + $0x1a40] sm:$0xf]  ;;  %v11523_v54 = vor.u32 %v13298_v41, %v11522_v34  ;;  %6672 = vmatpush.bf16.msrb.mxu3 %v12323_v46  ;;  %v12694_v34 = vld [vmem:[%s13942_s7 + $0x584] sm:$0xf]  ;;  %v14258_v41 = vpack.c.bf16 %v276_v22, %v260_v19  ;;  %v14262_v46 = vpack.c.bf16 %v278_v24, %v262_v23 }
 0x13c   : > { %v13362_v45 = vld [vmem:[%s13942_s7 + $0x1a5c] sm:$0xf0]  ;;  %v12742_v8 = vld [vmem:[%s13942_s7 + $0x704] sm:$0xf] }
 0x13d   : > { %v12034_v48 = vld [vmem:[%s13942_s7 + $0x1c40] sm:$0xf]  ;;  %v11779_v60 = vor.u32 %v13362_v45, %v11778_v42  ;;  %6631 = vmatpush.bf16.msrb.mxu0 %v11523_v54  ;;  %v12758_v42 = vld [vmem:[%s13942_s7 + $0x784] sm:$0xf] }
 0x13e   : > { %v13426_v49 = vld [vmem:[%s13942_s7 + $0x1c5c] sm:$0xf0]  ;;  %v9380_v45 = vld [vmem:[%s13942_s7 + $0x7a0] sm:$0xf0] }
 0x13f   : > { %v12290_v50 = vld [vmem:[%s13942_s7 + $0x1e40] sm:$0xf]  ;;  %v12035_v61 = vor.u32 %v13426_v49, %v12034_v48  ;;  %6645 = vmatpush.bf16.msrb.mxu1 %v11779_v60  ;;  %v8615_v48 = vor.u32 %v12566_v27, %v8612_v28  ;;  %v8871_v49 = vor.u32 %v12630_v29, %v8868_v33  ;;  %v9383_v54 = vor.u32 %v12758_v42, %v9380_v45  ;;  %v9348_v60 = vld [vmem:[%s13942_s7 + $0x760] sm:$0xf0] }
 0x140   : > { %v13490_v51 = vld [vmem:[%s13942_s7 + $0x1e5c] sm:$0xf0]  ;;  %v12606_v16 = vld [vmem:[%s13942_s7 + $0x2c4] sm:$0xf] }
 0x141   : > { %v11490_v52 = vld [vmem:[%s13942_s7 + $0x1800] sm:$0xf]  ;;  %v12291_v2 = vor.u32 %v13490_v51, %v12290_v50  ;;  %6659 = vmatpush.bf16.msrb.mxu2 %v12035_v61  ;;  %v9127_v50 = vor.u32 %v12694_v34, %v9124_v37  ;;  %v12558_v51 = vld [vmem:[%s13942_s7 + $0x144] sm:$0xf] }
 0x142   : > { %v13290_v53 = vld [vmem:[%s13942_s7 + $0x181c] sm:$0xf0]  ;;  %v8772_v19 = vld [vmem:[%s13942_s7 + $0x2e0] sm:$0xf0] }
 0x143   : > { %v11746_v55 = vld [vmem:[%s13942_s7 + $0x1a00] sm:$0xf]  ;;  %v11491_v9 = vor.u32 %v13290_v53, %v11490_v52  ;;  %6673 = vmatpush.bf16.msrb.mxu3 %v12291_v2  ;;  %v8580_v52 = vld [vmem:[%s13942_s7 + $0x160] sm:$0xf0] }
 0x144   : > { %v13354_v56 = vld [vmem:[%s13942_s7 + $0x1a1c] sm:$0xf0]  ;;  %v12622_v53 = vld [vmem:[%s13942_s7 + $0x344] sm:$0xf]  ;;  %v8583_v61 = vor.u32 %v12558_v51, %v8580_v52 }
 0x145   : > { %v12002_v57 = vld [vmem:[%s13942_s7 + $0x1c00] sm:$0xf]  ;;  %v11747_v14 = vor.u32 %v13354_v56, %v11746_v55  ;;  %6632 = vmatpush.bf16.msrb.mxu0 %v11491_v9  ;;  %v8836_v55 = vld [vmem:[%s13942_s7 + $0x360] sm:$0xf0] }
 0x146   : > { %v13418_v59 = vld [vmem:[%s13942_s7 + $0x1c1c] sm:$0xf0]  ;;  %v12686_v56 = vld [vmem:[%s13942_s7 + $0x544] sm:$0xf] }
 0x147   : > { %v12258_v62 = vld [vmem:[%s13942_s7 + $0x1e00] sm:$0xf]  ;;  %v12003_v15 = vor.u32 %v13418_v59, %v12002_v57  ;;  %6646 = vmatpush.bf16.msrb.mxu1 %v11747_v14  ;;  %v9092_v57 = vld [vmem:[%s13942_s7 + $0x560] sm:$0xf0] }
 0x148   : > { %v13482_v63 = vld [vmem:[%s13942_s7 + $0x1e1c] sm:$0xf0]  ;;  %v12750_v59 = vld [vmem:[%s13942_s7 + $0x744] sm:$0xf] }
 0x149   : > { %v259_v12 = vld [vmem:[#allocation2 + $0x60] sm:$0xff]  ;;  %v12259_v20 = vor.u32 %v13482_v63, %v12258_v62  ;;  %6660 = vmatpush.bf16.msrb.mxu2 %v12003_v15  ;;  %6681 = vmatpush.bf16.msra.mxu0 %v8647_v21  ;;  %v8839_v62 = vor.u32 %v12622_v53, %v8836_v55  ;;  %v9095_v63 = vor.u32 %v12686_v56, %v9092_v57 }
 0x14a   : > { %v275_v13 = vld [vmem:[#allocation2 + $0xe0] sm:$0xff]  ;;  %6647 = vmatmul.bf16.vlgmr.msrb.gmra.mxu1 %v14258_v41  ;;  %v9351_v4 = vor.u32 %v12750_v59, %v9348_v60 }
 0x14b   : > { %v14251_v32 = vpack.c.bf16 %v275_v13, %v259_v12  ;;  %6674 = vmatpush.bf16.msrb.mxu3 %v12259_v20  ;;  %6695 = vmatpush.bf16.msra.mxu1 %v8903_v25  ;;  %v8548_v2 = vld [vmem:[%s13942_s7 + $0x120] sm:$0xf0]  ;;  %v8807_v12 = vor.u32 %v12614_v3, %v8804_v5  ;;  %v9063_v13 = vor.u32 %v12678_v6, %v9060_v7 }
 0x14c   : > { %6661 = vmatmul.bf16.vlgmr.msrb.gmra.mxu2 %v14256_v38  ;;  %v9316_v9 = vld [vmem:[%s13942_s7 + $0x720] sm:$0xf0]  ;;  %v8551_v11 = vor.u32 %v12550_v0, %v8548_v2  ;;  %v8775_v25 = vor.u32 %v12606_v16, %v8772_v19 }
 0x14d   : > { %6709 = vmatpush.bf16.msra.mxu2 %v9159_v26  ;;  %6633 = vmatmul.bf16.vlgmr.msrb.gmra.mxu0 %v14251_v32  ;;  %v12542_v14 = vld [vmem:[%s13942_s7 + $0xc4] sm:$0xf]  ;;  %v9319_v18 = vor.u32 %v12742_v8, %v9316_v9 }
 0x14e   : > { %6675 = vmatmul.bf16.vlgmr.msrb.gmra.mxu3 %v14262_v46  ;;  %6682 = vmatpush.bf16.msra.mxu0 %v8615_v48  ;;  %v8516_v15 = vld [vmem:[%s13942_s7 + $0xe0] sm:$0xf0] }
 0x14f   : > { %6723 = vmatpush.bf16.msra.mxu3 %v9415_v30  ;;  %6696 = vmatpush.bf16.msra.mxu1 %v8871_v49  ;;  %v12670_v20 = vld [vmem:[%s13942_s7 + $0x4c4] sm:$0xf]  ;;  %v8519_v24 = vor.u32 %v12542_v14, %v8516_v15 }
 0x150   : > { %v9028_v21 = vld [vmem:[%s13942_s7 + $0x4e0] sm:$0xf0] }
 0x151   : > { %6710 = vmatpush.bf16.msra.mxu2 %v9127_v50  ;;  %v12734_v22 = vld [vmem:[%s13942_s7 + $0x6c4] sm:$0xf]  ;;  %v9031_v26 = vor.u32 %v12670_v20, %v9028_v21 }
 0x152   : > { %6683 = vmatpush.bf16.msra.mxu0 %v8583_v61  ;;  %v9284_v23 = vld [vmem:[%s13942_s7 + $0x6e0] sm:$0xf0] }
 0x153   : > { %6724 = vmatpush.bf16.msra.mxu3 %v9383_v54  ;;  %6697 = vmatpush.bf16.msra.mxu1 %v8839_v62  ;;  %v12534_v27 = vld [vmem:[%s13942_s7 + $0x84] sm:$0xf]  ;;  %v9287_v30 = vor.u32 %v12734_v22, %v9284_v23 }
 0x154   : > { %v8484_v28 = vld [vmem:[%s13942_s7 + $0xa0] sm:$0xf0] }
 0x155   : > { %6711 = vmatpush.bf16.msra.mxu2 %v9095_v63  ;;  %v12598_v29 = vld [vmem:[%s13942_s7 + $0x284] sm:$0xf]  ;;  %v8487_v48 = vor.u32 %v12534_v27, %v8484_v28 }
 0x156   : > { %6684 = vmatpush.bf16.msra.mxu0 %v8551_v11  ;;  %v8740_v33 = vld [vmem:[%s13942_s7 + $0x2a0] sm:$0xf0] }
 0x157   : > { %6725 = vmatpush.bf16.msra.mxu3 %v9351_v4  ;;  %6698 = vmatpush.bf16.msra.mxu1 %v8807_v12  ;;  %v12662_v34 = vld [vmem:[%s13942_s7 + $0x484] sm:$0xf]  ;;  %v8743_v49 = vor.u32 %v12598_v29, %v8740_v33 }
 0x158   : > { %v8996_v37 = vld [vmem:[%s13942_s7 + $0x4a0] sm:$0xf0] }
 0x159   : > { %6712 = vmatpush.bf16.msra.mxu2 %v9063_v13  ;;  %v12726_v42 = vld [vmem:[%s13942_s7 + $0x684] sm:$0xf]  ;;  %v8999_v50 = vor.u32 %v12662_v34, %v8996_v37 }
 0x15a   : > { %v9252_v45 = vld [vmem:[%s13942_s7 + $0x6a0] sm:$0xf0]  ;;  %6685 = vmatpush.bf16.msra.mxu0 %v8519_v24 }
 0x15b   : > { %6726 = vmatpush.bf16.msra.mxu3 %v9319_v18  ;;  %6699 = vmatpush.bf16.msra.mxu1 %v8775_v25  ;;  %v12526_v51 = vld [vmem:[%s13942_s7 + $0x44] sm:$0xf]  ;;  %v9255_v54 = vor.u32 %v12726_v42, %v9252_v45 }
 0x15c   : > { %v8452_v52 = vld [vmem:[%s13942_s7 + $0x60] sm:$0xf0] }
 0x15d   : > { %6713 = vmatpush.bf16.msra.mxu2 %v9031_v26  ;;  %v12590_v53 = vld [vmem:[%s13942_s7 + $0x244] sm:$0xf]  ;;  %v8455_v61 = vor.u32 %v12526_v51, %v8452_v52 }
 0x15e   : > { %v8708_v55 = vld [vmem:[%s13942_s7 + $0x260] sm:$0xf0]  ;;  %6686 = vmatpush.bf16.msra.mxu0 %v8487_v48 }
 0x15f   : > { %6727 = vmatpush.bf16.msra.mxu3 %v9287_v30  ;;  %v12654_v56 = vld [vmem:[%s13942_s7 + $0x444] sm:$0xf]  ;;  %6700 = vmatpush.bf16.msra.mxu1 %v8743_v49  ;;  %v8711_v0 = vor.u32 %v12590_v53, %v8708_v55 }
 0x160   : > { %v8964_v57 = vld [vmem:[%s13942_s7 + $0x460] sm:$0xf0] }
 0x161   : > { %v12718_v59 = vld [vmem:[%s13942_s7 + $0x644] sm:$0xf]  ;;  %6714 = vmatpush.bf16.msra.mxu2 %v8999_v50  ;;  %v8967_v2 = vor.u32 %v12654_v56, %v8964_v57 }
 0x162   : > { %v9220_v60 = vld [vmem:[%s13942_s7 + $0x660] sm:$0xf0]  ;;  %6687 = vmatpush.bf16.msra.mxu0 %v8455_v61 }
 0x163   : > { %v12518_v62 = vld [vmem:[%s13942_s7 + $0x4] sm:$0xf]  ;;  %6728 = vmatpush.bf16.msra.mxu3 %v9255_v54  ;;  %v9223_v6 = vor.u32 %v12718_v59, %v9220_v60  ;;  %6701 = vmatpush.bf16.msra.mxu1 %v8711_v0 }
 0x164   : > { %v8420_v63 = vld [vmem:[%s13942_s7 + $0x20] sm:$0xf0] }
 0x165   : > { %v12582_v3 = vld [vmem:[%s13942_s7 + $0x204] sm:$0xf]  ;;  %v8423_v14 = vor.u32 %v12518_v62, %v8420_v63  ;;  %6715 = vmatpush.bf16.msra.mxu2 %v8967_v2 }
 0x166   : > { %v8676_v4 = vld [vmem:[%s13942_s7 + $0x220] sm:$0xf0] }
 0x167   : > { %v12646_v5 = vld [vmem:[%s13942_s7 + $0x404] sm:$0xf]  ;;  %v8679_v19 = vor.u32 %v12582_v3, %v8676_v4  ;;  %6729 = vmatpush.bf16.msra.mxu3 %v9223_v6  ;;  %6688 = vmatpush.bf16.msra.mxu0 %v8423_v14 }
 0x168   : > { %v8932_v7 = vld [vmem:[%s13942_s7 + $0x420] sm:$0xf0] }
 0x169   : > { %v12710_v8 = vld [vmem:[%s13942_s7 + $0x604] sm:$0xf]  ;;  %v8935_v20 = vor.u32 %v12646_v5, %v8932_v7  ;;  %6702 = vmatpush.bf16.msra.mxu1 %v8679_v19 }
 0x16a   : > { %v9188_v9 = vld [vmem:[%s13942_s7 + $0x620] sm:$0xf0]  ;;  %6689 = vmatmul.bf16.vlgmr.msra.gmra.mxu0 %v14030_v58 }
 0x16b   : > { %v12830_v11 = vld [vmem:[%s13942_s7 + $0x9c4] sm:$0xf]  ;;  %v9191_v23 = vor.u32 %v12710_v8, %v9188_v9  ;;  %6716 = vmatpush.bf16.msra.mxu2 %v8935_v20 }
 0x16c   : > { %v9668_v12 = vld [vmem:[%s13942_s7 + $0x9e0] sm:$0xf0]  ;;  %6703 = vmatmul.bf16.vlgmr.msra.gmra.mxu1 %v14042_v10 }
 0x16d   : > { %v12894_v13 = vld [vmem:[%s13942_s7 + $0xbc4] sm:$0xf]  ;;  %v9671_v24 = vor.u32 %v12830_v11, %v9668_v12  ;;  %6730 = vmatpush.bf16.msra.mxu3 %v9191_v23 }
 0x16e   : > { %v9924_v15 = vld [vmem:[%s13942_s7 + $0xbe0] sm:$0xf0]  ;;  %6717 = vmatmul.bf16.vlgmr.msra.gmra.mxu2 %v14035_v1 }
 0x16f   : > { %v12958_v16 = vld [vmem:[%s13942_s7 + $0xdc4] sm:$0xf]  ;;  %v9927_v25 = vor.u32 %v12894_v13, %v9924_v15  ;;  %6737 = vmatpush.bf16.msrb.mxu0 %v9671_v24 }
 0x170   : > { %v10180_v18 = vld [vmem:[%s13942_s7 + $0xde0] sm:$0xf0]  ;;  %6731 = vmatmul.bf16.vlgmr.msra.gmra.mxu3 %v14047_v17 }
 0x171   : > { %v13022_v21 = vld [vmem:[%s13942_s7 + $0xfc4] sm:$0xf]  ;;  %v10183_v26 = vor.u32 %v12958_v16, %v10180_v18  ;;  %6751 = vmatpush.bf16.msrb.mxu1 %v9927_v25 }
 0x172   : > { %v10436_v22 = vld [vmem:[%s13942_s7 + $0xfe0] sm:$0xf0] }
 0x173   : > { %v12822_v27 = vld [vmem:[%s13942_s7 + $0x984] sm:$0xf]  ;;  %v10439_v30 = vor.u32 %v13022_v21, %v10436_v22  ;;  %6765 = vmatpush.bf16.msrb.mxu2 %v10183_v26 }
 0x174   : > { %v9636_v28 = vld [vmem:[%s13942_s7 + $0x9a0] sm:$0xf0] }
 0x175   : > { %v12886_v29 = vld [vmem:[%s13942_s7 + $0xb84] sm:$0xf]  ;;  %v9639_v48 = vor.u32 %v12822_v27, %v9636_v28  ;;  %6779 = vmatpush.bf16.msrb.mxu3 %v10439_v30 }
 0x176   : > { %v9892_v33 = vld [vmem:[%s13942_s7 + $0xba0] sm:$0xf0] }
 0x177   : > { %v12950_v34 = vld [vmem:[%s13942_s7 + $0xd84] sm:$0xf]  ;;  %v9895_v49 = vor.u32 %v12886_v29, %v9892_v33  ;;  %6738 = vmatpush.bf16.msrb.mxu0 %v9639_v48 }
 0x178   : > { %v10148_v37 = vld [vmem:[%s13942_s7 + $0xda0] sm:$0xf0] }
 0x179   : > { %v13014_v42 = vld [vmem:[%s13942_s7 + $0xf84] sm:$0xf]  ;;  %v10151_v50 = vor.u32 %v12950_v34, %v10148_v37  ;;  %6752 = vmatpush.bf16.msrb.mxu1 %v9895_v49 }
 0x17a   : > { %v10404_v45 = vld [vmem:[%s13942_s7 + $0xfa0] sm:$0xf0] }
 0x17b   : > { %v12814_v51 = vld [vmem:[%s13942_s7 + $0x944] sm:$0xf]  ;;  %v10407_v54 = vor.u32 %v13014_v42, %v10404_v45  ;;  %6766 = vmatpush.bf16.msrb.mxu2 %v10151_v50 }
 0x17c   : > { %v9604_v52 = vld [vmem:[%s13942_s7 + $0x960] sm:$0xf0] }
 0x17d   : > { %v12878_v53 = vld [vmem:[%s13942_s7 + $0xb44] sm:$0xf]  ;;  %v9607_v61 = vor.u32 %v12814_v51, %v9604_v52  ;;  %6780 = vmatpush.bf16.msrb.mxu3 %v10407_v54 }
 0x17e   : > { %v9860_v55 = vld [vmem:[%s13942_s7 + $0xb60] sm:$0xf0] }
 0x17f   : > { %v12942_v56 = vld [vmem:[%s13942_s7 + $0xd44] sm:$0xf]  ;;  %v9863_v62 = vor.u32 %v12878_v53, %v9860_v55  ;;  %6739 = vmatpush.bf16.msrb.mxu0 %v9607_v61 }
 0x180   : > { %v10116_v57 = vld [vmem:[%s13942_s7 + $0xd60] sm:$0xf0] }
 0x181   : > { %v13006_v59 = vld [vmem:[%s13942_s7 + $0xf44] sm:$0xf]  ;;  %v10119_v63 = vor.u32 %v12942_v56, %v10116_v57  ;;  %6753 = vmatpush.bf16.msrb.mxu1 %v9863_v62 }
 0x182   : > { %v10372_v60 = vld [vmem:[%s13942_s7 + $0xf60] sm:$0xf0] }
 0x183   : > { %v12806_v0 = vld [vmem:[%s13942_s7 + $0x904] sm:$0xf]  ;;  %v10375_v4 = vor.u32 %v13006_v59, %v10372_v60  ;;  %6767 = vmatpush.bf16.msrb.mxu2 %v10119_v63 }
 0x184   : > { %v9572_v2 = vld [vmem:[%s13942_s7 + $0x920] sm:$0xf0] }
 0x185   : > { %v12870_v3 = vld [vmem:[%s13942_s7 + $0xb04] sm:$0xf]  ;;  %v9575_v11 = vor.u32 %v12806_v0, %v9572_v2  ;;  %6781 = vmatpush.bf16.msrb.mxu3 %v10375_v4 }
 0x186   : > { %v9828_v5 = vld [vmem:[%s13942_s7 + $0xb20] sm:$0xf0] }
 0x187   : > { %v12934_v6 = vld [vmem:[%s13942_s7 + $0xd04] sm:$0xf]  ;;  %v9831_v12 = vor.u32 %v12870_v3, %v9828_v5  ;;  %6740 = vmatpush.bf16.msrb.mxu0 %v9575_v11 }
 0x188   : > { %v10084_v7 = vld [vmem:[%s13942_s7 + $0xd20] sm:$0xf0] }
 0x189   : > { %v12998_v8 = vld [vmem:[%s13942_s7 + $0xf04] sm:$0xf]  ;;  %v10087_v13 = vor.u32 %v12934_v6, %v10084_v7  ;;  %6754 = vmatpush.bf16.msrb.mxu1 %v9831_v12 }
 0x18a   : > { %v10340_v9 = vld [vmem:[%s13942_s7 + $0xf20] sm:$0xf0] }
 0x18b   : > { %v12798_v14 = vld [vmem:[%s13942_s7 + $0x8c4] sm:$0xf]  ;;  %v10343_v18 = vor.u32 %v12998_v8, %v10340_v9  ;;  %6768 = vmatpush.bf16.msrb.mxu2 %v10087_v13 }
 0x18c   : > { %v9540_v15 = vld [vmem:[%s13942_s7 + $0x8e0] sm:$0xf0] }
 0x18d   : > { %v12862_v16 = vld [vmem:[%s13942_s7 + $0xac4] sm:$0xf]  ;;  %v9543_v24 = vor.u32 %v12798_v14, %v9540_v15  ;;  %6782 = vmatpush.bf16.msrb.mxu3 %v10343_v18 }
 0x18e   : > { %v9796_v19 = vld [vmem:[%s13942_s7 + $0xae0] sm:$0xf0] }
 0x18f   : > { %v12926_v20 = vld [vmem:[%s13942_s7 + $0xcc4] sm:$0xf]  ;;  %v9799_v25 = vor.u32 %v12862_v16, %v9796_v19  ;;  %6741 = vmatpush.bf16.msrb.mxu0 %v9543_v24 }
 0x190   : > { %v10052_v21 = vld [vmem:[%s13942_s7 + $0xce0] sm:$0xf0] }
 0x191   : > { %v12990_v22 = vld [vmem:[%s13942_s7 + $0xec4] sm:$0xf]  ;;  %v10055_v26 = vor.u32 %v12926_v20, %v10052_v21  ;;  %6755 = vmatpush.bf16.msrb.mxu1 %v9799_v25 }
 0x192   : > { %v10308_v23 = vld [vmem:[%s13942_s7 + $0xee0] sm:$0xf0] }
 0x193   : > { %v12790_v27 = vld [vmem:[%s13942_s7 + $0x884] sm:$0xf]  ;;  %v10311_v30 = vor.u32 %v12990_v22, %v10308_v23  ;;  %6769 = vmatpush.bf16.msrb.mxu2 %v10055_v26 }
 0x194   : > { %v9508_v28 = vld [vmem:[%s13942_s7 + $0x8a0] sm:$0xf0] }
 0x195   : > { %v12854_v29 = vld [vmem:[%s13942_s7 + $0xa84] sm:$0xf]  ;;  %v9511_v48 = vor.u32 %v12790_v27, %v9508_v28  ;;  %6783 = vmatpush.bf16.msrb.mxu3 %v10311_v30 }
 0x196   : > { %v9764_v33 = vld [vmem:[%s13942_s7 + $0xaa0] sm:$0xf0] }
 0x197   : > { %v12918_v34 = vld [vmem:[%s13942_s7 + $0xc84] sm:$0xf]  ;;  %v9767_v49 = vor.u32 %v12854_v29, %v9764_v33  ;;  %6742 = vmatpush.bf16.msrb.mxu0 %v9511_v48 }
 0x198   : > { %v10020_v37 = vld [vmem:[%s13942_s7 + $0xca0] sm:$0xf0] }
 0x199   : > { %v12982_v42 = vld [vmem:[%s13942_s7 + $0xe84] sm:$0xf]  ;;  %v10023_v50 = vor.u32 %v12918_v34, %v10020_v37  ;;  %6756 = vmatpush.bf16.msrb.mxu1 %v9767_v49 }
 0x19a   : > { %v10276_v45 = vld [vmem:[%s13942_s7 + $0xea0] sm:$0xf0] }
 0x19b   : > { %v12782_v51 = vld [vmem:[%s13942_s7 + $0x844] sm:$0xf]  ;;  %v10279_v54 = vor.u32 %v12982_v42, %v10276_v45  ;;  %6770 = vmatpush.bf16.msrb.mxu2 %v10023_v50 }
 0x19c   : > { %v9476_v52 = vld [vmem:[%s13942_s7 + $0x860] sm:$0xf0] }
 0x19d   : > { %v12846_v53 = vld [vmem:[%s13942_s7 + $0xa44] sm:$0xf]  ;;  %v9479_v61 = vor.u32 %v12782_v51, %v9476_v52  ;;  %6784 = vmatpush.bf16.msrb.mxu3 %v10279_v54 }
 0x19e   : > { %v9732_v55 = vld [vmem:[%s13942_s7 + $0xa60] sm:$0xf0] }
 0x19f   : > { %v12910_v56 = vld [vmem:[%s13942_s7 + $0xc44] sm:$0xf]  ;;  %v9735_v0 = vor.u32 %v12846_v53, %v9732_v55  ;;  %6743 = vmatpush.bf16.msrb.mxu0 %v9479_v61 }
 0x1a0   : > { %v9988_v57 = vld [vmem:[%s13942_s7 + $0xc60] sm:$0xf0] }
 0x1a1   : > { %v12974_v59 = vld [vmem:[%s13942_s7 + $0xe44] sm:$0xf]  ;;  %v9991_v2 = vor.u32 %v12910_v56, %v9988_v57  ;;  %6757 = vmatpush.bf16.msrb.mxu1 %v9735_v0 }
 0x1a2   : > { %v10244_v60 = vld [vmem:[%s13942_s7 + $0xe60] sm:$0xf0] }
 0x1a3   : > { %v12774_v62 = vld [vmem:[%s13942_s7 + $0x804] sm:$0xf]  ;;  %v10247_v6 = vor.u32 %v12974_v59, %v10244_v60  ;;  %6771 = vmatpush.bf16.msrb.mxu2 %v9991_v2 }
 0x1a4   : > { %v9444_v63 = vld [vmem:[%s13942_s7 + $0x820] sm:$0xf0] }
 0x1a5   : > { %v12838_v3 = vld [vmem:[%s13942_s7 + $0xa04] sm:$0xf]  ;;  %v9447_v14 = vor.u32 %v12774_v62, %v9444_v63  ;;  %6785 = vmatpush.bf16.msrb.mxu3 %v10247_v6 }
 0x1a6   : > { %v9700_v4 = vld [vmem:[%s13942_s7 + $0xa20] sm:$0xf0] }
 0x1a7   : > { %v12902_v5 = vld [vmem:[%s13942_s7 + $0xc04] sm:$0xf]  ;;  %v9703_v19 = vor.u32 %v12838_v3, %v9700_v4  ;;  %6744 = vmatpush.bf16.msrb.mxu0 %v9447_v14 }
 0x1a8   : > { %v9956_v7 = vld [vmem:[%s13942_s7 + $0xc20] sm:$0xf0] }
 0x1a9   : > { %v12966_v8 = vld [vmem:[%s13942_s7 + $0xe04] sm:$0xf]  ;;  %v9959_v20 = vor.u32 %v12902_v5, %v9956_v7  ;;  %6758 = vmatpush.bf16.msrb.mxu1 %v9703_v19 }
 0x1aa   : > { %v10212_v9 = vld [vmem:[%s13942_s7 + $0xe20] sm:$0xf0]  ;;  %6745 = vmatmul.bf16.vlgmr.msrb.gmra.mxu0 %v14099_v39 }
 0x1ab   : > { %v13086_v11 = vld [vmem:[%s13942_s7 + $0x11c4] sm:$0xf]  ;;  %v10215_v23 = vor.u32 %v12966_v8, %v10212_v9  ;;  %6772 = vmatpush.bf16.msrb.mxu2 %v9959_v20 }
 0x1ac   : > { %v10692_v12 = vld [vmem:[%s13942_s7 + $0x11e0] sm:$0xf0]  ;;  %6759 = vmatmul.bf16.vlgmr.msrb.gmra.mxu1 %v14106_v44 }
 0x1ad   : > { %v13150_v13 = vld [vmem:[%s13942_s7 + $0x13c4] sm:$0xf]  ;;  %v10695_v24 = vor.u32 %v13086_v11, %v10692_v12  ;;  %6786 = vmatpush.bf16.msrb.mxu3 %v10215_v23 }
 0x1ae   : > { %v10948_v15 = vld [vmem:[%s13942_s7 + $0x13e0] sm:$0xf0]  ;;  %6773 = vmatmul.bf16.vlgmr.msrb.gmra.mxu2 %v14104_v43 }
 0x1af   : > { %v13214_v16 = vld [vmem:[%s13942_s7 + $0x15c4] sm:$0xf]  ;;  %v10951_v25 = vor.u32 %v13150_v13, %v10948_v15  ;;  %6793 = vmatpush.bf16.msra.mxu0 %v10695_v24 }
 0x1b0   : > { %v11204_v18 = vld [vmem:[%s13942_s7 + $0x15e0] sm:$0xf0]  ;;  %6787 = vmatmul.bf16.vlgmr.msrb.gmra.mxu3 %v14110_v47 }
 0x1b1   : > { %v13278_v21 = vld [vmem:[%s13942_s7 + $0x17c4] sm:$0xf]  ;;  %v11207_v26 = vor.u32 %v13214_v16, %v11204_v18  ;;  %6807 = vmatpush.bf16.msra.mxu1 %v10951_v25  ;;  %v14431_v25 = vpop.f32.mrf.mxu1 }
 0x1b2   : > { %v11460_v22 = vld [vmem:[%s13942_s7 + $0x17e0] sm:$0xf0] }
 0x1b3   : > { %v13078_v27 = vld [vmem:[%s13942_s7 + $0x1184] sm:$0xf]  ;;  %v11463_v30 = vor.u32 %v13278_v21, %v11460_v22  ;;  %6821 = vmatpush.bf16.msra.mxu2 %v11207_v26  ;;  %v14427_v22 = vpop.f32.mrf.mxu0 }
 0x1b4   : > { %v10660_v28 = vld [vmem:[%s13942_s7 + $0x11a0] sm:$0xf0] }
 0x1b5   : > { %v13142_v29 = vld [vmem:[%s13942_s7 + $0x1384] sm:$0xf]  ;;  %v10663_v48 = vor.u32 %v13078_v27, %v10660_v28  ;;  %6835 = vmatpush.bf16.msra.mxu3 %v11463_v30 }
 0x1b6   : > { %v10916_v33 = vld [vmem:[%s13942_s7 + $0x13a0] sm:$0xf0] }
 0x1b7   : > { %v13206_v34 = vld [vmem:[%s13942_s7 + $0x1584] sm:$0xf]  ;;  %v10919_v49 = vor.u32 %v13142_v29, %v10916_v33  ;;  %6794 = vmatpush.bf16.msra.mxu0 %v10663_v48 }
 0x1b8   : > { %v11172_v37 = vld [vmem:[%s13942_s7 + $0x15a0] sm:$0xf0] }
 0x1b9   : > { %v13270_v42 = vld [vmem:[%s13942_s7 + $0x1784] sm:$0xf]  ;;  %v11175_v50 = vor.u32 %v13206_v34, %v11172_v37  ;;  %6808 = vmatpush.bf16.msra.mxu1 %v10919_v49 }
 0x1ba   : > { %v11428_v45 = vld [vmem:[%s13942_s7 + $0x17a0] sm:$0xf0] }
 0x1bb   : > { %v13070_v51 = vld [vmem:[%s13942_s7 + $0x1144] sm:$0xf]  ;;  %v11431_v54 = vor.u32 %v13270_v42, %v11428_v45  ;;  %6822 = vmatpush.bf16.msra.mxu2 %v11175_v50 }
 0x1bc   : > { %v10628_v52 = vld [vmem:[%s13942_s7 + $0x1160] sm:$0xf0] }
 0x1bd   : > { %v13134_v53 = vld [vmem:[%s13942_s7 + $0x1344] sm:$0xf]  ;;  %v10631_v61 = vor.u32 %v13070_v51, %v10628_v52  ;;  %6836 = vmatpush.bf16.msra.mxu3 %v11431_v54 }
 0x1be   : > { %v10884_v55 = vld [vmem:[%s13942_s7 + $0x1360] sm:$0xf0] }
 0x1bf   : > { %v13198_v56 = vld [vmem:[%s13942_s7 + $0x1544] sm:$0xf]  ;;  %v10887_v62 = vor.u32 %v13134_v53, %v10884_v55  ;;  %6795 = vmatpush.bf16.msra.mxu0 %v10631_v61 }
 0x1c0   : > { %v11140_v57 = vld [vmem:[%s13942_s7 + $0x1560] sm:$0xf0] }
 0x1c1   : > { %v13262_v59 = vld [vmem:[%s13942_s7 + $0x1744] sm:$0xf]  ;;  %v11143_v63 = vor.u32 %v13198_v56, %v11140_v57  ;;  %6809 = vmatpush.bf16.msra.mxu1 %v10887_v62  ;;  %v14451_v57 = vpop.f32.mrf.mxu2 }
 0x1c2   : > { %v11396_v60 = vld [vmem:[%s13942_s7 + $0x1760] sm:$0xf0] }
 0x1c3   : > { %v13062_v0 = vld [vmem:[%s13942_s7 + $0x1104] sm:$0xf]  ;;  %v11399_v4 = vor.u32 %v13262_v59, %v11396_v60  ;;  %6823 = vmatpush.bf16.msra.mxu2 %v11143_v63  ;;  %v14456_v63 = vpop.f32.mrf.mxu3 }
 0x1c4   : > { %v10596_v2 = vld [vmem:[%s13942_s7 + $0x1120] sm:$0xf0] }
 0x1c5   : > { %v13126_v3 = vld [vmem:[%s13942_s7 + $0x1304] sm:$0xf]  ;;  %v10599_v11 = vor.u32 %v13062_v0, %v10596_v2  ;;  %6837 = vmatpush.bf16.msra.mxu3 %v11399_v4 }
 0x1c6   : > { %v10852_v5 = vld [vmem:[%s13942_s7 + $0x1320] sm:$0xf0] }
 0x1c7   : > { %v13190_v6 = vld [vmem:[%s13942_s7 + $0x1504] sm:$0xf]  ;;  %v10855_v12 = vor.u32 %v13126_v3, %v10852_v5  ;;  %6796 = vmatpush.bf16.msra.mxu0 %v10599_v11 }
 0x1c8   : > { %v11108_v7 = vld [vmem:[%s13942_s7 + $0x1520] sm:$0xf0] }
 0x1c9   : > { %v13254_v8 = vld [vmem:[%s13942_s7 + $0x1704] sm:$0xf]  ;;  %v11111_v13 = vor.u32 %v13190_v6, %v11108_v7  ;;  %6810 = vmatpush.bf16.msra.mxu1 %v10855_v12  ;;  %v14463_v7 = vpop.f32.mrf.mxu0 }
 0x1ca   : > { %v11364_v9 = vld [vmem:[%s13942_s7 + $0x1720] sm:$0xf0] }
 0x1cb   : > { %v13054_v14 = vld [vmem:[%s13942_s7 + $0x10c4] sm:$0xf]  ;;  %v11367_v18 = vor.u32 %v13254_v8, %v11364_v9  ;;  %6824 = vmatpush.bf16.msra.mxu2 %v11111_v13 }
 0x1cc   : > { %v10564_v15 = vld [vmem:[%s13942_s7 + $0x10e0] sm:$0xf0] }
 0x1cd   : > { %v13118_v16 = vld [vmem:[%s13942_s7 + $0x12c4] sm:$0xf]  ;;  %v10567_v26 = vor.u32 %v13054_v14, %v10564_v15  ;;  %6838 = vmatpush.bf16.msra.mxu3 %v11367_v18  ;;  %v14468_v14 = vpop.f32.mrf.mxu1 }
 0x1ce   : > { %v10820_v19 = vld [vmem:[%s13942_s7 + $0x12e0] sm:$0xf0] }
 0x1cf   : > { %v13182_v20 = vld [vmem:[%s13942_s7 + $0x14c4] sm:$0xf]  ;;  %v10823_v27 = vor.u32 %v13118_v16, %v10820_v19  ;;  %6797 = vmatpush.bf16.msra.mxu0 %v10567_v26 }
 0x1d0   : > { %v11076_v21 = vld [vmem:[%s13942_s7 + $0x14e0] sm:$0xf0] }
 0x1d1   : > { %v13246_v23 = vld [vmem:[%s13942_s7 + $0x16c4] sm:$0xf]  ;;  %v11079_v28 = vor.u32 %v13182_v20, %v11076_v21  ;;  %6811 = vmatpush.bf16.msra.mxu1 %v10823_v27 }
 0x1d2   : > { %v11332_v24 = vld [vmem:[%s13942_s7 + $0x16e0] sm:$0xf0] }
 0x1d3   : > { %v13046_v29 = vld [vmem:[%s13942_s7 + $0x1084] sm:$0xf]  ;;  %v11335_v34 = vor.u32 %v13246_v23, %v11332_v24  ;;  %6825 = vmatpush.bf16.msra.mxu2 %v11079_v28 }
 0x1d4   : > { %v10532_v30 = vld [vmem:[%s13942_s7 + $0x10a0] sm:$0xf0] }
 0x1d5   : > { %v13110_v33 = vld [vmem:[%s13942_s7 + $0x1284] sm:$0xf]  ;;  %v10535_v51 = vor.u32 %v13046_v29, %v10532_v30  ;;  %6839 = vmatpush.bf16.msra.mxu3 %v11335_v34 }
 0x1d6   : > { %v10788_v37 = vld [vmem:[%s13942_s7 + $0x12a0] sm:$0xf0] }
 0x1d7   : > { %v13174_v42 = vld [vmem:[%s13942_s7 + $0x1484] sm:$0xf]  ;;  %v10791_v52 = vor.u32 %v13110_v33, %v10788_v37  ;;  %6798 = vmatpush.bf16.msra.mxu0 %v10535_v51 }
 0x1d8   : > { %v11044_v45 = vld [vmem:[%s13942_s7 + $0x14a0] sm:$0xf0] }
 0x1d9   : > { %v13238_v48 = vld [vmem:[%s13942_s7 + $0x1684] sm:$0xf]  ;;  %v11047_v53 = vor.u32 %v13174_v42, %v11044_v45  ;;  %6812 = vmatpush.bf16.msra.mxu1 %v10791_v52 }
 0x1da   : > { %v11300_v49 = vld [vmem:[%s13942_s7 + $0x16a0] sm:$0xf0] }
 0x1db   : > { %v14446_v50 = vld [vmem:[%s14443_s24] sm:$0xff]  ;;  %v11303_v59 = vor.u32 %v13238_v48, %v11300_v49  ;;  %6826 = vmatpush.bf16.msra.mxu2 %v11047_v53 }
 0x1dc   : > { %v13038_v54 = vld [vmem:[%s13942_s7 + $0x1044] sm:$0xf]  ;;  %v1321_v3 = vperm.slane %v14446_v50, 0 }
 0x1dd   : > { %v10500_v55 = vld [vmem:[%s13942_s7 + $0x1060] sm:$0xf0]  ;;  %6840 = vmatpush.bf16.msra.mxu3 %v11303_v59 }
 0x1de   : > { %v13102_v56 = vld [vmem:[%s13942_s7 + $0x1244] sm:$0xf]  ;;  %v10503_v4 = vor.u32 %v13038_v54, %v10500_v55  ;;  %v6467_v45 = vadd.f32 %v14427_v22, %v1321_v3  ;;  %v14487_v54 = vpop.f32.mrf.mxu2 }
 0x1df   : > { %v10756_v60 = vld [vmem:[%s13942_s7 + $0x1260] sm:$0xf0] }
 0x1e0   : > { %v13166_v61 = vld [vmem:[%s13942_s7 + $0x1444] sm:$0xf]  ;;  %v10759_v8 = vor.u32 %v13102_v56, %v10756_v60  ;;  %6799 = vmatpush.bf16.msra.mxu0 %v10503_v4  ;;  %v6522_v4 = vpop.f32.mrf.mxu0 }
 0x1e1   : > { %v11012_v62 = vld [vmem:[%s13942_s7 + $0x1460] sm:$0xf0] }
 0x1e2   : > { %v13230_v0 = vld [vmem:[%s13942_s7 + $0x1644] sm:$0xf]  ;;  %v11015_v9 = vor.u32 %v13166_v61, %v11012_v62  ;;  %6813 = vmatpush.bf16.msra.mxu1 %v10759_v8  ;;  %v14492_v61 = vpop.f32.mrf.mxu3 }
 0x1e3   : > { %v11268_v2 = vld [vmem:[%s13942_s7 + $0x1660] sm:$0xf0] }
 0x1e4   : > { %v13030_v5 = vld [vmem:[%s13942_s7 + $0x1004] sm:$0xf]  ;;  %v11271_v15 = vor.u32 %v13230_v0, %v11268_v2  ;;  %6827 = vmatpush.bf16.msra.mxu2 %v11015_v9  ;;  %v6481_v2 = vadd.f32 %v14431_v25, %v6467_v45 }
 0x1e5   : > { %v10468_v6 = vld [vmem:[%s13942_s7 + $0x1020] sm:$0xf0] }
 0x1e6   : > { %v13094_v11 = vld [vmem:[%s13942_s7 + $0x1204] sm:$0xf]  ;;  %v10471_v24 = vor.u32 %v13030_v5, %v10468_v6  ;;  %6841 = vmatpush.bf16.msra.mxu3 %v11271_v15  ;;  %v14523_v45 = vpop.f32.mrf.mxu2 }
 0x1e7   : > { %v10724_v12 = vld [vmem:[%s13942_s7 + $0x1220] sm:$0xf0] }
 0x1e8   : > { %v13158_v13 = vld [vmem:[%s13942_s7 + $0x1404] sm:$0xf]  ;;  %v10727_v29 = vor.u32 %v13094_v11, %v10724_v12  ;;  %6800 = vmatpush.bf16.msra.mxu0 %v10471_v24  ;;  %v14500_v12 = vpop.f32.mrf.mxu1 }
 0x1e9   : > { %v10980_v16 = vld [vmem:[%s13942_s7 + $0x1420] sm:$0xf0] }
 0x1ea   : > { %v13222_v18 = vld [vmem:[%s13942_s7 + $0x1604] sm:$0xf]  ;;  %v10983_v30 = vor.u32 %v13158_v13, %v10980_v16  ;;  %6814 = vmatpush.bf16.msra.mxu1 %v10727_v29 }
 0x1eb   : > { %v11236_v19 = vld [vmem:[%s13942_s7 + $0x1620] sm:$0xf0]  ;;  %6801 = vmatmul.bf16.vlgmr.msra.gmra.mxu0 %v14175_v31 }
 0x1ec   : > { %v13342_v20 = vld [vmem:[%s13942_s7 + $0x19c4] sm:$0xf]  ;;  %v11239_v37 = vor.u32 %v13222_v18, %v11236_v19  ;;  %6828 = vmatpush.bf16.msra.mxu2 %v10983_v30 }
 0x1ed   : > { %v11716_v21 = vld [vmem:[%s13942_s7 + $0x19e0] sm:$0xf0]  ;;  %6815 = vmatmul.bf16.vlgmr.msra.gmra.mxu1 %v14182_v36 }
 0x1ee   : > { %v13406_v23 = vld [vmem:[%s13942_s7 + $0x1bc4] sm:$0xf]  ;;  %v11719_v42 = vor.u32 %v13342_v20, %v11716_v21  ;;  %6842 = vmatpush.bf16.msra.mxu3 %v11239_v37  ;;  %v6495_v21 = vadd.f32 %v14451_v57, %v6481_v2  ;;  %v6469_v37 = vadd.f32 %v14463_v7, %v1321_v3 }
 0x1ef   : > { %v11972_v26 = vld [vmem:[%s13942_s7 + $0x1be0] sm:$0xf0]  ;;  %6829 = vmatmul.bf16.vlgmr.msra.gmra.mxu2 %v14180_v35 }
 0x1f0   : > { %v13470_v27 = vld [vmem:[%s13942_s7 + $0x1dc4] sm:$0xf]  ;;  %v11975_v48 = vor.u32 %v13406_v23, %v11972_v26  ;;  %6849 = vmatpush.bf16.msrb.mxu0 %v11719_v42  ;;  %v14537_v2 = vpop.f32.mrf.mxu1 }
 0x1f1   : > { %v12228_v28 = vld [vmem:[%s13942_s7 + $0x1de0] sm:$0xf0]  ;;  %6843 = vmatmul.bf16.vlgmr.msra.gmra.mxu3 %v14186_v40 }
 0x1f2   : > { %v13534_v33 = vld [vmem:[%s13942_s7 + $0x1fc4] sm:$0xf]  ;;  %v12231_v49 = vor.u32 %v13470_v27, %v12228_v28  ;;  %6863 = vmatpush.bf16.msrb.mxu1 %v11975_v48 }
 0x1f3   : > { %v12484_v34 = vld [vmem:[%s13942_s7 + $0x1fe0] sm:$0xf0] }
 0x1f4   : > { %v13334_v51 = vld [vmem:[%s13942_s7 + $0x1984] sm:$0xf]  ;;  %v12487_v55 = vor.u32 %v13534_v33, %v12484_v34  ;;  %6877 = vmatpush.bf16.msrb.mxu2 %v12231_v49  ;;  %v6509_v49 = vadd.f32 %v14456_v63, %v6495_v21  ;;  %v6483_v63 = vadd.f32 %v14468_v14, %v6469_v37 }
 0x1f5   : > { %v11684_v52 = vld [vmem:[%s13942_s7 + $0x19a0] sm:$0xf0] }
 0x1f6   : > { %v13398_v53 = vld [vmem:[%s13942_s7 + $0x1b84] sm:$0xf]  ;;  %v11687_v0 = vor.u32 %v13334_v51, %v11684_v52  ;;  %6891 = vmatpush.bf16.msrb.mxu3 %v12487_v55  ;;  %v14526_v51 = vpop.f32.mrf.mxu3 }
 0x1f7   : > { %v11940_v56 = vld [vmem:[%s13942_s7 + $0x1ba0] sm:$0xf0] }
 0x1f8   : > { %v13462_v59 = vld [vmem:[%s13942_s7 + $0x1d84] sm:$0xf]  ;;  %v11943_v5 = vor.u32 %v13398_v53, %v11940_v56  ;;  %6850 = vmatpush.bf16.msrb.mxu0 %v11687_v0 }
 0x1f9   : > { %v12196_v60 = vld [vmem:[%s13942_s7 + $0x1da0] sm:$0xf0] }
 0x1fa   : > { %v13526_v22 = vld [vmem:[%s13942_s7 + $0x1f84] sm:$0xf]  ;;  %v12199_v6 = vor.u32 %v13462_v59, %v12196_v60  ;;  %6864 = vmatpush.bf16.msrb.mxu1 %v11943_v5 }
 0x1fb   : > { %v12452_v62 = vld [vmem:[%s13942_s7 + $0x1fa0] sm:$0xf0] }
 0x1fc   : > { %v13326_v8 = vld [vmem:[%s13942_s7 + $0x1944] sm:$0xf]  ;;  %v12455_v13 = vor.u32 %v13526_v22, %v12452_v62  ;;  %6878 = vmatpush.bf16.msrb.mxu2 %v12199_v6  ;;  %v6524_v22 = vpop.f32.mrf.mxu0  ;;  %v6523_v6 = vadd.f32 %v6522_v4, %v6509_v49 }
 0x1fd   : > { %v11652_v9 = vld [vmem:[%s13942_s7 + $0x1960] sm:$0xf0] }
 0x1fe   : > { %v13390_v11 = vld [vmem:[%s13942_s7 + $0x1b44] sm:$0xf]  ;;  %v11655_v20 = vor.u32 %v13326_v8, %v11652_v9  ;;  %6892 = vmatpush.bf16.msrb.mxu3 %v12455_v13 }
 0x1ff   : > { %v11908_v15 = vld [vmem:[%s13942_s7 + $0x1b60] sm:$0xf0] }
 0x200   : > { %v13454_v25 = vld [vmem:[%s13942_s7 + $0x1d44] sm:$0xf]  ;;  %v11911_v23 = vor.u32 %v13390_v11, %v11908_v15  ;;  %6851 = vmatpush.bf16.msrb.mxu0 %v11655_v20 }
 0x201   : > { %v12164_v16 = vld [vmem:[%s13942_s7 + $0x1d60] sm:$0xf0] }
 0x202   : > { %v13518_v18 = vld [vmem:[%s13942_s7 + $0x1f44] sm:$0xf]  ;;  %v12167_v24 = vor.u32 %v13454_v25, %v12164_v16  ;;  %6865 = vmatpush.bf16.msrb.mxu1 %v11911_v23  ;;  %v6537_v23 = vadd.f32 %v14500_v12, %v6523_v6 }
 0x203   : > { %v12420_v19 = vld [vmem:[%s13942_s7 + $0x1f60] sm:$0xf0] }
 0x204   : > { %v13318_v26 = vld [vmem:[%s13942_s7 + $0x1904] sm:$0xf]  ;;  %v12423_v29 = vor.u32 %v13518_v18, %v12420_v19  ;;  %6879 = vmatpush.bf16.msrb.mxu2 %v12167_v24  ;;  %v6497_v19 = vadd.f32 %v14487_v54, %v6483_v63  ;;  %v6552_v54 = vpop.f32.mrf.mxu2 }
 0x205   : > { %v11620_v27 = vld [vmem:[%s13942_s7 + $0x1920] sm:$0xf0] }
 0x206   : > { %v13382_v28 = vld [vmem:[%s13942_s7 + $0x1b04] sm:$0xf]  ;;  %v11623_v48 = vor.u32 %v13318_v26, %v11620_v27  ;;  %6893 = vmatpush.bf16.msrb.mxu3 %v12423_v29  ;;  %v6511_v12 = vadd.f32 %v14492_v61, %v6497_v19  ;;  %v9418_v19 = vld [vmem:[%s13942_s7 + $0x7c8] sm:$0xf] }
 0x207   : > { %v11876_v30 = vld [vmem:[%s13942_s7 + $0x1b20] sm:$0xf0] }
 0x208   : > { %v13446_v33 = vld [vmem:[%s13942_s7 + $0x1d04] sm:$0xf]  ;;  %v11879_v50 = vor.u32 %v13382_v28, %v11876_v30  ;;  %6852 = vmatpush.bf16.msrb.mxu0 %v11623_v48  ;;  %v6525_v6 = vadd.f32 %v6524_v22, %v6511_v12  ;;  %v12771_v22 = vld [vmem:[%s13942_s7 + $0x7e4] sm:$0xf0] }
 0x209   : > { %v12132_v34 = vld [vmem:[%s13942_s7 + $0x1d20] sm:$0xf0]  ;;  %v12699_v12 = vld [vmem:[%s13942_s7 + $0x5a4] sm:$0xf0] }
 0x20a   : > { %v13510_v57 = vld [vmem:[%s13942_s7 + $0x1f04] sm:$0xf]  ;;  %v12135_v52 = vor.u32 %v13446_v33, %v12132_v34  ;;  %6866 = vmatpush.bf16.msrb.mxu1 %v11879_v50  ;;  %v6592_v50 = vpop.f32.mrf.mxu1 }
 0x20b   : > { %v12388_v42 = vld [vmem:[%s13942_s7 + $0x1f20] sm:$0xf0] }
 0x20c   : > { %v13310_v3 = vld [vmem:[%s13942_s7 + $0x18c4] sm:$0xf]  ;;  %v12391_v55 = vor.u32 %v13510_v57, %v12388_v42  ;;  %6880 = vmatpush.bf16.msrb.mxu2 %v12135_v52  ;;  %v14556_v57 = vpop.f32.mrf.mxu3  ;;  %v6578_v42 = vpop.f32.mrf.mxu0 }
 0x20d   : > { %v11588_v7 = vld [vmem:[%s13942_s7 + $0x18e0] sm:$0xf0] }
 0x20e   : > { %v13374_v53 = vld [vmem:[%s13942_s7 + $0x1ac4] sm:$0xf]  ;;  %v11591_v5 = vor.u32 %v13310_v3, %v11588_v7  ;;  %6894 = vmatpush.bf16.msrb.mxu3 %v12391_v55 }
 0x20f   : > { %v11844_v56 = vld [vmem:[%s13942_s7 + $0x1ae0] sm:$0xf0] }
 0x210   : > { %v13438_v59 = vld [vmem:[%s13942_s7 + $0x1cc4] sm:$0xf]  ;;  %v11847_v8 = vor.u32 %v13374_v53, %v11844_v56  ;;  %6853 = vmatpush.bf16.msrb.mxu0 %v11591_v5  ;;  %v6551_v53 = vadd.f32 %v14523_v45, %v6537_v23  ;;  %v8650_v45 = vld [vmem:[%s13942_s7 + $0x1c8] sm:$0xf]  ;;  %v6539_v23 = vadd.f32 %v14537_v2, %v6525_v6 }
 0x211   : > { %v12100_v60 = vld [vmem:[%s13942_s7 + $0x1ce0] sm:$0xf0]  ;;  %v9386_v2 = vld [vmem:[%s13942_s7 + $0x788] sm:$0xf] }
 0x212   : > { %v13502_v62 = vld [vmem:[%s13942_s7 + $0x1ec4] sm:$0xf]  ;;  %v12103_v9 = vor.u32 %v13438_v59, %v12100_v60  ;;  %6867 = vmatpush.bf16.msrb.mxu1 %v11847_v8  ;;  %v12579_v8 = vld [vmem:[%s13942_s7 + $0x1e4] sm:$0xf0] }
 0x213   : > { %v12356_v0 = vld [vmem:[%s13942_s7 + $0x1ee0] sm:$0xf0]  ;;  %v12755_v6 = vld [vmem:[%s13942_s7 + $0x764] sm:$0xf0] }
 0x214   : > { %v13302_v11 = vld [vmem:[%s13942_s7 + $0x1884] sm:$0xf]  ;;  %v12359_v15 = vor.u32 %v13502_v62, %v12356_v0  ;;  %6881 = vmatpush.bf16.msrb.mxu2 %v12103_v9  ;;  %v8906_v9 = vld [vmem:[%s13942_s7 + $0x3c8] sm:$0xf] }
 0x215   : > { %v11556_v13 = vld [vmem:[%s13942_s7 + $0x18a0] sm:$0xf0] }
 0x216   : > { %v13366_v14 = vld [vmem:[%s13942_s7 + $0x1a84] sm:$0xf]  ;;  %v11559_v21 = vor.u32 %v13302_v11, %v11556_v13  ;;  %6895 = vmatpush.bf16.msrb.mxu3 %v12359_v15  ;;  %v12643_v13 = vld [vmem:[%s13942_s7 + $0x3e4] sm:$0xf0] }
 0x217   : > { %v11812_v25 = vld [vmem:[%s13942_s7 + $0x1aa0] sm:$0xf0]  ;;  %v12707_v15 = vld [vmem:[%s13942_s7 + $0x5e4] sm:$0xf0] }
 0x218   : > { %v13430_v16 = vld [vmem:[%s13942_s7 + $0x1c84] sm:$0xf]  ;;  %v11815_v24 = vor.u32 %v13366_v14, %v11812_v25  ;;  %6854 = vmatpush.bf16.msrb.mxu0 %v11559_v21  ;;  %v9162_v14 = vld [vmem:[%s13942_s7 + $0x5c8] sm:$0xf]  ;;  %v6565_v25 = vadd.f32 %v14526_v51, %v6551_v53  ;;  %v8651_v21 = vor.u32 %v12579_v8, %v8650_v45  ;;  %v6620_v51 = vpop.f32.mrf.mxu3 }
 0x219   : > { %v12068_v18 = vld [vmem:[%s13942_s7 + $0x1ca0] sm:$0xf0]  ;;  %v8554_v8 = vld [vmem:[%s13942_s7 + $0x108] sm:$0xf] }
 0x21a   : > { %v13494_v20 = vld [vmem:[%s13942_s7 + $0x1e84] sm:$0xf]  ;;  %v12071_v26 = vor.u32 %v13430_v16, %v12068_v18  ;;  %6868 = vmatpush.bf16.msrb.mxu1 %v11815_v24  ;;  %v6579_v24 = vadd.f32 %v6578_v42, %v6565_v25  ;;  %v12763_v42 = vld [vmem:[%s13942_s7 + $0x7a4] sm:$0xf0] }
 0x21b   : > { %v12324_v4 = vld [vmem:[%s13942_s7 + $0x1ea0] sm:$0xf0] }
 0x21c   : > { %v13294_v27 = vld [vmem:[%s13942_s7 + $0x1844] sm:$0xf]  ;;  %v12327_v30 = vor.u32 %v13494_v20, %v12324_v4  ;;  %6882 = vmatpush.bf16.msrb.mxu2 %v12071_v26  ;;  %v6606_v20 = vpop.f32.mrf.mxu2  ;;  %v8907_v26 = vor.u32 %v12643_v13, %v8906_v9  ;;  %v12555_v13 = vld [vmem:[%s13942_s7 + $0x124] sm:$0xf0] }
 0x21d   : > { %v11524_v28 = vld [vmem:[%s13942_s7 + $0x1860] sm:$0xf0] }
 0x21e   : > { %v13358_v29 = vld [vmem:[%s13942_s7 + $0x1a44] sm:$0xf]  ;;  %v11527_v52 = vor.u32 %v13294_v27, %v11524_v28  ;;  %6896 = vmatpush.bf16.msrb.mxu3 %v12327_v30  ;;  %v9163_v27 = vor.u32 %v12707_v15, %v9162_v14  ;;  %v8618_v28 = vld [vmem:[%s13942_s7 + $0x188] sm:$0xf] }
 0x21f   : > { %v11780_v33 = vld [vmem:[%s13942_s7 + $0x1a60] sm:$0xf0]  ;;  %v8874_v30 = vld [vmem:[%s13942_s7 + $0x388] sm:$0xf] }
 0x220   : > { %v13422_v34 = vld [vmem:[%s13942_s7 + $0x1c44] sm:$0xf]  ;;  %v11783_v61 = vor.u32 %v13358_v29, %v11780_v33  ;;  %6855 = vmatpush.bf16.msrb.mxu0 %v11527_v52  ;;  %v12571_v29 = vld [vmem:[%s13942_s7 + $0x1a4] sm:$0xf0]  ;;  %v9419_v33 = vor.u32 %v12771_v22, %v9418_v19  ;;  %v6594_v52 = vpop.f32.mrf.mxu1 }
 0x221   : > { %v12036_v37 = vld [vmem:[%s13942_s7 + $0x1c60] sm:$0xf0]  ;;  %v8810_v14 = vld [vmem:[%s13942_s7 + $0x308] sm:$0xf] }
 0x222   : > { %v13486_v48 = vld [vmem:[%s13942_s7 + $0x1e44] sm:$0xf]  ;;  %v12039_v55 = vor.u32 %v13422_v34, %v12036_v37  ;;  %6869 = vmatpush.bf16.msrb.mxu1 %v11783_v61  ;;  %v12635_v34 = vld [vmem:[%s13942_s7 + $0x3a4] sm:$0xf0] }
 0x223   : > { %v12292_v49 = vld [vmem:[%s13942_s7 + $0x1e60] sm:$0xf0]  ;;  %v9130_v37 = vld [vmem:[%s13942_s7 + $0x588] sm:$0xf]  ;;  %v8875_v53 = vor.u32 %v12635_v34, %v8874_v30 }
 0x224   : > { %v13286_v3 = vld [vmem:[%s13942_s7 + $0x1804] sm:$0xf]  ;;  %v12295_v63 = vor.u32 %v13486_v48, %v12292_v49  ;;  %6883 = vmatpush.bf16.msrb.mxu2 %v12039_v55  ;;  %v6553_v48 = vadd.f32 %v6552_v54, %v6539_v23  ;;  %v6580_v49 = vpop.f32.mrf.mxu0  ;;  %v9131_v54 = vor.u32 %v12699_v12, %v9130_v37  ;;  %v8586_v61 = vld [vmem:[%s13942_s7 + $0x148] sm:$0xf]  ;;  %v6608_v25 = vpop.f32.mrf.mxu2 }
 0x225   : > { %v11492_v7 = vld [vmem:[%s13942_s7 + $0x1820] sm:$0xf0]  ;;  %v12563_v55 = vld [vmem:[%s13942_s7 + $0x164] sm:$0xf0] }
 0x226   : > { %v13350_v56 = vld [vmem:[%s13942_s7 + $0x1a04] sm:$0xf]  ;;  %v11495_v11 = vor.u32 %v13286_v3, %v11492_v7  ;;  %6897 = vmatpush.bf16.msrb.mxu3 %v12295_v63  ;;  %v8619_v3 = vor.u32 %v12571_v29, %v8618_v28  ;;  %v6593_v7 = vadd.f32 %v6592_v50, %v6579_v24  ;;  %v9098_v63 = vld [vmem:[%s13942_s7 + $0x548] sm:$0xf]  ;;  %v6567_v50 = vadd.f32 %v14556_v57, %v6553_v48 }
 0x227   : > { %v11748_v59 = vld [vmem:[%s13942_s7 + $0x1a20] sm:$0xf0]  ;;  %v8587_v45 = vor.u32 %v12563_v55, %v8586_v61  ;;  %v12619_v15 = vld [vmem:[%s13942_s7 + $0x324] sm:$0xf0]  ;;  %v8555_v24 = vor.u32 %v12555_v13, %v8554_v8 }
 0x228   : > { %v13414_v60 = vld [vmem:[%s13942_s7 + $0x1c04] sm:$0xf]  ;;  %v11751_v16 = vor.u32 %v13350_v56, %v11748_v59  ;;  %6856 = vmatpush.bf16.msrb.mxu0 %v11495_v11  ;;  %v8842_v56 = vld [vmem:[%s13942_s7 + $0x348] sm:$0xf]  ;;  %v9387_v59 = vor.u32 %v12763_v42, %v9386_v2  ;;  %v6581_v9 = vadd.f32 %v6580_v49, %v6567_v50 }
 0x229   : > { %v12004_v62 = vld [vmem:[%s13942_s7 + $0x1c20] sm:$0xf0]  ;;  %v12683_v19 = vld [vmem:[%s13942_s7 + $0x524] sm:$0xf0] }
 0x22a   : > { %v13478_v0 = vld [vmem:[%s13942_s7 + $0x1e04] sm:$0xf]  ;;  %v12007_v18 = vor.u32 %v13414_v60, %v12004_v62  ;;  %6870 = vmatpush.bf16.msrb.mxu1 %v11751_v16  ;;  %v12627_v60 = vld [vmem:[%s13942_s7 + $0x364] sm:$0xf0]  ;;  %v6595_v28 = vadd.f32 %v6594_v52, %v6581_v9 }
 0x22b   : > { %v12260_v5 = vld [vmem:[%s13942_s7 + $0x1e20] sm:$0xf0]  ;;  %6857 = vmatmul.bf16.vlgmr.msrb.gmra.mxu0 %v14251_v32  ;;  %v12691_v62 = vld [vmem:[%s13942_s7 + $0x564] sm:$0xf0]  ;;  %v8843_v57 = vor.u32 %v12627_v60, %v8842_v56 }
 0x22c   : > { %v12263_v4 = vor.u32 %v13478_v0, %v12260_v5  ;;  %6884 = vmatpush.bf16.msrb.mxu2 %v12007_v18  ;;  %6905 = vmatpush.bf16.msra.mxu0 %v8651_v21  ;;  %v6607_v0 = vadd.f32 %v6606_v20, %v6593_v7  ;;  %v9354_v5 = vld [vmem:[%s13942_s7 + $0x748] sm:$0xf]  ;;  %v9099_v11 = vor.u32 %v12691_v62, %v9098_v63  ;;  %v6622_v20 = vpop.f32.mrf.mxu3  ;;  %v6662_v63 = vpop.f32.mrf.mxu2 }
 0x22d   : > { %6871 = vmatmul.bf16.vlgmr.msrb.gmra.mxu1 %v14258_v41  ;;  %v9355_v16 = vor.u32 %v12755_v6, %v9354_v5  ;;  %v9066_v18 = vld [vmem:[%s13942_s7 + $0x508] sm:$0xf]  ;;  %v6609_v2 = vadd.f32 %v6608_v25, %v6595_v28 }
 0x22e   : > { %6898 = vmatpush.bf16.msrb.mxu3 %v12263_v4  ;;  %6919 = vmatpush.bf16.msra.mxu1 %v8907_v26  ;;  %v6621_v22 = vadd.f32 %v6620_v51, %v6607_v0  ;;  %v6634_v4 = vpop.f32.mrf.mxu0  ;;  %v9322_v21 = vld [vmem:[%s13942_s7 + $0x708] sm:$0xf]  ;;  %v8811_v26 = vor.u32 %v12619_v15, %v8810_v14  ;;  %v9067_v51 = vor.u32 %v12683_v19, %v9066_v18 }
 0x22f   : > { %6885 = vmatmul.bf16.vlgmr.msrb.gmra.mxu2 %v14256_v38  ;;  %v12747_v23 = vld [vmem:[%s13942_s7 + $0x724] sm:$0xf0]  ;;  %v6623_v0 = vadd.f32 %v6622_v20, %v6609_v2 }
 0x230   : > { %6933 = vmatpush.bf16.msra.mxu2 %v9163_v27  ;;  %6906 = vmatpush.bf16.msra.mxu0 %v8619_v3  ;;  %v6648_v27 = vpop.f32.mrf.mxu1  ;;  %v6635_v29 = vadd.f32 %v6634_v4, %v6621_v22  ;;  %v8522_v30 = vld [vmem:[%s13942_s7 + $0xc8] sm:$0xf]  ;;  %v9323_v37 = vor.u32 %v12747_v23, %v9322_v21 }
 0x231   : > { %6899 = vmatmul.bf16.vlgmr.msrb.gmra.mxu3 %v14262_v46  ;;  %v8778_v34 = vld [vmem:[%s13942_s7 + $0x2c8] sm:$0xf] }
 0x232   : > { %6947 = vmatpush.bf16.msra.mxu3 %v9419_v33  ;;  %6920 = vmatpush.bf16.msra.mxu1 %v8875_v53  ;;  %v12547_v33 = vld [vmem:[%s13942_s7 + $0xe4] sm:$0xf0]  ;;  %v6649_v53 = vadd.f32 %v6648_v27, %v6635_v29 }
 0x233   : > { %v12611_v12 = vld [vmem:[%s13942_s7 + $0x2e4] sm:$0xf0]  ;;  %v8523_v3 = vor.u32 %v12547_v33, %v8522_v30 }
 0x234   : > { %6934 = vmatpush.bf16.msra.mxu2 %v9131_v54  ;;  %6907 = vmatpush.bf16.msra.mxu0 %v8587_v45  ;;  %v9034_v48 = vld [vmem:[%s13942_s7 + $0x4c8] sm:$0xf]  ;;  %v8779_v54 = vor.u32 %v12611_v12, %v8778_v34  ;;  %v6663_v5 = vadd.f32 %v6662_v63, %v6649_v53  ;;  %v6676_v45 = vpop.f32.mrf.mxu3 }
 0x235   : > { %v12675_v49 = vld [vmem:[%s13942_s7 + $0x4e4] sm:$0xf0] }
 0x236   : > { %6948 = vmatpush.bf16.msra.mxu3 %v9387_v59  ;;  %6921 = vmatpush.bf16.msra.mxu1 %v8843_v57  ;;  %v9290_v42 = vld [vmem:[%s13942_s7 + $0x6c8] sm:$0xf]  ;;  %v9035_v61 = vor.u32 %v12675_v49, %v9034_v48  ;;  %v6636_v6 = vpop.f32.mrf.mxu0  ;;  %v6677_v14 = vadd.f32 %v6676_v45, %v6663_v5  ;;  %v6664_v49 = vpop.f32.mrf.mxu2 }
 0x237   : > { %v12739_v52 = vld [vmem:[%s13942_s7 + $0x6e4] sm:$0xf0]  ;;  %v6637_v13 = vadd.f32 %v6636_v6, %v6623_v0 }
 0x238   : > { %6935 = vmatpush.bf16.msra.mxu2 %v9099_v11  ;;  %6908 = vmatpush.bf16.msra.mxu0 %v8555_v24  ;;  %v8490_v7 = vld [vmem:[%s13942_s7 + $0x88] sm:$0xf]  ;;  %v9291_v60 = vor.u32 %v12739_v52, %v9290_v42  ;;  %v6650_v22 = vpop.f32.mrf.mxu1  ;;  %v8249_v23 = vmax.f32 %v6677_v14, 0.0 }
 0x239   : > { %v12539_v55 = vld [vmem:[%s13942_s7 + $0xa4] sm:$0xf0] }
 0x23a   : > { %6949 = vmatpush.bf16.msra.mxu3 %v9355_v16  ;;  %6922 = vmatpush.bf16.msra.mxu1 %v8811_v26  ;;  %v8746_v56 = vld [vmem:[%s13942_s7 + $0x288] sm:$0xf]  ;;  %v8491_v57 = vor.u32 %v12539_v55, %v8490_v7  ;;  %8265 = vst [vmem:[%s14637_s11] sm:$0xff] %v8249_v23 }
 0x23b   : > { %v12603_v59 = vld [vmem:[%s13942_s7 + $0x2a4] sm:$0xf0] }
 0x23c   : > { %6936 = vmatpush.bf16.msra.mxu2 %v9067_v51  ;;  %v9002_v62 = vld [vmem:[%s13942_s7 + $0x488] sm:$0xf]  ;;  %6909 = vmatpush.bf16.msra.mxu0 %v8523_v3  ;;  %v8747_v11 = vor.u32 %v12603_v59, %v8746_v56  ;;  %v6651_v51 = vadd.f32 %v6650_v22, %v6637_v13  ;;  %v6678_v7 = vpop.f32.mrf.mxu3 }
 0x23d   : > { %v12667_v50 = vld [vmem:[%s13942_s7 + $0x4a4] sm:$0xf0] }
 0x23e   : > { %6950 = vmatpush.bf16.msra.mxu3 %v9323_v37  ;;  %v9258_v8 = vld [vmem:[%s13942_s7 + $0x688] sm:$0xf]  ;;  %6923 = vmatpush.bf16.msra.mxu1 %v8779_v54  ;;  %v9003_v15 = vor.u32 %v12667_v50, %v9002_v62  ;;  %v6665_v3 = vadd.f32 %v6664_v49, %v6651_v51 }
 0x23f   : > { %v12731_v9 = vld [vmem:[%s13942_s7 + $0x6a4] sm:$0xf0] }
 0x240   : > { %6937 = vmatpush.bf16.msra.mxu2 %v9035_v61  ;;  %v8458_v25 = vld [vmem:[%s13942_s7 + $0x48] sm:$0xf]  ;;  %v9259_v19 = vor.u32 %v12731_v9, %v9258_v8  ;;  %6910 = vmatpush.bf16.msra.mxu0 %v8491_v57  ;;  %v6679_v63 = vadd.f32 %v6678_v7, %v6665_v3 }
 0x241   : > { %v12531_v16 = vld [vmem:[%s13942_s7 + $0x64] sm:$0xf0] }
 0x242   : > { %v8714_v18 = vld [vmem:[%s13942_s7 + $0x248] sm:$0xf]  ;;  %6951 = vmatpush.bf16.msra.mxu3 %v9291_v60  ;;  %v8459_v27 = vor.u32 %v12531_v16, %v8458_v25  ;;  %6924 = vmatpush.bf16.msra.mxu1 %v8747_v11  ;;  %v8257_v9 = vmax.f32 %v6679_v63, 0.0 }
 0x243   : > { %v12595_v20 = vld [vmem:[%s13942_s7 + $0x264] sm:$0xf0] }
 0x244   : > { %v8970_v4 = vld [vmem:[%s13942_s7 + $0x448] sm:$0xf]  ;;  %6938 = vmatpush.bf16.msra.mxu2 %v9003_v15  ;;  %v8715_v30 = vor.u32 %v12595_v20, %v8714_v18  ;;  %6911 = vmatpush.bf16.msra.mxu0 %v8459_v27  ;;  %8273 = vst [vmem:[%s14637_s11 + $0x40] sm:$0xff] %v8257_v9 }
 0x245   : > { %v12659_v21 = vld [vmem:[%s13942_s7 + $0x464] sm:$0xf0] }
 0x246   : > { %v9226_v24 = vld [vmem:[%s13942_s7 + $0x648] sm:$0xf]  ;;  %v8971_v33 = vor.u32 %v12659_v21, %v8970_v4  ;;  %6952 = vmatpush.bf16.msra.mxu3 %v9259_v19  ;;  %6925 = vmatpush.bf16.msra.mxu1 %v8715_v30 }
 0x247   : > { %v12723_v26 = vld [vmem:[%s13942_s7 + $0x664] sm:$0xf0] }
 0x248   : > { %v8426_v28 = vld [vmem:[%s13942_s7 + $0x8] sm:$0xf]  ;;  %v9227_v48 = vor.u32 %v12723_v26, %v9226_v24  ;;  %6939 = vmatpush.bf16.msra.mxu2 %v8971_v33 }
 0x249   : > { %v12523_v29 = vld [vmem:[%s13942_s7 + $0x24] sm:$0xf0] }
 0x24a   : > { %v8682_v34 = vld [vmem:[%s13942_s7 + $0x208] sm:$0xf]  ;;  %v8427_v55 = vor.u32 %v12523_v29, %v8426_v28  ;;  %6953 = vmatpush.bf16.msra.mxu3 %v9227_v48 }
 0x24b   : > { %v12587_v37 = vld [vmem:[%s13942_s7 + $0x224] sm:$0xf0] }
 0x24c   : > { %v8938_v12 = vld [vmem:[%s13942_s7 + $0x408] sm:$0xf]  ;;  %v8683_v62 = vor.u32 %v12587_v37, %v8682_v34  ;;  %6912 = vmatpush.bf16.msra.mxu0 %v8427_v55 }
 0x24d   : > { %v12651_v2 = vld [vmem:[%s13942_s7 + $0x424] sm:$0xf0] }
 0x24e   : > { %v9194_v42 = vld [vmem:[%s13942_s7 + $0x608] sm:$0xf]  ;;  %v8939_v50 = vor.u32 %v12651_v2, %v8938_v12  ;;  %6926 = vmatpush.bf16.msra.mxu1 %v8683_v62 }
 0x24f   : > { %v12715_v52 = vld [vmem:[%s13942_s7 + $0x624] sm:$0xf0]  ;;  %6913 = vmatmul.bf16.vlgmr.msra.gmra.mxu0 %v14030_v58 }
 0x250   : > { %v9674_v53 = vld [vmem:[%s13942_s7 + $0x9c8] sm:$0xf]  ;;  %v9195_v6 = vor.u32 %v12715_v52, %v9194_v42  ;;  %6940 = vmatpush.bf16.msra.mxu2 %v8939_v50 }
 0x251   : > { %v12835_v54 = vld [vmem:[%s13942_s7 + $0x9e4] sm:$0xf0]  ;;  %6927 = vmatmul.bf16.vlgmr.msra.gmra.mxu1 %v14042_v10 }
 0x252   : > { %v9930_v61 = vld [vmem:[%s13942_s7 + $0xbc8] sm:$0xf]  ;;  %v9675_v45 = vor.u32 %v12835_v54, %v9674_v53  ;;  %6954 = vmatpush.bf16.msra.mxu3 %v9195_v6 }
 0x253   : > { %v12899_v56 = vld [vmem:[%s13942_s7 + $0xbe4] sm:$0xf0]  ;;  %6941 = vmatmul.bf16.vlgmr.msra.gmra.mxu2 %v14035_v1 }
 0x254   : > { %v10186_v59 = vld [vmem:[%s13942_s7 + $0xdc8] sm:$0xf]  ;;  %v9931_v57 = vor.u32 %v12899_v56, %v9930_v61  ;;  %6961 = vmatpush.bf16.msrb.mxu0 %v9675_v45 }
 0x255   : > { %v12963_v60 = vld [vmem:[%s13942_s7 + $0xde4] sm:$0xf0]  ;;  %6955 = vmatmul.bf16.vlgmr.msra.gmra.mxu3 %v14047_v17 }
 0x256   : > { %v10442_v0 = vld [vmem:[%s13942_s7 + $0xfc8] sm:$0xf]  ;;  %v10187_v11 = vor.u32 %v12963_v60, %v10186_v59  ;;  %6975 = vmatpush.bf16.msrb.mxu1 %v9931_v57 }
 0x257   : > { %v13027_v5 = vld [vmem:[%s13942_s7 + $0xfe4] sm:$0xf0] }
 0x258   : > { %v9642_v8 = vld [vmem:[%s13942_s7 + $0x988] sm:$0xf]  ;;  %v10443_v15 = vor.u32 %v13027_v5, %v10442_v0  ;;  %6989 = vmatpush.bf16.msrb.mxu2 %v10187_v11 }
 0x259   : > { %v12827_v13 = vld [vmem:[%s13942_s7 + $0x9a4] sm:$0xf0] }
 0x25a   : > { %v9898_v14 = vld [vmem:[%s13942_s7 + $0xb88] sm:$0xf]  ;;  %v9643_v20 = vor.u32 %v12827_v13, %v9642_v8  ;;  %7003 = vmatpush.bf16.msrb.mxu3 %v10443_v15 }
 0x25b   : > { %v12891_v25 = vld [vmem:[%s13942_s7 + $0xba4] sm:$0xf0] }
 0x25c   : > { %v10154_v16 = vld [vmem:[%s13942_s7 + $0xd88] sm:$0xf]  ;;  %v9899_v4 = vor.u32 %v12891_v25, %v9898_v14  ;;  %6962 = vmatpush.bf16.msrb.mxu0 %v9643_v20 }
 0x25d   : > { %v12955_v18 = vld [vmem:[%s13942_s7 + $0xda4] sm:$0xf0] }
 0x25e   : > { %v10410_v19 = vld [vmem:[%s13942_s7 + $0xf88] sm:$0xf]  ;;  %v10155_v21 = vor.u32 %v12955_v18, %v10154_v16  ;;  %6976 = vmatpush.bf16.msrb.mxu1 %v9899_v4 }
 0x25f   : > { %v13019_v22 = vld [vmem:[%s13942_s7 + $0xfa4] sm:$0xf0] }
 0x260   : > { %v9610_v23 = vld [vmem:[%s13942_s7 + $0x948] sm:$0xf]  ;;  %v10411_v27 = vor.u32 %v13019_v22, %v10410_v19  ;;  %6990 = vmatpush.bf16.msrb.mxu2 %v10155_v21 }
 0x261   : > { %v12819_v24 = vld [vmem:[%s13942_s7 + $0x964] sm:$0xf0] }
 0x262   : > { %v9866_v26 = vld [vmem:[%s13942_s7 + $0xb48] sm:$0xf]  ;;  %v9611_v34 = vor.u32 %v12819_v24, %v9610_v23  ;;  %7004 = vmatpush.bf16.msrb.mxu3 %v10411_v27 }
 0x263   : > { %v12883_v28 = vld [vmem:[%s13942_s7 + $0xb64] sm:$0xf0] }
 0x264   : > { %v10122_v29 = vld [vmem:[%s13942_s7 + $0xd48] sm:$0xf]  ;;  %v9867_v37 = vor.u32 %v12883_v28, %v9866_v26  ;;  %6963 = vmatpush.bf16.msrb.mxu0 %v9611_v34 }
 0x265   : > { %v12947_v51 = vld [vmem:[%s13942_s7 + $0xd64] sm:$0xf0] }
 0x266   : > { %v10378_v30 = vld [vmem:[%s13942_s7 + $0xf48] sm:$0xf]  ;;  %v10123_v12 = vor.u32 %v12947_v51, %v10122_v29  ;;  %6977 = vmatpush.bf16.msrb.mxu1 %v9867_v37 }
 0x267   : > { %v13011_v33 = vld [vmem:[%s13942_s7 + $0xf64] sm:$0xf0] }
 0x268   : > { %v9578_v48 = vld [vmem:[%s13942_s7 + $0x908] sm:$0xf]  ;;  %v10379_v42 = vor.u32 %v13011_v33, %v10378_v30  ;;  %6991 = vmatpush.bf16.msrb.mxu2 %v10123_v12 }
 0x269   : > { %v12811_v49 = vld [vmem:[%s13942_s7 + $0x924] sm:$0xf0] }
 0x26a   : > { %v9834_v2 = vld [vmem:[%s13942_s7 + $0xb08] sm:$0xf]  ;;  %v9579_v61 = vor.u32 %v12811_v49, %v9578_v48  ;;  %7005 = vmatpush.bf16.msrb.mxu3 %v10379_v42 }
 0x26b   : > { %v12875_v52 = vld [vmem:[%s13942_s7 + $0xb24] sm:$0xf0] }
 0x26c   : > { %v10090_v3 = vld [vmem:[%s13942_s7 + $0xd08] sm:$0xf]  ;;  %v9835_v55 = vor.u32 %v12875_v52, %v9834_v2  ;;  %6964 = vmatpush.bf16.msrb.mxu0 %v9579_v61 }
 0x26d   : > { %v12939_v7 = vld [vmem:[%s13942_s7 + $0xd24] sm:$0xf0] }
 0x26e   : > { %v10346_v53 = vld [vmem:[%s13942_s7 + $0xf08] sm:$0xf]  ;;  %v10091_v56 = vor.u32 %v12939_v7, %v10090_v3  ;;  %6978 = vmatpush.bf16.msrb.mxu1 %v9835_v55 }
 0x26f   : > { %v13003_v54 = vld [vmem:[%s13942_s7 + $0xf24] sm:$0xf0] }
 0x270   : > { %v9546_v59 = vld [vmem:[%s13942_s7 + $0x8c8] sm:$0xf]  ;;  %v10347_v62 = vor.u32 %v13003_v54, %v10346_v53  ;;  %6992 = vmatpush.bf16.msrb.mxu2 %v10091_v56 }
 0x271   : > { %v12803_v60 = vld [vmem:[%s13942_s7 + $0x8e4] sm:$0xf0] }
 0x272   : > { %v9802_v63 = vld [vmem:[%s13942_s7 + $0xac8] sm:$0xf]  ;;  %v9547_v8 = vor.u32 %v12803_v60, %v9546_v59  ;;  %7006 = vmatpush.bf16.msrb.mxu3 %v10347_v62 }
 0x273   : > { %v12867_v50 = vld [vmem:[%s13942_s7 + $0xae4] sm:$0xf0] }
 0x274   : > { %v10058_v0 = vld [vmem:[%s13942_s7 + $0xcc8] sm:$0xf]  ;;  %v9803_v9 = vor.u32 %v12867_v50, %v9802_v63  ;;  %6965 = vmatpush.bf16.msrb.mxu0 %v9547_v8 }
 0x275   : > { %v12931_v5 = vld [vmem:[%s13942_s7 + $0xce4] sm:$0xf0] }
 0x276   : > { %v10314_v6 = vld [vmem:[%s13942_s7 + $0xec8] sm:$0xf]  ;;  %v10059_v57 = vor.u32 %v12931_v5, %v10058_v0  ;;  %6979 = vmatpush.bf16.msrb.mxu1 %v9803_v9 }
 0x277   : > { %v12995_v45 = vld [vmem:[%s13942_s7 + $0xee4] sm:$0xf0] }
 0x278   : > { %v9514_v11 = vld [vmem:[%s13942_s7 + $0x888] sm:$0xf]  ;;  %v10315_v15 = vor.u32 %v12995_v45, %v10314_v6  ;;  %6993 = vmatpush.bf16.msrb.mxu2 %v10059_v57 }
 0x279   : > { %v12795_v13 = vld [vmem:[%s13942_s7 + $0x8a4] sm:$0xf0] }
 0x27a   : > { %v9770_v14 = vld [vmem:[%s13942_s7 + $0xa88] sm:$0xf]  ;;  %v9515_v20 = vor.u32 %v12795_v13, %v9514_v11  ;;  %7007 = vmatpush.bf16.msrb.mxu3 %v10315_v15 }
 0x27b   : > { %v12859_v25 = vld [vmem:[%s13942_s7 + $0xaa4] sm:$0xf0] }
 0x27c   : > { %v10026_v16 = vld [vmem:[%s13942_s7 + $0xc88] sm:$0xf]  ;;  %v9771_v4 = vor.u32 %v12859_v25, %v9770_v14  ;;  %6966 = vmatpush.bf16.msrb.mxu0 %v9515_v20 }
 0x27d   : > { %v12923_v18 = vld [vmem:[%s13942_s7 + $0xca4] sm:$0xf0] }
 0x27e   : > { %v10282_v19 = vld [vmem:[%s13942_s7 + $0xe88] sm:$0xf]  ;;  %v10027_v21 = vor.u32 %v12923_v18, %v10026_v16  ;;  %6980 = vmatpush.bf16.msrb.mxu1 %v9771_v4 }
 0x27f   : > { %v12987_v22 = vld [vmem:[%s13942_s7 + $0xea4] sm:$0xf0] }
 0x280   : > { %v9482_v23 = vld [vmem:[%s13942_s7 + $0x848] sm:$0xf]  ;;  %v10283_v27 = vor.u32 %v12987_v22, %v10282_v19  ;;  %6994 = vmatpush.bf16.msrb.mxu2 %v10027_v21 }
 0x281   : > { %v12787_v24 = vld [vmem:[%s13942_s7 + $0x864] sm:$0xf0] }
 0x282   : > { %v9738_v26 = vld [vmem:[%s13942_s7 + $0xa48] sm:$0xf]  ;;  %v9483_v34 = vor.u32 %v12787_v24, %v9482_v23  ;;  %7008 = vmatpush.bf16.msrb.mxu3 %v10283_v27 }
 0x283   : > { %v12851_v28 = vld [vmem:[%s13942_s7 + $0xa64] sm:$0xf0] }
 0x284   : > { %v9994_v29 = vld [vmem:[%s13942_s7 + $0xc48] sm:$0xf]  ;;  %v9739_v48 = vor.u32 %v12851_v28, %v9738_v26  ;;  %6967 = vmatpush.bf16.msrb.mxu0 %v9483_v34 }
 0x285   : > { %v12915_v51 = vld [vmem:[%s13942_s7 + $0xc64] sm:$0xf0] }
 0x286   : > { %v10250_v30 = vld [vmem:[%s13942_s7 + $0xe48] sm:$0xf]  ;;  %v9995_v49 = vor.u32 %v12915_v51, %v9994_v29  ;;  %6981 = vmatpush.bf16.msrb.mxu1 %v9739_v48 }
 0x287   : > { %v12979_v33 = vld [vmem:[%s13942_s7 + $0xe64] sm:$0xf0] }
 0x288   : > { %v9450_v37 = vld [vmem:[%s13942_s7 + $0x808] sm:$0xf]  ;;  %v10251_v3 = vor.u32 %v12979_v33, %v10250_v30  ;;  %6995 = vmatpush.bf16.msrb.mxu2 %v9995_v49 }
 0x289   : > { %v12779_v12 = vld [vmem:[%s13942_s7 + $0x824] sm:$0xf0] }
 0x28a   : > { %v9706_v2 = vld [vmem:[%s13942_s7 + $0xa08] sm:$0xf]  ;;  %v9451_v59 = vor.u32 %v12779_v12, %v9450_v37  ;;  %7009 = vmatpush.bf16.msrb.mxu3 %v10251_v3 }
 0x28b   : > { %v12843_v42 = vld [vmem:[%s13942_s7 + $0xa24] sm:$0xf0] }
 0x28c   : > { %v9962_v52 = vld [vmem:[%s13942_s7 + $0xc08] sm:$0xf]  ;;  %v9707_v50 = vor.u32 %v12843_v42, %v9706_v2  ;;  %6968 = vmatpush.bf16.msrb.mxu0 %v9451_v59 }
 0x28d   : > { %v12907_v7 = vld [vmem:[%s13942_s7 + $0xc24] sm:$0xf0] }
 0x28e   : > { %v10218_v53 = vld [vmem:[%s13942_s7 + $0xe08] sm:$0xf]  ;;  %v9963_v0 = vor.u32 %v12907_v7, %v9962_v52  ;;  %6982 = vmatpush.bf16.msrb.mxu1 %v9707_v50 }
 0x28f   : > { %v12971_v54 = vld [vmem:[%s13942_s7 + $0xe24] sm:$0xf0]  ;;  %6969 = vmatmul.bf16.vlgmr.msrb.gmra.mxu0 %v14099_v39 }
 0x290   : > { %v10698_v61 = vld [vmem:[%s13942_s7 + $0x11c8] sm:$0xf]  ;;  %v10219_v45 = vor.u32 %v12971_v54, %v10218_v53  ;;  %6996 = vmatpush.bf16.msrb.mxu2 %v9963_v0 }
 0x291   : > { %v13091_v55 = vld [vmem:[%s13942_s7 + $0x11e4] sm:$0xf0]  ;;  %6983 = vmatmul.bf16.vlgmr.msrb.gmra.mxu1 %v14106_v44 }
 0x292   : > { %v10954_v56 = vld [vmem:[%s13942_s7 + $0x13c8] sm:$0xf]  ;;  %v10699_v8 = vor.u32 %v13091_v55, %v10698_v61  ;;  %7010 = vmatpush.bf16.msrb.mxu3 %v10219_v45 }
 0x293   : > { %v13155_v60 = vld [vmem:[%s13942_s7 + $0x13e4] sm:$0xf0]  ;;  %6997 = vmatmul.bf16.vlgmr.msrb.gmra.mxu2 %v14104_v43 }
 0x294   : > { %v11210_v63 = vld [vmem:[%s13942_s7 + $0x15c8] sm:$0xf]  ;;  %v10955_v9 = vor.u32 %v13155_v60, %v10954_v56  ;;  %7017 = vmatpush.bf16.msra.mxu0 %v10699_v8 }
 0x295   : > { %v13219_v62 = vld [vmem:[%s13942_s7 + $0x15e4] sm:$0xf0]  ;;  %7011 = vmatmul.bf16.vlgmr.msrb.gmra.mxu3 %v14110_v47 }
 0x296   : > { %v11466_v5 = vld [vmem:[%s13942_s7 + $0x17c8] sm:$0xf]  ;;  %v11211_v57 = vor.u32 %v13219_v62, %v11210_v63  ;;  %7031 = vmatpush.bf16.msra.mxu1 %v10955_v9  ;;  %v14761_v9 = vpop.f32.mrf.mxu1 }
 0x297   : > { %v13283_v6 = vld [vmem:[%s13942_s7 + $0x17e4] sm:$0xf0] }
 0x298   : > { %v10666_v11 = vld [vmem:[%s13942_s7 + $0x1188] sm:$0xf]  ;;  %v11467_v15 = vor.u32 %v13283_v6, %v11466_v5  ;;  %7045 = vmatpush.bf16.msra.mxu2 %v11211_v57  ;;  %v14757_v6 = vpop.f32.mrf.mxu0 }
 0x299   : > { %v13083_v13 = vld [vmem:[%s13942_s7 + $0x11a4] sm:$0xf0] }
 0x29a   : > { %v10922_v14 = vld [vmem:[%s13942_s7 + $0x1388] sm:$0xf]  ;;  %v10667_v20 = vor.u32 %v13083_v13, %v10666_v11  ;;  %7059 = vmatpush.bf16.msra.mxu3 %v11467_v15 }
 0x29b   : > { %v13147_v25 = vld [vmem:[%s13942_s7 + $0x13a4] sm:$0xf0] }
 0x29c   : > { %v11178_v16 = vld [vmem:[%s13942_s7 + $0x1588] sm:$0xf]  ;;  %v10923_v4 = vor.u32 %v13147_v25, %v10922_v14  ;;  %7018 = vmatpush.bf16.msra.mxu0 %v10667_v20 }
 0x29d   : > { %v13211_v18 = vld [vmem:[%s13942_s7 + $0x15a4] sm:$0xf0] }
 0x29e   : > { %v11434_v19 = vld [vmem:[%s13942_s7 + $0x1788] sm:$0xf]  ;;  %v11179_v21 = vor.u32 %v13211_v18, %v11178_v16  ;;  %7032 = vmatpush.bf16.msra.mxu1 %v10923_v4 }
 0x29f   : > { %v13275_v22 = vld [vmem:[%s13942_s7 + $0x17a4] sm:$0xf0] }
 0x2a0   : > { %v10634_v23 = vld [vmem:[%s13942_s7 + $0x1148] sm:$0xf]  ;;  %v11435_v27 = vor.u32 %v13275_v22, %v11434_v19  ;;  %7046 = vmatpush.bf16.msra.mxu2 %v11179_v21 }
 0x2a1   : > { %v13075_v24 = vld [vmem:[%s13942_s7 + $0x1164] sm:$0xf0] }
 0x2a2   : > { %v10890_v26 = vld [vmem:[%s13942_s7 + $0x1348] sm:$0xf]  ;;  %v10635_v34 = vor.u32 %v13075_v24, %v10634_v23  ;;  %7060 = vmatpush.bf16.msra.mxu3 %v11435_v27 }
 0x2a3   : > { %v13139_v28 = vld [vmem:[%s13942_s7 + $0x1364] sm:$0xf0] }
 0x2a4   : > { %v11146_v29 = vld [vmem:[%s13942_s7 + $0x1548] sm:$0xf]  ;;  %v10891_v37 = vor.u32 %v13139_v28, %v10890_v26  ;;  %7019 = vmatpush.bf16.msra.mxu0 %v10635_v34 }
 0x2a5   : > { %v13203_v51 = vld [vmem:[%s13942_s7 + $0x1564] sm:$0xf0] }
 0x2a6   : > { %v11402_v30 = vld [vmem:[%s13942_s7 + $0x1748] sm:$0xf]  ;;  %v11147_v12 = vor.u32 %v13203_v51, %v11146_v29  ;;  %7033 = vmatpush.bf16.msra.mxu1 %v10891_v37  ;;  %v14774_v29 = vpop.f32.mrf.mxu2  ;;  %v14779_v37 = vpop.f32.mrf.mxu3 }
 0x2a7   : > { %v13267_v33 = vld [vmem:[%s13942_s7 + $0x1764] sm:$0xf0] }
 0x2a8   : > { %v10602_v48 = vld [vmem:[%s13942_s7 + $0x1108] sm:$0xf]  ;;  %v11403_v42 = vor.u32 %v13267_v33, %v11402_v30  ;;  %7047 = vmatpush.bf16.msra.mxu2 %v11147_v12 }
 0x2a9   : > { %v13067_v49 = vld [vmem:[%s13942_s7 + $0x1124] sm:$0xf0] }
 0x2aa   : > { %v10858_v2 = vld [vmem:[%s13942_s7 + $0x1308] sm:$0xf]  ;;  %v10603_v61 = vor.u32 %v13067_v49, %v10602_v48  ;;  %7061 = vmatpush.bf16.msra.mxu3 %v11403_v42 }
 0x2ab   : > { %v13131_v52 = vld [vmem:[%s13942_s7 + $0x1324] sm:$0xf0] }
 0x2ac   : > { %v11114_v3 = vld [vmem:[%s13942_s7 + $0x1508] sm:$0xf]  ;;  %v10859_v55 = vor.u32 %v13131_v52, %v10858_v2  ;;  %7020 = vmatpush.bf16.msra.mxu0 %v10603_v61 }
 0x2ad   : > { %v13195_v7 = vld [vmem:[%s13942_s7 + $0x1524] sm:$0xf0] }
 0x2ae   : > { %v11370_v53 = vld [vmem:[%s13942_s7 + $0x1708] sm:$0xf]  ;;  %v11115_v56 = vor.u32 %v13195_v7, %v11114_v3  ;;  %7034 = vmatpush.bf16.msra.mxu1 %v10859_v55  ;;  %v14789_v7 = vpop.f32.mrf.mxu0 }
 0x2af   : > { %v13259_v54 = vld [vmem:[%s13942_s7 + $0x1724] sm:$0xf0] }
 0x2b0   : > { %v10570_v59 = vld [vmem:[%s13942_s7 + $0x10c8] sm:$0xf]  ;;  %v11371_v62 = vor.u32 %v13259_v54, %v11370_v53  ;;  %7048 = vmatpush.bf16.msra.mxu2 %v11115_v56 }
 0x2b1   : > { %v13059_v60 = vld [vmem:[%s13942_s7 + $0x10e4] sm:$0xf0] }
 0x2b2   : > { %v10826_v63 = vld [vmem:[%s13942_s7 + $0x12c8] sm:$0xf]  ;;  %v10571_v57 = vor.u32 %v13059_v60, %v10570_v59  ;;  %7062 = vmatpush.bf16.msra.mxu3 %v11371_v62  ;;  %v14794_v59 = vpop.f32.mrf.mxu1 }
 0x2b3   : > { %v13123_v50 = vld [vmem:[%s13942_s7 + $0x12e4] sm:$0xf0] }
 0x2b4   : > { %v11082_v0 = vld [vmem:[%s13942_s7 + $0x14c8] sm:$0xf]  ;;  %v10827_v11 = vor.u32 %v13123_v50, %v10826_v63  ;;  %7021 = vmatpush.bf16.msra.mxu0 %v10571_v57 }
 0x2b5   : > { %v13187_v5 = vld [vmem:[%s13942_s7 + $0x14e4] sm:$0xf0] }
 0x2b6   : > { %v11338_v45 = vld [vmem:[%s13942_s7 + $0x16c8] sm:$0xf]  ;;  %v11083_v13 = vor.u32 %v13187_v5, %v11082_v0  ;;  %7035 = vmatpush.bf16.msra.mxu1 %v10827_v11 }
 0x2b7   : > { %v13251_v8 = vld [vmem:[%s13942_s7 + $0x16e4] sm:$0xf0] }
 0x2b8   : > { %v10538_v14 = vld [vmem:[%s13942_s7 + $0x1088] sm:$0xf]  ;;  %v11339_v16 = vor.u32 %v13251_v8, %v11338_v45  ;;  %7049 = vmatpush.bf16.msra.mxu2 %v11083_v13 }
 0x2b9   : > { %v13051_v15 = vld [vmem:[%s13942_s7 + $0x10a4] sm:$0xf0] }
 0x2ba   : > { %v10794_v25 = vld [vmem:[%s13942_s7 + $0x1288] sm:$0xf]  ;;  %v10539_v21 = vor.u32 %v13051_v15, %v10538_v14  ;;  %7063 = vmatpush.bf16.msra.mxu3 %v11339_v16 }
 0x2bb   : > { %v13115_v18 = vld [vmem:[%s13942_s7 + $0x12a4] sm:$0xf0] }
 0x2bc   : > { %v11050_v19 = vld [vmem:[%s13942_s7 + $0x1488] sm:$0xf]  ;;  %v10795_v23 = vor.u32 %v13115_v18, %v10794_v25  ;;  %7022 = vmatpush.bf16.msra.mxu0 %v10539_v21 }
 0x2bd   : > { %v13179_v22 = vld [vmem:[%s13942_s7 + $0x14a4] sm:$0xf0] }
 0x2be   : > { %v11306_v20 = vld [vmem:[%s13942_s7 + $0x1688] sm:$0xf]  ;;  %v11051_v24 = vor.u32 %v13179_v22, %v11050_v19  ;;  %7036 = vmatpush.bf16.msra.mxu1 %v10795_v23 }
 0x2bf   : > { %v13243_v4 = vld [vmem:[%s13942_s7 + $0x16a4] sm:$0xf0] }
 0x2c0   : > { %v10506_v26 = vld [vmem:[%s13942_s7 + $0x1048] sm:$0xf]  ;;  %v11307_v51 = vor.u32 %v13243_v4, %v11306_v20  ;;  %7050 = vmatpush.bf16.msra.mxu2 %v11051_v24 }
 0x2c1   : > { %v13043_v27 = vld [vmem:[%s13942_s7 + $0x1064] sm:$0xf0] }
 0x2c2   : > { %v10762_v28 = vld [vmem:[%s13942_s7 + $0x1248] sm:$0xf]  ;;  %v10507_v42 = vor.u32 %v13043_v27, %v10506_v26  ;;  %7064 = vmatpush.bf16.msra.mxu3 %v11307_v51  ;;  %v14813_v26 = vpop.f32.mrf.mxu2 }
 0x2c3   : > { %v13107_v30 = vld [vmem:[%s13942_s7 + $0x1264] sm:$0xf0] }
 0x2c4   : > { %v11018_v33 = vld [vmem:[%s13942_s7 + $0x1448] sm:$0xf]  ;;  %v10763_v53 = vor.u32 %v13107_v30, %v10762_v28  ;;  %7023 = vmatpush.bf16.msra.mxu0 %v10507_v42  ;;  %v6746_v42 = vpop.f32.mrf.mxu0 }
 0x2c5   : > { %v13171_v34 = vld [vmem:[%s13942_s7 + $0x1464] sm:$0xf0] }
 0x2c6   : > { %v11274_v12 = vld [vmem:[%s13942_s7 + $0x1648] sm:$0xf]  ;;  %v11019_v54 = vor.u32 %v13171_v34, %v11018_v33  ;;  %7037 = vmatpush.bf16.msra.mxu1 %v10763_v53  ;;  %v14818_v33 = vpop.f32.mrf.mxu3 }
 0x2c7   : > { %v13235_v48 = vld [vmem:[%s13942_s7 + $0x1664] sm:$0xf0] }
 0x2c8   : > { %v14784_v49 = vld [vmem:[%s14443_s24] sm:$0xff]  ;;  %v11275_v60 = vor.u32 %v13235_v48, %v11274_v12  ;;  %7051 = vmatpush.bf16.msra.mxu2 %v11019_v54 }
 0x2c9   : > { %v1322_v2 = vperm.slane %v14784_v49, 1  ;;  %v10474_v52 = vld [vmem:[%s13942_s7 + $0x1008] sm:$0xf] }
 0x2ca   : > { %v13035_v3 = vld [vmem:[%s13942_s7 + $0x1024] sm:$0xf0]  ;;  %7065 = vmatpush.bf16.msra.mxu3 %v11275_v60 }
 0x2cb   : > { %v10730_v61 = vld [vmem:[%s13942_s7 + $0x1208] sm:$0xf]  ;;  %v10475_v8 = vor.u32 %v13035_v3, %v10474_v52  ;;  %v6691_v22 = vadd.f32 %v14757_v6, %v1322_v2 }
 0x2cc   : > { %v13099_v55 = vld [vmem:[%s13942_s7 + $0x1224] sm:$0xf0] }
 0x2cd   : > { %v10986_v56 = vld [vmem:[%s13942_s7 + $0x1408] sm:$0xf]  ;;  %v10731_v14 = vor.u32 %v13099_v55, %v10730_v61  ;;  %7024 = vmatpush.bf16.msra.mxu0 %v10475_v8  ;;  %v6705_v48 = vadd.f32 %v14761_v9, %v6691_v22  ;;  %v14826_v55 = vpop.f32.mrf.mxu1  ;;  %v14849_v22 = vpop.f32.mrf.mxu2 }
 0x2ce   : > { %v13163_v63 = vld [vmem:[%s13942_s7 + $0x1424] sm:$0xf0] }
 0x2cf   : > { %v11242_v62 = vld [vmem:[%s13942_s7 + $0x1608] sm:$0xf]  ;;  %v10987_v15 = vor.u32 %v13163_v63, %v10986_v56  ;;  %7038 = vmatpush.bf16.msra.mxu1 %v10731_v14 }
 0x2d0   : > { %v13227_v50 = vld [vmem:[%s13942_s7 + $0x1624] sm:$0xf0]  ;;  %7025 = vmatmul.bf16.vlgmr.msra.gmra.mxu0 %v14175_v31 }
 0x2d1   : > { %v11722_v0 = vld [vmem:[%s13942_s7 + $0x19c8] sm:$0xf]  ;;  %v11243_v18 = vor.u32 %v13227_v50, %v11242_v62  ;;  %7052 = vmatpush.bf16.msra.mxu2 %v10987_v15 }
 0x2d2   : > { %v13347_v5 = vld [vmem:[%s13942_s7 + $0x19e4] sm:$0xf0]  ;;  %7039 = vmatmul.bf16.vlgmr.msra.gmra.mxu1 %v14182_v36 }
 0x2d3   : > { %v11978_v45 = vld [vmem:[%s13942_s7 + $0x1bc8] sm:$0xf]  ;;  %v11723_v19 = vor.u32 %v13347_v5, %v11722_v0  ;;  %7066 = vmatpush.bf16.msra.mxu3 %v11243_v18  ;;  %v6719_v5 = vadd.f32 %v14774_v29, %v6705_v48  ;;  %v6693_v18 = vadd.f32 %v14789_v7, %v1322_v2 }
 0x2d4   : > { %v13411_v57 = vld [vmem:[%s13942_s7 + $0x1be4] sm:$0xf0]  ;;  %7053 = vmatmul.bf16.vlgmr.msra.gmra.mxu2 %v14180_v35 }
 0x2d5   : > { %v12234_v11 = vld [vmem:[%s13942_s7 + $0x1dc8] sm:$0xf]  ;;  %v11979_v20 = vor.u32 %v13411_v57, %v11978_v45  ;;  %7073 = vmatpush.bf16.msrb.mxu0 %v11723_v19  ;;  %v14863_v48 = vpop.f32.mrf.mxu1 }
 0x2d6   : > { %v13475_v13 = vld [vmem:[%s13942_s7 + $0x1de4] sm:$0xf0]  ;;  %7067 = vmatmul.bf16.vlgmr.msra.gmra.mxu3 %v14186_v40 }
 0x2d7   : > { %v12490_v25 = vld [vmem:[%s13942_s7 + $0x1fc8] sm:$0xf]  ;;  %v12235_v4 = vor.u32 %v13475_v13, %v12234_v11  ;;  %7087 = vmatpush.bf16.msrb.mxu1 %v11979_v20 }
 0x2d8   : > { %v13539_v16 = vld [vmem:[%s13942_s7 + $0x1fe4] sm:$0xf0] }
 0x2d9   : > { %v11690_v21 = vld [vmem:[%s13942_s7 + $0x1988] sm:$0xf]  ;;  %v12491_v27 = vor.u32 %v13539_v16, %v12490_v25  ;;  %7101 = vmatpush.bf16.msrb.mxu2 %v12235_v4  ;;  %v6733_v4 = vadd.f32 %v14779_v37, %v6719_v5  ;;  %v6707_v37 = vadd.f32 %v14794_v59, %v6693_v18 }
 0x2da   : > { %v13339_v23 = vld [vmem:[%s13942_s7 + $0x19a4] sm:$0xf0] }
 0x2db   : > { %v11946_v24 = vld [vmem:[%s13942_s7 + $0x1b88] sm:$0xf]  ;;  %v11691_v12 = vor.u32 %v13339_v23, %v11690_v21  ;;  %7115 = vmatpush.bf16.msrb.mxu3 %v12491_v27  ;;  %v14852_v21 = vpop.f32.mrf.mxu3 }
 0x2dc   : > { %v13403_v28 = vld [vmem:[%s13942_s7 + $0x1ba4] sm:$0xf0] }
 0x2dd   : > { %v12202_v51 = vld [vmem:[%s13942_s7 + $0x1d88] sm:$0xf]  ;;  %v11947_v52 = vor.u32 %v13403_v28, %v11946_v24  ;;  %7074 = vmatpush.bf16.msrb.mxu0 %v11691_v12 }
 0x2de   : > { %v13467_v30 = vld [vmem:[%s13942_s7 + $0x1da4] sm:$0xf0] }
 0x2df   : > { %v12458_v6 = vld [vmem:[%s13942_s7 + $0x1f88] sm:$0xf]  ;;  %v12203_v3 = vor.u32 %v13467_v30, %v12202_v51  ;;  %7088 = vmatpush.bf16.msrb.mxu1 %v11947_v52 }
 0x2e0   : > { %v13531_v34 = vld [vmem:[%s13942_s7 + $0x1fa4] sm:$0xf0] }
 0x2e1   : > { %v11658_v53 = vld [vmem:[%s13942_s7 + $0x1948] sm:$0xf]  ;;  %v12459_v56 = vor.u32 %v13531_v34, %v12458_v6  ;;  %7102 = vmatpush.bf16.msrb.mxu2 %v12203_v3  ;;  %v6748_v6 = vpop.f32.mrf.mxu0  ;;  %v6747_v3 = vadd.f32 %v6746_v42, %v6733_v4 }
 0x2e2   : > { %v13331_v54 = vld [vmem:[%s13942_s7 + $0x1964] sm:$0xf0] }
 0x2e3   : > { %v11914_v61 = vld [vmem:[%s13942_s7 + $0x1b48] sm:$0xf]  ;;  %v11659_v0 = vor.u32 %v13331_v54, %v11658_v53  ;;  %7116 = vmatpush.bf16.msrb.mxu3 %v12459_v56 }
 0x2e4   : > { %v13395_v60 = vld [vmem:[%s13942_s7 + $0x1b64] sm:$0xf0] }
 0x2e5   : > { %v12170_v9 = vld [vmem:[%s13942_s7 + $0x1d48] sm:$0xf]  ;;  %v11915_v45 = vor.u32 %v13395_v60, %v11914_v61  ;;  %7075 = vmatpush.bf16.msrb.mxu0 %v11659_v0 }
 0x2e6   : > { %v13459_v63 = vld [vmem:[%s13942_s7 + $0x1d64] sm:$0xf0] }
 0x2e7   : > { %v12426_v62 = vld [vmem:[%s13942_s7 + $0x1f48] sm:$0xf]  ;;  %v12171_v8 = vor.u32 %v13459_v63, %v12170_v9  ;;  %7089 = vmatpush.bf16.msrb.mxu1 %v11915_v45  ;;  %v6761_v45 = vadd.f32 %v14826_v55, %v6747_v3 }
 0x2e8   : > { %v13523_v50 = vld [vmem:[%s13942_s7 + $0x1f64] sm:$0xf0] }
 0x2e9   : > { %v11626_v57 = vld [vmem:[%s13942_s7 + $0x1908] sm:$0xf]  ;;  %v12427_v14 = vor.u32 %v13523_v50, %v12426_v62  ;;  %7103 = vmatpush.bf16.msrb.mxu2 %v12171_v8  ;;  %v6721_v50 = vadd.f32 %v14813_v26, %v6707_v37  ;;  %v6776_v26 = vpop.f32.mrf.mxu2 }
 0x2ea   : > { %v13323_v11 = vld [vmem:[%s13942_s7 + $0x1924] sm:$0xf0] }
 0x2eb   : > { %v11882_v13 = vld [vmem:[%s13942_s7 + $0x1b08] sm:$0xf]  ;;  %v11627_v20 = vor.u32 %v13323_v11, %v11626_v57  ;;  %7117 = vmatpush.bf16.msrb.mxu3 %v12427_v14  ;;  %v6735_v55 = vadd.f32 %v14818_v33, %v6721_v50  ;;  %v12767_v50 = vld [vmem:[%s13942_s7 + $0x7cc] sm:$0xf] }
 0x2ec   : > { %v13387_v15 = vld [vmem:[%s13942_s7 + $0x1b24] sm:$0xf0] }
 0x2ed   : > { %v12138_v25 = vld [vmem:[%s13942_s7 + $0x1d08] sm:$0xf]  ;;  %v11883_v49 = vor.u32 %v13387_v15, %v11882_v13  ;;  %7076 = vmatpush.bf16.msrb.mxu0 %v11627_v20  ;;  %v6749_v3 = vadd.f32 %v6748_v6, %v6735_v55  ;;  %v9420_v6 = vld [vmem:[%s13942_s7 + $0x7e8] sm:$0xf0] }
 0x2ee   : > { %v13451_v16 = vld [vmem:[%s13942_s7 + $0x1d24] sm:$0xf0]  ;;  %v9132_v55 = vld [vmem:[%s13942_s7 + $0x5a8] sm:$0xf0] }
 0x2ef   : > { %v12394_v29 = vld [vmem:[%s13942_s7 + $0x1f08] sm:$0xf]  ;;  %v12139_v23 = vor.u32 %v13451_v16, %v12138_v25  ;;  %7090 = vmatpush.bf16.msrb.mxu1 %v11883_v49  ;;  %v6816_v49 = vpop.f32.mrf.mxu1 }
 0x2f0   : > { %v13515_v19 = vld [vmem:[%s13942_s7 + $0x1f24] sm:$0xf0] }
 0x2f1   : > { %v11594_v2 = vld [vmem:[%s13942_s7 + $0x18c8] sm:$0xf]  ;;  %v12395_v27 = vor.u32 %v13515_v19, %v12394_v29  ;;  %7104 = vmatpush.bf16.msrb.mxu2 %v12139_v23  ;;  %v14882_v29 = vpop.f32.mrf.mxu3  ;;  %v6802_v19 = vpop.f32.mrf.mxu0 }
 0x2f2   : > { %v13315_v7 = vld [vmem:[%s13942_s7 + $0x18e4] sm:$0xf0] }
 0x2f3   : > { %v11850_v24 = vld [vmem:[%s13942_s7 + $0x1ac8] sm:$0xf]  ;;  %v11595_v52 = vor.u32 %v13315_v7, %v11594_v2  ;;  %7118 = vmatpush.bf16.msrb.mxu3 %v12395_v27 }
 0x2f4   : > { %v13379_v28 = vld [vmem:[%s13942_s7 + $0x1ae4] sm:$0xf0] }
 0x2f5   : > { %v12106_v51 = vld [vmem:[%s13942_s7 + $0x1cc8] sm:$0xf]  ;;  %v11851_v53 = vor.u32 %v13379_v28, %v11850_v24  ;;  %7077 = vmatpush.bf16.msrb.mxu0 %v11595_v52  ;;  %v6775_v24 = vadd.f32 %v14849_v22, %v6761_v45  ;;  %v12575_v22 = vld [vmem:[%s13942_s7 + $0x1cc] sm:$0xf]  ;;  %v6763_v45 = vadd.f32 %v14863_v48, %v6749_v3 }
 0x2f6   : > { %v13443_v30 = vld [vmem:[%s13942_s7 + $0x1ce4] sm:$0xf0]  ;;  %v12759_v48 = vld [vmem:[%s13942_s7 + $0x78c] sm:$0xf] }
 0x2f7   : > { %v12362_v34 = vld [vmem:[%s13942_s7 + $0x1ec8] sm:$0xf]  ;;  %v12107_v54 = vor.u32 %v13443_v30, %v12106_v51  ;;  %7091 = vmatpush.bf16.msrb.mxu1 %v11851_v53  ;;  %v8652_v53 = vld [vmem:[%s13942_s7 + $0x1e8] sm:$0xf0] }
 0x2f8   : > { %v13507_v12 = vld [vmem:[%s13942_s7 + $0x1ee4] sm:$0xf0]  ;;  %v9356_v3 = vld [vmem:[%s13942_s7 + $0x768] sm:$0xf0] }
 0x2f9   : > { %v11562_v61 = vld [vmem:[%s13942_s7 + $0x1888] sm:$0xf]  ;;  %v12363_v60 = vor.u32 %v13507_v12, %v12362_v34  ;;  %7105 = vmatpush.bf16.msrb.mxu2 %v12107_v54  ;;  %v12639_v54 = vld [vmem:[%s13942_s7 + $0x3cc] sm:$0xf] }
 0x2fa   : > { %v13307_v56 = vld [vmem:[%s13942_s7 + $0x18a4] sm:$0xf0] }
 0x2fb   : > { %v11818_v59 = vld [vmem:[%s13942_s7 + $0x1a88] sm:$0xf]  ;;  %v11563_v5 = vor.u32 %v13307_v56, %v11562_v61  ;;  %7119 = vmatpush.bf16.msrb.mxu3 %v12363_v60  ;;  %v8908_v56 = vld [vmem:[%s13942_s7 + $0x3e8] sm:$0xf0] }
 0x2fc   : > { %v13371_v9 = vld [vmem:[%s13942_s7 + $0x1aa4] sm:$0xf0]  ;;  %v9164_v60 = vld [vmem:[%s13942_s7 + $0x5e8] sm:$0xf0] }
 0x2fd   : > { %v12074_v63 = vld [vmem:[%s13942_s7 + $0x1c88] sm:$0xf]  ;;  %v11819_v8 = vor.u32 %v13371_v9, %v11818_v59  ;;  %7078 = vmatpush.bf16.msrb.mxu0 %v11563_v5  ;;  %v12703_v59 = vld [vmem:[%s13942_s7 + $0x5cc] sm:$0xf]  ;;  %v6789_v9 = vadd.f32 %v14852_v21, %v6775_v24  ;;  %v8655_v5 = vor.u32 %v12575_v22, %v8652_v53  ;;  %v6844_v21 = vpop.f32.mrf.mxu3 }
 0x2fe   : > { %v13435_v62 = vld [vmem:[%s13942_s7 + $0x1ca4] sm:$0xf0]  ;;  %v12551_v53 = vld [vmem:[%s13942_s7 + $0x10c] sm:$0xf] }
 0x2ff   : > { %v12330_v0 = vld [vmem:[%s13942_s7 + $0x1e88] sm:$0xf]  ;;  %v12075_v57 = vor.u32 %v13435_v62, %v12074_v63  ;;  %7092 = vmatpush.bf16.msrb.mxu1 %v11819_v8  ;;  %v6803_v8 = vadd.f32 %v6802_v19, %v6789_v9  ;;  %v9388_v19 = vld [vmem:[%s13942_s7 + $0x7a8] sm:$0xf0] }
 0x300   : > { %v13499_v42 = vld [vmem:[%s13942_s7 + $0x1ea4] sm:$0xf0] }
 0x301   : > { %v11530_v11 = vld [vmem:[%s13942_s7 + $0x1848] sm:$0xf]  ;;  %v12331_v15 = vor.u32 %v13499_v42, %v12330_v0  ;;  %7106 = vmatpush.bf16.msrb.mxu2 %v12075_v57  ;;  %v6830_v0 = vpop.f32.mrf.mxu2  ;;  %v8911_v57 = vor.u32 %v12639_v54, %v8908_v56  ;;  %v8556_v56 = vld [vmem:[%s13942_s7 + $0x128] sm:$0xf0] }
 0x302   : > { %v13299_v13 = vld [vmem:[%s13942_s7 + $0x1864] sm:$0xf0] }
 0x303   : > { %v11786_v14 = vld [vmem:[%s13942_s7 + $0x1a48] sm:$0xf]  ;;  %v11531_v23 = vor.u32 %v13299_v13, %v11530_v11  ;;  %7120 = vmatpush.bf16.msrb.mxu3 %v12331_v15  ;;  %v9167_v11 = vor.u32 %v12703_v59, %v9164_v60  ;;  %v12567_v13 = vld [vmem:[%s13942_s7 + $0x18c] sm:$0xf] }
 0x304   : > { %v13363_v25 = vld [vmem:[%s13942_s7 + $0x1a64] sm:$0xf0]  ;;  %v12631_v15 = vld [vmem:[%s13942_s7 + $0x38c] sm:$0xf] }
 0x305   : > { %v12042_v16 = vld [vmem:[%s13942_s7 + $0x1c48] sm:$0xf]  ;;  %v11787_v33 = vor.u32 %v13363_v25, %v11786_v14  ;;  %7079 = vmatpush.bf16.msrb.mxu0 %v11531_v23  ;;  %v8620_v14 = vld [vmem:[%s13942_s7 + $0x1a8] sm:$0xf0]  ;;  %v9423_v25 = vor.u32 %v12767_v50, %v9420_v6  ;;  %v6818_v23 = vpop.f32.mrf.mxu1 }
 0x306   : > { %v13427_v18 = vld [vmem:[%s13942_s7 + $0x1c64] sm:$0xf0]  ;;  %v12615_v59 = vld [vmem:[%s13942_s7 + $0x30c] sm:$0xf] }
 0x307   : > { %v12298_v20 = vld [vmem:[%s13942_s7 + $0x1e48] sm:$0xf]  ;;  %v12043_v27 = vor.u32 %v13427_v18, %v12042_v16  ;;  %7093 = vmatpush.bf16.msrb.mxu1 %v11787_v33  ;;  %v8876_v16 = vld [vmem:[%s13942_s7 + $0x3a8] sm:$0xf0] }
 0x308   : > { %v13491_v4 = vld [vmem:[%s13942_s7 + $0x1e64] sm:$0xf0]  ;;  %v12695_v18 = vld [vmem:[%s13942_s7 + $0x58c] sm:$0xf]  ;;  %v8879_v24 = vor.u32 %v12631_v15, %v8876_v16 }
 0x309   : > { %v11498_v2 = vld [vmem:[%s13942_s7 + $0x1808] sm:$0xf]  ;;  %v12299_v37 = vor.u32 %v13491_v4, %v12298_v20  ;;  %7107 = vmatpush.bf16.msrb.mxu2 %v12043_v27  ;;  %v6777_v20 = vadd.f32 %v6776_v26, %v6763_v45  ;;  %v6804_v4 = vpop.f32.mrf.mxu0  ;;  %v9135_v26 = vor.u32 %v12695_v18, %v9132_v55  ;;  %v12559_v33 = vld [vmem:[%s13942_s7 + $0x14c] sm:$0xf]  ;;  %v6832_v9 = vpop.f32.mrf.mxu2 }
 0x30a   : > { %v13291_v7 = vld [vmem:[%s13942_s7 + $0x1824] sm:$0xf0]  ;;  %v8588_v27 = vld [vmem:[%s13942_s7 + $0x168] sm:$0xf0] }
 0x30b   : > { %v11754_v28 = vld [vmem:[%s13942_s7 + $0x1a08] sm:$0xf]  ;;  %v11499_v61 = vor.u32 %v13291_v7, %v11498_v2  ;;  %7121 = vmatpush.bf16.msrb.mxu3 %v12299_v37  ;;  %v8623_v2 = vor.u32 %v12567_v13, %v8620_v14  ;;  %v6817_v7 = vadd.f32 %v6816_v49, %v6803_v8  ;;  %v12687_v37 = vld [vmem:[%s13942_s7 + $0x54c] sm:$0xf]  ;;  %v6791_v49 = vadd.f32 %v14882_v29, %v6777_v20 }
 0x30c   : > { %v13355_v51 = vld [vmem:[%s13942_s7 + $0x1a24] sm:$0xf0]  ;;  %v8591_v22 = vor.u32 %v12559_v33, %v8588_v27  ;;  %v8812_v60 = vld [vmem:[%s13942_s7 + $0x328] sm:$0xf0]  ;;  %v8559_v8 = vor.u32 %v12551_v53, %v8556_v56 }
 0x30d   : > { %v12010_v30 = vld [vmem:[%s13942_s7 + $0x1c08] sm:$0xf]  ;;  %v11755_v63 = vor.u32 %v13355_v51, %v11754_v28  ;;  %7080 = vmatpush.bf16.msrb.mxu0 %v11499_v61  ;;  %v12623_v28 = vld [vmem:[%s13942_s7 + $0x34c] sm:$0xf]  ;;  %v9391_v51 = vor.u32 %v12759_v48, %v9388_v19  ;;  %v6805_v54 = vadd.f32 %v6804_v4, %v6791_v49 }
 0x30e   : > { %v13419_v34 = vld [vmem:[%s13942_s7 + $0x1c24] sm:$0xf0]  ;;  %v9068_v50 = vld [vmem:[%s13942_s7 + $0x528] sm:$0xf0] }
 0x30f   : > { %v12266_v12 = vld [vmem:[%s13942_s7 + $0x1e08] sm:$0xf]  ;;  %v12011_v62 = vor.u32 %v13419_v34, %v12010_v30  ;;  %7094 = vmatpush.bf16.msrb.mxu1 %v11755_v63  ;;  %v8844_v30 = vld [vmem:[%s13942_s7 + $0x368] sm:$0xf0]  ;;  %v6819_v13 = vadd.f32 %v6818_v23, %v6805_v54 }
 0x310   : > { %v13483_v52 = vld [vmem:[%s13942_s7 + $0x1e24] sm:$0xf0]  ;;  %7081 = vmatmul.bf16.vlgmr.msrb.gmra.mxu0 %v14251_v32  ;;  %v9100_v34 = vld [vmem:[%s13942_s7 + $0x568] sm:$0xf0]  ;;  %v8847_v29 = vor.u32 %v12623_v28, %v8844_v30 }
 0x311   : > { %v12267_v42 = vor.u32 %v13483_v52, %v12266_v12  ;;  %7108 = vmatpush.bf16.msrb.mxu2 %v12011_v62  ;;  %7129 = vmatpush.bf16.msra.mxu0 %v8655_v5  ;;  %v6831_v12 = vadd.f32 %v6830_v0, %v6817_v7  ;;  %v12751_v52 = vld [vmem:[%s13942_s7 + $0x74c] sm:$0xf]  ;;  %v9103_v61 = vor.u32 %v12687_v37, %v9100_v34  ;;  %v6846_v0 = vpop.f32.mrf.mxu3  ;;  %v6886_v37 = vpop.f32.mrf.mxu2 }
 0x312   : > { %7095 = vmatmul.bf16.vlgmr.msrb.gmra.mxu1 %v14258_v41  ;;  %v9359_v63 = vor.u32 %v12751_v52, %v9356_v3  ;;  %v12679_v62 = vld [vmem:[%s13942_s7 + $0x50c] sm:$0xf]  ;;  %v6833_v48 = vadd.f32 %v6832_v9, %v6819_v13 }
 0x313   : > { %7122 = vmatpush.bf16.msrb.mxu3 %v12267_v42  ;;  %7143 = vmatpush.bf16.msra.mxu1 %v8911_v57  ;;  %v6845_v6 = vadd.f32 %v6844_v21, %v6831_v12  ;;  %v6858_v42 = vpop.f32.mrf.mxu0  ;;  %v12743_v5 = vld [vmem:[%s13942_s7 + $0x70c] sm:$0xf]  ;;  %v8815_v57 = vor.u32 %v12615_v59, %v8812_v60  ;;  %v9071_v21 = vor.u32 %v12679_v62, %v9068_v50 }
 0x314   : > { %7109 = vmatmul.bf16.vlgmr.msrb.gmra.mxu2 %v14256_v38  ;;  %v9324_v45 = vld [vmem:[%s13942_s7 + $0x728] sm:$0xf0]  ;;  %v6847_v12 = vadd.f32 %v6846_v0, %v6833_v48 }
 0x315   : > { %7157 = vmatpush.bf16.msra.mxu2 %v9167_v11  ;;  %7130 = vmatpush.bf16.msra.mxu0 %v8623_v2  ;;  %v6872_v11 = vpop.f32.mrf.mxu1  ;;  %v6859_v14 = vadd.f32 %v6858_v42, %v6845_v6  ;;  %v12543_v15 = vld [vmem:[%s13942_s7 + $0xcc] sm:$0xf]  ;;  %v9327_v18 = vor.u32 %v12743_v5, %v9324_v45 }
 0x316   : > { %7123 = vmatmul.bf16.vlgmr.msrb.gmra.mxu3 %v14262_v46  ;;  %v12607_v16 = vld [vmem:[%s13942_s7 + $0x2cc] sm:$0xf] }
 0x317   : > { %7171 = vmatpush.bf16.msra.mxu3 %v9423_v25  ;;  %7144 = vmatpush.bf16.msra.mxu1 %v8879_v24  ;;  %v8524_v25 = vld [vmem:[%s13942_s7 + $0xe8] sm:$0xf0]  ;;  %v6873_v24 = vadd.f32 %v6872_v11, %v6859_v14 }
 0x318   : > { %v8780_v55 = vld [vmem:[%s13942_s7 + $0x2e8] sm:$0xf0]  ;;  %v8527_v2 = vor.u32 %v12543_v15, %v8524_v25 }
 0x319   : > { %7158 = vmatpush.bf16.msra.mxu2 %v9135_v26  ;;  %7131 = vmatpush.bf16.msra.mxu0 %v8591_v22  ;;  %v12671_v20 = vld [vmem:[%s13942_s7 + $0x4cc] sm:$0xf]  ;;  %v8783_v26 = vor.u32 %v12607_v16, %v8780_v55  ;;  %v6887_v52 = vadd.f32 %v6886_v37, %v6873_v24  ;;  %v6900_v22 = vpop.f32.mrf.mxu3 }
 0x31a   : > { %v9036_v4 = vld [vmem:[%s13942_s7 + $0x4e8] sm:$0xf0] }
 0x31b   : > { %7172 = vmatpush.bf16.msra.mxu3 %v9391_v51  ;;  %7145 = vmatpush.bf16.msra.mxu1 %v8847_v29  ;;  %v12735_v19 = vld [vmem:[%s13942_s7 + $0x6cc] sm:$0xf]  ;;  %v9039_v33 = vor.u32 %v12671_v20, %v9036_v4  ;;  %v6860_v3 = vpop.f32.mrf.mxu0  ;;  %v6901_v59 = vadd.f32 %v6900_v22, %v6887_v52  ;;  %v6888_v4 = vpop.f32.mrf.mxu2 }
 0x31c   : > { %v9292_v23 = vld [vmem:[%s13942_s7 + $0x6e8] sm:$0xf0]  ;;  %v6861_v56 = vadd.f32 %v6860_v3, %v6847_v12 }
 0x31d   : > { %7159 = vmatpush.bf16.msra.mxu2 %v9103_v61  ;;  %7132 = vmatpush.bf16.msra.mxu0 %v8559_v8  ;;  %v12535_v7 = vld [vmem:[%s13942_s7 + $0x8c] sm:$0xf]  ;;  %v9295_v30 = vor.u32 %v12735_v19, %v9292_v23  ;;  %v6874_v6 = vpop.f32.mrf.mxu1  ;;  %v8250_v45 = vmax.f32 %v6901_v59, 0.0 }
 0x31e   : > { %v8492_v27 = vld [vmem:[%s13942_s7 + $0xa8] sm:$0xf0]  ;;  %v6875_v15 = vadd.f32 %v6874_v6, %v6861_v56 }
 0x31f   : > { %7173 = vmatpush.bf16.msra.mxu3 %v9359_v63  ;;  %7146 = vmatpush.bf16.msra.mxu1 %v8815_v57  ;;  %v12599_v28 = vld [vmem:[%s13942_s7 + $0x28c] sm:$0xf]  ;;  %v8495_v29 = vor.u32 %v12535_v7, %v8492_v27  ;;  %8266 = vst [vmem:[%s14637_s11 + $0x8] sm:$0xff] %v8250_v45 }
 0x320   : > { %v8748_v51 = vld [vmem:[%s13942_s7 + $0x2a8] sm:$0xf0] }
 0x321   : > { %7160 = vmatpush.bf16.msra.mxu2 %v9071_v21  ;;  %v12663_v34 = vld [vmem:[%s13942_s7 + $0x48c] sm:$0xf]  ;;  %7133 = vmatpush.bf16.msra.mxu0 %v8527_v2  ;;  %v8751_v61 = vor.u32 %v12599_v28, %v8748_v51  ;;  %v6889_v2 = vadd.f32 %v6888_v4, %v6875_v15  ;;  %v6902_v7 = vpop.f32.mrf.mxu3 }
 0x322   : > { %v9004_v49 = vld [vmem:[%s13942_s7 + $0x4a8] sm:$0xf0] }
 0x323   : > { %7174 = vmatpush.bf16.msra.mxu3 %v9327_v18  ;;  %v12727_v53 = vld [vmem:[%s13942_s7 + $0x68c] sm:$0xf]  ;;  %7147 = vmatpush.bf16.msra.mxu1 %v8783_v26  ;;  %v9007_v60 = vor.u32 %v12663_v34, %v9004_v49  ;;  %v6903_v37 = vadd.f32 %v6902_v7, %v6889_v2 }
 0x324   : > { %v9260_v54 = vld [vmem:[%s13942_s7 + $0x6a8] sm:$0xf0] }
 0x325   : > { %7161 = vmatpush.bf16.msra.mxu2 %v9039_v33  ;;  %v12527_v9 = vld [vmem:[%s13942_s7 + $0x4c] sm:$0xf]  ;;  %v9263_v50 = vor.u32 %v12727_v53, %v9260_v54  ;;  %7134 = vmatpush.bf16.msra.mxu0 %v8495_v29  ;;  %v8258_v54 = vmax.f32 %v6903_v37, 0.0 }
 0x326   : > { %v8460_v63 = vld [vmem:[%s13942_s7 + $0x68] sm:$0xf0] }
 0x327   : > { %v12591_v62 = vld [vmem:[%s13942_s7 + $0x24c] sm:$0xf]  ;;  %7175 = vmatpush.bf16.msra.mxu3 %v9295_v30  ;;  %v8463_v11 = vor.u32 %v12527_v9, %v8460_v63  ;;  %7148 = vmatpush.bf16.msra.mxu1 %v8751_v61  ;;  %8274 = vst [vmem:[%s14637_s11 + $0x48] sm:$0xff] %v8258_v54 }
 0x328   : > { %v8716_v0 = vld [vmem:[%s13942_s7 + $0x268] sm:$0xf0] }
 0x329   : > { %v12655_v42 = vld [vmem:[%s13942_s7 + $0x44c] sm:$0xf]  ;;  %7162 = vmatpush.bf16.msra.mxu2 %v9007_v60  ;;  %v8719_v25 = vor.u32 %v12591_v62, %v8716_v0  ;;  %7135 = vmatpush.bf16.msra.mxu0 %v8463_v11 }
 0x32a   : > { %v8972_v5 = vld [vmem:[%s13942_s7 + $0x468] sm:$0xf0] }
 0x32b   : > { %v12719_v8 = vld [vmem:[%s13942_s7 + $0x64c] sm:$0xf]  ;;  %v8975_v16 = vor.u32 %v12655_v42, %v8972_v5  ;;  %7176 = vmatpush.bf16.msra.mxu3 %v9263_v50  ;;  %7149 = vmatpush.bf16.msra.mxu1 %v8719_v25 }
 0x32c   : > { %v9228_v57 = vld [vmem:[%s13942_s7 + $0x668] sm:$0xf0] }
 0x32d   : > { %v12519_v13 = vld [vmem:[%s13942_s7 + $0xc] sm:$0xf]  ;;  %v9231_v20 = vor.u32 %v12719_v8, %v9228_v57  ;;  %7163 = vmatpush.bf16.msra.mxu2 %v8975_v16 }
 0x32e   : > { %v8428_v14 = vld [vmem:[%s13942_s7 + $0x28] sm:$0xf0] }
 0x32f   : > { %v12583_v21 = vld [vmem:[%s13942_s7 + $0x20c] sm:$0xf]  ;;  %v8431_v27 = vor.u32 %v12519_v13, %v8428_v14  ;;  %7177 = vmatpush.bf16.msra.mxu3 %v9231_v20 }
 0x330   : > { %v8684_v18 = vld [vmem:[%s13942_s7 + $0x228] sm:$0xf0] }
 0x331   : > { %v12647_v55 = vld [vmem:[%s13942_s7 + $0x40c] sm:$0xf]  ;;  %v8687_v34 = vor.u32 %v12583_v21, %v8684_v18  ;;  %7136 = vmatpush.bf16.msra.mxu0 %v8431_v27 }
 0x332   : > { %v8940_v48 = vld [vmem:[%s13942_s7 + $0x428] sm:$0xf0] }
 0x333   : > { %v12711_v19 = vld [vmem:[%s13942_s7 + $0x60c] sm:$0xf]  ;;  %v8943_v49 = vor.u32 %v12647_v55, %v8940_v48  ;;  %7150 = vmatpush.bf16.msra.mxu1 %v8687_v34 }
 0x334   : > { %v9196_v23 = vld [vmem:[%s13942_s7 + $0x628] sm:$0xf0]  ;;  %7137 = vmatmul.bf16.vlgmr.msra.gmra.mxu0 %v14030_v58 }
 0x335   : > { %v12831_v24 = vld [vmem:[%s13942_s7 + $0x9cc] sm:$0xf]  ;;  %v9199_v3 = vor.u32 %v12711_v19, %v9196_v23  ;;  %7164 = vmatpush.bf16.msra.mxu2 %v8943_v49 }
 0x336   : > { %v9676_v26 = vld [vmem:[%s13942_s7 + $0x9e8] sm:$0xf0]  ;;  %7151 = vmatmul.bf16.vlgmr.msra.gmra.mxu1 %v14042_v10 }
 0x337   : > { %v12895_v33 = vld [vmem:[%s13942_s7 + $0xbcc] sm:$0xf]  ;;  %v9679_v22 = vor.u32 %v12831_v24, %v9676_v26  ;;  %7178 = vmatpush.bf16.msra.mxu3 %v9199_v3 }
 0x338   : > { %v9932_v28 = vld [vmem:[%s13942_s7 + $0xbe8] sm:$0xf0]  ;;  %7165 = vmatmul.bf16.vlgmr.msra.gmra.mxu2 %v14035_v1 }
 0x339   : > { %v12959_v51 = vld [vmem:[%s13942_s7 + $0xdcc] sm:$0xf]  ;;  %v9935_v29 = vor.u32 %v12895_v33, %v9932_v28  ;;  %7185 = vmatpush.bf16.msrb.mxu0 %v9679_v22 }
 0x33a   : > { %v10188_v30 = vld [vmem:[%s13942_s7 + $0xde8] sm:$0xf0]  ;;  %7179 = vmatmul.bf16.vlgmr.msra.gmra.mxu3 %v14047_v17 }
 0x33b   : > { %v13023_v12 = vld [vmem:[%s13942_s7 + $0xfcc] sm:$0xf]  ;;  %v10191_v61 = vor.u32 %v12959_v51, %v10188_v30  ;;  %7199 = vmatpush.bf16.msrb.mxu1 %v9935_v29 }
 0x33c   : > { %v10444_v52 = vld [vmem:[%s13942_s7 + $0xfe8] sm:$0xf0] }
 0x33d   : > { %v12823_v53 = vld [vmem:[%s13942_s7 + $0x98c] sm:$0xf]  ;;  %v10447_v60 = vor.u32 %v13023_v12, %v10444_v52  ;;  %7213 = vmatpush.bf16.msrb.mxu2 %v10191_v61 }
 0x33e   : > { %v9644_v56 = vld [vmem:[%s13942_s7 + $0x9a8] sm:$0xf0] }
 0x33f   : > { %v12887_v59 = vld [vmem:[%s13942_s7 + $0xb8c] sm:$0xf]  ;;  %v9647_v0 = vor.u32 %v12823_v53, %v9644_v56  ;;  %7227 = vmatpush.bf16.msrb.mxu3 %v10447_v60 }
 0x340   : > { %v9900_v9 = vld [vmem:[%s13942_s7 + $0xba8] sm:$0xf0] }
 0x341   : > { %v12951_v63 = vld [vmem:[%s13942_s7 + $0xd8c] sm:$0xf]  ;;  %v9903_v42 = vor.u32 %v12887_v59, %v9900_v9  ;;  %7186 = vmatpush.bf16.msrb.mxu0 %v9647_v0 }
 0x342   : > { %v10156_v62 = vld [vmem:[%s13942_s7 + $0xda8] sm:$0xf0] }
 0x343   : > { %v13015_v50 = vld [vmem:[%s13942_s7 + $0xf8c] sm:$0xf]  ;;  %v10159_v5 = vor.u32 %v12951_v63, %v10156_v62  ;;  %7200 = vmatpush.bf16.msrb.mxu1 %v9903_v42 }
 0x344   : > { %v10412_v6 = vld [vmem:[%s13942_s7 + $0xfa8] sm:$0xf0] }
 0x345   : > { %v12815_v45 = vld [vmem:[%s13942_s7 + $0x94c] sm:$0xf]  ;;  %v10415_v11 = vor.u32 %v13015_v50, %v10412_v6  ;;  %7214 = vmatpush.bf16.msrb.mxu2 %v10159_v5 }
 0x346   : > { %v9612_v8 = vld [vmem:[%s13942_s7 + $0x968] sm:$0xf0] }
 0x347   : > { %v12879_v57 = vld [vmem:[%s13942_s7 + $0xb4c] sm:$0xf]  ;;  %v9615_v16 = vor.u32 %v12815_v45, %v9612_v8  ;;  %7228 = vmatpush.bf16.msrb.mxu3 %v10415_v11 }
 0x348   : > { %v9868_v13 = vld [vmem:[%s13942_s7 + $0xb68] sm:$0xf0] }
 0x349   : > { %v12943_v14 = vld [vmem:[%s13942_s7 + $0xd4c] sm:$0xf]  ;;  %v9871_v18 = vor.u32 %v12879_v57, %v9868_v13  ;;  %7187 = vmatpush.bf16.msrb.mxu0 %v9615_v16 }
 0x34a   : > { %v10124_v21 = vld [vmem:[%s13942_s7 + $0xd68] sm:$0xf0] }
 0x34b   : > { %v13007_v15 = vld [vmem:[%s13942_s7 + $0xf4c] sm:$0xf]  ;;  %v10127_v55 = vor.u32 %v12943_v14, %v10124_v21  ;;  %7201 = vmatpush.bf16.msrb.mxu1 %v9871_v18 }
 0x34c   : > { %v10380_v25 = vld [vmem:[%s13942_s7 + $0xf68] sm:$0xf0] }
 0x34d   : > { %v12807_v20 = vld [vmem:[%s13942_s7 + $0x90c] sm:$0xf]  ;;  %v10383_v19 = vor.u32 %v13007_v15, %v10380_v25  ;;  %7215 = vmatpush.bf16.msrb.mxu2 %v10127_v55 }
 0x34e   : > { %v9580_v4 = vld [vmem:[%s13942_s7 + $0x928] sm:$0xf0] }
 0x34f   : > { %v12871_v48 = vld [vmem:[%s13942_s7 + $0xb0c] sm:$0xf]  ;;  %v9583_v33 = vor.u32 %v12807_v20, %v9580_v4  ;;  %7229 = vmatpush.bf16.msrb.mxu3 %v10383_v19 }
 0x350   : > { %v9836_v23 = vld [vmem:[%s13942_s7 + $0xb28] sm:$0xf0] }
 0x351   : > { %v12935_v2 = vld [vmem:[%s13942_s7 + $0xd0c] sm:$0xf]  ;;  %v9839_v27 = vor.u32 %v12871_v48, %v9836_v23  ;;  %7188 = vmatpush.bf16.msrb.mxu0 %v9583_v33 }
 0x352   : > { %v10092_v7 = vld [vmem:[%s13942_s7 + $0xd28] sm:$0xf0] }
 0x353   : > { %v12999_v24 = vld [vmem:[%s13942_s7 + $0xf0c] sm:$0xf]  ;;  %v10095_v28 = vor.u32 %v12935_v2, %v10092_v7  ;;  %7202 = vmatpush.bf16.msrb.mxu1 %v9839_v27 }
 0x354   : > { %v10348_v26 = vld [vmem:[%s13942_s7 + $0xf28] sm:$0xf0] }
 0x355   : > { %v12799_v51 = vld [vmem:[%s13942_s7 + $0x8cc] sm:$0xf]  ;;  %v10351_v34 = vor.u32 %v12999_v24, %v10348_v26  ;;  %7216 = vmatpush.bf16.msrb.mxu2 %v10095_v28 }
 0x356   : > { %v9548_v30 = vld [vmem:[%s13942_s7 + $0x8e8] sm:$0xf0] }
 0x357   : > { %v12863_v37 = vld [vmem:[%s13942_s7 + $0xacc] sm:$0xf]  ;;  %v9551_v53 = vor.u32 %v12799_v51, %v9548_v30  ;;  %7230 = vmatpush.bf16.msrb.mxu3 %v10351_v34 }
 0x358   : > { %v9804_v49 = vld [vmem:[%s13942_s7 + $0xae8] sm:$0xf0] }
 0x359   : > { %v12927_v12 = vld [vmem:[%s13942_s7 + $0xccc] sm:$0xf]  ;;  %v9807_v54 = vor.u32 %v12863_v37, %v9804_v49  ;;  %7189 = vmatpush.bf16.msrb.mxu0 %v9551_v53 }
 0x35a   : > { %v10060_v52 = vld [vmem:[%s13942_s7 + $0xce8] sm:$0xf0] }
 0x35b   : > { %v12991_v3 = vld [vmem:[%s13942_s7 + $0xecc] sm:$0xf]  ;;  %v10063_v29 = vor.u32 %v12927_v12, %v10060_v52  ;;  %7203 = vmatpush.bf16.msrb.mxu1 %v9807_v54 }
 0x35c   : > { %v10316_v22 = vld [vmem:[%s13942_s7 + $0xee8] sm:$0xf0] }
 0x35d   : > { %v12791_v61 = vld [vmem:[%s13942_s7 + $0x88c] sm:$0xf]  ;;  %v10319_v60 = vor.u32 %v12991_v3, %v10316_v22  ;;  %7217 = vmatpush.bf16.msrb.mxu2 %v10063_v29 }
 0x35e   : > { %v9516_v56 = vld [vmem:[%s13942_s7 + $0x8a8] sm:$0xf0] }
 0x35f   : > { %v12855_v59 = vld [vmem:[%s13942_s7 + $0xa8c] sm:$0xf]  ;;  %v9519_v0 = vor.u32 %v12791_v61, %v9516_v56  ;;  %7231 = vmatpush.bf16.msrb.mxu3 %v10319_v60 }
 0x360   : > { %v9772_v9 = vld [vmem:[%s13942_s7 + $0xaa8] sm:$0xf0] }
 0x361   : > { %v12919_v63 = vld [vmem:[%s13942_s7 + $0xc8c] sm:$0xf]  ;;  %v9775_v42 = vor.u32 %v12855_v59, %v9772_v9  ;;  %7190 = vmatpush.bf16.msrb.mxu0 %v9519_v0 }
 0x362   : > { %v10028_v62 = vld [vmem:[%s13942_s7 + $0xca8] sm:$0xf0] }
 0x363   : > { %v12983_v50 = vld [vmem:[%s13942_s7 + $0xe8c] sm:$0xf]  ;;  %v10031_v5 = vor.u32 %v12919_v63, %v10028_v62  ;;  %7204 = vmatpush.bf16.msrb.mxu1 %v9775_v42 }
 0x364   : > { %v10284_v6 = vld [vmem:[%s13942_s7 + $0xea8] sm:$0xf0] }
 0x365   : > { %v12783_v45 = vld [vmem:[%s13942_s7 + $0x84c] sm:$0xf]  ;;  %v10287_v11 = vor.u32 %v12983_v50, %v10284_v6  ;;  %7218 = vmatpush.bf16.msrb.mxu2 %v10031_v5 }
 0x366   : > { %v9484_v8 = vld [vmem:[%s13942_s7 + $0x868] sm:$0xf0] }
 0x367   : > { %v12847_v57 = vld [vmem:[%s13942_s7 + $0xa4c] sm:$0xf]  ;;  %v9487_v16 = vor.u32 %v12783_v45, %v9484_v8  ;;  %7232 = vmatpush.bf16.msrb.mxu3 %v10287_v11 }
 0x368   : > { %v9740_v13 = vld [vmem:[%s13942_s7 + $0xa68] sm:$0xf0] }
 0x369   : > { %v12911_v14 = vld [vmem:[%s13942_s7 + $0xc4c] sm:$0xf]  ;;  %v9743_v20 = vor.u32 %v12847_v57, %v9740_v13  ;;  %7191 = vmatpush.bf16.msrb.mxu0 %v9487_v16 }
 0x36a   : > { %v9996_v21 = vld [vmem:[%s13942_s7 + $0xc68] sm:$0xf0] }
 0x36b   : > { %v12975_v15 = vld [vmem:[%s13942_s7 + $0xe4c] sm:$0xf]  ;;  %v9999_v4 = vor.u32 %v12911_v14, %v9996_v21  ;;  %7205 = vmatpush.bf16.msrb.mxu1 %v9743_v20 }
 0x36c   : > { %v10252_v25 = vld [vmem:[%s13942_s7 + $0xe68] sm:$0xf0] }
 0x36d   : > { %v12775_v18 = vld [vmem:[%s13942_s7 + $0x80c] sm:$0xf]  ;;  %v10255_v2 = vor.u32 %v12975_v15, %v10252_v25  ;;  %7219 = vmatpush.bf16.msrb.mxu2 %v9999_v4 }
 0x36e   : > { %v9452_v55 = vld [vmem:[%s13942_s7 + $0x828] sm:$0xf0] }
 0x36f   : > { %v12839_v48 = vld [vmem:[%s13942_s7 + $0xa0c] sm:$0xf]  ;;  %v9455_v51 = vor.u32 %v12775_v18, %v9452_v55  ;;  %7233 = vmatpush.bf16.msrb.mxu3 %v10255_v2 }
 0x370   : > { %v9708_v19 = vld [vmem:[%s13942_s7 + $0xa28] sm:$0xf0] }
 0x371   : > { %v12903_v23 = vld [vmem:[%s13942_s7 + $0xc0c] sm:$0xf]  ;;  %v9711_v49 = vor.u32 %v12839_v48, %v9708_v19  ;;  %7192 = vmatpush.bf16.msrb.mxu0 %v9455_v51 }
 0x372   : > { %v9964_v7 = vld [vmem:[%s13942_s7 + $0xc28] sm:$0xf0] }
 0x373   : > { %v12967_v24 = vld [vmem:[%s13942_s7 + $0xe0c] sm:$0xf]  ;;  %v9967_v12 = vor.u32 %v12903_v23, %v9964_v7  ;;  %7206 = vmatpush.bf16.msrb.mxu1 %v9711_v49 }
 0x374   : > { %v10220_v26 = vld [vmem:[%s13942_s7 + $0xe28] sm:$0xf0]  ;;  %7193 = vmatmul.bf16.vlgmr.msrb.gmra.mxu0 %v14099_v39 }
 0x375   : > { %v13087_v33 = vld [vmem:[%s13942_s7 + $0x11cc] sm:$0xf]  ;;  %v10223_v22 = vor.u32 %v12967_v24, %v10220_v26  ;;  %7220 = vmatpush.bf16.msrb.mxu2 %v9967_v12 }
 0x376   : > { %v10700_v27 = vld [vmem:[%s13942_s7 + $0x11e8] sm:$0xf0]  ;;  %7207 = vmatmul.bf16.vlgmr.msrb.gmra.mxu1 %v14106_v44 }
 0x377   : > { %v13151_v28 = vld [vmem:[%s13942_s7 + $0x13cc] sm:$0xf]  ;;  %v10703_v53 = vor.u32 %v13087_v33, %v10700_v27  ;;  %7234 = vmatpush.bf16.msrb.mxu3 %v10223_v22 }
 0x378   : > { %v10956_v30 = vld [vmem:[%s13942_s7 + $0x13e8] sm:$0xf0]  ;;  %7221 = vmatmul.bf16.vlgmr.msrb.gmra.mxu2 %v14104_v43 }
 0x379   : > { %v13215_v37 = vld [vmem:[%s13942_s7 + $0x15cc] sm:$0xf]  ;;  %v10959_v54 = vor.u32 %v13151_v28, %v10956_v30  ;;  %7241 = vmatpush.bf16.msra.mxu0 %v10703_v53 }
 0x37a   : > { %v11212_v34 = vld [vmem:[%s13942_s7 + $0x15e8] sm:$0xf0]  ;;  %7235 = vmatmul.bf16.vlgmr.msrb.gmra.mxu3 %v14110_v47 }
 0x37b   : > { %v13279_v52 = vld [vmem:[%s13942_s7 + $0x17cc] sm:$0xf]  ;;  %v11215_v29 = vor.u32 %v13215_v37, %v11212_v34  ;;  %7255 = vmatpush.bf16.msra.mxu1 %v10959_v54  ;;  %v15082_v54 = vpop.f32.mrf.mxu1 }
 0x37c   : > { %v11468_v3 = vld [vmem:[%s13942_s7 + $0x17e8] sm:$0xf0] }
 0x37d   : > { %v13079_v61 = vld [vmem:[%s13942_s7 + $0x118c] sm:$0xf]  ;;  %v11471_v60 = vor.u32 %v13279_v52, %v11468_v3  ;;  %7269 = vmatpush.bf16.msra.mxu2 %v11215_v29  ;;  %v15078_v3 = vpop.f32.mrf.mxu0 }
 0x37e   : > { %v10668_v56 = vld [vmem:[%s13942_s7 + $0x11a8] sm:$0xf0] }
 0x37f   : > { %v13143_v59 = vld [vmem:[%s13942_s7 + $0x138c] sm:$0xf]  ;;  %v10671_v0 = vor.u32 %v13079_v61, %v10668_v56  ;;  %7283 = vmatpush.bf16.msra.mxu3 %v11471_v60 }
 0x380   : > { %v10924_v9 = vld [vmem:[%s13942_s7 + $0x13a8] sm:$0xf0] }
 0x381   : > { %v13207_v63 = vld [vmem:[%s13942_s7 + $0x158c] sm:$0xf]  ;;  %v10927_v42 = vor.u32 %v13143_v59, %v10924_v9  ;;  %7242 = vmatpush.bf16.msra.mxu0 %v10671_v0 }
 0x382   : > { %v11180_v62 = vld [vmem:[%s13942_s7 + $0x15a8] sm:$0xf0] }
 0x383   : > { %v13271_v50 = vld [vmem:[%s13942_s7 + $0x178c] sm:$0xf]  ;;  %v11183_v5 = vor.u32 %v13207_v63, %v11180_v62  ;;  %7256 = vmatpush.bf16.msra.mxu1 %v10927_v42 }
 0x384   : > { %v11436_v6 = vld [vmem:[%s13942_s7 + $0x17a8] sm:$0xf0] }
 0x385   : > { %v13071_v45 = vld [vmem:[%s13942_s7 + $0x114c] sm:$0xf]  ;;  %v11439_v11 = vor.u32 %v13271_v50, %v11436_v6  ;;  %7270 = vmatpush.bf16.msra.mxu2 %v11183_v5 }
 0x386   : > { %v10636_v8 = vld [vmem:[%s13942_s7 + $0x1168] sm:$0xf0] }
 0x387   : > { %v13135_v57 = vld [vmem:[%s13942_s7 + $0x134c] sm:$0xf]  ;;  %v10639_v16 = vor.u32 %v13071_v45, %v10636_v8  ;;  %7284 = vmatpush.bf16.msra.mxu3 %v11439_v11 }
 0x388   : > { %v10892_v13 = vld [vmem:[%s13942_s7 + $0x1368] sm:$0xf0] }
 0x389   : > { %v13199_v14 = vld [vmem:[%s13942_s7 + $0x154c] sm:$0xf]  ;;  %v10895_v18 = vor.u32 %v13135_v57, %v10892_v13  ;;  %7243 = vmatpush.bf16.msra.mxu0 %v10639_v16 }
 0x38a   : > { %v11148_v21 = vld [vmem:[%s13942_s7 + $0x1568] sm:$0xf0] }
 0x38b   : > { %v13263_v15 = vld [vmem:[%s13942_s7 + $0x174c] sm:$0xf]  ;;  %v11151_v55 = vor.u32 %v13199_v14, %v11148_v21  ;;  %7257 = vmatpush.bf16.msra.mxu1 %v10895_v18  ;;  %v15095_v14 = vpop.f32.mrf.mxu2  ;;  %v15100_v18 = vpop.f32.mrf.mxu3 }
 0x38c   : > { %v11404_v25 = vld [vmem:[%s13942_s7 + $0x1768] sm:$0xf0] }
 0x38d   : > { %v13063_v20 = vld [vmem:[%s13942_s7 + $0x110c] sm:$0xf]  ;;  %v11407_v19 = vor.u32 %v13263_v15, %v11404_v25  ;;  %7271 = vmatpush.bf16.msra.mxu2 %v11151_v55 }
 0x38e   : > { %v10604_v4 = vld [vmem:[%s13942_s7 + $0x1128] sm:$0xf0] }
 0x38f   : > { %v13127_v48 = vld [vmem:[%s13942_s7 + $0x130c] sm:$0xf]  ;;  %v10607_v33 = vor.u32 %v13063_v20, %v10604_v4  ;;  %7285 = vmatpush.bf16.msra.mxu3 %v11407_v19 }
 0x390   : > { %v10860_v23 = vld [vmem:[%s13942_s7 + $0x1328] sm:$0xf0] }
 0x391   : > { %v13191_v2 = vld [vmem:[%s13942_s7 + $0x150c] sm:$0xf]  ;;  %v10863_v27 = vor.u32 %v13127_v48, %v10860_v23  ;;  %7244 = vmatpush.bf16.msra.mxu0 %v10607_v33 }
 0x392   : > { %v11116_v7 = vld [vmem:[%s13942_s7 + $0x1528] sm:$0xf0] }
 0x393   : > { %v13255_v24 = vld [vmem:[%s13942_s7 + $0x170c] sm:$0xf]  ;;  %v11119_v28 = vor.u32 %v13191_v2, %v11116_v7  ;;  %7258 = vmatpush.bf16.msra.mxu1 %v10863_v27  ;;  %v15110_v7 = vpop.f32.mrf.mxu0 }
 0x394   : > { %v11372_v26 = vld [vmem:[%s13942_s7 + $0x1728] sm:$0xf0] }
 0x395   : > { %v13055_v51 = vld [vmem:[%s13942_s7 + $0x10cc] sm:$0xf]  ;;  %v11375_v34 = vor.u32 %v13255_v24, %v11372_v26  ;;  %7272 = vmatpush.bf16.msra.mxu2 %v11119_v28 }
 0x396   : > { %v10572_v30 = vld [vmem:[%s13942_s7 + $0x10e8] sm:$0xf0] }
 0x397   : > { %v13119_v37 = vld [vmem:[%s13942_s7 + $0x12cc] sm:$0xf]  ;;  %v10575_v29 = vor.u32 %v13055_v51, %v10572_v30  ;;  %7286 = vmatpush.bf16.msra.mxu3 %v11375_v34  ;;  %v15115_v51 = vpop.f32.mrf.mxu1 }
 0x398   : > { %v10828_v49 = vld [vmem:[%s13942_s7 + $0x12e8] sm:$0xf0] }
 0x399   : > { %v13183_v12 = vld [vmem:[%s13942_s7 + $0x14cc] sm:$0xf]  ;;  %v10831_v61 = vor.u32 %v13119_v37, %v10828_v49  ;;  %7245 = vmatpush.bf16.msra.mxu0 %v10575_v29 }
 0x39a   : > { %v11084_v52 = vld [vmem:[%s13942_s7 + $0x14e8] sm:$0xf0] }
 0x39b   : > { %v13247_v22 = vld [vmem:[%s13942_s7 + $0x16cc] sm:$0xf]  ;;  %v11087_v56 = vor.u32 %v13183_v12, %v11084_v52  ;;  %7259 = vmatpush.bf16.msra.mxu1 %v10831_v61 }
 0x39c   : > { %v11340_v53 = vld [vmem:[%s13942_s7 + $0x16e8] sm:$0xf0] }
 0x39d   : > { %v13047_v59 = vld [vmem:[%s13942_s7 + $0x108c] sm:$0xf]  ;;  %v11343_v63 = vor.u32 %v13247_v22, %v11340_v53  ;;  %7273 = vmatpush.bf16.msra.mxu2 %v11087_v56 }
 0x39e   : > { %v10540_v60 = vld [vmem:[%s13942_s7 + $0x10a8] sm:$0xf0] }
 0x39f   : > { %v13111_v9 = vld [vmem:[%s13942_s7 + $0x128c] sm:$0xf]  ;;  %v10543_v5 = vor.u32 %v13047_v59, %v10540_v60  ;;  %7287 = vmatpush.bf16.msra.mxu3 %v11343_v63 }
 0x3a0   : > { %v10796_v62 = vld [vmem:[%s13942_s7 + $0x12a8] sm:$0xf0] }
 0x3a1   : > { %v13175_v50 = vld [vmem:[%s13942_s7 + $0x148c] sm:$0xf]  ;;  %v10799_v45 = vor.u32 %v13111_v9, %v10796_v62  ;;  %7246 = vmatpush.bf16.msra.mxu0 %v10543_v5 }
 0x3a2   : > { %v11052_v6 = vld [vmem:[%s13942_s7 + $0x14a8] sm:$0xf0] }
 0x3a3   : > { %v13239_v0 = vld [vmem:[%s13942_s7 + $0x168c] sm:$0xf]  ;;  %v11055_v8 = vor.u32 %v13175_v50, %v11052_v6  ;;  %7260 = vmatpush.bf16.msra.mxu1 %v10799_v45 }
 0x3a4   : > { %v11308_v42 = vld [vmem:[%s13942_s7 + $0x16a8] sm:$0xf0] }
 0x3a5   : > { %v13039_v57 = vld [vmem:[%s13942_s7 + $0x104c] sm:$0xf]  ;;  %v11311_v21 = vor.u32 %v13239_v0, %v11308_v42  ;;  %7274 = vmatpush.bf16.msra.mxu2 %v11055_v8 }
 0x3a6   : > { %v10508_v11 = vld [vmem:[%s13942_s7 + $0x1068] sm:$0xf0] }
 0x3a7   : > { %v13103_v13 = vld [vmem:[%s13942_s7 + $0x124c] sm:$0xf]  ;;  %v10511_v19 = vor.u32 %v13039_v57, %v10508_v11  ;;  %7288 = vmatpush.bf16.msra.mxu3 %v11311_v21  ;;  %v15134_v57 = vpop.f32.mrf.mxu2 }
 0x3a8   : > { %v10764_v15 = vld [vmem:[%s13942_s7 + $0x1268] sm:$0xf0] }
 0x3a9   : > { %v13167_v25 = vld [vmem:[%s13942_s7 + $0x144c] sm:$0xf]  ;;  %v10767_v24 = vor.u32 %v13103_v13, %v10764_v15  ;;  %7247 = vmatpush.bf16.msra.mxu0 %v10511_v19  ;;  %v6970_v19 = vpop.f32.mrf.mxu0 }
 0x3aa   : > { %v11020_v16 = vld [vmem:[%s13942_s7 + $0x1468] sm:$0xf0] }
 0x3ab   : > { %v13231_v55 = vld [vmem:[%s13942_s7 + $0x164c] sm:$0xf]  ;;  %v11023_v26 = vor.u32 %v13167_v25, %v11020_v16  ;;  %7261 = vmatpush.bf16.msra.mxu1 %v10767_v24  ;;  %v15139_v25 = vpop.f32.mrf.mxu3 }
 0x3ac   : > { %v11276_v20 = vld [vmem:[%s13942_s7 + $0x1668] sm:$0xf0] }
 0x3ad   : > { %v15105_v4 = vld [vmem:[%s14443_s24] sm:$0xff]  ;;  %v11279_v30 = vor.u32 %v13231_v55, %v11276_v20  ;;  %7275 = vmatpush.bf16.msra.mxu2 %v11023_v26 }
 0x3ae   : > { %v1323_v48 = vperm.slane %v15105_v4, 2  ;;  %v13031_v23 = vld [vmem:[%s13942_s7 + $0x100c] sm:$0xf] }
 0x3af   : > { %v10476_v2 = vld [vmem:[%s13942_s7 + $0x1028] sm:$0xf0]  ;;  %7289 = vmatpush.bf16.msra.mxu3 %v11279_v30 }
 0x3b0   : > { %v13095_v33 = vld [vmem:[%s13942_s7 + $0x120c] sm:$0xf]  ;;  %v10479_v53 = vor.u32 %v13031_v23, %v10476_v2  ;;  %v6915_v6 = vadd.f32 %v15078_v3, %v1323_v48 }
 0x3b1   : > { %v10732_v27 = vld [vmem:[%s13942_s7 + $0x1228] sm:$0xf0] }
 0x3b2   : > { %v13159_v28 = vld [vmem:[%s13942_s7 + $0x140c] sm:$0xf]  ;;  %v10735_v59 = vor.u32 %v13095_v33, %v10732_v27  ;;  %7248 = vmatpush.bf16.msra.mxu0 %v10479_v53  ;;  %v6929_v20 = vadd.f32 %v15082_v54, %v6915_v6  ;;  %v15147_v27 = vpop.f32.mrf.mxu1  ;;  %v15170_v6 = vpop.f32.mrf.mxu2 }
 0x3b3   : > { %v10988_v37 = vld [vmem:[%s13942_s7 + $0x1428] sm:$0xf0] }
 0x3b4   : > { %v13223_v34 = vld [vmem:[%s13942_s7 + $0x160c] sm:$0xf]  ;;  %v10991_v60 = vor.u32 %v13159_v28, %v10988_v37  ;;  %7262 = vmatpush.bf16.msra.mxu1 %v10735_v59 }
 0x3b5   : > { %v11244_v49 = vld [vmem:[%s13942_s7 + $0x1628] sm:$0xf0]  ;;  %7249 = vmatmul.bf16.vlgmr.msra.gmra.mxu0 %v14175_v31 }
 0x3b6   : > { %v13343_v12 = vld [vmem:[%s13942_s7 + $0x19cc] sm:$0xf]  ;;  %v11247_v62 = vor.u32 %v13223_v34, %v11244_v49  ;;  %7276 = vmatpush.bf16.msra.mxu2 %v10991_v60 }
 0x3b7   : > { %v11724_v52 = vld [vmem:[%s13942_s7 + $0x19e8] sm:$0xf0]  ;;  %7263 = vmatmul.bf16.vlgmr.msra.gmra.mxu1 %v14182_v36 }
 0x3b8   : > { %v13407_v22 = vld [vmem:[%s13942_s7 + $0x1bcc] sm:$0xf]  ;;  %v11727_v50 = vor.u32 %v13343_v12, %v11724_v52  ;;  %7290 = vmatpush.bf16.msra.mxu3 %v11247_v62  ;;  %v6943_v52 = vadd.f32 %v15095_v14, %v6929_v20  ;;  %v6917_v62 = vadd.f32 %v15110_v7, %v1323_v48 }
 0x3b9   : > { %v11980_v29 = vld [vmem:[%s13942_s7 + $0x1be8] sm:$0xf0]  ;;  %7277 = vmatmul.bf16.vlgmr.msra.gmra.mxu2 %v14180_v35 }
 0x3ba   : > { %v13471_v61 = vld [vmem:[%s13942_s7 + $0x1dcc] sm:$0xf]  ;;  %v11983_v0 = vor.u32 %v13407_v22, %v11980_v29  ;;  %7297 = vmatpush.bf16.msrb.mxu0 %v11727_v50  ;;  %v15184_v20 = vpop.f32.mrf.mxu1 }
 0x3bb   : > { %v12236_v56 = vld [vmem:[%s13942_s7 + $0x1de8] sm:$0xf0]  ;;  %7291 = vmatmul.bf16.vlgmr.msra.gmra.mxu3 %v14186_v40 }
 0x3bc   : > { %v13535_v9 = vld [vmem:[%s13942_s7 + $0x1fcc] sm:$0xf]  ;;  %v12239_v42 = vor.u32 %v13471_v61, %v12236_v56  ;;  %7311 = vmatpush.bf16.msrb.mxu1 %v11983_v0 }
 0x3bd   : > { %v12492_v63 = vld [vmem:[%s13942_s7 + $0x1fe8] sm:$0xf0] }
 0x3be   : > { %v13335_v5 = vld [vmem:[%s13942_s7 + $0x198c] sm:$0xf]  ;;  %v12495_v11 = vor.u32 %v13535_v9, %v12492_v63  ;;  %7325 = vmatpush.bf16.msrb.mxu2 %v12239_v42  ;;  %v6957_v42 = vadd.f32 %v15100_v18, %v6943_v52  ;;  %v6931_v18 = vadd.f32 %v15115_v51, %v6917_v62 }
 0x3bf   : > { %v11692_v45 = vld [vmem:[%s13942_s7 + $0x19a8] sm:$0xf0] }
 0x3c0   : > { %v13399_v8 = vld [vmem:[%s13942_s7 + $0x1b8c] sm:$0xf]  ;;  %v11695_v55 = vor.u32 %v13335_v5, %v11692_v45  ;;  %7339 = vmatpush.bf16.msrb.mxu3 %v12495_v11  ;;  %v15173_v5 = vpop.f32.mrf.mxu3 }
 0x3c1   : > { %v11948_v13 = vld [vmem:[%s13942_s7 + $0x1ba8] sm:$0xf0] }
 0x3c2   : > { %v13463_v21 = vld [vmem:[%s13942_s7 + $0x1d8c] sm:$0xf]  ;;  %v11951_v23 = vor.u32 %v13399_v8, %v11948_v13  ;;  %7298 = vmatpush.bf16.msrb.mxu0 %v11695_v55 }
 0x3c3   : > { %v12204_v15 = vld [vmem:[%s13942_s7 + $0x1da8] sm:$0xf0] }
 0x3c4   : > { %v13527_v3 = vld [vmem:[%s13942_s7 + $0x1f8c] sm:$0xf]  ;;  %v12207_v2 = vor.u32 %v13463_v21, %v12204_v15  ;;  %7312 = vmatpush.bf16.msrb.mxu1 %v11951_v23 }
 0x3c5   : > { %v12460_v16 = vld [vmem:[%s13942_s7 + $0x1fa8] sm:$0xf0] }
 0x3c6   : > { %v13327_v24 = vld [vmem:[%s13942_s7 + $0x194c] sm:$0xf]  ;;  %v12463_v28 = vor.u32 %v13527_v3, %v12460_v16  ;;  %7326 = vmatpush.bf16.msrb.mxu2 %v12207_v2  ;;  %v6972_v3 = vpop.f32.mrf.mxu0  ;;  %v6971_v2 = vadd.f32 %v6970_v19, %v6957_v42 }
 0x3c7   : > { %v11660_v26 = vld [vmem:[%s13942_s7 + $0x1968] sm:$0xf0] }
 0x3c8   : > { %v13391_v33 = vld [vmem:[%s13942_s7 + $0x1b4c] sm:$0xf]  ;;  %v11663_v12 = vor.u32 %v13327_v24, %v11660_v26  ;;  %7340 = vmatpush.bf16.msrb.mxu3 %v12463_v28 }
 0x3c9   : > { %v11916_v30 = vld [vmem:[%s13942_s7 + $0x1b68] sm:$0xf0] }
 0x3ca   : > { %v13455_v54 = vld [vmem:[%s13942_s7 + $0x1d4c] sm:$0xf]  ;;  %v11919_v22 = vor.u32 %v13391_v33, %v11916_v30  ;;  %7299 = vmatpush.bf16.msrb.mxu0 %v11663_v12 }
 0x3cb   : > { %v12172_v37 = vld [vmem:[%s13942_s7 + $0x1d68] sm:$0xf0] }
 0x3cc   : > { %v13519_v34 = vld [vmem:[%s13942_s7 + $0x1f4c] sm:$0xf]  ;;  %v12175_v53 = vor.u32 %v13455_v54, %v12172_v37  ;;  %7313 = vmatpush.bf16.msrb.mxu1 %v11919_v22  ;;  %v6985_v22 = vadd.f32 %v15147_v27, %v6971_v2 }
 0x3cd   : > { %v12428_v49 = vld [vmem:[%s13942_s7 + $0x1f68] sm:$0xf0] }
 0x3ce   : > { %v13319_v29 = vld [vmem:[%s13942_s7 + $0x190c] sm:$0xf]  ;;  %v12431_v59 = vor.u32 %v13519_v34, %v12428_v49  ;;  %7327 = vmatpush.bf16.msrb.mxu2 %v12175_v53  ;;  %v6945_v49 = vadd.f32 %v15134_v57, %v6931_v18  ;;  %v7000_v57 = vpop.f32.mrf.mxu2 }
 0x3cf   : > { %v11628_v61 = vld [vmem:[%s13942_s7 + $0x1928] sm:$0xf0] }
 0x3d0   : > { %v13383_v56 = vld [vmem:[%s13942_s7 + $0x1b0c] sm:$0xf]  ;;  %v11631_v0 = vor.u32 %v13319_v29, %v11628_v61  ;;  %7341 = vmatpush.bf16.msrb.mxu3 %v12431_v59  ;;  %v6959_v27 = vadd.f32 %v15139_v25, %v6945_v49  ;;  %v9426_v49 = vld [vmem:[%s13942_s7 + $0x7d0] sm:$0xf] }
 0x3d1   : > { %v11884_v60 = vld [vmem:[%s13942_s7 + $0x1b28] sm:$0xf0] }
 0x3d2   : > { %v13447_v9 = vld [vmem:[%s13942_s7 + $0x1d0c] sm:$0xf]  ;;  %v11887_v4 = vor.u32 %v13383_v56, %v11884_v60  ;;  %7300 = vmatpush.bf16.msrb.mxu0 %v11631_v0  ;;  %v6973_v2 = vadd.f32 %v6972_v3, %v6959_v27  ;;  %v12772_v3 = vld [vmem:[%s13942_s7 + $0x7ec] sm:$0xf0] }
 0x3d3   : > { %v12140_v63 = vld [vmem:[%s13942_s7 + $0x1d28] sm:$0xf0]  ;;  %v12700_v27 = vld [vmem:[%s13942_s7 + $0x5ac] sm:$0xf0] }
 0x3d4   : > { %v13511_v14 = vld [vmem:[%s13942_s7 + $0x1f0c] sm:$0xf]  ;;  %v12143_v45 = vor.u32 %v13447_v9, %v12140_v63  ;;  %7314 = vmatpush.bf16.msrb.mxu1 %v11887_v4  ;;  %v7040_v4 = vpop.f32.mrf.mxu1 }
 0x3d5   : > { %v12396_v50 = vld [vmem:[%s13942_s7 + $0x1f28] sm:$0xf0] }
 0x3d6   : > { %v13311_v48 = vld [vmem:[%s13942_s7 + $0x18cc] sm:$0xf]  ;;  %v12399_v11 = vor.u32 %v13511_v14, %v12396_v50  ;;  %7328 = vmatpush.bf16.msrb.mxu2 %v12143_v45  ;;  %v15203_v14 = vpop.f32.mrf.mxu3  ;;  %v7026_v50 = vpop.f32.mrf.mxu0 }
 0x3d7   : > { %v11596_v7 = vld [vmem:[%s13942_s7 + $0x18e8] sm:$0xf0] }
 0x3d8   : > { %v13375_v8 = vld [vmem:[%s13942_s7 + $0x1acc] sm:$0xf]  ;;  %v11599_v23 = vor.u32 %v13311_v48, %v11596_v7  ;;  %7342 = vmatpush.bf16.msrb.mxu3 %v12399_v11 }
 0x3d9   : > { %v11852_v13 = vld [vmem:[%s13942_s7 + $0x1ae8] sm:$0xf0] }
 0x3da   : > { %v13439_v21 = vld [vmem:[%s13942_s7 + $0x1ccc] sm:$0xf]  ;;  %v11855_v24 = vor.u32 %v13375_v8, %v11852_v13  ;;  %7301 = vmatpush.bf16.msrb.mxu0 %v11599_v23  ;;  %v6999_v8 = vadd.f32 %v15170_v6, %v6985_v22  ;;  %v8658_v6 = vld [vmem:[%s13942_s7 + $0x1d0] sm:$0xf]  ;;  %v6987_v22 = vadd.f32 %v15184_v20, %v6973_v2 }
 0x3db   : > { %v12108_v15 = vld [vmem:[%s13942_s7 + $0x1ce8] sm:$0xf0]  ;;  %v9394_v20 = vld [vmem:[%s13942_s7 + $0x790] sm:$0xf] }
 0x3dc   : > { %v13503_v16 = vld [vmem:[%s13942_s7 + $0x1ecc] sm:$0xf]  ;;  %v12111_v26 = vor.u32 %v13439_v21, %v12108_v15  ;;  %7315 = vmatpush.bf16.msrb.mxu1 %v11855_v24  ;;  %v12580_v24 = vld [vmem:[%s13942_s7 + $0x1ec] sm:$0xf0] }
 0x3dd   : > { %v12364_v55 = vld [vmem:[%s13942_s7 + $0x1ee8] sm:$0xf0]  ;;  %v12756_v2 = vld [vmem:[%s13942_s7 + $0x76c] sm:$0xf0] }
 0x3de   : > { %v13303_v33 = vld [vmem:[%s13942_s7 + $0x188c] sm:$0xf]  ;;  %v12367_v30 = vor.u32 %v13503_v16, %v12364_v55  ;;  %7329 = vmatpush.bf16.msrb.mxu2 %v12111_v26  ;;  %v8914_v26 = vld [vmem:[%s13942_s7 + $0x3d0] sm:$0xf] }
 0x3df   : > { %v11564_v28 = vld [vmem:[%s13942_s7 + $0x18a8] sm:$0xf0] }
 0x3e0   : > { %v13367_v51 = vld [vmem:[%s13942_s7 + $0x1a8c] sm:$0xf]  ;;  %v11567_v52 = vor.u32 %v13303_v33, %v11564_v28  ;;  %7343 = vmatpush.bf16.msrb.mxu3 %v12367_v30  ;;  %v12644_v28 = vld [vmem:[%s13942_s7 + $0x3ec] sm:$0xf0] }
 0x3e1   : > { %v11820_v54 = vld [vmem:[%s13942_s7 + $0x1aa8] sm:$0xf0]  ;;  %v12708_v30 = vld [vmem:[%s13942_s7 + $0x5ec] sm:$0xf0] }
 0x3e2   : > { %v13431_v37 = vld [vmem:[%s13942_s7 + $0x1c8c] sm:$0xf]  ;;  %v11823_v53 = vor.u32 %v13367_v51, %v11820_v54  ;;  %7302 = vmatpush.bf16.msrb.mxu0 %v11567_v52  ;;  %v9170_v51 = vld [vmem:[%s13942_s7 + $0x5d0] sm:$0xf]  ;;  %v7013_v54 = vadd.f32 %v15173_v5, %v6999_v8  ;;  %v8659_v52 = vor.u32 %v12580_v24, %v8658_v6  ;;  %v7068_v5 = vpop.f32.mrf.mxu3 }
 0x3e3   : > { %v12076_v34 = vld [vmem:[%s13942_s7 + $0x1ca8] sm:$0xf0]  ;;  %v8562_v24 = vld [vmem:[%s13942_s7 + $0x110] sm:$0xf] }
 0x3e4   : > { %v13495_v12 = vld [vmem:[%s13942_s7 + $0x1e8c] sm:$0xf]  ;;  %v12079_v29 = vor.u32 %v13431_v37, %v12076_v34  ;;  %7316 = vmatpush.bf16.msrb.mxu1 %v11823_v53  ;;  %v7027_v53 = vadd.f32 %v7026_v50, %v7013_v54  ;;  %v12764_v50 = vld [vmem:[%s13942_s7 + $0x7ac] sm:$0xf0] }
 0x3e5   : > { %v12332_v19 = vld [vmem:[%s13942_s7 + $0x1ea8] sm:$0xf0] }
 0x3e6   : > { %v13295_v61 = vld [vmem:[%s13942_s7 + $0x184c] sm:$0xf]  ;;  %v12335_v60 = vor.u32 %v13495_v12, %v12332_v19  ;;  %7330 = vmatpush.bf16.msrb.mxu2 %v12079_v29  ;;  %v7054_v12 = vpop.f32.mrf.mxu2  ;;  %v8915_v29 = vor.u32 %v12644_v28, %v8914_v26  ;;  %v12556_v28 = vld [vmem:[%s13942_s7 + $0x12c] sm:$0xf0] }
 0x3e7   : > { %v11532_v56 = vld [vmem:[%s13942_s7 + $0x1868] sm:$0xf0] }
 0x3e8   : > { %v13359_v59 = vld [vmem:[%s13942_s7 + $0x1a4c] sm:$0xf]  ;;  %v11535_v45 = vor.u32 %v13295_v61, %v11532_v56  ;;  %7344 = vmatpush.bf16.msrb.mxu3 %v12335_v60  ;;  %v9171_v61 = vor.u32 %v12708_v30, %v9170_v51  ;;  %v8626_v56 = vld [vmem:[%s13942_s7 + $0x190] sm:$0xf] }
 0x3e9   : > { %v11788_v9 = vld [vmem:[%s13942_s7 + $0x1a68] sm:$0xf0]  ;;  %v8882_v60 = vld [vmem:[%s13942_s7 + $0x390] sm:$0xf] }
 0x3ea   : > { %v13423_v63 = vld [vmem:[%s13942_s7 + $0x1c4c] sm:$0xf]  ;;  %v11791_v25 = vor.u32 %v13359_v59, %v11788_v9  ;;  %7303 = vmatpush.bf16.msrb.mxu0 %v11535_v45  ;;  %v12572_v59 = vld [vmem:[%s13942_s7 + $0x1ac] sm:$0xf0]  ;;  %v9427_v9 = vor.u32 %v12772_v3, %v9426_v49  ;;  %v7042_v45 = vpop.f32.mrf.mxu1 }
 0x3eb   : > { %v12044_v62 = vld [vmem:[%s13942_s7 + $0x1c68] sm:$0xf0]  ;;  %v8818_v51 = vld [vmem:[%s13942_s7 + $0x310] sm:$0xf] }
 0x3ec   : > { %v13487_v0 = vld [vmem:[%s13942_s7 + $0x1e4c] sm:$0xf]  ;;  %v12047_v11 = vor.u32 %v13423_v63, %v12044_v62  ;;  %7317 = vmatpush.bf16.msrb.mxu1 %v11791_v25  ;;  %v12636_v63 = vld [vmem:[%s13942_s7 + $0x3ac] sm:$0xf0] }
 0x3ed   : > { %v12300_v42 = vld [vmem:[%s13942_s7 + $0x1e68] sm:$0xf0]  ;;  %v9138_v62 = vld [vmem:[%s13942_s7 + $0x590] sm:$0xf]  ;;  %v8883_v8 = vor.u32 %v12636_v63, %v8882_v60 }
 0x3ee   : > { %v13287_v48 = vld [vmem:[%s13942_s7 + $0x180c] sm:$0xf]  ;;  %v12303_v18 = vor.u32 %v13487_v0, %v12300_v42  ;;  %7331 = vmatpush.bf16.msrb.mxu2 %v12047_v11  ;;  %v7001_v0 = vadd.f32 %v7000_v57, %v6987_v22  ;;  %v7028_v42 = vpop.f32.mrf.mxu0  ;;  %v9139_v57 = vor.u32 %v12700_v27, %v9138_v62  ;;  %v8594_v25 = vld [vmem:[%s13942_s7 + $0x150] sm:$0xf]  ;;  %v7056_v54 = vpop.f32.mrf.mxu2 }
 0x3ef   : > { %v11500_v7 = vld [vmem:[%s13942_s7 + $0x1828] sm:$0xf0]  ;;  %v12564_v11 = vld [vmem:[%s13942_s7 + $0x16c] sm:$0xf0] }
 0x3f0   : > { %v13351_v13 = vld [vmem:[%s13942_s7 + $0x1a0c] sm:$0xf]  ;;  %v11503_v33 = vor.u32 %v13287_v48, %v11500_v7  ;;  %7345 = vmatpush.bf16.msrb.mxu3 %v12303_v18  ;;  %v8627_v48 = vor.u32 %v12572_v59, %v8626_v56  ;;  %v7041_v7 = vadd.f32 %v7040_v4, %v7027_v53  ;;  %v9106_v18 = vld [vmem:[%s13942_s7 + $0x550] sm:$0xf]  ;;  %v7015_v4 = vadd.f32 %v15203_v14, %v7001_v0 }
 0x3f1   : > { %v11756_v21 = vld [vmem:[%s13942_s7 + $0x1a28] sm:$0xf0]  ;;  %v8595_v6 = vor.u32 %v12564_v11, %v8594_v25  ;;  %v12620_v30 = vld [vmem:[%s13942_s7 + $0x32c] sm:$0xf0]  ;;  %v8563_v53 = vor.u32 %v12556_v28, %v8562_v24 }
 0x3f2   : > { %v13415_v15 = vld [vmem:[%s13942_s7 + $0x1c0c] sm:$0xf]  ;;  %v11759_v37 = vor.u32 %v13351_v13, %v11756_v21  ;;  %7304 = vmatpush.bf16.msrb.mxu0 %v11503_v33  ;;  %v8850_v13 = vld [vmem:[%s13942_s7 + $0x350] sm:$0xf]  ;;  %v9395_v21 = vor.u32 %v12764_v50, %v9394_v20  ;;  %v7029_v26 = vadd.f32 %v7028_v42, %v7015_v4 }
 0x3f3   : > { %v12012_v16 = vld [vmem:[%s13942_s7 + $0x1c28] sm:$0xf0]  ;;  %v12684_v49 = vld [vmem:[%s13942_s7 + $0x52c] sm:$0xf0] }
 0x3f4   : > { %v13479_v55 = vld [vmem:[%s13942_s7 + $0x1e0c] sm:$0xf]  ;;  %v12015_v34 = vor.u32 %v13415_v15, %v12012_v16  ;;  %7318 = vmatpush.bf16.msrb.mxu1 %v11759_v37  ;;  %v12628_v15 = vld [vmem:[%s13942_s7 + $0x36c] sm:$0xf0]  ;;  %v7043_v56 = vadd.f32 %v7042_v45, %v7029_v26 }
 0x3f5   : > { %v12268_v23 = vld [vmem:[%s13942_s7 + $0x1e28] sm:$0xf0]  ;;  %7305 = vmatmul.bf16.vlgmr.msrb.gmra.mxu0 %v14251_v32  ;;  %v12692_v16 = vld [vmem:[%s13942_s7 + $0x56c] sm:$0xf0]  ;;  %v8851_v14 = vor.u32 %v12628_v15, %v8850_v13 }
 0x3f6   : > { %v12271_v19 = vor.u32 %v13479_v55, %v12268_v23  ;;  %7332 = vmatpush.bf16.msrb.mxu2 %v12015_v34  ;;  %7353 = vmatpush.bf16.msra.mxu0 %v8659_v52  ;;  %v7055_v55 = vadd.f32 %v7054_v12, %v7041_v7  ;;  %v9362_v23 = vld [vmem:[%s13942_s7 + $0x750] sm:$0xf]  ;;  %v9107_v33 = vor.u32 %v12692_v16, %v9106_v18  ;;  %v7070_v12 = vpop.f32.mrf.mxu3  ;;  %v7110_v18 = vpop.f32.mrf.mxu2 }
 0x3f7   : > { %7319 = vmatmul.bf16.vlgmr.msrb.gmra.mxu1 %v14258_v41  ;;  %v9363_v37 = vor.u32 %v12756_v2, %v9362_v23  ;;  %v9074_v34 = vld [vmem:[%s13942_s7 + $0x510] sm:$0xf]  ;;  %v7057_v20 = vadd.f32 %v7056_v54, %v7043_v56 }
 0x3f8   : > { %7346 = vmatpush.bf16.msrb.mxu3 %v12271_v19  ;;  %7367 = vmatpush.bf16.msra.mxu1 %v8915_v29  ;;  %v7069_v3 = vadd.f32 %v7068_v5, %v7055_v55  ;;  %v7082_v19 = vpop.f32.mrf.mxu0  ;;  %v9330_v52 = vld [vmem:[%s13942_s7 + $0x710] sm:$0xf]  ;;  %v8819_v29 = vor.u32 %v12620_v30, %v8818_v51  ;;  %v9075_v5 = vor.u32 %v12684_v49, %v9074_v34 }
 0x3f9   : > { %7333 = vmatmul.bf16.vlgmr.msrb.gmra.mxu2 %v14256_v38  ;;  %v12748_v22 = vld [vmem:[%s13942_s7 + $0x72c] sm:$0xf0]  ;;  %v7071_v55 = vadd.f32 %v7070_v12, %v7057_v20 }
 0x3fa   : > { %7381 = vmatpush.bf16.msra.mxu2 %v9171_v61  ;;  %7354 = vmatpush.bf16.msra.mxu0 %v8627_v48  ;;  %v7096_v61 = vpop.f32.mrf.mxu1  ;;  %v7083_v59 = vadd.f32 %v7082_v19, %v7069_v3  ;;  %v8530_v60 = vld [vmem:[%s13942_s7 + $0xd0] sm:$0xf]  ;;  %v9331_v62 = vor.u32 %v12748_v22, %v9330_v52 }
 0x3fb   : > { %7347 = vmatmul.bf16.vlgmr.msrb.gmra.mxu3 %v14262_v46  ;;  %v8786_v63 = vld [vmem:[%s13942_s7 + $0x2d0] sm:$0xf] }
 0x3fc   : > { %7395 = vmatpush.bf16.msra.mxu3 %v9427_v9  ;;  %7368 = vmatpush.bf16.msra.mxu1 %v8883_v8  ;;  %v12548_v9 = vld [vmem:[%s13942_s7 + $0xec] sm:$0xf0]  ;;  %v7097_v8 = vadd.f32 %v7096_v61, %v7083_v59 }
 0x3fd   : > { %v12612_v27 = vld [vmem:[%s13942_s7 + $0x2ec] sm:$0xf0]  ;;  %v8531_v48 = vor.u32 %v12548_v9, %v8530_v60 }
 0x3fe   : > { %7382 = vmatpush.bf16.msra.mxu2 %v9139_v57  ;;  %7355 = vmatpush.bf16.msra.mxu0 %v8595_v6  ;;  %v9042_v0 = vld [vmem:[%s13942_s7 + $0x4d0] sm:$0xf]  ;;  %v8787_v57 = vor.u32 %v12612_v27, %v8786_v63  ;;  %v7111_v23 = vadd.f32 %v7110_v18, %v7097_v8  ;;  %v7124_v6 = vpop.f32.mrf.mxu3 }
 0x3ff   : > { %v12676_v42 = vld [vmem:[%s13942_s7 + $0x4ec] sm:$0xf0] }
 0x400   : > { %7396 = vmatpush.bf16.msra.mxu3 %v9395_v21  ;;  %7369 = vmatpush.bf16.msra.mxu1 %v8851_v14  ;;  %v9298_v50 = vld [vmem:[%s13942_s7 + $0x6d0] sm:$0xf]  ;;  %v9043_v25 = vor.u32 %v12676_v42, %v9042_v0  ;;  %v7084_v2 = vpop.f32.mrf.mxu0  ;;  %v7125_v51 = vadd.f32 %v7124_v6, %v7111_v23  ;;  %v7112_v42 = vpop.f32.mrf.mxu2 }
 0x401   : > { %v12740_v45 = vld [vmem:[%s13942_s7 + $0x6ec] sm:$0xf0]  ;;  %v7085_v28 = vadd.f32 %v7084_v2, %v7071_v55 }
 0x402   : > { %7383 = vmatpush.bf16.msra.mxu2 %v9107_v33  ;;  %7356 = vmatpush.bf16.msra.mxu0 %v8563_v53  ;;  %v8498_v7 = vld [vmem:[%s13942_s7 + $0x90] sm:$0xf]  ;;  %v9299_v15 = vor.u32 %v12740_v45, %v9298_v50  ;;  %v7098_v3 = vpop.f32.mrf.mxu1  ;;  %v8251_v22 = vmax.f32 %v7125_v51, 0.0 }
 0x403   : > { %v12540_v11 = vld [vmem:[%s13942_s7 + $0xac] sm:$0xf0]  ;;  %v7099_v60 = vadd.f32 %v7098_v3, %v7085_v28 }
 0x404   : > { %7397 = vmatpush.bf16.msra.mxu3 %v9363_v37  ;;  %7370 = vmatpush.bf16.msra.mxu1 %v8819_v29  ;;  %v8754_v13 = vld [vmem:[%s13942_s7 + $0x290] sm:$0xf]  ;;  %v8499_v14 = vor.u32 %v12540_v11, %v8498_v7  ;;  %8267 = vst [vmem:[%s14637_s11 + $0x10] sm:$0xff] %v8251_v22 }
 0x405   : > { %v12604_v21 = vld [vmem:[%s13942_s7 + $0x2ac] sm:$0xf0] }
 0x406   : > { %7384 = vmatpush.bf16.msra.mxu2 %v9075_v5  ;;  %v9010_v16 = vld [vmem:[%s13942_s7 + $0x490] sm:$0xf]  ;;  %7357 = vmatpush.bf16.msra.mxu0 %v8531_v48  ;;  %v8755_v33 = vor.u32 %v12604_v21, %v8754_v13  ;;  %v7113_v48 = vadd.f32 %v7112_v42, %v7099_v60  ;;  %v7126_v7 = vpop.f32.mrf.mxu3 }
 0x407   : > { %v12668_v4 = vld [vmem:[%s13942_s7 + $0x4ac] sm:$0xf0] }
 0x408   : > { %7398 = vmatpush.bf16.msra.mxu3 %v9331_v62  ;;  %v9266_v24 = vld [vmem:[%s13942_s7 + $0x690] sm:$0xf]  ;;  %7371 = vmatpush.bf16.msra.mxu1 %v8787_v57  ;;  %v9011_v30 = vor.u32 %v12668_v4, %v9010_v16  ;;  %v7127_v18 = vadd.f32 %v7126_v7, %v7113_v48 }
 0x409   : > { %v12732_v26 = vld [vmem:[%s13942_s7 + $0x6ac] sm:$0xf0] }
 0x40a   : > { %7385 = vmatpush.bf16.msra.mxu2 %v9043_v25  ;;  %v8466_v54 = vld [vmem:[%s13942_s7 + $0x50] sm:$0xf]  ;;  %v9267_v49 = vor.u32 %v12732_v26, %v9266_v24  ;;  %7358 = vmatpush.bf16.msra.mxu0 %v8499_v14  ;;  %v8259_v26 = vmax.f32 %v7127_v18, 0.0 }
 0x40b   : > { %v12532_v37 = vld [vmem:[%s13942_s7 + $0x6c] sm:$0xf0] }
 0x40c   : > { %v8722_v34 = vld [vmem:[%s13942_s7 + $0x250] sm:$0xf]  ;;  %7399 = vmatpush.bf16.msra.mxu3 %v9299_v15  ;;  %v8467_v61 = vor.u32 %v12532_v37, %v8466_v54  ;;  %7372 = vmatpush.bf16.msra.mxu1 %v8755_v33  ;;  %8275 = vst [vmem:[%s14637_s11 + $0x50] sm:$0xff] %v8259_v26 }
 0x40d   : > { %v12596_v12 = vld [vmem:[%s13942_s7 + $0x26c] sm:$0xf0] }
 0x40e   : > { %v8978_v19 = vld [vmem:[%s13942_s7 + $0x450] sm:$0xf]  ;;  %7386 = vmatpush.bf16.msra.mxu2 %v9011_v30  ;;  %v8723_v9 = vor.u32 %v12596_v12, %v8722_v34  ;;  %7359 = vmatpush.bf16.msra.mxu0 %v8467_v61 }
 0x40f   : > { %v12660_v52 = vld [vmem:[%s13942_s7 + $0x46c] sm:$0xf0] }
 0x410   : > { %v9234_v53 = vld [vmem:[%s13942_s7 + $0x650] sm:$0xf]  ;;  %v8979_v63 = vor.u32 %v12660_v52, %v8978_v19  ;;  %7400 = vmatpush.bf16.msra.mxu3 %v9267_v49  ;;  %7373 = vmatpush.bf16.msra.mxu1 %v8723_v9 }
 0x411   : > { %v12724_v29 = vld [vmem:[%s13942_s7 + $0x66c] sm:$0xf0] }
 0x412   : > { %v8434_v56 = vld [vmem:[%s13942_s7 + $0x10] sm:$0xf]  ;;  %v9235_v0 = vor.u32 %v12724_v29, %v9234_v53  ;;  %7387 = vmatpush.bf16.msra.mxu2 %v8979_v63 }
 0x413   : > { %v12524_v59 = vld [vmem:[%s13942_s7 + $0x2c] sm:$0xf0] }
 0x414   : > { %v8690_v5 = vld [vmem:[%s13942_s7 + $0x210] sm:$0xf]  ;;  %v8435_v11 = vor.u32 %v12524_v59, %v8434_v56  ;;  %7401 = vmatpush.bf16.msra.mxu3 %v9235_v0 }
 0x415   : > { %v12588_v62 = vld [vmem:[%s13942_s7 + $0x22c] sm:$0xf0] }
 0x416   : > { %v8946_v27 = vld [vmem:[%s13942_s7 + $0x410] sm:$0xf]  ;;  %v8691_v16 = vor.u32 %v12588_v62, %v8690_v5  ;;  %7360 = vmatpush.bf16.msra.mxu0 %v8435_v11 }
 0x417   : > { %v12652_v20 = vld [vmem:[%s13942_s7 + $0x42c] sm:$0xf0] }
 0x418   : > { %v9202_v50 = vld [vmem:[%s13942_s7 + $0x610] sm:$0xf]  ;;  %v8947_v4 = vor.u32 %v12652_v20, %v8946_v27  ;;  %7374 = vmatpush.bf16.msra.mxu1 %v8691_v16 }
 0x419   : > { %v12716_v45 = vld [vmem:[%s13942_s7 + $0x62c] sm:$0xf0]  ;;  %7361 = vmatmul.bf16.vlgmr.msra.gmra.mxu0 %v14030_v58 }
 0x41a   : > { %v9682_v8 = vld [vmem:[%s13942_s7 + $0x9d0] sm:$0xf]  ;;  %v9203_v2 = vor.u32 %v12716_v45, %v9202_v50  ;;  %7388 = vmatpush.bf16.msra.mxu2 %v8947_v4 }
 0x41b   : > { %v12836_v57 = vld [vmem:[%s13942_s7 + $0x9ec] sm:$0xf0]  ;;  %7375 = vmatmul.bf16.vlgmr.msra.gmra.mxu1 %v14042_v10 }
 0x41c   : > { %v9938_v25 = vld [vmem:[%s13942_s7 + $0xbd0] sm:$0xf]  ;;  %v9683_v6 = vor.u32 %v12836_v57, %v9682_v8  ;;  %7402 = vmatpush.bf16.msra.mxu3 %v9203_v2 }
 0x41d   : > { %v12900_v13 = vld [vmem:[%s13942_s7 + $0xbec] sm:$0xf0]  ;;  %7389 = vmatmul.bf16.vlgmr.msra.gmra.mxu2 %v14035_v1 }
 0x41e   : > { %v10194_v21 = vld [vmem:[%s13942_s7 + $0xdd0] sm:$0xf]  ;;  %v9939_v14 = vor.u32 %v12900_v13, %v9938_v25  ;;  %7409 = vmatpush.bf16.msrb.mxu0 %v9683_v6 }
 0x41f   : > { %v12964_v15 = vld [vmem:[%s13942_s7 + $0xdec] sm:$0xf0]  ;;  %7403 = vmatmul.bf16.vlgmr.msra.gmra.mxu3 %v14047_v17 }
 0x420   : > { %v10450_v55 = vld [vmem:[%s13942_s7 + $0xfd0] sm:$0xf]  ;;  %v10195_v33 = vor.u32 %v12964_v15, %v10194_v21  ;;  %7423 = vmatpush.bf16.msrb.mxu1 %v9939_v14 }
 0x421   : > { %v13028_v23 = vld [vmem:[%s13942_s7 + $0xfec] sm:$0xf0] }
 0x422   : > { %v9650_v24 = vld [vmem:[%s13942_s7 + $0x990] sm:$0xf]  ;;  %v10451_v30 = vor.u32 %v13028_v23, %v10450_v55  ;;  %7437 = vmatpush.bf16.msrb.mxu2 %v10195_v33 }
 0x423   : > { %v12828_v28 = vld [vmem:[%s13942_s7 + $0x9ac] sm:$0xf0] }
 0x424   : > { %v9906_v51 = vld [vmem:[%s13942_s7 + $0xb90] sm:$0xf]  ;;  %v9651_v12 = vor.u32 %v12828_v28, %v9650_v24  ;;  %7451 = vmatpush.bf16.msrb.mxu3 %v10451_v30 }
 0x425   : > { %v12892_v54 = vld [vmem:[%s13942_s7 + $0xbac] sm:$0xf0] }
 0x426   : > { %v10162_v37 = vld [vmem:[%s13942_s7 + $0xd90] sm:$0xf]  ;;  %v9907_v19 = vor.u32 %v12892_v54, %v9906_v51  ;;  %7410 = vmatpush.bf16.msrb.mxu0 %v9651_v12 }
 0x427   : > { %v12956_v34 = vld [vmem:[%s13942_s7 + $0xdac] sm:$0xf0] }
 0x428   : > { %v10418_v49 = vld [vmem:[%s13942_s7 + $0xf90] sm:$0xf]  ;;  %v10163_v52 = vor.u32 %v12956_v34, %v10162_v37  ;;  %7424 = vmatpush.bf16.msrb.mxu1 %v9907_v19 }
 0x429   : > { %v13020_v3 = vld [vmem:[%s13942_s7 + $0xfac] sm:$0xf0] }
 0x42a   : > { %v9618_v22 = vld [vmem:[%s13942_s7 + $0x950] sm:$0xf]  ;;  %v10419_v61 = vor.u32 %v13020_v3, %v10418_v49  ;;  %7438 = vmatpush.bf16.msrb.mxu2 %v10163_v52 }
 0x42b   : > { %v12820_v53 = vld [vmem:[%s13942_s7 + $0x96c] sm:$0xf0] }
 0x42c   : > { %v9874_v29 = vld [vmem:[%s13942_s7 + $0xb50] sm:$0xf]  ;;  %v9619_v63 = vor.u32 %v12820_v53, %v9618_v22  ;;  %7452 = vmatpush.bf16.msrb.mxu3 %v10419_v61 }
 0x42d   : > { %v12884_v56 = vld [vmem:[%s13942_s7 + $0xb6c] sm:$0xf0] }
 0x42e   : > { %v10130_v59 = vld [vmem:[%s13942_s7 + $0xd50] sm:$0xf]  ;;  %v9875_v62 = vor.u32 %v12884_v56, %v9874_v29  ;;  %7411 = vmatpush.bf16.msrb.mxu0 %v9619_v63 }
 0x42f   : > { %v12948_v5 = vld [vmem:[%s13942_s7 + $0xd6c] sm:$0xf0] }
 0x430   : > { %v10386_v60 = vld [vmem:[%s13942_s7 + $0xf50] sm:$0xf]  ;;  %v10131_v27 = vor.u32 %v12948_v5, %v10130_v59  ;;  %7425 = vmatpush.bf16.msrb.mxu1 %v9875_v62 }
 0x431   : > { %v13012_v9 = vld [vmem:[%s13942_s7 + $0xf6c] sm:$0xf0] }
 0x432   : > { %v9586_v0 = vld [vmem:[%s13942_s7 + $0x910] sm:$0xf]  ;;  %v10387_v50 = vor.u32 %v13012_v9, %v10386_v60  ;;  %7439 = vmatpush.bf16.msrb.mxu2 %v10131_v27 }
 0x433   : > { %v12812_v42 = vld [vmem:[%s13942_s7 + $0x92c] sm:$0xf0] }
 0x434   : > { %v9842_v20 = vld [vmem:[%s13942_s7 + $0xb10] sm:$0xf]  ;;  %v9587_v25 = vor.u32 %v12812_v42, %v9586_v0  ;;  %7453 = vmatpush.bf16.msrb.mxu3 %v10387_v50 }
 0x435   : > { %v12876_v45 = vld [vmem:[%s13942_s7 + $0xb2c] sm:$0xf0] }
 0x436   : > { %v10098_v48 = vld [vmem:[%s13942_s7 + $0xd10] sm:$0xf]  ;;  %v9843_v11 = vor.u32 %v12876_v45, %v9842_v20  ;;  %7412 = vmatpush.bf16.msrb.mxu0 %v9587_v25 }
 0x437   : > { %v12940_v7 = vld [vmem:[%s13942_s7 + $0xd2c] sm:$0xf0] }
 0x438   : > { %v10354_v8 = vld [vmem:[%s13942_s7 + $0xf10] sm:$0xf]  ;;  %v10099_v13 = vor.u32 %v12940_v7, %v10098_v48  ;;  %7426 = vmatpush.bf16.msrb.mxu1 %v9843_v11 }
 0x439   : > { %v13004_v57 = vld [vmem:[%s13942_s7 + $0xf2c] sm:$0xf0] }
 0x43a   : > { %v9554_v21 = vld [vmem:[%s13942_s7 + $0x8d0] sm:$0xf]  ;;  %v10355_v16 = vor.u32 %v13004_v57, %v10354_v8  ;;  %7440 = vmatpush.bf16.msrb.mxu2 %v10099_v13 }
 0x43b   : > { %v12804_v15 = vld [vmem:[%s13942_s7 + $0x8ec] sm:$0xf0] }
 0x43c   : > { %v9810_v18 = vld [vmem:[%s13942_s7 + $0xad0] sm:$0xf]  ;;  %v9555_v24 = vor.u32 %v12804_v15, %v9554_v21  ;;  %7454 = vmatpush.bf16.msrb.mxu3 %v10355_v16 }
 0x43d   : > { %v12868_v4 = vld [vmem:[%s13942_s7 + $0xaec] sm:$0xf0] }
 0x43e   : > { %v10066_v55 = vld [vmem:[%s13942_s7 + $0xcd0] sm:$0xf]  ;;  %v9811_v26 = vor.u32 %v12868_v4, %v9810_v18  ;;  %7413 = vmatpush.bf16.msrb.mxu0 %v9555_v24 }
 0x43f   : > { %v12932_v23 = vld [vmem:[%s13942_s7 + $0xcec] sm:$0xf0] }
 0x440   : > { %v10322_v2 = vld [vmem:[%s13942_s7 + $0xed0] sm:$0xf]  ;;  %v10067_v14 = vor.u32 %v12932_v23, %v10066_v55  ;;  %7427 = vmatpush.bf16.msrb.mxu1 %v9811_v26 }
 0x441   : > { %v12996_v6 = vld [vmem:[%s13942_s7 + $0xeec] sm:$0xf0] }
 0x442   : > { %v9522_v33 = vld [vmem:[%s13942_s7 + $0x890] sm:$0xf]  ;;  %v10323_v30 = vor.u32 %v12996_v6, %v10322_v2  ;;  %7441 = vmatpush.bf16.msrb.mxu2 %v10067_v14 }
 0x443   : > { %v12796_v28 = vld [vmem:[%s13942_s7 + $0x8ac] sm:$0xf0] }
 0x444   : > { %v9778_v51 = vld [vmem:[%s13942_s7 + $0xa90] sm:$0xf]  ;;  %v9523_v12 = vor.u32 %v12796_v28, %v9522_v33  ;;  %7455 = vmatpush.bf16.msrb.mxu3 %v10323_v30 }
 0x445   : > { %v12860_v54 = vld [vmem:[%s13942_s7 + $0xaac] sm:$0xf0] }
 0x446   : > { %v10034_v37 = vld [vmem:[%s13942_s7 + $0xc90] sm:$0xf]  ;;  %v9779_v19 = vor.u32 %v12860_v54, %v9778_v51  ;;  %7414 = vmatpush.bf16.msrb.mxu0 %v9523_v12 }
 0x447   : > { %v12924_v34 = vld [vmem:[%s13942_s7 + $0xcac] sm:$0xf0] }
 0x448   : > { %v10290_v49 = vld [vmem:[%s13942_s7 + $0xe90] sm:$0xf]  ;;  %v10035_v52 = vor.u32 %v12924_v34, %v10034_v37  ;;  %7428 = vmatpush.bf16.msrb.mxu1 %v9779_v19 }
 0x449   : > { %v12988_v3 = vld [vmem:[%s13942_s7 + $0xeac] sm:$0xf0] }
 0x44a   : > { %v9490_v22 = vld [vmem:[%s13942_s7 + $0x850] sm:$0xf]  ;;  %v10291_v61 = vor.u32 %v12988_v3, %v10290_v49  ;;  %7442 = vmatpush.bf16.msrb.mxu2 %v10035_v52 }
 0x44b   : > { %v12788_v53 = vld [vmem:[%s13942_s7 + $0x86c] sm:$0xf0] }
 0x44c   : > { %v9746_v29 = vld [vmem:[%s13942_s7 + $0xa50] sm:$0xf]  ;;  %v9491_v63 = vor.u32 %v12788_v53, %v9490_v22  ;;  %7456 = vmatpush.bf16.msrb.mxu3 %v10291_v61 }
 0x44d   : > { %v12852_v56 = vld [vmem:[%s13942_s7 + $0xa6c] sm:$0xf0] }
 0x44e   : > { %v10002_v59 = vld [vmem:[%s13942_s7 + $0xc50] sm:$0xf]  ;;  %v9747_v0 = vor.u32 %v12852_v56, %v9746_v29  ;;  %7415 = vmatpush.bf16.msrb.mxu0 %v9491_v63 }
 0x44f   : > { %v12916_v5 = vld [vmem:[%s13942_s7 + $0xc6c] sm:$0xf0] }
 0x450   : > { %v10258_v60 = vld [vmem:[%s13942_s7 + $0xe50] sm:$0xf]  ;;  %v10003_v42 = vor.u32 %v12916_v5, %v10002_v59  ;;  %7429 = vmatpush.bf16.msrb.mxu1 %v9747_v0 }
 0x451   : > { %v12980_v9 = vld [vmem:[%s13942_s7 + $0xe6c] sm:$0xf0] }
 0x452   : > { %v9458_v62 = vld [vmem:[%s13942_s7 + $0x810] sm:$0xf]  ;;  %v10259_v48 = vor.u32 %v12980_v9, %v10258_v60  ;;  %7443 = vmatpush.bf16.msrb.mxu2 %v10003_v42 }
 0x453   : > { %v12780_v27 = vld [vmem:[%s13942_s7 + $0x82c] sm:$0xf0] }
 0x454   : > { %v9714_v20 = vld [vmem:[%s13942_s7 + $0xa10] sm:$0xf]  ;;  %v9459_v21 = vor.u32 %v12780_v27, %v9458_v62  ;;  %7457 = vmatpush.bf16.msrb.mxu3 %v10259_v48 }
 0x455   : > { %v12844_v50 = vld [vmem:[%s13942_s7 + $0xa2c] sm:$0xf0] }
 0x456   : > { %v9970_v45 = vld [vmem:[%s13942_s7 + $0xc10] sm:$0xf]  ;;  %v9715_v4 = vor.u32 %v12844_v50, %v9714_v20  ;;  %7416 = vmatpush.bf16.msrb.mxu0 %v9459_v21 }
 0x457   : > { %v12908_v7 = vld [vmem:[%s13942_s7 + $0xc2c] sm:$0xf0] }
 0x458   : > { %v10226_v8 = vld [vmem:[%s13942_s7 + $0xe10] sm:$0xf]  ;;  %v9971_v55 = vor.u32 %v12908_v7, %v9970_v45  ;;  %7430 = vmatpush.bf16.msrb.mxu1 %v9715_v4 }
 0x459   : > { %v12972_v57 = vld [vmem:[%s13942_s7 + $0xe2c] sm:$0xf0]  ;;  %7417 = vmatmul.bf16.vlgmr.msrb.gmra.mxu0 %v14099_v39 }
 0x45a   : > { %v10706_v25 = vld [vmem:[%s13942_s7 + $0x11d0] sm:$0xf]  ;;  %v10227_v6 = vor.u32 %v12972_v57, %v10226_v8  ;;  %7444 = vmatpush.bf16.msrb.mxu2 %v9971_v55 }
 0x45b   : > { %v13092_v11 = vld [vmem:[%s13942_s7 + $0x11ec] sm:$0xf0]  ;;  %7431 = vmatmul.bf16.vlgmr.msrb.gmra.mxu1 %v14106_v44 }
 0x45c   : > { %v10962_v13 = vld [vmem:[%s13942_s7 + $0x13d0] sm:$0xf]  ;;  %v10707_v24 = vor.u32 %v13092_v11, %v10706_v25  ;;  %7458 = vmatpush.bf16.msrb.mxu3 %v10227_v6 }
 0x45d   : > { %v13156_v15 = vld [vmem:[%s13942_s7 + $0x13ec] sm:$0xf0]  ;;  %7445 = vmatmul.bf16.vlgmr.msrb.gmra.mxu2 %v14104_v43 }
 0x45e   : > { %v11218_v18 = vld [vmem:[%s13942_s7 + $0x15d0] sm:$0xf]  ;;  %v10963_v26 = vor.u32 %v13156_v15, %v10962_v13  ;;  %7465 = vmatpush.bf16.msra.mxu0 %v10707_v24 }
 0x45f   : > { %v13220_v16 = vld [vmem:[%s13942_s7 + $0x15ec] sm:$0xf0]  ;;  %7459 = vmatmul.bf16.vlgmr.msrb.gmra.mxu3 %v14110_v47 }
 0x460   : > { %v11474_v23 = vld [vmem:[%s13942_s7 + $0x17d0] sm:$0xf]  ;;  %v11219_v14 = vor.u32 %v13220_v16, %v11218_v18  ;;  %7479 = vmatpush.bf16.msra.mxu1 %v10963_v26  ;;  %v15403_v26 = vpop.f32.mrf.mxu1 }
 0x461   : > { %v13284_v2 = vld [vmem:[%s13942_s7 + $0x17ec] sm:$0xf0] }
 0x462   : > { %v10674_v33 = vld [vmem:[%s13942_s7 + $0x1190] sm:$0xf]  ;;  %v11475_v30 = vor.u32 %v13284_v2, %v11474_v23  ;;  %7493 = vmatpush.bf16.msra.mxu2 %v11219_v14  ;;  %v15399_v2 = vpop.f32.mrf.mxu0 }
 0x463   : > { %v13084_v28 = vld [vmem:[%s13942_s7 + $0x11ac] sm:$0xf0] }
 0x464   : > { %v10930_v51 = vld [vmem:[%s13942_s7 + $0x1390] sm:$0xf]  ;;  %v10675_v12 = vor.u32 %v13084_v28, %v10674_v33  ;;  %7507 = vmatpush.bf16.msra.mxu3 %v11475_v30 }
 0x465   : > { %v13148_v54 = vld [vmem:[%s13942_s7 + $0x13ac] sm:$0xf0] }
 0x466   : > { %v11186_v37 = vld [vmem:[%s13942_s7 + $0x1590] sm:$0xf]  ;;  %v10931_v19 = vor.u32 %v13148_v54, %v10930_v51  ;;  %7466 = vmatpush.bf16.msra.mxu0 %v10675_v12 }
 0x467   : > { %v13212_v34 = vld [vmem:[%s13942_s7 + $0x15ac] sm:$0xf0] }
 0x468   : > { %v11442_v49 = vld [vmem:[%s13942_s7 + $0x1790] sm:$0xf]  ;;  %v11187_v52 = vor.u32 %v13212_v34, %v11186_v37  ;;  %7480 = vmatpush.bf16.msra.mxu1 %v10931_v19 }
 0x469   : > { %v13276_v3 = vld [vmem:[%s13942_s7 + $0x17ac] sm:$0xf0] }
 0x46a   : > { %v10642_v22 = vld [vmem:[%s13942_s7 + $0x1150] sm:$0xf]  ;;  %v11443_v61 = vor.u32 %v13276_v3, %v11442_v49  ;;  %7494 = vmatpush.bf16.msra.mxu2 %v11187_v52 }
 0x46b   : > { %v13076_v53 = vld [vmem:[%s13942_s7 + $0x116c] sm:$0xf0] }
 0x46c   : > { %v10898_v29 = vld [vmem:[%s13942_s7 + $0x1350] sm:$0xf]  ;;  %v10643_v63 = vor.u32 %v13076_v53, %v10642_v22  ;;  %7508 = vmatpush.bf16.msra.mxu3 %v11443_v61 }
 0x46d   : > { %v13140_v56 = vld [vmem:[%s13942_s7 + $0x136c] sm:$0xf0] }
 0x46e   : > { %v11154_v59 = vld [vmem:[%s13942_s7 + $0x1550] sm:$0xf]  ;;  %v10899_v62 = vor.u32 %v13140_v56, %v10898_v29  ;;  %7467 = vmatpush.bf16.msra.mxu0 %v10643_v63 }
 0x46f   : > { %v13204_v5 = vld [vmem:[%s13942_s7 + $0x156c] sm:$0xf0] }
 0x470   : > { %v11410_v60 = vld [vmem:[%s13942_s7 + $0x1750] sm:$0xf]  ;;  %v11155_v27 = vor.u32 %v13204_v5, %v11154_v59  ;;  %7481 = vmatpush.bf16.msra.mxu1 %v10899_v62  ;;  %v15416_v59 = vpop.f32.mrf.mxu2  ;;  %v15421_v62 = vpop.f32.mrf.mxu3 }
 0x471   : > { %v13268_v9 = vld [vmem:[%s13942_s7 + $0x176c] sm:$0xf0] }
 0x472   : > { %v10610_v0 = vld [vmem:[%s13942_s7 + $0x1110] sm:$0xf]  ;;  %v11411_v50 = vor.u32 %v13268_v9, %v11410_v60  ;;  %7495 = vmatpush.bf16.msra.mxu2 %v11155_v27 }
 0x473   : > { %v13068_v42 = vld [vmem:[%s13942_s7 + $0x112c] sm:$0xf0] }
 0x474   : > { %v10866_v20 = vld [vmem:[%s13942_s7 + $0x1310] sm:$0xf]  ;;  %v10611_v25 = vor.u32 %v13068_v42, %v10610_v0  ;;  %7509 = vmatpush.bf16.msra.mxu3 %v11411_v50  ;;  %v15426_v42 = vld [vmem:[%s14443_s24] sm:$0xff] }
 0x475   : > { %v13132_v45 = vld [vmem:[%s13942_s7 + $0x132c] sm:$0xf0] }
 0x476   : > { %v11122_v48 = vld [vmem:[%s13942_s7 + $0x1510] sm:$0xf]  ;;  %v10867_v11 = vor.u32 %v13132_v45, %v10866_v20  ;;  %7468 = vmatpush.bf16.msra.mxu0 %v10611_v25  ;;  %v1324_v20 = vperm.slane %v15426_v42, 3 }
 0x477   : > { %v13196_v7 = vld [vmem:[%s13942_s7 + $0x152c] sm:$0xf0] }
 0x478   : > { %v11378_v8 = vld [vmem:[%s13942_s7 + $0x1710] sm:$0xf]  ;;  %v11123_v13 = vor.u32 %v13196_v7, %v11122_v48  ;;  %7482 = vmatpush.bf16.msra.mxu1 %v10867_v11  ;;  %v15431_v7 = vpop.f32.mrf.mxu0 }
 0x479   : > { %v13260_v57 = vld [vmem:[%s13942_s7 + $0x172c] sm:$0xf0] }
 0x47a   : > { %v10578_v21 = vld [vmem:[%s13942_s7 + $0x10d0] sm:$0xf]  ;;  %v11379_v16 = vor.u32 %v13260_v57, %v11378_v8  ;;  %7496 = vmatpush.bf16.msra.mxu2 %v11123_v13 }
 0x47b   : > { %v13060_v15 = vld [vmem:[%s13942_s7 + $0x10ec] sm:$0xf0] }
 0x47c   : > { %v10834_v18 = vld [vmem:[%s13942_s7 + $0x12d0] sm:$0xf]  ;;  %v10579_v14 = vor.u32 %v13060_v15, %v10578_v21  ;;  %7510 = vmatpush.bf16.msra.mxu3 %v11379_v16  ;;  %v15436_v21 = vpop.f32.mrf.mxu1 }
 0x47d   : > { %v13124_v4 = vld [vmem:[%s13942_s7 + $0x12ec] sm:$0xf0] }
 0x47e   : > { %v11090_v55 = vld [vmem:[%s13942_s7 + $0x14d0] sm:$0xf]  ;;  %v10835_v33 = vor.u32 %v13124_v4, %v10834_v18  ;;  %7469 = vmatpush.bf16.msra.mxu0 %v10579_v14 }
 0x47f   : > { %v13188_v23 = vld [vmem:[%s13942_s7 + $0x14ec] sm:$0xf0] }
 0x480   : > { %v11346_v6 = vld [vmem:[%s13942_s7 + $0x16d0] sm:$0xf]  ;;  %v11091_v28 = vor.u32 %v13188_v23, %v11090_v55  ;;  %7483 = vmatpush.bf16.msra.mxu1 %v10835_v33 }
 0x481   : > { %v13252_v24 = vld [vmem:[%s13942_s7 + $0x16ec] sm:$0xf0] }
 0x482   : > { %v10546_v51 = vld [vmem:[%s13942_s7 + $0x1090] sm:$0xf]  ;;  %v11347_v37 = vor.u32 %v13252_v24, %v11346_v6  ;;  %7497 = vmatpush.bf16.msra.mxu2 %v11091_v28 }
 0x483   : > { %v13052_v30 = vld [vmem:[%s13942_s7 + $0x10ac] sm:$0xf0] }
 0x484   : > { %v10802_v54 = vld [vmem:[%s13942_s7 + $0x1290] sm:$0xf]  ;;  %v10547_v52 = vor.u32 %v13052_v30, %v10546_v51  ;;  %7511 = vmatpush.bf16.msra.mxu3 %v11347_v37 }
 0x485   : > { %v13116_v34 = vld [vmem:[%s13942_s7 + $0x12ac] sm:$0xf0] }
 0x486   : > { %v11058_v49 = vld [vmem:[%s13942_s7 + $0x1490] sm:$0xf]  ;;  %v10803_v22 = vor.u32 %v13116_v34, %v10802_v54  ;;  %7470 = vmatpush.bf16.msra.mxu0 %v10547_v52 }
 0x487   : > { %v13180_v3 = vld [vmem:[%s13942_s7 + $0x14ac] sm:$0xf0] }
 0x488   : > { %v11314_v12 = vld [vmem:[%s13942_s7 + $0x1690] sm:$0xf]  ;;  %v11059_v53 = vor.u32 %v13180_v3, %v11058_v49  ;;  %7484 = vmatpush.bf16.msra.mxu1 %v10803_v22  ;;  %v7139_v3 = vadd.f32 %v15399_v2, %v1324_v20 }
 0x489   : > { %v13244_v19 = vld [vmem:[%s13942_s7 + $0x16ac] sm:$0xf0] }
 0x48a   : > { %v10514_v29 = vld [vmem:[%s13942_s7 + $0x1050] sm:$0xf]  ;;  %v11315_v5 = vor.u32 %v13244_v19, %v11314_v12  ;;  %7498 = vmatpush.bf16.msra.mxu2 %v11059_v53 }
 0x48b   : > { %v13044_v61 = vld [vmem:[%s13942_s7 + $0x106c] sm:$0xf0] }
 0x48c   : > { %v10770_v56 = vld [vmem:[%s13942_s7 + $0x1250] sm:$0xf]  ;;  %v10515_v50 = vor.u32 %v13044_v61, %v10514_v29  ;;  %7512 = vmatpush.bf16.msra.mxu3 %v11315_v5  ;;  %v15455_v29 = vpop.f32.mrf.mxu2 }
 0x48d   : > { %v13108_v60 = vld [vmem:[%s13942_s7 + $0x126c] sm:$0xf0] }
 0x48e   : > { %v11026_v9 = vld [vmem:[%s13942_s7 + $0x1450] sm:$0xf]  ;;  %v10771_v8 = vor.u32 %v13108_v60, %v10770_v56  ;;  %7471 = vmatpush.bf16.msra.mxu0 %v10515_v50  ;;  %v7194_v50 = vpop.f32.mrf.mxu0 }
 0x48f   : > { %v13172_v63 = vld [vmem:[%s13942_s7 + $0x146c] sm:$0xf0] }
 0x490   : > { %v11282_v27 = vld [vmem:[%s13942_s7 + $0x1650] sm:$0xf]  ;;  %v11027_v57 = vor.u32 %v13172_v63, %v11026_v9  ;;  %7485 = vmatpush.bf16.msra.mxu1 %v10771_v8  ;;  %v15460_v9 = vpop.f32.mrf.mxu3 }
 0x491   : > { %v13236_v0 = vld [vmem:[%s13942_s7 + $0x166c] sm:$0xf0] }
 0x492   : > { %v10482_v45 = vld [vmem:[%s13942_s7 + $0x1010] sm:$0xf]  ;;  %v11283_v15 = vor.u32 %v13236_v0, %v11282_v27  ;;  %7499 = vmatpush.bf16.msra.mxu2 %v11027_v57  ;;  %v7153_v0 = vadd.f32 %v15403_v26, %v7139_v3 }
 0x493   : > { %v13036_v48 = vld [vmem:[%s13942_s7 + $0x102c] sm:$0xf0] }
 0x494   : > { %v10738_v25 = vld [vmem:[%s13942_s7 + $0x1210] sm:$0xf]  ;;  %v10483_v24 = vor.u32 %v13036_v48, %v10482_v45  ;;  %7513 = vmatpush.bf16.msra.mxu3 %v11283_v15  ;;  %v15491_v3 = vpop.f32.mrf.mxu2 }
 0x495   : > { %v13100_v11 = vld [vmem:[%s13942_s7 + $0x122c] sm:$0xf0] }
 0x496   : > { %v10994_v13 = vld [vmem:[%s13942_s7 + $0x1410] sm:$0xf]  ;;  %v10739_v51 = vor.u32 %v13100_v11, %v10738_v25  ;;  %7472 = vmatpush.bf16.msra.mxu0 %v10483_v24  ;;  %v15468_v11 = vpop.f32.mrf.mxu1 }
 0x497   : > { %v13164_v18 = vld [vmem:[%s13942_s7 + $0x142c] sm:$0xf0] }
 0x498   : > { %v11250_v16 = vld [vmem:[%s13942_s7 + $0x1610] sm:$0xf]  ;;  %v10995_v30 = vor.u32 %v13164_v18, %v10994_v13  ;;  %7486 = vmatpush.bf16.msra.mxu1 %v10739_v51 }
 0x499   : > { %v13228_v4 = vld [vmem:[%s13942_s7 + $0x162c] sm:$0xf0]  ;;  %7473 = vmatmul.bf16.vlgmr.msra.gmra.mxu0 %v14175_v31 }
 0x49a   : > { %v11730_v55 = vld [vmem:[%s13942_s7 + $0x19d0] sm:$0xf]  ;;  %v11251_v34 = vor.u32 %v13228_v4, %v11250_v16  ;;  %7500 = vmatpush.bf16.msra.mxu2 %v10995_v30 }
 0x49b   : > { %v13348_v23 = vld [vmem:[%s13942_s7 + $0x19ec] sm:$0xf0]  ;;  %7487 = vmatmul.bf16.vlgmr.msra.gmra.mxu1 %v14182_v36 }
 0x49c   : > { %v11986_v6 = vld [vmem:[%s13942_s7 + $0x1bd0] sm:$0xf]  ;;  %v11731_v49 = vor.u32 %v13348_v23, %v11730_v55  ;;  %7514 = vmatpush.bf16.msra.mxu3 %v11251_v34  ;;  %v7167_v23 = vadd.f32 %v15416_v59, %v7153_v0  ;;  %v7141_v34 = vadd.f32 %v15431_v7, %v1324_v20 }
 0x49d   : > { %v13412_v14 = vld [vmem:[%s13942_s7 + $0x1bec] sm:$0xf0]  ;;  %7501 = vmatmul.bf16.vlgmr.msra.gmra.mxu2 %v14180_v35 }
 0x49e   : > { %v12242_v33 = vld [vmem:[%s13942_s7 + $0x1dd0] sm:$0xf]  ;;  %v11987_v12 = vor.u32 %v13412_v14, %v11986_v6  ;;  %7521 = vmatpush.bf16.msrb.mxu0 %v11731_v49  ;;  %v15505_v0 = vpop.f32.mrf.mxu1 }
 0x49f   : > { %v13476_v28 = vld [vmem:[%s13942_s7 + $0x1dec] sm:$0xf0]  ;;  %7515 = vmatmul.bf16.vlgmr.msra.gmra.mxu3 %v14186_v40 }
 0x4a0   : > { %v12498_v54 = vld [vmem:[%s13942_s7 + $0x1fd0] sm:$0xf]  ;;  %v12243_v19 = vor.u32 %v13476_v28, %v12242_v33  ;;  %7535 = vmatpush.bf16.msrb.mxu1 %v11987_v12 }
 0x4a1   : > { %v13540_v37 = vld [vmem:[%s13942_s7 + $0x1fec] sm:$0xf0] }
 0x4a2   : > { %v11698_v52 = vld [vmem:[%s13942_s7 + $0x1990] sm:$0xf]  ;;  %v12499_v61 = vor.u32 %v13540_v37, %v12498_v54  ;;  %7549 = vmatpush.bf16.msrb.mxu2 %v12243_v19  ;;  %v7181_v19 = vadd.f32 %v15421_v62, %v7167_v23  ;;  %v7155_v62 = vadd.f32 %v15436_v21, %v7141_v34 }
 0x4a3   : > { %v13340_v22 = vld [vmem:[%s13942_s7 + $0x19ac] sm:$0xf0] }
 0x4a4   : > { %v11954_v53 = vld [vmem:[%s13942_s7 + $0x1b90] sm:$0xf]  ;;  %v11699_v27 = vor.u32 %v13340_v22, %v11698_v52  ;;  %7563 = vmatpush.bf16.msrb.mxu3 %v12499_v61  ;;  %v15494_v52 = vpop.f32.mrf.mxu3 }
 0x4a5   : > { %v13404_v56 = vld [vmem:[%s13942_s7 + $0x1bac] sm:$0xf0] }
 0x4a6   : > { %v12210_v5 = vld [vmem:[%s13942_s7 + $0x1d90] sm:$0xf]  ;;  %v11955_v45 = vor.u32 %v13404_v56, %v11954_v53  ;;  %7522 = vmatpush.bf16.msrb.mxu0 %v11699_v27 }
 0x4a7   : > { %v13468_v60 = vld [vmem:[%s13942_s7 + $0x1dac] sm:$0xf0] }
 0x4a8   : > { %v12466_v2 = vld [vmem:[%s13942_s7 + $0x1f90] sm:$0xf]  ;;  %v12211_v48 = vor.u32 %v13468_v60, %v12210_v5  ;;  %7536 = vmatpush.bf16.msrb.mxu1 %v11955_v45 }
 0x4a9   : > { %v13532_v63 = vld [vmem:[%s13942_s7 + $0x1fac] sm:$0xf0] }
 0x4aa   : > { %v11666_v8 = vld [vmem:[%s13942_s7 + $0x1950] sm:$0xf]  ;;  %v12467_v13 = vor.u32 %v13532_v63, %v12466_v2  ;;  %7550 = vmatpush.bf16.msrb.mxu2 %v12211_v48  ;;  %v7196_v2 = vpop.f32.mrf.mxu0  ;;  %v7195_v48 = vadd.f32 %v7194_v50, %v7181_v19 }
 0x4ab   : > { %v13332_v57 = vld [vmem:[%s13942_s7 + $0x196c] sm:$0xf0] }
 0x4ac   : > { %v11922_v25 = vld [vmem:[%s13942_s7 + $0x1b50] sm:$0xf]  ;;  %v11667_v55 = vor.u32 %v13332_v57, %v11666_v8  ;;  %7564 = vmatpush.bf16.msrb.mxu3 %v12467_v13 }
 0x4ad   : > { %v13396_v15 = vld [vmem:[%s13942_s7 + $0x1b6c] sm:$0xf0] }
 0x4ae   : > { %v12178_v26 = vld [vmem:[%s13942_s7 + $0x1d50] sm:$0xf]  ;;  %v11923_v6 = vor.u32 %v13396_v15, %v11922_v25  ;;  %7523 = vmatpush.bf16.msrb.mxu0 %v11667_v55 }
 0x4af   : > { %v13460_v18 = vld [vmem:[%s13942_s7 + $0x1d6c] sm:$0xf0] }
 0x4b0   : > { %v12434_v16 = vld [vmem:[%s13942_s7 + $0x1f50] sm:$0xf]  ;;  %v12179_v24 = vor.u32 %v13460_v18, %v12178_v26  ;;  %7537 = vmatpush.bf16.msrb.mxu1 %v11923_v6  ;;  %v7209_v6 = vadd.f32 %v15468_v11, %v7195_v48 }
 0x4b1   : > { %v13524_v4 = vld [vmem:[%s13942_s7 + $0x1f6c] sm:$0xf0] }
 0x4b2   : > { %v11634_v14 = vld [vmem:[%s13942_s7 + $0x1910] sm:$0xf]  ;;  %v12435_v51 = vor.u32 %v13524_v4, %v12434_v16  ;;  %7551 = vmatpush.bf16.msrb.mxu2 %v12179_v24  ;;  %v7169_v4 = vadd.f32 %v15455_v29, %v7155_v62  ;;  %v7224_v29 = vpop.f32.mrf.mxu2 }
 0x4b3   : > { %v13324_v33 = vld [vmem:[%s13942_s7 + $0x192c] sm:$0xf0] }
 0x4b4   : > { %v11890_v28 = vld [vmem:[%s13942_s7 + $0x1b10] sm:$0xf]  ;;  %v11635_v12 = vor.u32 %v13324_v33, %v11634_v14  ;;  %7565 = vmatpush.bf16.msrb.mxu3 %v12435_v51  ;;  %v7183_v11 = vadd.f32 %v15460_v9, %v7169_v4  ;;  %v12768_v4 = vld [vmem:[%s13942_s7 + $0x7d4] sm:$0xf] }
 0x4b5   : > { %v13388_v30 = vld [vmem:[%s13942_s7 + $0x1b2c] sm:$0xf0] }
 0x4b6   : > { %v12146_v54 = vld [vmem:[%s13942_s7 + $0x1d10] sm:$0xf]  ;;  %v11891_v42 = vor.u32 %v13388_v30, %v11890_v28  ;;  %7524 = vmatpush.bf16.msrb.mxu0 %v11635_v12  ;;  %v7197_v48 = vadd.f32 %v7196_v2, %v7183_v11  ;;  %v9428_v2 = vld [vmem:[%s13942_s7 + $0x7f0] sm:$0xf0] }
 0x4b7   : > { %v13452_v37 = vld [vmem:[%s13942_s7 + $0x1d2c] sm:$0xf0]  ;;  %v9140_v11 = vld [vmem:[%s13942_s7 + $0x5b0] sm:$0xf0] }
 0x4b8   : > { %v12402_v59 = vld [vmem:[%s13942_s7 + $0x1f10] sm:$0xf]  ;;  %v12147_v22 = vor.u32 %v13452_v37, %v12146_v54  ;;  %7538 = vmatpush.bf16.msrb.mxu1 %v11891_v42  ;;  %v7264_v42 = vpop.f32.mrf.mxu1 }
 0x4b9   : > { %v13516_v49 = vld [vmem:[%s13942_s7 + $0x1f2c] sm:$0xf0] }
 0x4ba   : > { %v11602_v20 = vld [vmem:[%s13942_s7 + $0x18d0] sm:$0xf]  ;;  %v12403_v61 = vor.u32 %v13516_v49, %v12402_v59  ;;  %7552 = vmatpush.bf16.msrb.mxu2 %v12147_v22  ;;  %v15524_v59 = vpop.f32.mrf.mxu3  ;;  %v7250_v49 = vpop.f32.mrf.mxu0 }
 0x4bb   : > { %v13316_v7 = vld [vmem:[%s13942_s7 + $0x18ec] sm:$0xf0] }
 0x4bc   : > { %v11858_v53 = vld [vmem:[%s13942_s7 + $0x1ad0] sm:$0xf]  ;;  %v11603_v45 = vor.u32 %v13316_v7, %v11602_v20  ;;  %7566 = vmatpush.bf16.msrb.mxu3 %v12403_v61 }
 0x4bd   : > { %v13380_v56 = vld [vmem:[%s13942_s7 + $0x1aec] sm:$0xf0] }
 0x4be   : > { %v12114_v5 = vld [vmem:[%s13942_s7 + $0x1cd0] sm:$0xf]  ;;  %v11859_v8 = vor.u32 %v13380_v56, %v11858_v53  ;;  %7525 = vmatpush.bf16.msrb.mxu0 %v11603_v45  ;;  %v7223_v53 = vadd.f32 %v15491_v3, %v7209_v6  ;;  %v12576_v3 = vld [vmem:[%s13942_s7 + $0x1d4] sm:$0xf]  ;;  %v7211_v6 = vadd.f32 %v15505_v0, %v7197_v48 }
 0x4bf   : > { %v13444_v60 = vld [vmem:[%s13942_s7 + $0x1cec] sm:$0xf0]  ;;  %v12760_v0 = vld [vmem:[%s13942_s7 + $0x794] sm:$0xf] }
 0x4c0   : > { %v12370_v63 = vld [vmem:[%s13942_s7 + $0x1ed0] sm:$0xf]  ;;  %v12115_v57 = vor.u32 %v13444_v60, %v12114_v5  ;;  %7539 = vmatpush.bf16.msrb.mxu1 %v11859_v8  ;;  %v8660_v8 = vld [vmem:[%s13942_s7 + $0x1f0] sm:$0xf0] }
 0x4c1   : > { %v13508_v27 = vld [vmem:[%s13942_s7 + $0x1eec] sm:$0xf0]  ;;  %v9364_v48 = vld [vmem:[%s13942_s7 + $0x770] sm:$0xf0] }
 0x4c2   : > { %v11570_v25 = vld [vmem:[%s13942_s7 + $0x1890] sm:$0xf]  ;;  %v12371_v15 = vor.u32 %v13508_v27, %v12370_v63  ;;  %7553 = vmatpush.bf16.msrb.mxu2 %v12115_v57  ;;  %v12640_v57 = vld [vmem:[%s13942_s7 + $0x3d4] sm:$0xf] }
 0x4c3   : > { %v13308_v13 = vld [vmem:[%s13942_s7 + $0x18ac] sm:$0xf0] }
 0x4c4   : > { %v11826_v21 = vld [vmem:[%s13942_s7 + $0x1a90] sm:$0xf]  ;;  %v11571_v23 = vor.u32 %v13308_v13, %v11570_v25  ;;  %7567 = vmatpush.bf16.msrb.mxu3 %v12371_v15  ;;  %v8916_v13 = vld [vmem:[%s13942_s7 + $0x3f0] sm:$0xf0] }
 0x4c5   : > { %v13372_v26 = vld [vmem:[%s13942_s7 + $0x1aac] sm:$0xf0]  ;;  %v9172_v15 = vld [vmem:[%s13942_s7 + $0x5f0] sm:$0xf0] }
 0x4c6   : > { %v12082_v18 = vld [vmem:[%s13942_s7 + $0x1c90] sm:$0xf]  ;;  %v11827_v24 = vor.u32 %v13372_v26, %v11826_v21  ;;  %7526 = vmatpush.bf16.msrb.mxu0 %v11571_v23  ;;  %v12704_v21 = vld [vmem:[%s13942_s7 + $0x5d4] sm:$0xf]  ;;  %v7237_v26 = vadd.f32 %v15494_v52, %v7223_v53  ;;  %v8663_v23 = vor.u32 %v12576_v3, %v8660_v8  ;;  %v7292_v52 = vpop.f32.mrf.mxu3 }
 0x4c7   : > { %v13436_v16 = vld [vmem:[%s13942_s7 + $0x1cac] sm:$0xf0]  ;;  %v12552_v8 = vld [vmem:[%s13942_s7 + $0x114] sm:$0xf] }
 0x4c8   : > { %v12338_v55 = vld [vmem:[%s13942_s7 + $0x1e90] sm:$0xf]  ;;  %v12083_v14 = vor.u32 %v13436_v16, %v12082_v18  ;;  %7540 = vmatpush.bf16.msrb.mxu1 %v11827_v24  ;;  %v7251_v24 = vadd.f32 %v7250_v49, %v7237_v26  ;;  %v9396_v49 = vld [vmem:[%s13942_s7 + $0x7b0] sm:$0xf0] }
 0x4c9   : > { %v13500_v50 = vld [vmem:[%s13942_s7 + $0x1eac] sm:$0xf0] }
 0x4ca   : > { %v11538_v33 = vld [vmem:[%s13942_s7 + $0x1850] sm:$0xf]  ;;  %v12339_v30 = vor.u32 %v13500_v50, %v12338_v55  ;;  %7554 = vmatpush.bf16.msrb.mxu2 %v12083_v14  ;;  %v7278_v55 = vpop.f32.mrf.mxu2  ;;  %v8919_v14 = vor.u32 %v12640_v57, %v8916_v13  ;;  %v8564_v13 = vld [vmem:[%s13942_s7 + $0x130] sm:$0xf0] }
 0x4cb   : > { %v13300_v28 = vld [vmem:[%s13942_s7 + $0x186c] sm:$0xf0] }
 0x4cc   : > { %v11794_v51 = vld [vmem:[%s13942_s7 + $0x1a50] sm:$0xf]  ;;  %v11539_v22 = vor.u32 %v13300_v28, %v11538_v33  ;;  %7568 = vmatpush.bf16.msrb.mxu3 %v12339_v30  ;;  %v9175_v33 = vor.u32 %v12704_v21, %v9172_v15  ;;  %v12568_v28 = vld [vmem:[%s13942_s7 + $0x194] sm:$0xf] }
 0x4cd   : > { %v13364_v54 = vld [vmem:[%s13942_s7 + $0x1a6c] sm:$0xf0]  ;;  %v12632_v30 = vld [vmem:[%s13942_s7 + $0x394] sm:$0xf] }
 0x4ce   : > { %v12050_v37 = vld [vmem:[%s13942_s7 + $0x1c50] sm:$0xf]  ;;  %v11795_v9 = vor.u32 %v13364_v54, %v11794_v51  ;;  %7527 = vmatpush.bf16.msrb.mxu0 %v11539_v22  ;;  %v8628_v51 = vld [vmem:[%s13942_s7 + $0x1b0] sm:$0xf0]  ;;  %v9431_v54 = vor.u32 %v12768_v4, %v9428_v2  ;;  %v7266_v22 = vpop.f32.mrf.mxu1 }
 0x4cf   : > { %v13428_v34 = vld [vmem:[%s13942_s7 + $0x1c6c] sm:$0xf0]  ;;  %v12616_v21 = vld [vmem:[%s13942_s7 + $0x314] sm:$0xf] }
 0x4d0   : > { %v12306_v12 = vld [vmem:[%s13942_s7 + $0x1e50] sm:$0xf]  ;;  %v12051_v61 = vor.u32 %v13428_v34, %v12050_v37  ;;  %7541 = vmatpush.bf16.msrb.mxu1 %v11795_v9  ;;  %v8884_v37 = vld [vmem:[%s13942_s7 + $0x3b0] sm:$0xf0] }
 0x4d1   : > { %v13492_v19 = vld [vmem:[%s13942_s7 + $0x1e6c] sm:$0xf0]  ;;  %v12696_v34 = vld [vmem:[%s13942_s7 + $0x594] sm:$0xf]  ;;  %v8887_v53 = vor.u32 %v12632_v30, %v8884_v37 }
 0x4d2   : > { %v11506_v20 = vld [vmem:[%s13942_s7 + $0x1810] sm:$0xf]  ;;  %v12307_v62 = vor.u32 %v13492_v19, %v12306_v12  ;;  %7555 = vmatpush.bf16.msrb.mxu2 %v12051_v61  ;;  %v7225_v12 = vadd.f32 %v7224_v29, %v7211_v6  ;;  %v7252_v19 = vpop.f32.mrf.mxu0  ;;  %v9143_v29 = vor.u32 %v12696_v34, %v9140_v11  ;;  %v12560_v9 = vld [vmem:[%s13942_s7 + $0x154] sm:$0xf]  ;;  %v7280_v26 = vpop.f32.mrf.mxu2 }
 0x4d3   : > { %v13292_v7 = vld [vmem:[%s13942_s7 + $0x182c] sm:$0xf0]  ;;  %v8596_v61 = vld [vmem:[%s13942_s7 + $0x170] sm:$0xf0] }
 0x4d4   : > { %v11762_v56 = vld [vmem:[%s13942_s7 + $0x1a10] sm:$0xf]  ;;  %v11507_v25 = vor.u32 %v13292_v7, %v11506_v20  ;;  %7569 = vmatpush.bf16.msrb.mxu3 %v12307_v62  ;;  %v8631_v20 = vor.u32 %v12568_v28, %v8628_v51  ;;  %v7265_v7 = vadd.f32 %v7264_v42, %v7251_v24  ;;  %v12688_v62 = vld [vmem:[%s13942_s7 + $0x554] sm:$0xf]  ;;  %v7239_v42 = vadd.f32 %v15524_v59, %v7225_v12 }
 0x4d5   : > { %v13356_v5 = vld [vmem:[%s13942_s7 + $0x1a2c] sm:$0xf0]  ;;  %v8599_v3 = vor.u32 %v12560_v9, %v8596_v61  ;;  %v8820_v15 = vld [vmem:[%s13942_s7 + $0x330] sm:$0xf0]  ;;  %v8567_v24 = vor.u32 %v12552_v8, %v8564_v13 }
 0x4d6   : > { %v12018_v60 = vld [vmem:[%s13942_s7 + $0x1c10] sm:$0xf]  ;;  %v11763_v18 = vor.u32 %v13356_v5, %v11762_v56  ;;  %7528 = vmatpush.bf16.msrb.mxu0 %v11507_v25  ;;  %v12624_v56 = vld [vmem:[%s13942_s7 + $0x354] sm:$0xf]  ;;  %v9399_v5 = vor.u32 %v12760_v0, %v9396_v49  ;;  %v7253_v57 = vadd.f32 %v7252_v19, %v7239_v42 }
 0x4d7   : > { %v13420_v63 = vld [vmem:[%s13942_s7 + $0x1c2c] sm:$0xf0]  ;;  %v9076_v4 = vld [vmem:[%s13942_s7 + $0x530] sm:$0xf0] }
 0x4d8   : > { %v12274_v27 = vld [vmem:[%s13942_s7 + $0x1e10] sm:$0xf]  ;;  %v12019_v16 = vor.u32 %v13420_v63, %v12018_v60  ;;  %7542 = vmatpush.bf16.msrb.mxu1 %v11763_v18  ;;  %v8852_v60 = vld [vmem:[%s13942_s7 + $0x370] sm:$0xf0]  ;;  %v7267_v28 = vadd.f32 %v7266_v22, %v7253_v57 }
 0x4d9   : > { %v13484_v45 = vld [vmem:[%s13942_s7 + $0x1e2c] sm:$0xf0]  ;;  %7529 = vmatmul.bf16.vlgmr.msrb.gmra.mxu0 %v14251_v32  ;;  %v9108_v63 = vld [vmem:[%s13942_s7 + $0x570] sm:$0xf0]  ;;  %v8855_v59 = vor.u32 %v12624_v56, %v8852_v60 }
 0x4da   : > { %v12275_v50 = vor.u32 %v13484_v45, %v12274_v27  ;;  %7556 = vmatpush.bf16.msrb.mxu2 %v12019_v16  ;;  %7577 = vmatpush.bf16.msra.mxu0 %v8663_v23  ;;  %v7279_v27 = vadd.f32 %v7278_v55, %v7265_v7  ;;  %v12752_v45 = vld [vmem:[%s13942_s7 + $0x754] sm:$0xf]  ;;  %v9111_v25 = vor.u32 %v12688_v62, %v9108_v63  ;;  %v7294_v55 = vpop.f32.mrf.mxu3  ;;  %v7334_v62 = vpop.f32.mrf.mxu2 }
 0x4db   : > { %7543 = vmatmul.bf16.vlgmr.msrb.gmra.mxu1 %v14258_v41  ;;  %v9367_v18 = vor.u32 %v12752_v45, %v9364_v48  ;;  %v12680_v16 = vld [vmem:[%s13942_s7 + $0x514] sm:$0xf]  ;;  %v7281_v0 = vadd.f32 %v7280_v26, %v7267_v28 }
 0x4dc   : > { %7570 = vmatpush.bf16.msrb.mxu3 %v12275_v50  ;;  %7591 = vmatpush.bf16.msra.mxu1 %v8919_v14  ;;  %v7293_v2 = vadd.f32 %v7292_v52, %v7279_v27  ;;  %v7306_v50 = vpop.f32.mrf.mxu0  ;;  %v12744_v23 = vld [vmem:[%s13942_s7 + $0x714] sm:$0xf]  ;;  %v8823_v14 = vor.u32 %v12616_v21, %v8820_v15  ;;  %v9079_v52 = vor.u32 %v12680_v16, %v9076_v4 }
 0x4dd   : > { %7557 = vmatmul.bf16.vlgmr.msrb.gmra.mxu2 %v14256_v38  ;;  %v9332_v6 = vld [vmem:[%s13942_s7 + $0x730] sm:$0xf0]  ;;  %v7295_v27 = vadd.f32 %v7294_v55, %v7281_v0 }
 0x4de   : > { %7605 = vmatpush.bf16.msra.mxu2 %v9175_v33  ;;  %7578 = vmatpush.bf16.msra.mxu0 %v8631_v20  ;;  %v7320_v33 = vpop.f32.mrf.mxu1  ;;  %v7307_v51 = vadd.f32 %v7306_v50, %v7293_v2  ;;  %v12544_v30 = vld [vmem:[%s13942_s7 + $0xd4] sm:$0xf]  ;;  %v9335_v34 = vor.u32 %v12744_v23, %v9332_v6 }
 0x4df   : > { %7571 = vmatmul.bf16.vlgmr.msrb.gmra.mxu3 %v14262_v46  ;;  %v12608_v37 = vld [vmem:[%s13942_s7 + $0x2d4] sm:$0xf] }
 0x4e0   : > { %7619 = vmatpush.bf16.msra.mxu3 %v9431_v54  ;;  %7592 = vmatpush.bf16.msra.mxu1 %v8887_v53  ;;  %v8532_v54 = vld [vmem:[%s13942_s7 + $0xf0] sm:$0xf0]  ;;  %v7321_v53 = vadd.f32 %v7320_v33, %v7307_v51 }
 0x4e1   : > { %v8788_v11 = vld [vmem:[%s13942_s7 + $0x2f0] sm:$0xf0]  ;;  %v8535_v20 = vor.u32 %v12544_v30, %v8532_v54 }
 0x4e2   : > { %7606 = vmatpush.bf16.msra.mxu2 %v9143_v29  ;;  %7579 = vmatpush.bf16.msra.mxu0 %v8599_v3  ;;  %v12672_v12 = vld [vmem:[%s13942_s7 + $0x4d4] sm:$0xf]  ;;  %v8791_v29 = vor.u32 %v12608_v37, %v8788_v11  ;;  %v7335_v45 = vadd.f32 %v7334_v62, %v7321_v53  ;;  %v7348_v3 = vpop.f32.mrf.mxu3 }
 0x4e3   : > { %v9044_v19 = vld [vmem:[%s13942_s7 + $0x4f0] sm:$0xf0] }
 0x4e4   : > { %7620 = vmatpush.bf16.msra.mxu3 %v9399_v5  ;;  %7593 = vmatpush.bf16.msra.mxu1 %v8855_v59  ;;  %v12736_v49 = vld [vmem:[%s13942_s7 + $0x6d4] sm:$0xf]  ;;  %v9047_v9 = vor.u32 %v12672_v12, %v9044_v19  ;;  %v7308_v48 = vpop.f32.mrf.mxu0  ;;  %v7349_v21 = vadd.f32 %v7348_v3, %v7335_v45  ;;  %v7336_v19 = vpop.f32.mrf.mxu2 }
 0x4e5   : > { %v9300_v22 = vld [vmem:[%s13942_s7 + $0x6f0] sm:$0xf0]  ;;  %v7309_v13 = vadd.f32 %v7308_v48, %v7295_v27 }
 0x4e6   : > { %7607 = vmatpush.bf16.msra.mxu2 %v9111_v25  ;;  %7580 = vmatpush.bf16.msra.mxu0 %v8567_v24  ;;  %v12536_v7 = vld [vmem:[%s13942_s7 + $0x94] sm:$0xf]  ;;  %v9303_v60 = vor.u32 %v12736_v49, %v9300_v22  ;;  %v7322_v2 = vpop.f32.mrf.mxu1  ;;  %v8252_v6 = vmax.f32 %v7349_v21, 0.0 }
 0x4e7   : > { %v8500_v61 = vld [vmem:[%s13942_s7 + $0xb0] sm:$0xf0]  ;;  %v7323_v30 = vadd.f32 %v7322_v2, %v7309_v13 }
 0x4e8   : > { %7621 = vmatpush.bf16.msra.mxu3 %v9367_v18  ;;  %7594 = vmatpush.bf16.msra.mxu1 %v8823_v14  ;;  %v12600_v56 = vld [vmem:[%s13942_s7 + $0x294] sm:$0xf]  ;;  %v8503_v59 = vor.u32 %v12536_v7, %v8500_v61  ;;  %8268 = vst [vmem:[%s14637_s11 + $0x18] sm:$0xff] %v8252_v6 }
 0x4e9   : > { %v8756_v5 = vld [vmem:[%s13942_s7 + $0x2b0] sm:$0xf0] }
 0x4ea   : > { %7608 = vmatpush.bf16.msra.mxu2 %v9079_v52  ;;  %v12664_v63 = vld [vmem:[%s13942_s7 + $0x494] sm:$0xf]  ;;  %7581 = vmatpush.bf16.msra.mxu0 %v8535_v20  ;;  %v8759_v25 = vor.u32 %v12600_v56, %v8756_v5  ;;  %v7337_v20 = vadd.f32 %v7336_v19, %v7323_v30  ;;  %v7350_v7 = vpop.f32.mrf.mxu3 }
 0x4eb   : > { %v9012_v42 = vld [vmem:[%s13942_s7 + $0x4b0] sm:$0xf0] }
 0x4ec   : > { %7622 = vmatpush.bf16.msra.mxu3 %v9335_v34  ;;  %v12728_v8 = vld [vmem:[%s13942_s7 + $0x694] sm:$0xf]  ;;  %7595 = vmatpush.bf16.msra.mxu1 %v8791_v29  ;;  %v9015_v15 = vor.u32 %v12664_v63, %v9012_v42  ;;  %v7351_v62 = vadd.f32 %v7350_v7, %v7337_v20 }
 0x4ed   : > { %v9268_v57 = vld [vmem:[%s13942_s7 + $0x6b0] sm:$0xf0] }
 0x4ee   : > { %7609 = vmatpush.bf16.msra.mxu2 %v9047_v9  ;;  %v12528_v26 = vld [vmem:[%s13942_s7 + $0x54] sm:$0xf]  ;;  %v9271_v4 = vor.u32 %v12728_v8, %v9268_v57  ;;  %7582 = vmatpush.bf16.msra.mxu0 %v8503_v59  ;;  %v8260_v57 = vmax.f32 %v7351_v62, 0.0 }
 0x4ef   : > { %v8468_v18 = vld [vmem:[%s13942_s7 + $0x70] sm:$0xf0] }
 0x4f0   : > { %v12592_v16 = vld [vmem:[%s13942_s7 + $0x254] sm:$0xf]  ;;  %7623 = vmatpush.bf16.msra.mxu3 %v9303_v60  ;;  %v8471_v33 = vor.u32 %v12528_v26, %v8468_v18  ;;  %7596 = vmatpush.bf16.msra.mxu1 %v8759_v25  ;;  %8276 = vst [vmem:[%s14637_s11 + $0x58] sm:$0xff] %v8260_v57 }
 0x4f1   : > { %v8724_v55 = vld [vmem:[%s13942_s7 + $0x270] sm:$0xf0] }
 0x4f2   : > { %v12656_v50 = vld [vmem:[%s13942_s7 + $0x454] sm:$0xf]  ;;  %7610 = vmatpush.bf16.msra.mxu2 %v9015_v15  ;;  %v8727_v54 = vor.u32 %v12592_v16, %v8724_v55  ;;  %7583 = vmatpush.bf16.msra.mxu0 %v8471_v33 }
 0x4f3   : > { %v8980_v23 = vld [vmem:[%s13942_s7 + $0x470] sm:$0xf0] }
 0x4f4   : > { %v12720_v24 = vld [vmem:[%s13942_s7 + $0x654] sm:$0xf]  ;;  %v8983_v37 = vor.u32 %v12656_v50, %v8980_v23  ;;  %7624 = vmatpush.bf16.msra.mxu3 %v9271_v4  ;;  %7597 = vmatpush.bf16.msra.mxu1 %v8727_v54 }
 0x4f5   : > { %v9236_v14 = vld [vmem:[%s13942_s7 + $0x670] sm:$0xf0] }
 0x4f6   : > { %v12520_v28 = vld [vmem:[%s13942_s7 + $0x14] sm:$0xf]  ;;  %v9239_v12 = vor.u32 %v12720_v24, %v9236_v14  ;;  %7611 = vmatpush.bf16.msra.mxu2 %v8983_v37 }
 0x4f7   : > { %v8436_v51 = vld [vmem:[%s13942_s7 + $0x30] sm:$0xf0] }
 0x4f8   : > { %v12584_v52 = vld [vmem:[%s13942_s7 + $0x214] sm:$0xf]  ;;  %v8439_v61 = vor.u32 %v12520_v28, %v8436_v51  ;;  %7625 = vmatpush.bf16.msra.mxu3 %v9239_v12 }
 0x4f9   : > { %v8692_v34 = vld [vmem:[%s13942_s7 + $0x230] sm:$0xf0] }
 0x4fa   : > { %v12648_v11 = vld [vmem:[%s13942_s7 + $0x414] sm:$0xf]  ;;  %v8695_v63 = vor.u32 %v12584_v52, %v8692_v34  ;;  %7584 = vmatpush.bf16.msra.mxu0 %v8439_v61 }
 0x4fb   : > { %v8948_v0 = vld [vmem:[%s13942_s7 + $0x430] sm:$0xf0] }
 0x4fc   : > { %v12712_v49 = vld [vmem:[%s13942_s7 + $0x614] sm:$0xf]  ;;  %v8951_v42 = vor.u32 %v12648_v11, %v8948_v0  ;;  %7598 = vmatpush.bf16.msra.mxu1 %v8695_v63 }
 0x4fd   : > { %v9204_v22 = vld [vmem:[%s13942_s7 + $0x630] sm:$0xf0]  ;;  %7585 = vmatmul.bf16.vlgmr.msra.gmra.mxu0 %v14030_v58 }
 0x4fe   : > { %v12832_v53 = vld [vmem:[%s13942_s7 + $0x9d4] sm:$0xf]  ;;  %v9207_v48 = vor.u32 %v12712_v49, %v9204_v22  ;;  %7612 = vmatpush.bf16.msra.mxu2 %v8951_v42 }
 0x4ff   : > { %v9684_v29 = vld [vmem:[%s13942_s7 + $0x9f0] sm:$0xf0]  ;;  %7599 = vmatmul.bf16.vlgmr.msra.gmra.mxu1 %v14042_v10 }
 0x500   : > { %v12896_v9 = vld [vmem:[%s13942_s7 + $0xbd4] sm:$0xf]  ;;  %v9687_v3 = vor.u32 %v12832_v53, %v9684_v29  ;;  %7626 = vmatpush.bf16.msra.mxu3 %v9207_v48 }
 0x501   : > { %v9940_v56 = vld [vmem:[%s13942_s7 + $0xbf0] sm:$0xf0]  ;;  %7613 = vmatmul.bf16.vlgmr.msra.gmra.mxu2 %v14035_v1 }
 0x502   : > { %v12960_v5 = vld [vmem:[%s13942_s7 + $0xdd4] sm:$0xf]  ;;  %v9943_v59 = vor.u32 %v12896_v9, %v9940_v56  ;;  %7633 = vmatpush.bf16.msrb.mxu0 %v9687_v3 }
 0x503   : > { %v10196_v60 = vld [vmem:[%s13942_s7 + $0xdf0] sm:$0xf0]  ;;  %7627 = vmatmul.bf16.vlgmr.msra.gmra.mxu3 %v14047_v17 }
 0x504   : > { %v13024_v27 = vld [vmem:[%s13942_s7 + $0xfd4] sm:$0xf]  ;;  %v10199_v25 = vor.u32 %v12960_v5, %v10196_v60  ;;  %7647 = vmatpush.bf16.msrb.mxu1 %v9943_v59 }
 0x505   : > { %v10452_v45 = vld [vmem:[%s13942_s7 + $0xff0] sm:$0xf0] }
 0x506   : > { %v12824_v8 = vld [vmem:[%s13942_s7 + $0x994] sm:$0xf]  ;;  %v10455_v15 = vor.u32 %v13024_v27, %v10452_v45  ;;  %7661 = vmatpush.bf16.msrb.mxu2 %v10199_v25 }
 0x507   : > { %v9652_v13 = vld [vmem:[%s13942_s7 + $0x9b0] sm:$0xf0] }
 0x508   : > { %v12888_v21 = vld [vmem:[%s13942_s7 + $0xb94] sm:$0xf]  ;;  %v9655_v55 = vor.u32 %v12824_v8, %v9652_v13  ;;  %7675 = vmatpush.bf16.msrb.mxu3 %v10455_v15 }
 0x509   : > { %v9908_v26 = vld [vmem:[%s13942_s7 + $0xbb0] sm:$0xf0] }
 0x50a   : > { %v12952_v18 = vld [vmem:[%s13942_s7 + $0xd94] sm:$0xf]  ;;  %v9911_v50 = vor.u32 %v12888_v21, %v9908_v26  ;;  %7634 = vmatpush.bf16.msrb.mxu0 %v9655_v55 }
 0x50b   : > { %v10164_v16 = vld [vmem:[%s13942_s7 + $0xdb0] sm:$0xf0] }
 0x50c   : > { %v13016_v4 = vld [vmem:[%s13942_s7 + $0xf94] sm:$0xf]  ;;  %v10167_v23 = vor.u32 %v12952_v18, %v10164_v16  ;;  %7648 = vmatpush.bf16.msrb.mxu1 %v9911_v50 }
 0x50d   : > { %v10420_v2 = vld [vmem:[%s13942_s7 + $0xfb0] sm:$0xf0] }
 0x50e   : > { %v12816_v6 = vld [vmem:[%s13942_s7 + $0x954] sm:$0xf]  ;;  %v10423_v33 = vor.u32 %v13016_v4, %v10420_v2  ;;  %7662 = vmatpush.bf16.msrb.mxu2 %v10167_v23 }
 0x50f   : > { %v9620_v24 = vld [vmem:[%s13942_s7 + $0x970] sm:$0xf0] }
 0x510   : > { %v12880_v14 = vld [vmem:[%s13942_s7 + $0xb54] sm:$0xf]  ;;  %v9623_v37 = vor.u32 %v12816_v6, %v9620_v24  ;;  %7676 = vmatpush.bf16.msrb.mxu3 %v10423_v33 }
 0x511   : > { %v9876_v28 = vld [vmem:[%s13942_s7 + $0xb70] sm:$0xf0] }
 0x512   : > { %v12944_v51 = vld [vmem:[%s13942_s7 + $0xd54] sm:$0xf]  ;;  %v9879_v34 = vor.u32 %v12880_v14, %v9876_v28  ;;  %7635 = vmatpush.bf16.msrb.mxu0 %v9623_v37 }
 0x513   : > { %v10132_v52 = vld [vmem:[%s13942_s7 + $0xd70] sm:$0xf0] }
 0x514   : > { %v13008_v30 = vld [vmem:[%s13942_s7 + $0xf54] sm:$0xf]  ;;  %v10135_v11 = vor.u32 %v12944_v51, %v10132_v52  ;;  %7649 = vmatpush.bf16.msrb.mxu1 %v9879_v34 }
 0x515   : > { %v10388_v54 = vld [vmem:[%s13942_s7 + $0xf70] sm:$0xf0] }
 0x516   : > { %v12808_v12 = vld [vmem:[%s13942_s7 + $0x914] sm:$0xf]  ;;  %v10391_v49 = vor.u32 %v13008_v30, %v10388_v54  ;;  %7663 = vmatpush.bf16.msrb.mxu2 %v10135_v11 }
 0x517   : > { %v9588_v19 = vld [vmem:[%s13942_s7 + $0x930] sm:$0xf0] }
 0x518   : > { %v12872_v0 = vld [vmem:[%s13942_s7 + $0xb14] sm:$0xf]  ;;  %v9591_v9 = vor.u32 %v12808_v12, %v9588_v19  ;;  %7677 = vmatpush.bf16.msrb.mxu3 %v10391_v49 }
 0x519   : > { %v9844_v22 = vld [vmem:[%s13942_s7 + $0xb30] sm:$0xf0] }
 0x51a   : > { %v12936_v20 = vld [vmem:[%s13942_s7 + $0xd14] sm:$0xf]  ;;  %v9847_v61 = vor.u32 %v12872_v0, %v9844_v22  ;;  %7636 = vmatpush.bf16.msrb.mxu0 %v9591_v9 }
 0x51b   : > { %v10100_v7 = vld [vmem:[%s13942_s7 + $0xd30] sm:$0xf0] }
 0x51c   : > { %v13000_v53 = vld [vmem:[%s13942_s7 + $0xf14] sm:$0xf]  ;;  %v10103_v56 = vor.u32 %v12936_v20, %v10100_v7  ;;  %7650 = vmatpush.bf16.msrb.mxu1 %v9847_v61 }
 0x51d   : > { %v10356_v29 = vld [vmem:[%s13942_s7 + $0xf30] sm:$0xf0] }
 0x51e   : > { %v12800_v5 = vld [vmem:[%s13942_s7 + $0x8d4] sm:$0xf]  ;;  %v10359_v63 = vor.u32 %v13000_v53, %v10356_v29  ;;  %7664 = vmatpush.bf16.msrb.mxu2 %v10103_v56 }
 0x51f   : > { %v9556_v60 = vld [vmem:[%s13942_s7 + $0x8f0] sm:$0xf0] }
 0x520   : > { %v12864_v62 = vld [vmem:[%s13942_s7 + $0xad4] sm:$0xf]  ;;  %v9559_v8 = vor.u32 %v12800_v5, %v9556_v60  ;;  %7678 = vmatpush.bf16.msrb.mxu3 %v10359_v63 }
 0x521   : > { %v9812_v42 = vld [vmem:[%s13942_s7 + $0xaf0] sm:$0xf0] }
 0x522   : > { %v12928_v27 = vld [vmem:[%s13942_s7 + $0xcd4] sm:$0xf]  ;;  %v9815_v57 = vor.u32 %v12864_v62, %v9812_v42  ;;  %7637 = vmatpush.bf16.msrb.mxu0 %v9559_v8 }
 0x523   : > { %v10068_v45 = vld [vmem:[%s13942_s7 + $0xcf0] sm:$0xf0] }
 0x524   : > { %v12992_v48 = vld [vmem:[%s13942_s7 + $0xed4] sm:$0xf]  ;;  %v10071_v59 = vor.u32 %v12928_v27, %v10068_v45  ;;  %7651 = vmatpush.bf16.msrb.mxu1 %v9815_v57 }
 0x525   : > { %v10324_v3 = vld [vmem:[%s13942_s7 + $0xef0] sm:$0xf0] }
 0x526   : > { %v12792_v25 = vld [vmem:[%s13942_s7 + $0x894] sm:$0xf]  ;;  %v10327_v15 = vor.u32 %v12992_v48, %v10324_v3  ;;  %7665 = vmatpush.bf16.msrb.mxu2 %v10071_v59 }
 0x527   : > { %v9524_v13 = vld [vmem:[%s13942_s7 + $0x8b0] sm:$0xf0] }
 0x528   : > { %v12856_v21 = vld [vmem:[%s13942_s7 + $0xa94] sm:$0xf]  ;;  %v9527_v55 = vor.u32 %v12792_v25, %v9524_v13  ;;  %7679 = vmatpush.bf16.msrb.mxu3 %v10327_v15 }
 0x529   : > { %v9780_v26 = vld [vmem:[%s13942_s7 + $0xab0] sm:$0xf0] }
 0x52a   : > { %v12920_v18 = vld [vmem:[%s13942_s7 + $0xc94] sm:$0xf]  ;;  %v9783_v50 = vor.u32 %v12856_v21, %v9780_v26  ;;  %7638 = vmatpush.bf16.msrb.mxu0 %v9527_v55 }
 0x52b   : > { %v10036_v16 = vld [vmem:[%s13942_s7 + $0xcb0] sm:$0xf0] }
 0x52c   : > { %v12984_v4 = vld [vmem:[%s13942_s7 + $0xe94] sm:$0xf]  ;;  %v10039_v23 = vor.u32 %v12920_v18, %v10036_v16  ;;  %7652 = vmatpush.bf16.msrb.mxu1 %v9783_v50 }
 0x52d   : > { %v10292_v2 = vld [vmem:[%s13942_s7 + $0xeb0] sm:$0xf0] }
 0x52e   : > { %v12784_v6 = vld [vmem:[%s13942_s7 + $0x854] sm:$0xf]  ;;  %v10295_v33 = vor.u32 %v12984_v4, %v10292_v2  ;;  %7666 = vmatpush.bf16.msrb.mxu2 %v10039_v23 }
 0x52f   : > { %v9492_v24 = vld [vmem:[%s13942_s7 + $0x870] sm:$0xf0] }
 0x530   : > { %v12848_v14 = vld [vmem:[%s13942_s7 + $0xa54] sm:$0xf]  ;;  %v9495_v37 = vor.u32 %v12784_v6, %v9492_v24  ;;  %7680 = vmatpush.bf16.msrb.mxu3 %v10295_v33 }
 0x531   : > { %v9748_v28 = vld [vmem:[%s13942_s7 + $0xa70] sm:$0xf0] }
 0x532   : > { %v12912_v51 = vld [vmem:[%s13942_s7 + $0xc54] sm:$0xf]  ;;  %v9751_v12 = vor.u32 %v12848_v14, %v9748_v28  ;;  %7639 = vmatpush.bf16.msrb.mxu0 %v9495_v37 }
 0x533   : > { %v10004_v52 = vld [vmem:[%s13942_s7 + $0xc70] sm:$0xf0] }
 0x534   : > { %v12976_v30 = vld [vmem:[%s13942_s7 + $0xe54] sm:$0xf]  ;;  %v10007_v19 = vor.u32 %v12912_v51, %v10004_v52  ;;  %7653 = vmatpush.bf16.msrb.mxu1 %v9751_v12 }
 0x535   : > { %v10260_v54 = vld [vmem:[%s13942_s7 + $0xe70] sm:$0xf0] }
 0x536   : > { %v12776_v34 = vld [vmem:[%s13942_s7 + $0x814] sm:$0xf]  ;;  %v10263_v20 = vor.u32 %v12976_v30, %v10260_v54  ;;  %7667 = vmatpush.bf16.msrb.mxu2 %v10007_v19 }
 0x537   : > { %v9460_v11 = vld [vmem:[%s13942_s7 + $0x830] sm:$0xf0] }
 0x538   : > { %v12840_v0 = vld [vmem:[%s13942_s7 + $0xa14] sm:$0xf]  ;;  %v9463_v5 = vor.u32 %v12776_v34, %v9460_v11  ;;  %7681 = vmatpush.bf16.msrb.mxu3 %v10263_v20 }
 0x539   : > { %v9716_v49 = vld [vmem:[%s13942_s7 + $0xa30] sm:$0xf0] }
 0x53a   : > { %v12904_v22 = vld [vmem:[%s13942_s7 + $0xc14] sm:$0xf]  ;;  %v9719_v42 = vor.u32 %v12840_v0, %v9716_v49  ;;  %7640 = vmatpush.bf16.msrb.mxu0 %v9463_v5 }
 0x53b   : > { %v9972_v7 = vld [vmem:[%s13942_s7 + $0xc30] sm:$0xf0] }
 0x53c   : > { %v12968_v53 = vld [vmem:[%s13942_s7 + $0xe14] sm:$0xf]  ;;  %v9975_v27 = vor.u32 %v12904_v22, %v9972_v7  ;;  %7654 = vmatpush.bf16.msrb.mxu1 %v9719_v42 }
 0x53d   : > { %v10228_v29 = vld [vmem:[%s13942_s7 + $0xe30] sm:$0xf0]  ;;  %7641 = vmatmul.bf16.vlgmr.msrb.gmra.mxu0 %v14099_v39 }
 0x53e   : > { %v13088_v9 = vld [vmem:[%s13942_s7 + $0x11d4] sm:$0xf]  ;;  %v10231_v3 = vor.u32 %v12968_v53, %v10228_v29  ;;  %7668 = vmatpush.bf16.msrb.mxu2 %v9975_v27 }
 0x53f   : > { %v10708_v61 = vld [vmem:[%s13942_s7 + $0x11f0] sm:$0xf0]  ;;  %7655 = vmatmul.bf16.vlgmr.msrb.gmra.mxu1 %v14106_v44 }
 0x540   : > { %v13152_v56 = vld [vmem:[%s13942_s7 + $0x13d4] sm:$0xf]  ;;  %v10711_v8 = vor.u32 %v13088_v9, %v10708_v61  ;;  %7682 = vmatpush.bf16.msrb.mxu3 %v10231_v3 }
 0x541   : > { %v10964_v60 = vld [vmem:[%s13942_s7 + $0x13f0] sm:$0xf0]  ;;  %7669 = vmatmul.bf16.vlgmr.msrb.gmra.mxu2 %v14104_v43 }
 0x542   : > { %v13216_v62 = vld [vmem:[%s13942_s7 + $0x15d4] sm:$0xf]  ;;  %v10967_v57 = vor.u32 %v13152_v56, %v10964_v60  ;;  %7689 = vmatpush.bf16.msra.mxu0 %v10711_v8 }
 0x543   : > { %v11220_v63 = vld [vmem:[%s13942_s7 + $0x15f0] sm:$0xf0]  ;;  %7683 = vmatmul.bf16.vlgmr.msrb.gmra.mxu3 %v14110_v47 }
 0x544   : > { %v13280_v45 = vld [vmem:[%s13942_s7 + $0x17d4] sm:$0xf]  ;;  %v11223_v59 = vor.u32 %v13216_v62, %v11220_v63  ;;  %7703 = vmatpush.bf16.msra.mxu1 %v10967_v57  ;;  %v15724_v57 = vpop.f32.mrf.mxu1 }
 0x545   : > { %v11476_v48 = vld [vmem:[%s13942_s7 + $0x17f0] sm:$0xf0] }
 0x546   : > { %v13080_v25 = vld [vmem:[%s13942_s7 + $0x1194] sm:$0xf]  ;;  %v11479_v15 = vor.u32 %v13280_v45, %v11476_v48  ;;  %7717 = vmatpush.bf16.msra.mxu2 %v11223_v59  ;;  %v15720_v48 = vpop.f32.mrf.mxu0 }
 0x547   : > { %v10676_v13 = vld [vmem:[%s13942_s7 + $0x11b0] sm:$0xf0] }
 0x548   : > { %v13144_v21 = vld [vmem:[%s13942_s7 + $0x1394] sm:$0xf]  ;;  %v10679_v55 = vor.u32 %v13080_v25, %v10676_v13  ;;  %7731 = vmatpush.bf16.msra.mxu3 %v11479_v15 }
 0x549   : > { %v10932_v26 = vld [vmem:[%s13942_s7 + $0x13b0] sm:$0xf0] }
 0x54a   : > { %v13208_v18 = vld [vmem:[%s13942_s7 + $0x1594] sm:$0xf]  ;;  %v10935_v50 = vor.u32 %v13144_v21, %v10932_v26  ;;  %7690 = vmatpush.bf16.msra.mxu0 %v10679_v55 }
 0x54b   : > { %v11188_v16 = vld [vmem:[%s13942_s7 + $0x15b0] sm:$0xf0] }
 0x54c   : > { %v13272_v4 = vld [vmem:[%s13942_s7 + $0x1794] sm:$0xf]  ;;  %v11191_v23 = vor.u32 %v13208_v18, %v11188_v16  ;;  %7704 = vmatpush.bf16.msra.mxu1 %v10935_v50 }
 0x54d   : > { %v11444_v2 = vld [vmem:[%s13942_s7 + $0x17b0] sm:$0xf0] }
 0x54e   : > { %v13072_v6 = vld [vmem:[%s13942_s7 + $0x1154] sm:$0xf]  ;;  %v11447_v33 = vor.u32 %v13272_v4, %v11444_v2  ;;  %7718 = vmatpush.bf16.msra.mxu2 %v11191_v23 }
 0x54f   : > { %v10644_v24 = vld [vmem:[%s13942_s7 + $0x1170] sm:$0xf0] }
 0x550   : > { %v13136_v14 = vld [vmem:[%s13942_s7 + $0x1354] sm:$0xf]  ;;  %v10647_v37 = vor.u32 %v13072_v6, %v10644_v24  ;;  %7732 = vmatpush.bf16.msra.mxu3 %v11447_v33 }
 0x551   : > { %v10900_v28 = vld [vmem:[%s13942_s7 + $0x1370] sm:$0xf0] }
 0x552   : > { %v13200_v51 = vld [vmem:[%s13942_s7 + $0x1554] sm:$0xf]  ;;  %v10903_v34 = vor.u32 %v13136_v14, %v10900_v28  ;;  %7691 = vmatpush.bf16.msra.mxu0 %v10647_v37 }
 0x553   : > { %v11156_v52 = vld [vmem:[%s13942_s7 + $0x1570] sm:$0xf0] }
 0x554   : > { %v13264_v30 = vld [vmem:[%s13942_s7 + $0x1754] sm:$0xf]  ;;  %v11159_v11 = vor.u32 %v13200_v51, %v11156_v52  ;;  %7705 = vmatpush.bf16.msra.mxu1 %v10903_v34  ;;  %v15737_v51 = vpop.f32.mrf.mxu2  ;;  %v15742_v34 = vpop.f32.mrf.mxu3 }
 0x555   : > { %v11412_v54 = vld [vmem:[%s13942_s7 + $0x1770] sm:$0xf0] }
 0x556   : > { %v13064_v12 = vld [vmem:[%s13942_s7 + $0x1114] sm:$0xf]  ;;  %v11415_v49 = vor.u32 %v13264_v30, %v11412_v54  ;;  %7719 = vmatpush.bf16.msra.mxu2 %v11159_v11 }
 0x557   : > { %v10612_v19 = vld [vmem:[%s13942_s7 + $0x1130] sm:$0xf0] }
 0x558   : > { %v13128_v0 = vld [vmem:[%s13942_s7 + $0x1314] sm:$0xf]  ;;  %v10615_v9 = vor.u32 %v13064_v12, %v10612_v19  ;;  %7733 = vmatpush.bf16.msra.mxu3 %v11415_v49  ;;  %v15747_v19 = vld [vmem:[%s14443_s24] sm:$0xff] }
 0x559   : > { %v10868_v22 = vld [vmem:[%s13942_s7 + $0x1330] sm:$0xf0] }
 0x55a   : > { %v13192_v20 = vld [vmem:[%s13942_s7 + $0x1514] sm:$0xf]  ;;  %v10871_v61 = vor.u32 %v13128_v0, %v10868_v22  ;;  %7692 = vmatpush.bf16.msra.mxu0 %v10615_v9  ;;  %v1325_v0 = vperm.slane %v15747_v19, 4 }
 0x55b   : > { %v11124_v7 = vld [vmem:[%s13942_s7 + $0x1530] sm:$0xf0] }
 0x55c   : > { %v13256_v53 = vld [vmem:[%s13942_s7 + $0x1714] sm:$0xf]  ;;  %v11127_v56 = vor.u32 %v13192_v20, %v11124_v7  ;;  %7706 = vmatpush.bf16.msra.mxu1 %v10871_v61  ;;  %v15752_v7 = vpop.f32.mrf.mxu0 }
 0x55d   : > { %v11380_v29 = vld [vmem:[%s13942_s7 + $0x1730] sm:$0xf0] }
 0x55e   : > { %v13056_v5 = vld [vmem:[%s13942_s7 + $0x10d4] sm:$0xf]  ;;  %v11383_v63 = vor.u32 %v13256_v53, %v11380_v29  ;;  %7720 = vmatpush.bf16.msra.mxu2 %v11127_v56 }
 0x55f   : > { %v10580_v60 = vld [vmem:[%s13942_s7 + $0x10f0] sm:$0xf0] }
 0x560   : > { %v13120_v62 = vld [vmem:[%s13942_s7 + $0x12d4] sm:$0xf]  ;;  %v10583_v59 = vor.u32 %v13056_v5, %v10580_v60  ;;  %7734 = vmatpush.bf16.msra.mxu3 %v11383_v63  ;;  %v15757_v5 = vpop.f32.mrf.mxu1 }
 0x561   : > { %v10836_v42 = vld [vmem:[%s13942_s7 + $0x12f0] sm:$0xf0] }
 0x562   : > { %v13184_v27 = vld [vmem:[%s13942_s7 + $0x14d4] sm:$0xf]  ;;  %v10839_v25 = vor.u32 %v13120_v62, %v10836_v42  ;;  %7693 = vmatpush.bf16.msra.mxu0 %v10583_v59 }
 0x563   : > { %v11092_v45 = vld [vmem:[%s13942_s7 + $0x14f0] sm:$0xf0] }
 0x564   : > { %v13248_v3 = vld [vmem:[%s13942_s7 + $0x16d4] sm:$0xf]  ;;  %v11095_v13 = vor.u32 %v13184_v27, %v11092_v45  ;;  %7707 = vmatpush.bf16.msra.mxu1 %v10839_v25 }
 0x565   : > { %v11348_v8 = vld [vmem:[%s13942_s7 + $0x16f0] sm:$0xf0] }
 0x566   : > { %v13048_v21 = vld [vmem:[%s13942_s7 + $0x1094] sm:$0xf]  ;;  %v11351_v18 = vor.u32 %v13248_v3, %v11348_v8  ;;  %7721 = vmatpush.bf16.msra.mxu2 %v11095_v13 }
 0x567   : > { %v10548_v15 = vld [vmem:[%s13942_s7 + $0x10b0] sm:$0xf0] }
 0x568   : > { %v13112_v26 = vld [vmem:[%s13942_s7 + $0x1294] sm:$0xf]  ;;  %v10551_v23 = vor.u32 %v13048_v21, %v10548_v15  ;;  %7735 = vmatpush.bf16.msra.mxu3 %v11351_v18 }
 0x569   : > { %v10804_v16 = vld [vmem:[%s13942_s7 + $0x12b0] sm:$0xf0] }
 0x56a   : > { %v13176_v4 = vld [vmem:[%s13942_s7 + $0x1494] sm:$0xf]  ;;  %v10807_v6 = vor.u32 %v13112_v26, %v10804_v16  ;;  %7694 = vmatpush.bf16.msra.mxu0 %v10551_v23 }
 0x56b   : > { %v11060_v2 = vld [vmem:[%s13942_s7 + $0x14b0] sm:$0xf0] }
 0x56c   : > { %v13240_v55 = vld [vmem:[%s13942_s7 + $0x1694] sm:$0xf]  ;;  %v11063_v24 = vor.u32 %v13176_v4, %v11060_v2  ;;  %7708 = vmatpush.bf16.msra.mxu1 %v10807_v6  ;;  %v7363_v2 = vadd.f32 %v15720_v48, %v1325_v0 }
 0x56d   : > { %v11316_v50 = vld [vmem:[%s13942_s7 + $0x16b0] sm:$0xf0] }
 0x56e   : > { %v13040_v14 = vld [vmem:[%s13942_s7 + $0x1054] sm:$0xf]  ;;  %v11319_v52 = vor.u32 %v13240_v55, %v11316_v50  ;;  %7722 = vmatpush.bf16.msra.mxu2 %v11063_v24 }
 0x56f   : > { %v10516_v33 = vld [vmem:[%s13942_s7 + $0x1070] sm:$0xf0] }
 0x570   : > { %v13104_v28 = vld [vmem:[%s13942_s7 + $0x1254] sm:$0xf]  ;;  %v10519_v49 = vor.u32 %v13040_v14, %v10516_v33  ;;  %7736 = vmatpush.bf16.msra.mxu3 %v11319_v52  ;;  %v15776_v14 = vpop.f32.mrf.mxu2 }
 0x571   : > { %v10772_v30 = vld [vmem:[%s13942_s7 + $0x1270] sm:$0xf0] }
 0x572   : > { %v13168_v54 = vld [vmem:[%s13942_s7 + $0x1454] sm:$0xf]  ;;  %v10775_v53 = vor.u32 %v13104_v28, %v10772_v30  ;;  %7695 = vmatpush.bf16.msra.mxu0 %v10519_v49  ;;  %v7418_v49 = vpop.f32.mrf.mxu0 }
 0x573   : > { %v11028_v37 = vld [vmem:[%s13942_s7 + $0x1470] sm:$0xf0] }
 0x574   : > { %v13232_v11 = vld [vmem:[%s13942_s7 + $0x1654] sm:$0xf]  ;;  %v11031_v29 = vor.u32 %v13168_v54, %v11028_v37  ;;  %7709 = vmatpush.bf16.msra.mxu1 %v10775_v53  ;;  %v15781_v54 = vpop.f32.mrf.mxu3 }
 0x575   : > { %v11284_v12 = vld [vmem:[%s13942_s7 + $0x1670] sm:$0xf0] }
 0x576   : > { %v13032_v22 = vld [vmem:[%s13942_s7 + $0x1014] sm:$0xf]  ;;  %v11287_v60 = vor.u32 %v13232_v11, %v11284_v12  ;;  %7723 = vmatpush.bf16.msra.mxu2 %v11031_v29  ;;  %v7377_v12 = vadd.f32 %v15724_v57, %v7363_v2 }
 0x577   : > { %v10484_v20 = vld [vmem:[%s13942_s7 + $0x1030] sm:$0xf0] }
 0x578   : > { %v13096_v9 = vld [vmem:[%s13942_s7 + $0x1214] sm:$0xf]  ;;  %v10487_v8 = vor.u32 %v13032_v22, %v10484_v20  ;;  %7737 = vmatpush.bf16.msra.mxu3 %v11287_v60  ;;  %v15812_v2 = vpop.f32.mrf.mxu2 }
 0x579   : > { %v10740_v61 = vld [vmem:[%s13942_s7 + $0x1230] sm:$0xf0] }
 0x57a   : > { %v13160_v56 = vld [vmem:[%s13942_s7 + $0x1414] sm:$0xf]  ;;  %v10743_v21 = vor.u32 %v13096_v9, %v10740_v61  ;;  %7696 = vmatpush.bf16.msra.mxu0 %v10487_v8  ;;  %v15789_v61 = vpop.f32.mrf.mxu1 }
 0x57b   : > { %v10996_v62 = vld [vmem:[%s13942_s7 + $0x1430] sm:$0xf0] }
 0x57c   : > { %v13224_v63 = vld [vmem:[%s13942_s7 + $0x1614] sm:$0xf]  ;;  %v10999_v15 = vor.u32 %v13160_v56, %v10996_v62  ;;  %7710 = vmatpush.bf16.msra.mxu1 %v10743_v21 }
 0x57d   : > { %v11252_v42 = vld [vmem:[%s13942_s7 + $0x1630] sm:$0xf0]  ;;  %7697 = vmatmul.bf16.vlgmr.msra.gmra.mxu0 %v14175_v31 }
 0x57e   : > { %v13344_v27 = vld [vmem:[%s13942_s7 + $0x19d4] sm:$0xf]  ;;  %v11255_v16 = vor.u32 %v13224_v63, %v11252_v42  ;;  %7724 = vmatpush.bf16.msra.mxu2 %v10999_v15 }
 0x57f   : > { %v11732_v45 = vld [vmem:[%s13942_s7 + $0x19f0] sm:$0xf0]  ;;  %7711 = vmatmul.bf16.vlgmr.msra.gmra.mxu1 %v14182_v36 }
 0x580   : > { %v13408_v3 = vld [vmem:[%s13942_s7 + $0x1bd4] sm:$0xf]  ;;  %v11735_v4 = vor.u32 %v13344_v27, %v11732_v45  ;;  %7738 = vmatpush.bf16.msra.mxu3 %v11255_v16  ;;  %v7391_v45 = vadd.f32 %v15737_v51, %v7377_v12  ;;  %v7365_v16 = vadd.f32 %v15752_v7, %v1325_v0 }
 0x581   : > { %v11988_v59 = vld [vmem:[%s13942_s7 + $0x1bf0] sm:$0xf0]  ;;  %7725 = vmatmul.bf16.vlgmr.msra.gmra.mxu2 %v14180_v35 }
 0x582   : > { %v13472_v25 = vld [vmem:[%s13942_s7 + $0x1dd4] sm:$0xf]  ;;  %v11991_v55 = vor.u32 %v13408_v3, %v11988_v59  ;;  %7745 = vmatpush.bf16.msrb.mxu0 %v11735_v4  ;;  %v15826_v12 = vpop.f32.mrf.mxu1 }
 0x583   : > { %v12244_v13 = vld [vmem:[%s13942_s7 + $0x1df0] sm:$0xf0]  ;;  %7739 = vmatmul.bf16.vlgmr.msra.gmra.mxu3 %v14186_v40 }
 0x584   : > { %v13536_v26 = vld [vmem:[%s13942_s7 + $0x1fd4] sm:$0xf]  ;;  %v12247_v50 = vor.u32 %v13472_v25, %v12244_v13  ;;  %7759 = vmatpush.bf16.msrb.mxu1 %v11991_v55 }
 0x585   : > { %v12500_v18 = vld [vmem:[%s13942_s7 + $0x1ff0] sm:$0xf0] }
 0x586   : > { %v13336_v23 = vld [vmem:[%s13942_s7 + $0x1994] sm:$0xf]  ;;  %v12503_v33 = vor.u32 %v13536_v26, %v12500_v18  ;;  %7773 = vmatpush.bf16.msrb.mxu2 %v12247_v50  ;;  %v7405_v50 = vadd.f32 %v15742_v34, %v7391_v45  ;;  %v7379_v34 = vadd.f32 %v15757_v5, %v7365_v16 }
 0x587   : > { %v11700_v6 = vld [vmem:[%s13942_s7 + $0x19b0] sm:$0xf0] }
 0x588   : > { %v13400_v24 = vld [vmem:[%s13942_s7 + $0x1b94] sm:$0xf]  ;;  %v11703_v11 = vor.u32 %v13336_v23, %v11700_v6  ;;  %7787 = vmatpush.bf16.msrb.mxu3 %v12503_v33  ;;  %v15815_v23 = vpop.f32.mrf.mxu3 }
 0x589   : > { %v11956_v28 = vld [vmem:[%s13942_s7 + $0x1bb0] sm:$0xf0] }
 0x58a   : > { %v13464_v52 = vld [vmem:[%s13942_s7 + $0x1d94] sm:$0xf]  ;;  %v11959_v22 = vor.u32 %v13400_v24, %v11956_v28  ;;  %7746 = vmatpush.bf16.msrb.mxu0 %v11703_v11 }
 0x58b   : > { %v12212_v30 = vld [vmem:[%s13942_s7 + $0x1db0] sm:$0xf0] }
 0x58c   : > { %v13528_v48 = vld [vmem:[%s13942_s7 + $0x1f94] sm:$0xf]  ;;  %v12215_v20 = vor.u32 %v13464_v52, %v12212_v30  ;;  %7760 = vmatpush.bf16.msrb.mxu1 %v11959_v22 }
 0x58d   : > { %v12468_v37 = vld [vmem:[%s13942_s7 + $0x1fb0] sm:$0xf0] }
 0x58e   : > { %v13328_v53 = vld [vmem:[%s13942_s7 + $0x1954] sm:$0xf]  ;;  %v12471_v56 = vor.u32 %v13528_v48, %v12468_v37  ;;  %7774 = vmatpush.bf16.msrb.mxu2 %v12215_v20  ;;  %v7420_v48 = vpop.f32.mrf.mxu0  ;;  %v7419_v20 = vadd.f32 %v7418_v49, %v7405_v50 }
 0x58f   : > { %v11668_v29 = vld [vmem:[%s13942_s7 + $0x1970] sm:$0xf0] }
 0x590   : > { %v13392_v9 = vld [vmem:[%s13942_s7 + $0x1b54] sm:$0xf]  ;;  %v11671_v27 = vor.u32 %v13328_v53, %v11668_v29  ;;  %7788 = vmatpush.bf16.msrb.mxu3 %v12471_v56 }
 0x591   : > { %v11924_v60 = vld [vmem:[%s13942_s7 + $0x1b70] sm:$0xf0] }
 0x592   : > { %v13456_v57 = vld [vmem:[%s13942_s7 + $0x1d54] sm:$0xf]  ;;  %v11927_v3 = vor.u32 %v13392_v9, %v11924_v60  ;;  %7747 = vmatpush.bf16.msrb.mxu0 %v11671_v27 }
 0x593   : > { %v12180_v62 = vld [vmem:[%s13942_s7 + $0x1d70] sm:$0xf0] }
 0x594   : > { %v13520_v63 = vld [vmem:[%s13942_s7 + $0x1f54] sm:$0xf]  ;;  %v12183_v8 = vor.u32 %v13456_v57, %v12180_v62  ;;  %7761 = vmatpush.bf16.msrb.mxu1 %v11927_v3  ;;  %v7433_v3 = vadd.f32 %v15789_v61, %v7419_v20 }
 0x595   : > { %v12436_v42 = vld [vmem:[%s13942_s7 + $0x1f70] sm:$0xf0] }
 0x596   : > { %v13320_v59 = vld [vmem:[%s13942_s7 + $0x1914] sm:$0xf]  ;;  %v12439_v21 = vor.u32 %v13520_v63, %v12436_v42  ;;  %7775 = vmatpush.bf16.msrb.mxu2 %v12183_v8  ;;  %v7393_v42 = vadd.f32 %v15776_v14, %v7379_v34  ;;  %v7448_v14 = vpop.f32.mrf.mxu2 }
 0x597   : > { %v11636_v25 = vld [vmem:[%s13942_s7 + $0x1930] sm:$0xf0] }
 0x598   : > { %v13384_v13 = vld [vmem:[%s13942_s7 + $0x1b14] sm:$0xf]  ;;  %v11639_v55 = vor.u32 %v13320_v59, %v11636_v25  ;;  %7789 = vmatpush.bf16.msrb.mxu3 %v12439_v21  ;;  %v7407_v61 = vadd.f32 %v15781_v54, %v7393_v42  ;;  %v9434_v42 = vld [vmem:[%s13942_s7 + $0x7d8] sm:$0xf] }
 0x599   : > { %v11892_v15 = vld [vmem:[%s13942_s7 + $0x1b30] sm:$0xf0] }
 0x59a   : > { %v13448_v26 = vld [vmem:[%s13942_s7 + $0x1d14] sm:$0xf]  ;;  %v11895_v19 = vor.u32 %v13384_v13, %v11892_v15  ;;  %7748 = vmatpush.bf16.msrb.mxu0 %v11639_v55  ;;  %v7421_v20 = vadd.f32 %v7420_v48, %v7407_v61  ;;  %v12773_v48 = vld [vmem:[%s13942_s7 + $0x7f4] sm:$0xf0] }
 0x59b   : > { %v12148_v18 = vld [vmem:[%s13942_s7 + $0x1d30] sm:$0xf0]  ;;  %v12701_v61 = vld [vmem:[%s13942_s7 + $0x5b4] sm:$0xf0] }
 0x59c   : > { %v13512_v51 = vld [vmem:[%s13942_s7 + $0x1f14] sm:$0xf]  ;;  %v12151_v6 = vor.u32 %v13448_v26, %v12148_v18  ;;  %7762 = vmatpush.bf16.msrb.mxu1 %v11895_v19  ;;  %v7488_v19 = vpop.f32.mrf.mxu1 }
 0x59d   : > { %v12404_v4 = vld [vmem:[%s13942_s7 + $0x1f30] sm:$0xf0] }
 0x59e   : > { %v13312_v0 = vld [vmem:[%s13942_s7 + $0x18d4] sm:$0xf]  ;;  %v12407_v33 = vor.u32 %v13512_v51, %v12404_v4  ;;  %7776 = vmatpush.bf16.msrb.mxu2 %v12151_v6  ;;  %v15845_v51 = vpop.f32.mrf.mxu3  ;;  %v7474_v4 = vpop.f32.mrf.mxu0 }
 0x59f   : > { %v11604_v7 = vld [vmem:[%s13942_s7 + $0x18f0] sm:$0xf0] }
 0x5a0   : > { %v13376_v24 = vld [vmem:[%s13942_s7 + $0x1ad4] sm:$0xf]  ;;  %v11607_v22 = vor.u32 %v13312_v0, %v11604_v7  ;;  %7790 = vmatpush.bf16.msrb.mxu3 %v12407_v33 }
 0x5a1   : > { %v11860_v28 = vld [vmem:[%s13942_s7 + $0x1af0] sm:$0xf0] }
 0x5a2   : > { %v13440_v52 = vld [vmem:[%s13942_s7 + $0x1cd4] sm:$0xf]  ;;  %v11863_v53 = vor.u32 %v13376_v24, %v11860_v28  ;;  %7749 = vmatpush.bf16.msrb.mxu0 %v11607_v22  ;;  %v7447_v24 = vadd.f32 %v15812_v2, %v7433_v3  ;;  %v8666_v2 = vld [vmem:[%s13942_s7 + $0x1d8] sm:$0xf]  ;;  %v7435_v3 = vadd.f32 %v15826_v12, %v7421_v20 }
 0x5a3   : > { %v12116_v30 = vld [vmem:[%s13942_s7 + $0x1cf0] sm:$0xf0]  ;;  %v9402_v12 = vld [vmem:[%s13942_s7 + $0x798] sm:$0xf] }
 0x5a4   : > { %v13504_v37 = vld [vmem:[%s13942_s7 + $0x1ed4] sm:$0xf]  ;;  %v12119_v29 = vor.u32 %v13440_v52, %v12116_v30  ;;  %7763 = vmatpush.bf16.msrb.mxu1 %v11863_v53  ;;  %v12581_v53 = vld [vmem:[%s13942_s7 + $0x1f4] sm:$0xf0] }
 0x5a5   : > { %v12372_v11 = vld [vmem:[%s13942_s7 + $0x1ef0] sm:$0xf0]  ;;  %v12757_v20 = vld [vmem:[%s13942_s7 + $0x774] sm:$0xf0] }
 0x5a6   : > { %v13304_v9 = vld [vmem:[%s13942_s7 + $0x1894] sm:$0xf]  ;;  %v12375_v60 = vor.u32 %v13504_v37, %v12372_v11  ;;  %7777 = vmatpush.bf16.msrb.mxu2 %v12119_v29  ;;  %v8922_v29 = vld [vmem:[%s13942_s7 + $0x3d8] sm:$0xf] }
 0x5a7   : > { %v11572_v56 = vld [vmem:[%s13942_s7 + $0x18b0] sm:$0xf0] }
 0x5a8   : > { %v13368_v5 = vld [vmem:[%s13942_s7 + $0x1a94] sm:$0xf]  ;;  %v11575_v45 = vor.u32 %v13304_v9, %v11572_v56  ;;  %7791 = vmatpush.bf16.msrb.mxu3 %v12375_v60  ;;  %v12645_v56 = vld [vmem:[%s13942_s7 + $0x3f4] sm:$0xf0] }
 0x5a9   : > { %v11828_v57 = vld [vmem:[%s13942_s7 + $0x1ab0] sm:$0xf0]  ;;  %v12709_v60 = vld [vmem:[%s13942_s7 + $0x5f4] sm:$0xf0] }
 0x5aa   : > { %v13432_v62 = vld [vmem:[%s13942_s7 + $0x1c94] sm:$0xf]  ;;  %v11831_v8 = vor.u32 %v13368_v5, %v11828_v57  ;;  %7750 = vmatpush.bf16.msrb.mxu0 %v11575_v45  ;;  %v9178_v5 = vld [vmem:[%s13942_s7 + $0x5d8] sm:$0xf]  ;;  %v7461_v57 = vadd.f32 %v15815_v23, %v7447_v24  ;;  %v8667_v45 = vor.u32 %v12581_v53, %v8666_v2  ;;  %v7516_v23 = vpop.f32.mrf.mxu3 }
 0x5ab   : > { %v12084_v63 = vld [vmem:[%s13942_s7 + $0x1cb0] sm:$0xf0]  ;;  %v8570_v53 = vld [vmem:[%s13942_s7 + $0x118] sm:$0xf] }
 0x5ac   : > { %v13496_v27 = vld [vmem:[%s13942_s7 + $0x1e94] sm:$0xf]  ;;  %v12087_v59 = vor.u32 %v13432_v62, %v12084_v63  ;;  %7764 = vmatpush.bf16.msrb.mxu1 %v11831_v8  ;;  %v7475_v8 = vadd.f32 %v7474_v4, %v7461_v57  ;;  %v12765_v4 = vld [vmem:[%s13942_s7 + $0x7b4] sm:$0xf0] }
 0x5ad   : > { %v12340_v49 = vld [vmem:[%s13942_s7 + $0x1eb0] sm:$0xf0] }
 0x5ae   : > { %v13296_v25 = vld [vmem:[%s13942_s7 + $0x1854] sm:$0xf]  ;;  %v12343_v15 = vor.u32 %v13496_v27, %v12340_v49  ;;  %7778 = vmatpush.bf16.msrb.mxu2 %v12087_v59  ;;  %v7502_v27 = vpop.f32.mrf.mxu2  ;;  %v8923_v59 = vor.u32 %v12645_v56, %v8922_v29  ;;  %v12557_v56 = vld [vmem:[%s13942_s7 + $0x134] sm:$0xf0] }
 0x5af   : > { %v11540_v13 = vld [vmem:[%s13942_s7 + $0x1870] sm:$0xf0] }
 0x5b0   : > { %v13360_v21 = vld [vmem:[%s13942_s7 + $0x1a54] sm:$0xf]  ;;  %v11543_v6 = vor.u32 %v13296_v25, %v11540_v13  ;;  %7792 = vmatpush.bf16.msrb.mxu3 %v12343_v15  ;;  %v9179_v25 = vor.u32 %v12709_v60, %v9178_v5  ;;  %v8634_v13 = vld [vmem:[%s13942_s7 + $0x198] sm:$0xf] }
 0x5b1   : > { %v11796_v26 = vld [vmem:[%s13942_s7 + $0x1a70] sm:$0xf0]  ;;  %v8890_v15 = vld [vmem:[%s13942_s7 + $0x398] sm:$0xf] }
 0x5b2   : > { %v13424_v18 = vld [vmem:[%s13942_s7 + $0x1c54] sm:$0xf]  ;;  %v11799_v54 = vor.u32 %v13360_v21, %v11796_v26  ;;  %7751 = vmatpush.bf16.msrb.mxu0 %v11543_v6  ;;  %v12573_v21 = vld [vmem:[%s13942_s7 + $0x1b4] sm:$0xf0]  ;;  %v9435_v26 = vor.u32 %v12773_v48, %v9434_v42  ;;  %v7490_v6 = vpop.f32.mrf.mxu1 }
 0x5b3   : > { %v12052_v16 = vld [vmem:[%s13942_s7 + $0x1c70] sm:$0xf0]  ;;  %v8826_v5 = vld [vmem:[%s13942_s7 + $0x318] sm:$0xf] }
 0x5b4   : > { %v13488_v55 = vld [vmem:[%s13942_s7 + $0x1e54] sm:$0xf]  ;;  %v12055_v33 = vor.u32 %v13424_v18, %v12052_v16  ;;  %7765 = vmatpush.bf16.msrb.mxu1 %v11799_v54  ;;  %v12637_v18 = vld [vmem:[%s13942_s7 + $0x3b4] sm:$0xf0] }
 0x5b5   : > { %v12308_v50 = vld [vmem:[%s13942_s7 + $0x1e70] sm:$0xf0]  ;;  %v9146_v16 = vld [vmem:[%s13942_s7 + $0x598] sm:$0xf]  ;;  %v8891_v24 = vor.u32 %v12637_v18, %v8890_v15 }
 0x5b6   : > { %v13288_v0 = vld [vmem:[%s13942_s7 + $0x1814] sm:$0xf]  ;;  %v12311_v34 = vor.u32 %v13488_v55, %v12308_v50  ;;  %7779 = vmatpush.bf16.msrb.mxu2 %v12055_v33  ;;  %v7449_v55 = vadd.f32 %v7448_v14, %v7435_v3  ;;  %v7476_v50 = vpop.f32.mrf.mxu0  ;;  %v9147_v14 = vor.u32 %v12701_v61, %v9146_v16  ;;  %v8602_v54 = vld [vmem:[%s13942_s7 + $0x158] sm:$0xf]  ;;  %v7504_v57 = vpop.f32.mrf.mxu2 }
 0x5b7   : > { %v11508_v7 = vld [vmem:[%s13942_s7 + $0x1830] sm:$0xf0]  ;;  %v12565_v33 = vld [vmem:[%s13942_s7 + $0x174] sm:$0xf0] }
 0x5b8   : > { %v13352_v28 = vld [vmem:[%s13942_s7 + $0x1a14] sm:$0xf]  ;;  %v11511_v9 = vor.u32 %v13288_v0, %v11508_v7  ;;  %7793 = vmatpush.bf16.msrb.mxu3 %v12311_v34  ;;  %v8635_v0 = vor.u32 %v12573_v21, %v8634_v13  ;;  %v7489_v7 = vadd.f32 %v7488_v19, %v7475_v8  ;;  %v9114_v34 = vld [vmem:[%s13942_s7 + $0x558] sm:$0xf]  ;;  %v7463_v19 = vadd.f32 %v15845_v51, %v7449_v55 }
 0x5b9   : > { %v11764_v52 = vld [vmem:[%s13942_s7 + $0x1a30] sm:$0xf0]  ;;  %v8603_v2 = vor.u32 %v12565_v33, %v8602_v54  ;;  %v12621_v60 = vld [vmem:[%s13942_s7 + $0x334] sm:$0xf0]  ;;  %v8571_v8 = vor.u32 %v12557_v56, %v8570_v53 }
 0x5ba   : > { %v13416_v30 = vld [vmem:[%s13942_s7 + $0x1c14] sm:$0xf]  ;;  %v11767_v62 = vor.u32 %v13352_v28, %v11764_v52  ;;  %7752 = vmatpush.bf16.msrb.mxu0 %v11511_v9  ;;  %v8858_v28 = vld [vmem:[%s13942_s7 + $0x358] sm:$0xf]  ;;  %v9403_v52 = vor.u32 %v12765_v4, %v9402_v12  ;;  %v7477_v29 = vadd.f32 %v7476_v50, %v7463_v19 }
 0x5bb   : > { %v12020_v37 = vld [vmem:[%s13942_s7 + $0x1c30] sm:$0xf0]  ;;  %v12685_v42 = vld [vmem:[%s13942_s7 + $0x534] sm:$0xf0] }
 0x5bc   : > { %v13480_v11 = vld [vmem:[%s13942_s7 + $0x1e14] sm:$0xf]  ;;  %v12023_v63 = vor.u32 %v13416_v30, %v12020_v37  ;;  %7766 = vmatpush.bf16.msrb.mxu1 %v11767_v62  ;;  %v12629_v30 = vld [vmem:[%s13942_s7 + $0x374] sm:$0xf0]  ;;  %v7491_v13 = vadd.f32 %v7490_v6, %v7477_v29 }
 0x5bd   : > { %v12276_v22 = vld [vmem:[%s13942_s7 + $0x1e30] sm:$0xf0]  ;;  %7753 = vmatmul.bf16.vlgmr.msrb.gmra.mxu0 %v14251_v32  ;;  %v12693_v37 = vld [vmem:[%s13942_s7 + $0x574] sm:$0xf0]  ;;  %v8859_v51 = vor.u32 %v12629_v30, %v8858_v28 }
 0x5be   : > { %v12279_v49 = vor.u32 %v13480_v11, %v12276_v22  ;;  %7780 = vmatpush.bf16.msrb.mxu2 %v12023_v63  ;;  %7801 = vmatpush.bf16.msra.mxu0 %v8667_v45  ;;  %v7503_v11 = vadd.f32 %v7502_v27, %v7489_v7  ;;  %v9370_v22 = vld [vmem:[%s13942_s7 + $0x758] sm:$0xf]  ;;  %v9115_v9 = vor.u32 %v12693_v37, %v9114_v34  ;;  %v7518_v27 = vpop.f32.mrf.mxu3  ;;  %v7558_v34 = vpop.f32.mrf.mxu2 }
 0x5bf   : > { %7767 = vmatmul.bf16.vlgmr.msrb.gmra.mxu1 %v14258_v41  ;;  %v9371_v62 = vor.u32 %v12757_v20, %v9370_v22  ;;  %v9082_v63 = vld [vmem:[%s13942_s7 + $0x518] sm:$0xf]  ;;  %v7505_v12 = vadd.f32 %v7504_v57, %v7491_v13 }
 0x5c0   : > { %7794 = vmatpush.bf16.msrb.mxu3 %v12279_v49  ;;  %7815 = vmatpush.bf16.msra.mxu1 %v8923_v59  ;;  %v7517_v48 = vadd.f32 %v7516_v23, %v7503_v11  ;;  %v7530_v49 = vpop.f32.mrf.mxu0  ;;  %v9338_v45 = vld [vmem:[%s13942_s7 + $0x718] sm:$0xf]  ;;  %v8827_v59 = vor.u32 %v12621_v60, %v8826_v5  ;;  %v9083_v23 = vor.u32 %v12685_v42, %v9082_v63 }
 0x5c1   : > { %7781 = vmatmul.bf16.vlgmr.msrb.gmra.mxu2 %v14256_v38  ;;  %v12749_v3 = vld [vmem:[%s13942_s7 + $0x734] sm:$0xf0]  ;;  %v7519_v11 = vadd.f32 %v7518_v27, %v7505_v12 }
 0x5c2   : > { %7829 = vmatpush.bf16.msra.mxu2 %v9179_v25  ;;  %7802 = vmatpush.bf16.msra.mxu0 %v8635_v0  ;;  %v7544_v25 = vpop.f32.mrf.mxu1  ;;  %v7531_v21 = vadd.f32 %v7530_v49, %v7517_v48  ;;  %v8538_v15 = vld [vmem:[%s13942_s7 + $0xd8] sm:$0xf]  ;;  %v9339_v16 = vor.u32 %v12749_v3, %v9338_v45 }
 0x5c3   : > { %7795 = vmatmul.bf16.vlgmr.msrb.gmra.mxu3 %v14262_v46  ;;  %v8794_v18 = vld [vmem:[%s13942_s7 + $0x2d8] sm:$0xf] }
 0x5c4   : > { %7843 = vmatpush.bf16.msra.mxu3 %v9435_v26  ;;  %7816 = vmatpush.bf16.msra.mxu1 %v8891_v24  ;;  %v12549_v26 = vld [vmem:[%s13942_s7 + $0xf4] sm:$0xf0]  ;;  %v7545_v24 = vadd.f32 %v7544_v25, %v7531_v21 }
 0x5c5   : > { %v12613_v61 = vld [vmem:[%s13942_s7 + $0x2f4] sm:$0xf0]  ;;  %v8539_v0 = vor.u32 %v12549_v26, %v8538_v15 }
 0x5c6   : > { %7830 = vmatpush.bf16.msra.mxu2 %v9147_v14  ;;  %7803 = vmatpush.bf16.msra.mxu0 %v8603_v2  ;;  %v9050_v55 = vld [vmem:[%s13942_s7 + $0x4d8] sm:$0xf]  ;;  %v8795_v14 = vor.u32 %v12613_v61, %v8794_v18  ;;  %v7559_v22 = vadd.f32 %v7558_v34, %v7545_v24  ;;  %v7572_v2 = vpop.f32.mrf.mxu3 }
 0x5c7   : > { %v12677_v50 = vld [vmem:[%s13942_s7 + $0x4f4] sm:$0xf0] }
 0x5c8   : > { %7844 = vmatpush.bf16.msra.mxu3 %v9403_v52  ;;  %7817 = vmatpush.bf16.msra.mxu1 %v8859_v51  ;;  %v9306_v4 = vld [vmem:[%s13942_s7 + $0x6d8] sm:$0xf]  ;;  %v9051_v54 = vor.u32 %v12677_v50, %v9050_v55  ;;  %v7532_v20 = vpop.f32.mrf.mxu0  ;;  %v7573_v5 = vadd.f32 %v7572_v2, %v7559_v22  ;;  %v7560_v50 = vpop.f32.mrf.mxu2 }
 0x5c9   : > { %v12741_v6 = vld [vmem:[%s13942_s7 + $0x6f4] sm:$0xf0]  ;;  %v7533_v56 = vadd.f32 %v7532_v20, %v7519_v11 }
 0x5ca   : > { %7831 = vmatpush.bf16.msra.mxu2 %v9115_v9  ;;  %7804 = vmatpush.bf16.msra.mxu0 %v8571_v8  ;;  %v8506_v7 = vld [vmem:[%s13942_s7 + $0x98] sm:$0xf]  ;;  %v9307_v30 = vor.u32 %v12741_v6, %v9306_v4  ;;  %v7546_v48 = vpop.f32.mrf.mxu1  ;;  %v8253_v3 = vmax.f32 %v7573_v5, 0.0 }
 0x5cb   : > { %v12541_v33 = vld [vmem:[%s13942_s7 + $0xb4] sm:$0xf0]  ;;  %v7547_v15 = vadd.f32 %v7546_v48, %v7533_v56 }
 0x5cc   : > { %7845 = vmatpush.bf16.msra.mxu3 %v9371_v62  ;;  %7818 = vmatpush.bf16.msra.mxu1 %v8827_v59  ;;  %v8762_v28 = vld [vmem:[%s13942_s7 + $0x298] sm:$0xf]  ;;  %v8507_v51 = vor.u32 %v12541_v33, %v8506_v7  ;;  %8269 = vst [vmem:[%s14637_s11 + $0x20] sm:$0xff] %v8253_v3 }
 0x5cd   : > { %v12605_v52 = vld [vmem:[%s13942_s7 + $0x2b4] sm:$0xf0] }
 0x5ce   : > { %7832 = vmatpush.bf16.msra.mxu2 %v9083_v23  ;;  %v9018_v37 = vld [vmem:[%s13942_s7 + $0x498] sm:$0xf]  ;;  %7805 = vmatpush.bf16.msra.mxu0 %v8539_v0  ;;  %v8763_v9 = vor.u32 %v12605_v52, %v8762_v28  ;;  %v7561_v0 = vadd.f32 %v7560_v50, %v7547_v15  ;;  %v7574_v7 = vpop.f32.mrf.mxu3 }
 0x5cf   : > { %v12669_v19 = vld [vmem:[%s13942_s7 + $0x4b4] sm:$0xf0] }
 0x5d0   : > { %7846 = vmatpush.bf16.msra.mxu3 %v9339_v16  ;;  %v9274_v53 = vld [vmem:[%s13942_s7 + $0x698] sm:$0xf]  ;;  %7819 = vmatpush.bf16.msra.mxu1 %v8795_v14  ;;  %v9019_v60 = vor.u32 %v12669_v19, %v9018_v37  ;;  %v7575_v34 = vadd.f32 %v7574_v7, %v7561_v0 }
 0x5d1   : > { %v12733_v29 = vld [vmem:[%s13942_s7 + $0x6b4] sm:$0xf0] }
 0x5d2   : > { %7833 = vmatpush.bf16.msra.mxu2 %v9051_v54  ;;  %v8474_v57 = vld [vmem:[%s13942_s7 + $0x58] sm:$0xf]  ;;  %v9275_v42 = vor.u32 %v12733_v29, %v9274_v53  ;;  %7806 = vmatpush.bf16.msra.mxu0 %v8507_v51  ;;  %v8261_v29 = vmax.f32 %v7575_v34, 0.0 }
 0x5d3   : > { %v12533_v62 = vld [vmem:[%s13942_s7 + $0x74] sm:$0xf0] }
 0x5d4   : > { %v8730_v63 = vld [vmem:[%s13942_s7 + $0x258] sm:$0xf]  ;;  %7847 = vmatpush.bf16.msra.mxu3 %v9307_v30  ;;  %v8475_v25 = vor.u32 %v12533_v62, %v8474_v57  ;;  %7820 = vmatpush.bf16.msra.mxu1 %v8763_v9  ;;  %8277 = vst [vmem:[%s14637_s11 + $0x60] sm:$0xff] %v8261_v29 }
 0x5d5   : > { %v12597_v27 = vld [vmem:[%s13942_s7 + $0x274] sm:$0xf0] }
 0x5d6   : > { %v8986_v49 = vld [vmem:[%s13942_s7 + $0x458] sm:$0xf]  ;;  %7834 = vmatpush.bf16.msra.mxu2 %v9019_v60  ;;  %v8731_v26 = vor.u32 %v12597_v27, %v8730_v63  ;;  %7807 = vmatpush.bf16.msra.mxu0 %v8475_v25 }
 0x5d7   : > { %v12661_v45 = vld [vmem:[%s13942_s7 + $0x474] sm:$0xf0] }
 0x5d8   : > { %v9242_v8 = vld [vmem:[%s13942_s7 + $0x658] sm:$0xf]  ;;  %v8987_v18 = vor.u32 %v12661_v45, %v8986_v49  ;;  %7848 = vmatpush.bf16.msra.mxu3 %v9275_v42  ;;  %7821 = vmatpush.bf16.msra.mxu1 %v8731_v26 }
 0x5d9   : > { %v12725_v59 = vld [vmem:[%s13942_s7 + $0x674] sm:$0xf0] }
 0x5da   : > { %v8442_v13 = vld [vmem:[%s13942_s7 + $0x18] sm:$0xf]  ;;  %v9243_v55 = vor.u32 %v12725_v59, %v9242_v8  ;;  %7835 = vmatpush.bf16.msra.mxu2 %v8987_v18 }
 0x5db   : > { %v12525_v21 = vld [vmem:[%s13942_s7 + $0x34] sm:$0xf0] }
 0x5dc   : > { %v8698_v23 = vld [vmem:[%s13942_s7 + $0x218] sm:$0xf]  ;;  %v8443_v33 = vor.u32 %v12525_v21, %v8442_v13  ;;  %7849 = vmatpush.bf16.msra.mxu3 %v9243_v55 }
 0x5dd   : > { %v12589_v16 = vld [vmem:[%s13942_s7 + $0x234] sm:$0xf0] }
 0x5de   : > { %v8954_v61 = vld [vmem:[%s13942_s7 + $0x418] sm:$0xf]  ;;  %v8699_v37 = vor.u32 %v12589_v16, %v8698_v23  ;;  %7808 = vmatpush.bf16.msra.mxu0 %v8443_v33 }
 0x5df   : > { %v12653_v12 = vld [vmem:[%s13942_s7 + $0x434] sm:$0xf0] }
 0x5e0   : > { %v9210_v4 = vld [vmem:[%s13942_s7 + $0x618] sm:$0xf]  ;;  %v8955_v19 = vor.u32 %v12653_v12, %v8954_v61  ;;  %7822 = vmatpush.bf16.msra.mxu1 %v8699_v37 }
 0x5e1   : > { %v12717_v6 = vld [vmem:[%s13942_s7 + $0x634] sm:$0xf0]  ;;  %7809 = vmatmul.bf16.vlgmr.msra.gmra.mxu0 %v14030_v58 }
 0x5e2   : > { %v9690_v24 = vld [vmem:[%s13942_s7 + $0x9d8] sm:$0xf]  ;;  %v9211_v20 = vor.u32 %v12717_v6, %v9210_v4  ;;  %7836 = vmatpush.bf16.msra.mxu2 %v8955_v19 }
 0x5e3   : > { %v12837_v14 = vld [vmem:[%s13942_s7 + $0x9f4] sm:$0xf0]  ;;  %7823 = vmatmul.bf16.vlgmr.msra.gmra.mxu1 %v14042_v10 }
 0x5e4   : > { %v9946_v54 = vld [vmem:[%s13942_s7 + $0xbd8] sm:$0xf]  ;;  %v9691_v2 = vor.u32 %v12837_v14, %v9690_v24  ;;  %7850 = vmatpush.bf16.msra.mxu3 %v9211_v20 }
 0x5e5   : > { %v12901_v28 = vld [vmem:[%s13942_s7 + $0xbf4] sm:$0xf0]  ;;  %7837 = vmatmul.bf16.vlgmr.msra.gmra.mxu2 %v14035_v1 }
 0x5e6   : > { %v10202_v52 = vld [vmem:[%s13942_s7 + $0xdd8] sm:$0xf]  ;;  %v9947_v51 = vor.u32 %v12901_v28, %v9946_v54  ;;  %7857 = vmatpush.bf16.msrb.mxu0 %v9691_v2 }
 0x5e7   : > { %v12965_v30 = vld [vmem:[%s13942_s7 + $0xdf4] sm:$0xf0]  ;;  %7851 = vmatmul.bf16.vlgmr.msra.gmra.mxu3 %v14047_v17 }
 0x5e8   : > { %v10458_v11 = vld [vmem:[%s13942_s7 + $0xfd8] sm:$0xf]  ;;  %v10203_v9 = vor.u32 %v12965_v30, %v10202_v52  ;;  %7871 = vmatpush.bf16.msrb.mxu1 %v9947_v51 }
 0x5e9   : > { %v13029_v22 = vld [vmem:[%s13942_s7 + $0xff4] sm:$0xf0] }
 0x5ea   : > { %v9658_v53 = vld [vmem:[%s13942_s7 + $0x998] sm:$0xf]  ;;  %v10459_v60 = vor.u32 %v13029_v22, %v10458_v11  ;;  %7885 = vmatpush.bf16.msrb.mxu2 %v10203_v9 }
 0x5eb   : > { %v12829_v56 = vld [vmem:[%s13942_s7 + $0x9b4] sm:$0xf0] }
 0x5ec   : > { %v9914_v5 = vld [vmem:[%s13942_s7 + $0xb98] sm:$0xf]  ;;  %v9659_v27 = vor.u32 %v12829_v56, %v9658_v53  ;;  %7899 = vmatpush.bf16.msrb.mxu3 %v10459_v60 }
 0x5ed   : > { %v12893_v57 = vld [vmem:[%s13942_s7 + $0xbb4] sm:$0xf0] }
 0x5ee   : > { %v10170_v62 = vld [vmem:[%s13942_s7 + $0xd98] sm:$0xf]  ;;  %v9915_v49 = vor.u32 %v12893_v57, %v9914_v5  ;;  %7858 = vmatpush.bf16.msrb.mxu0 %v9659_v27 }
 0x5ef   : > { %v12957_v63 = vld [vmem:[%s13942_s7 + $0xdb4] sm:$0xf0] }
 0x5f0   : > { %v10426_v42 = vld [vmem:[%s13942_s7 + $0xf98] sm:$0xf]  ;;  %v10171_v45 = vor.u32 %v12957_v63, %v10170_v62  ;;  %7872 = vmatpush.bf16.msrb.mxu1 %v9915_v49 }
 0x5f1   : > { %v13021_v48 = vld [vmem:[%s13942_s7 + $0xfb4] sm:$0xf0] }
 0x5f2   : > { %v9626_v3 = vld [vmem:[%s13942_s7 + $0x958] sm:$0xf]  ;;  %v10427_v25 = vor.u32 %v13021_v48, %v10426_v42  ;;  %7886 = vmatpush.bf16.msrb.mxu2 %v10171_v45 }
 0x5f3   : > { %v12821_v8 = vld [vmem:[%s13942_s7 + $0x974] sm:$0xf0] }
 0x5f4   : > { %v9882_v59 = vld [vmem:[%s13942_s7 + $0xb58] sm:$0xf]  ;;  %v9627_v18 = vor.u32 %v12821_v8, %v9626_v3  ;;  %7900 = vmatpush.bf16.msrb.mxu3 %v10427_v25 }
 0x5f5   : > { %v12885_v13 = vld [vmem:[%s13942_s7 + $0xb74] sm:$0xf0] }
 0x5f6   : > { %v10138_v21 = vld [vmem:[%s13942_s7 + $0xd58] sm:$0xf]  ;;  %v9883_v16 = vor.u32 %v12885_v13, %v9882_v59  ;;  %7859 = vmatpush.bf16.msrb.mxu0 %v9627_v18 }
 0x5f7   : > { %v12949_v23 = vld [vmem:[%s13942_s7 + $0xd74] sm:$0xf0] }
 0x5f8   : > { %v10394_v15 = vld [vmem:[%s13942_s7 + $0xf58] sm:$0xf]  ;;  %v10139_v61 = vor.u32 %v12949_v23, %v10138_v21  ;;  %7873 = vmatpush.bf16.msrb.mxu1 %v9883_v16 }
 0x5f9   : > { %v13013_v26 = vld [vmem:[%s13942_s7 + $0xf74] sm:$0xf0] }
 0x5fa   : > { %v9594_v55 = vld [vmem:[%s13942_s7 + $0x918] sm:$0xf]  ;;  %v10395_v4 = vor.u32 %v13013_v26, %v10394_v15  ;;  %7887 = vmatpush.bf16.msrb.mxu2 %v10139_v61 }
 0x5fb   : > { %v12813_v50 = vld [vmem:[%s13942_s7 + $0x934] sm:$0xf0] }
 0x5fc   : > { %v9850_v12 = vld [vmem:[%s13942_s7 + $0xb18] sm:$0xf]  ;;  %v9595_v54 = vor.u32 %v12813_v50, %v9594_v55  ;;  %7901 = vmatpush.bf16.msrb.mxu3 %v10395_v4 }
 0x5fd   : > { %v12877_v6 = vld [vmem:[%s13942_s7 + $0xb34] sm:$0xf0] }
 0x5fe   : > { %v10106_v0 = vld [vmem:[%s13942_s7 + $0xd18] sm:$0xf]  ;;  %v9851_v33 = vor.u32 %v12877_v6, %v9850_v12  ;;  %7860 = vmatpush.bf16.msrb.mxu0 %v9595_v54 }
 0x5ff   : > { %v12941_v7 = vld [vmem:[%s13942_s7 + $0xd34] sm:$0xf0] }
 0x600   : > { %v10362_v24 = vld [vmem:[%s13942_s7 + $0xf18] sm:$0xf]  ;;  %v10107_v28 = vor.u32 %v12941_v7, %v10106_v0  ;;  %7874 = vmatpush.bf16.msrb.mxu1 %v9851_v33 }
 0x601   : > { %v13005_v14 = vld [vmem:[%s13942_s7 + $0xf34] sm:$0xf0] }
 0x602   : > { %v9562_v52 = vld [vmem:[%s13942_s7 + $0x8d8] sm:$0xf]  ;;  %v10363_v37 = vor.u32 %v13005_v14, %v10362_v24  ;;  %7888 = vmatpush.bf16.msrb.mxu2 %v10107_v28 }
 0x603   : > { %v12805_v30 = vld [vmem:[%s13942_s7 + $0x8f4] sm:$0xf0] }
 0x604   : > { %v9818_v34 = vld [vmem:[%s13942_s7 + $0xad8] sm:$0xf]  ;;  %v9563_v53 = vor.u32 %v12805_v30, %v9562_v52  ;;  %7902 = vmatpush.bf16.msrb.mxu3 %v10363_v37 }
 0x605   : > { %v12869_v19 = vld [vmem:[%s13942_s7 + $0xaf4] sm:$0xf0] }
 0x606   : > { %v10074_v11 = vld [vmem:[%s13942_s7 + $0xcd8] sm:$0xf]  ;;  %v9819_v29 = vor.u32 %v12869_v19, %v9818_v34  ;;  %7861 = vmatpush.bf16.msrb.mxu0 %v9563_v53 }
 0x607   : > { %v12933_v22 = vld [vmem:[%s13942_s7 + $0xcf4] sm:$0xf0] }
 0x608   : > { %v10330_v20 = vld [vmem:[%s13942_s7 + $0xed8] sm:$0xf]  ;;  %v10075_v51 = vor.u32 %v12933_v22, %v10074_v11  ;;  %7875 = vmatpush.bf16.msrb.mxu1 %v9819_v29 }
 0x609   : > { %v12997_v2 = vld [vmem:[%s13942_s7 + $0xef4] sm:$0xf0] }
 0x60a   : > { %v9530_v9 = vld [vmem:[%s13942_s7 + $0x898] sm:$0xf]  ;;  %v10331_v60 = vor.u32 %v12997_v2, %v10330_v20  ;;  %7889 = vmatpush.bf16.msrb.mxu2 %v10075_v51 }
 0x60b   : > { %v12797_v56 = vld [vmem:[%s13942_s7 + $0x8b4] sm:$0xf0] }
 0x60c   : > { %v9786_v5 = vld [vmem:[%s13942_s7 + $0xa98] sm:$0xf]  ;;  %v9531_v27 = vor.u32 %v12797_v56, %v9530_v9  ;;  %7903 = vmatpush.bf16.msrb.mxu3 %v10331_v60 }
 0x60d   : > { %v12861_v57 = vld [vmem:[%s13942_s7 + $0xab4] sm:$0xf0] }
 0x60e   : > { %v10042_v62 = vld [vmem:[%s13942_s7 + $0xc98] sm:$0xf]  ;;  %v9787_v49 = vor.u32 %v12861_v57, %v9786_v5  ;;  %7862 = vmatpush.bf16.msrb.mxu0 %v9531_v27 }
 0x60f   : > { %v12925_v63 = vld [vmem:[%s13942_s7 + $0xcb4] sm:$0xf0] }
 0x610   : > { %v10298_v42 = vld [vmem:[%s13942_s7 + $0xe98] sm:$0xf]  ;;  %v10043_v45 = vor.u32 %v12925_v63, %v10042_v62  ;;  %7876 = vmatpush.bf16.msrb.mxu1 %v9787_v49 }
 0x611   : > { %v12989_v48 = vld [vmem:[%s13942_s7 + $0xeb4] sm:$0xf0] }
 0x612   : > { %v9498_v3 = vld [vmem:[%s13942_s7 + $0x858] sm:$0xf]  ;;  %v10299_v25 = vor.u32 %v12989_v48, %v10298_v42  ;;  %7890 = vmatpush.bf16.msrb.mxu2 %v10043_v45 }
 0x613   : > { %v12789_v8 = vld [vmem:[%s13942_s7 + $0x874] sm:$0xf0] }
 0x614   : > { %v9754_v59 = vld [vmem:[%s13942_s7 + $0xa58] sm:$0xf]  ;;  %v9499_v18 = vor.u32 %v12789_v8, %v9498_v3  ;;  %7904 = vmatpush.bf16.msrb.mxu3 %v10299_v25 }
 0x615   : > { %v12853_v13 = vld [vmem:[%s13942_s7 + $0xa74] sm:$0xf0] }
 0x616   : > { %v10010_v21 = vld [vmem:[%s13942_s7 + $0xc58] sm:$0xf]  ;;  %v9755_v55 = vor.u32 %v12853_v13, %v9754_v59  ;;  %7863 = vmatpush.bf16.msrb.mxu0 %v9499_v18 }
 0x617   : > { %v12917_v23 = vld [vmem:[%s13942_s7 + $0xc74] sm:$0xf0] }
 0x618   : > { %v10266_v15 = vld [vmem:[%s13942_s7 + $0xe58] sm:$0xf]  ;;  %v10011_v50 = vor.u32 %v12917_v23, %v10010_v21  ;;  %7877 = vmatpush.bf16.msrb.mxu1 %v9755_v55 }
 0x619   : > { %v12981_v26 = vld [vmem:[%s13942_s7 + $0xe74] sm:$0xf0] }
 0x61a   : > { %v9466_v16 = vld [vmem:[%s13942_s7 + $0x818] sm:$0xf]  ;;  %v10267_v0 = vor.u32 %v12981_v26, %v10266_v15  ;;  %7891 = vmatpush.bf16.msrb.mxu2 %v10011_v50 }
 0x61b   : > { %v12781_v61 = vld [vmem:[%s13942_s7 + $0x834] sm:$0xf0] }
 0x61c   : > { %v9722_v12 = vld [vmem:[%s13942_s7 + $0xa18] sm:$0xf]  ;;  %v9467_v52 = vor.u32 %v12781_v61, %v9466_v16  ;;  %7905 = vmatpush.bf16.msrb.mxu3 %v10267_v0 }
 0x61d   : > { %v12845_v4 = vld [vmem:[%s13942_s7 + $0xa34] sm:$0xf0] }
 0x61e   : > { %v9978_v6 = vld [vmem:[%s13942_s7 + $0xc18] sm:$0xf]  ;;  %v9723_v19 = vor.u32 %v12845_v4, %v9722_v12  ;;  %7864 = vmatpush.bf16.msrb.mxu0 %v9467_v52 }
 0x61f   : > { %v12909_v7 = vld [vmem:[%s13942_s7 + $0xc34] sm:$0xf0] }
 0x620   : > { %v10234_v24 = vld [vmem:[%s13942_s7 + $0xe18] sm:$0xf]  ;;  %v9979_v11 = vor.u32 %v12909_v7, %v9978_v6  ;;  %7878 = vmatpush.bf16.msrb.mxu1 %v9723_v19 }
 0x621   : > { %v12973_v14 = vld [vmem:[%s13942_s7 + $0xe34] sm:$0xf0]  ;;  %7865 = vmatmul.bf16.vlgmr.msrb.gmra.mxu0 %v14099_v39 }
 0x622   : > { %v10714_v54 = vld [vmem:[%s13942_s7 + $0x11d8] sm:$0xf]  ;;  %v10235_v2 = vor.u32 %v12973_v14, %v10234_v24  ;;  %7892 = vmatpush.bf16.msrb.mxu2 %v9979_v11 }
 0x623   : > { %v13093_v33 = vld [vmem:[%s13942_s7 + $0x11f4] sm:$0xf0]  ;;  %7879 = vmatmul.bf16.vlgmr.msrb.gmra.mxu1 %v14106_v44 }
 0x624   : > { %v10970_v28 = vld [vmem:[%s13942_s7 + $0x13d8] sm:$0xf]  ;;  %v10715_v53 = vor.u32 %v13093_v33, %v10714_v54  ;;  %7906 = vmatpush.bf16.msrb.mxu3 %v10235_v2 }
 0x625   : > { %v13157_v30 = vld [vmem:[%s13942_s7 + $0x13f4] sm:$0xf0]  ;;  %7893 = vmatmul.bf16.vlgmr.msrb.gmra.mxu2 %v14104_v43 }
 0x626   : > { %v11226_v34 = vld [vmem:[%s13942_s7 + $0x15d8] sm:$0xf]  ;;  %v10971_v29 = vor.u32 %v13157_v30, %v10970_v28  ;;  %7913 = vmatpush.bf16.msra.mxu0 %v10715_v53 }
 0x627   : > { %v13221_v37 = vld [vmem:[%s13942_s7 + $0x15f4] sm:$0xf0]  ;;  %7907 = vmatmul.bf16.vlgmr.msrb.gmra.mxu3 %v14110_v47 }
 0x628   : > { %v11482_v22 = vld [vmem:[%s13942_s7 + $0x17d8] sm:$0xf]  ;;  %v11227_v51 = vor.u32 %v13221_v37, %v11226_v34  ;;  %7927 = vmatpush.bf16.msra.mxu1 %v10971_v29  ;;  %v16045_v29 = vpop.f32.mrf.mxu1 }
 0x629   : > { %v13285_v20 = vld [vmem:[%s13942_s7 + $0x17f4] sm:$0xf0] }
 0x62a   : > { %v10682_v9 = vld [vmem:[%s13942_s7 + $0x1198] sm:$0xf]  ;;  %v11483_v60 = vor.u32 %v13285_v20, %v11482_v22  ;;  %7941 = vmatpush.bf16.msra.mxu2 %v11227_v51  ;;  %v16041_v20 = vpop.f32.mrf.mxu0 }
 0x62b   : > { %v13085_v56 = vld [vmem:[%s13942_s7 + $0x11b4] sm:$0xf0] }
 0x62c   : > { %v10938_v5 = vld [vmem:[%s13942_s7 + $0x1398] sm:$0xf]  ;;  %v10683_v27 = vor.u32 %v13085_v56, %v10682_v9  ;;  %7955 = vmatpush.bf16.msra.mxu3 %v11483_v60 }
 0x62d   : > { %v13149_v57 = vld [vmem:[%s13942_s7 + $0x13b4] sm:$0xf0] }
 0x62e   : > { %v11194_v62 = vld [vmem:[%s13942_s7 + $0x1598] sm:$0xf]  ;;  %v10939_v49 = vor.u32 %v13149_v57, %v10938_v5  ;;  %7914 = vmatpush.bf16.msra.mxu0 %v10683_v27 }
 0x62f   : > { %v13213_v63 = vld [vmem:[%s13942_s7 + $0x15b4] sm:$0xf0] }
 0x630   : > { %v11450_v42 = vld [vmem:[%s13942_s7 + $0x1798] sm:$0xf]  ;;  %v11195_v45 = vor.u32 %v13213_v63, %v11194_v62  ;;  %7928 = vmatpush.bf16.msra.mxu1 %v10939_v49 }
 0x631   : > { %v13277_v48 = vld [vmem:[%s13942_s7 + $0x17b4] sm:$0xf0] }
 0x632   : > { %v10650_v3 = vld [vmem:[%s13942_s7 + $0x1158] sm:$0xf]  ;;  %v11451_v25 = vor.u32 %v13277_v48, %v11450_v42  ;;  %7942 = vmatpush.bf16.msra.mxu2 %v11195_v45 }
 0x633   : > { %v13077_v8 = vld [vmem:[%s13942_s7 + $0x1174] sm:$0xf0] }
 0x634   : > { %v10906_v59 = vld [vmem:[%s13942_s7 + $0x1358] sm:$0xf]  ;;  %v10651_v18 = vor.u32 %v13077_v8, %v10650_v3  ;;  %7956 = vmatpush.bf16.msra.mxu3 %v11451_v25 }
 0x635   : > { %v13141_v13 = vld [vmem:[%s13942_s7 + $0x1374] sm:$0xf0] }
 0x636   : > { %v11162_v21 = vld [vmem:[%s13942_s7 + $0x1558] sm:$0xf]  ;;  %v10907_v16 = vor.u32 %v13141_v13, %v10906_v59  ;;  %7915 = vmatpush.bf16.msra.mxu0 %v10651_v18 }
 0x637   : > { %v13205_v23 = vld [vmem:[%s13942_s7 + $0x1574] sm:$0xf0] }
 0x638   : > { %v11418_v15 = vld [vmem:[%s13942_s7 + $0x1758] sm:$0xf]  ;;  %v11163_v61 = vor.u32 %v13205_v23, %v11162_v21  ;;  %7929 = vmatpush.bf16.msra.mxu1 %v10907_v16  ;;  %v16058_v21 = vpop.f32.mrf.mxu2  ;;  %v16063_v16 = vpop.f32.mrf.mxu3 }
 0x639   : > { %v13269_v26 = vld [vmem:[%s13942_s7 + $0x1774] sm:$0xf0] }
 0x63a   : > { %v10618_v55 = vld [vmem:[%s13942_s7 + $0x1118] sm:$0xf]  ;;  %v11419_v4 = vor.u32 %v13269_v26, %v11418_v15  ;;  %7943 = vmatpush.bf16.msra.mxu2 %v11163_v61 }
 0x63b   : > { %v13069_v50 = vld [vmem:[%s13942_s7 + $0x1134] sm:$0xf0] }
 0x63c   : > { %v10874_v12 = vld [vmem:[%s13942_s7 + $0x1318] sm:$0xf]  ;;  %v10619_v54 = vor.u32 %v13069_v50, %v10618_v55  ;;  %7957 = vmatpush.bf16.msra.mxu3 %v11419_v4  ;;  %v16068_v50 = vld [vmem:[%s14443_s24] sm:$0xff] }
 0x63d   : > { %v13133_v6 = vld [vmem:[%s13942_s7 + $0x1334] sm:$0xf0] }
 0x63e   : > { %v11130_v0 = vld [vmem:[%s13942_s7 + $0x1518] sm:$0xf]  ;;  %v10875_v33 = vor.u32 %v13133_v6, %v10874_v12  ;;  %7916 = vmatpush.bf16.msra.mxu0 %v10619_v54  ;;  %v1326_v12 = vperm.slane %v16068_v50, 5 }
 0x63f   : > { %v13197_v7 = vld [vmem:[%s13942_s7 + $0x1534] sm:$0xf0] }
 0x640   : > { %v11386_v24 = vld [vmem:[%s13942_s7 + $0x1718] sm:$0xf]  ;;  %v11131_v28 = vor.u32 %v13197_v7, %v11130_v0  ;;  %7930 = vmatpush.bf16.msra.mxu1 %v10875_v33  ;;  %v16073_v7 = vpop.f32.mrf.mxu0 }
 0x641   : > { %v13261_v14 = vld [vmem:[%s13942_s7 + $0x1734] sm:$0xf0] }
 0x642   : > { %v10586_v52 = vld [vmem:[%s13942_s7 + $0x10d8] sm:$0xf]  ;;  %v11387_v37 = vor.u32 %v13261_v14, %v11386_v24  ;;  %7944 = vmatpush.bf16.msra.mxu2 %v11131_v28 }
 0x643   : > { %v13061_v30 = vld [vmem:[%s13942_s7 + $0x10f4] sm:$0xf0] }
 0x644   : > { %v10842_v34 = vld [vmem:[%s13942_s7 + $0x12d8] sm:$0xf]  ;;  %v10587_v51 = vor.u32 %v13061_v30, %v10586_v52  ;;  %7958 = vmatpush.bf16.msra.mxu3 %v11387_v37  ;;  %v16078_v52 = vpop.f32.mrf.mxu1 }
 0x645   : > { %v13125_v19 = vld [vmem:[%s13942_s7 + $0x12f4] sm:$0xf0] }
 0x646   : > { %v11098_v11 = vld [vmem:[%s13942_s7 + $0x14d8] sm:$0xf]  ;;  %v10843_v9 = vor.u32 %v13125_v19, %v10842_v34  ;;  %7917 = vmatpush.bf16.msra.mxu0 %v10587_v51 }
 0x647   : > { %v13189_v22 = vld [vmem:[%s13942_s7 + $0x14f4] sm:$0xf0] }
 0x648   : > { %v11354_v2 = vld [vmem:[%s13942_s7 + $0x16d8] sm:$0xf]  ;;  %v11099_v56 = vor.u32 %v13189_v22, %v11098_v11  ;;  %7931 = vmatpush.bf16.msra.mxu1 %v10843_v9 }
 0x649   : > { %v13253_v53 = vld [vmem:[%s13942_s7 + $0x16f4] sm:$0xf0] }
 0x64a   : > { %v10554_v5 = vld [vmem:[%s13942_s7 + $0x1098] sm:$0xf]  ;;  %v11355_v62 = vor.u32 %v13253_v53, %v11354_v2  ;;  %7945 = vmatpush.bf16.msra.mxu2 %v11099_v56 }
 0x64b   : > { %v13053_v60 = vld [vmem:[%s13942_s7 + $0x10b4] sm:$0xf0] }
 0x64c   : > { %v10810_v57 = vld [vmem:[%s13942_s7 + $0x1298] sm:$0xf]  ;;  %v10555_v45 = vor.u32 %v13053_v60, %v10554_v5  ;;  %7959 = vmatpush.bf16.msra.mxu3 %v11355_v62 }
 0x64d   : > { %v13117_v63 = vld [vmem:[%s13942_s7 + $0x12b4] sm:$0xf0] }
 0x64e   : > { %v11066_v42 = vld [vmem:[%s13942_s7 + $0x1498] sm:$0xf]  ;;  %v10811_v3 = vor.u32 %v13117_v63, %v10810_v57  ;;  %7918 = vmatpush.bf16.msra.mxu0 %v10555_v45 }
 0x64f   : > { %v13181_v48 = vld [vmem:[%s13942_s7 + $0x14b4] sm:$0xf0] }
 0x650   : > { %v11322_v27 = vld [vmem:[%s13942_s7 + $0x1698] sm:$0xf]  ;;  %v11067_v8 = vor.u32 %v13181_v48, %v11066_v42  ;;  %7932 = vmatpush.bf16.msra.mxu1 %v10811_v3  ;;  %v7587_v48 = vadd.f32 %v16041_v20, %v1326_v12 }
 0x651   : > { %v13245_v49 = vld [vmem:[%s13942_s7 + $0x16b4] sm:$0xf0] }
 0x652   : > { %v10522_v59 = vld [vmem:[%s13942_s7 + $0x1058] sm:$0xf]  ;;  %v11323_v23 = vor.u32 %v13245_v49, %v11322_v27  ;;  %7946 = vmatpush.bf16.msra.mxu2 %v11067_v8 }
 0x653   : > { %v13045_v25 = vld [vmem:[%s13942_s7 + $0x1074] sm:$0xf0] }
 0x654   : > { %v10778_v13 = vld [vmem:[%s13942_s7 + $0x1258] sm:$0xf]  ;;  %v10523_v4 = vor.u32 %v13045_v25, %v10522_v59  ;;  %7960 = vmatpush.bf16.msra.mxu3 %v11323_v23  ;;  %v16097_v59 = vpop.f32.mrf.mxu2 }
 0x655   : > { %v13109_v15 = vld [vmem:[%s13942_s7 + $0x1274] sm:$0xf0] }
 0x656   : > { %v11034_v26 = vld [vmem:[%s13942_s7 + $0x1458] sm:$0xf]  ;;  %v10779_v24 = vor.u32 %v13109_v15, %v10778_v13  ;;  %7919 = vmatpush.bf16.msra.mxu0 %v10523_v4  ;;  %v7642_v4 = vpop.f32.mrf.mxu0 }
 0x657   : > { %v13173_v18 = vld [vmem:[%s13942_s7 + $0x1474] sm:$0xf0] }
 0x658   : > { %v11290_v61 = vld [vmem:[%s13942_s7 + $0x1658] sm:$0xf]  ;;  %v11035_v14 = vor.u32 %v13173_v18, %v11034_v26  ;;  %7933 = vmatpush.bf16.msra.mxu1 %v10779_v24  ;;  %v16102_v26 = vpop.f32.mrf.mxu3 }
 0x659   : > { %v13237_v55 = vld [vmem:[%s13942_s7 + $0x1674] sm:$0xf0] }
 0x65a   : > { %v10490_v6 = vld [vmem:[%s13942_s7 + $0x1018] sm:$0xf]  ;;  %v11291_v30 = vor.u32 %v13237_v55, %v11290_v61  ;;  %7947 = vmatpush.bf16.msra.mxu2 %v11035_v14  ;;  %v7601_v55 = vadd.f32 %v16045_v29, %v7587_v48 }
 0x65b   : > { %v13037_v0 = vld [vmem:[%s13942_s7 + $0x1034] sm:$0xf0] }
 0x65c   : > { %v10746_v54 = vld [vmem:[%s13942_s7 + $0x1218] sm:$0xf]  ;;  %v10491_v53 = vor.u32 %v13037_v0, %v10490_v6  ;;  %7961 = vmatpush.bf16.msra.mxu3 %v11291_v30  ;;  %v16133_v48 = vpop.f32.mrf.mxu2 }
 0x65d   : > { %v13101_v33 = vld [vmem:[%s13942_s7 + $0x1234] sm:$0xf0] }
 0x65e   : > { %v11002_v28 = vld [vmem:[%s13942_s7 + $0x1418] sm:$0xf]  ;;  %v10747_v5 = vor.u32 %v13101_v33, %v10746_v54  ;;  %7920 = vmatpush.bf16.msra.mxu0 %v10491_v53  ;;  %v16110_v33 = vpop.f32.mrf.mxu1 }
 0x65f   : > { %v13165_v34 = vld [vmem:[%s13942_s7 + $0x1434] sm:$0xf0] }
 0x660   : > { %v11258_v37 = vld [vmem:[%s13942_s7 + $0x1618] sm:$0xf]  ;;  %v11003_v60 = vor.u32 %v13165_v34, %v11002_v28  ;;  %7934 = vmatpush.bf16.msra.mxu1 %v10747_v5 }
 0x661   : > { %v13229_v19 = vld [vmem:[%s13942_s7 + $0x1634] sm:$0xf0]  ;;  %7921 = vmatmul.bf16.vlgmr.msra.gmra.mxu0 %v14175_v31 }
 0x662   : > { %v11738_v11 = vld [vmem:[%s13942_s7 + $0x19d8] sm:$0xf]  ;;  %v11259_v63 = vor.u32 %v13229_v19, %v11258_v37  ;;  %7948 = vmatpush.bf16.msra.mxu2 %v11003_v60 }
 0x663   : > { %v13349_v22 = vld [vmem:[%s13942_s7 + $0x19f4] sm:$0xf0]  ;;  %7935 = vmatmul.bf16.vlgmr.msra.gmra.mxu1 %v14182_v36 }
 0x664   : > { %v11994_v2 = vld [vmem:[%s13942_s7 + $0x1bd8] sm:$0xf]  ;;  %v11739_v42 = vor.u32 %v13349_v22, %v11738_v11  ;;  %7962 = vmatpush.bf16.msra.mxu3 %v11259_v63  ;;  %v7615_v22 = vadd.f32 %v16058_v21, %v7601_v55  ;;  %v7589_v63 = vadd.f32 %v16073_v7, %v1326_v12 }
 0x665   : > { %v13413_v51 = vld [vmem:[%s13942_s7 + $0x1bf4] sm:$0xf0]  ;;  %7949 = vmatmul.bf16.vlgmr.msra.gmra.mxu2 %v14180_v35 }
 0x666   : > { %v12250_v9 = vld [vmem:[%s13942_s7 + $0x1dd8] sm:$0xf]  ;;  %v11995_v27 = vor.u32 %v13413_v51, %v11994_v2  ;;  %7969 = vmatpush.bf16.msrb.mxu0 %v11739_v42  ;;  %v16147_v55 = vpop.f32.mrf.mxu1 }
 0x667   : > { %v13477_v56 = vld [vmem:[%s13942_s7 + $0x1df4] sm:$0xf0]  ;;  %7963 = vmatmul.bf16.vlgmr.msra.gmra.mxu3 %v14186_v40 }
 0x668   : > { %v12506_v57 = vld [vmem:[%s13942_s7 + $0x1fd8] sm:$0xf]  ;;  %v12251_v49 = vor.u32 %v13477_v56, %v12250_v9  ;;  %7983 = vmatpush.bf16.msrb.mxu1 %v11995_v27 }
 0x669   : > { %v13541_v62 = vld [vmem:[%s13942_s7 + $0x1ff4] sm:$0xf0] }
 0x66a   : > { %v11706_v45 = vld [vmem:[%s13942_s7 + $0x1998] sm:$0xf]  ;;  %v12507_v25 = vor.u32 %v13541_v62, %v12506_v57  ;;  %7997 = vmatpush.bf16.msrb.mxu2 %v12251_v49  ;;  %v7629_v49 = vadd.f32 %v16063_v16, %v7615_v22  ;;  %v7603_v16 = vadd.f32 %v16078_v52, %v7589_v63 }
 0x66b   : > { %v13341_v3 = vld [vmem:[%s13942_s7 + $0x19b4] sm:$0xf0] }
 0x66c   : > { %v11962_v8 = vld [vmem:[%s13942_s7 + $0x1b98] sm:$0xf]  ;;  %v11707_v61 = vor.u32 %v13341_v3, %v11706_v45  ;;  %8011 = vmatpush.bf16.msrb.mxu3 %v12507_v25  ;;  %v16136_v45 = vpop.f32.mrf.mxu3 }
 0x66d   : > { %v13405_v13 = vld [vmem:[%s13942_s7 + $0x1bb4] sm:$0xf0] }
 0x66e   : > { %v12218_v23 = vld [vmem:[%s13942_s7 + $0x1d98] sm:$0xf]  ;;  %v11963_v6 = vor.u32 %v13405_v13, %v11962_v8  ;;  %7970 = vmatpush.bf16.msrb.mxu0 %v11707_v61 }
 0x66f   : > { %v13469_v15 = vld [vmem:[%s13942_s7 + $0x1db4] sm:$0xf0] }
 0x670   : > { %v12474_v20 = vld [vmem:[%s13942_s7 + $0x1f98] sm:$0xf]  ;;  %v12219_v0 = vor.u32 %v13469_v15, %v12218_v23  ;;  %7984 = vmatpush.bf16.msrb.mxu1 %v11963_v6 }
 0x671   : > { %v13533_v18 = vld [vmem:[%s13942_s7 + $0x1fb4] sm:$0xf0] }
 0x672   : > { %v11674_v24 = vld [vmem:[%s13942_s7 + $0x1958] sm:$0xf]  ;;  %v12475_v28 = vor.u32 %v13533_v18, %v12474_v20  ;;  %7998 = vmatpush.bf16.msrb.mxu2 %v12219_v0  ;;  %v7644_v20 = vpop.f32.mrf.mxu0  ;;  %v7643_v0 = vadd.f32 %v7642_v4, %v7629_v49 }
 0x673   : > { %v13333_v14 = vld [vmem:[%s13942_s7 + $0x1974] sm:$0xf0] }
 0x674   : > { %v11930_v54 = vld [vmem:[%s13942_s7 + $0x1b58] sm:$0xf]  ;;  %v11675_v11 = vor.u32 %v13333_v14, %v11674_v24  ;;  %8012 = vmatpush.bf16.msrb.mxu3 %v12475_v28 }
 0x675   : > { %v13397_v30 = vld [vmem:[%s13942_s7 + $0x1b74] sm:$0xf0] }
 0x676   : > { %v12186_v29 = vld [vmem:[%s13942_s7 + $0x1d58] sm:$0xf]  ;;  %v11931_v2 = vor.u32 %v13397_v30, %v11930_v54  ;;  %7971 = vmatpush.bf16.msrb.mxu0 %v11675_v11 }
 0x677   : > { %v13461_v34 = vld [vmem:[%s13942_s7 + $0x1d74] sm:$0xf0] }
 0x678   : > { %v12442_v37 = vld [vmem:[%s13942_s7 + $0x1f58] sm:$0xf]  ;;  %v12187_v53 = vor.u32 %v13461_v34, %v12186_v29  ;;  %7985 = vmatpush.bf16.msrb.mxu1 %v11931_v2  ;;  %v7657_v2 = vadd.f32 %v16110_v33, %v7643_v0 }
 0x679   : > { %v13525_v19 = vld [vmem:[%s13942_s7 + $0x1f74] sm:$0xf0] }
 0x67a   : > { %v11642_v51 = vld [vmem:[%s13942_s7 + $0x1918] sm:$0xf]  ;;  %v12443_v5 = vor.u32 %v13525_v19, %v12442_v37  ;;  %7999 = vmatpush.bf16.msrb.mxu2 %v12187_v53  ;;  %v7617_v19 = vadd.f32 %v16097_v59, %v7603_v16  ;;  %v7672_v59 = vpop.f32.mrf.mxu2 }
 0x67b   : > { %v13325_v9 = vld [vmem:[%s13942_s7 + $0x1934] sm:$0xf0] }
 0x67c   : > { %v11898_v56 = vld [vmem:[%s13942_s7 + $0x1b18] sm:$0xf]  ;;  %v11643_v27 = vor.u32 %v13325_v9, %v11642_v51  ;;  %8013 = vmatpush.bf16.msrb.mxu3 %v12443_v5  ;;  %v7631_v33 = vadd.f32 %v16102_v26, %v7617_v19  ;;  %v12769_v19 = vld [vmem:[%s13942_s7 + $0x7dc] sm:$0xf] }
 0x67d   : > { %v13389_v60 = vld [vmem:[%s13942_s7 + $0x1b34] sm:$0xf0] }
 0x67e   : > { %v12154_v57 = vld [vmem:[%s13942_s7 + $0x1d18] sm:$0xf]  ;;  %v11899_v50 = vor.u32 %v13389_v60, %v11898_v56  ;;  %7972 = vmatpush.bf16.msrb.mxu0 %v11643_v27  ;;  %v7645_v0 = vadd.f32 %v7644_v20, %v7631_v33  ;;  %v9436_v20 = vld [vmem:[%s13942_s7 + $0x7f8] sm:$0xf0] }
 0x67f   : > { %v13453_v62 = vld [vmem:[%s13942_s7 + $0x1d34] sm:$0xf0]  ;;  %v9148_v33 = vld [vmem:[%s13942_s7 + $0x5b8] sm:$0xf0] }
 0x680   : > { %v12410_v21 = vld [vmem:[%s13942_s7 + $0x1f18] sm:$0xf]  ;;  %v12155_v3 = vor.u32 %v13453_v62, %v12154_v57  ;;  %7986 = vmatpush.bf16.msrb.mxu1 %v11899_v50  ;;  %v7712_v50 = vpop.f32.mrf.mxu1 }
 0x681   : > { %v13517_v42 = vld [vmem:[%s13942_s7 + $0x1f34] sm:$0xf0] }
 0x682   : > { %v11610_v12 = vld [vmem:[%s13942_s7 + $0x18d8] sm:$0xf]  ;;  %v12411_v25 = vor.u32 %v13517_v42, %v12410_v21  ;;  %8000 = vmatpush.bf16.msrb.mxu2 %v12155_v3  ;;  %v16166_v21 = vpop.f32.mrf.mxu3  ;;  %v7698_v42 = vpop.f32.mrf.mxu0 }
 0x683   : > { %v13317_v7 = vld [vmem:[%s13942_s7 + $0x18f4] sm:$0xf0] }
 0x684   : > { %v11866_v8 = vld [vmem:[%s13942_s7 + $0x1ad8] sm:$0xf]  ;;  %v11611_v6 = vor.u32 %v13317_v7, %v11610_v12  ;;  %8014 = vmatpush.bf16.msrb.mxu3 %v12411_v25 }
 0x685   : > { %v13381_v13 = vld [vmem:[%s13942_s7 + $0x1af4] sm:$0xf0] }
 0x686   : > { %v12122_v23 = vld [vmem:[%s13942_s7 + $0x1cd8] sm:$0xf]  ;;  %v11867_v24 = vor.u32 %v13381_v13, %v11866_v8  ;;  %7973 = vmatpush.bf16.msrb.mxu0 %v11611_v6  ;;  %v7671_v8 = vadd.f32 %v16133_v48, %v7657_v2  ;;  %v12577_v48 = vld [vmem:[%s13942_s7 + $0x1dc] sm:$0xf]  ;;  %v7659_v2 = vadd.f32 %v16147_v55, %v7645_v0 }
 0x687   : > { %v13445_v15 = vld [vmem:[%s13942_s7 + $0x1cf4] sm:$0xf0]  ;;  %v12761_v55 = vld [vmem:[%s13942_s7 + $0x79c] sm:$0xf] }
 0x688   : > { %v12378_v18 = vld [vmem:[%s13942_s7 + $0x1ed8] sm:$0xf]  ;;  %v12123_v14 = vor.u32 %v13445_v15, %v12122_v23  ;;  %7987 = vmatpush.bf16.msrb.mxu1 %v11867_v24  ;;  %v8668_v24 = vld [vmem:[%s13942_s7 + $0x1f8] sm:$0xf0] }
 0x689   : > { %v13509_v61 = vld [vmem:[%s13942_s7 + $0x1ef4] sm:$0xf0]  ;;  %v9372_v0 = vld [vmem:[%s13942_s7 + $0x778] sm:$0xf0] }
 0x68a   : > { %v11578_v54 = vld [vmem:[%s13942_s7 + $0x1898] sm:$0xf]  ;;  %v12379_v30 = vor.u32 %v13509_v61, %v12378_v18  ;;  %8001 = vmatpush.bf16.msrb.mxu2 %v12123_v14  ;;  %v12641_v14 = vld [vmem:[%s13942_s7 + $0x3dc] sm:$0xf] }
 0x68b   : > { %v13309_v28 = vld [vmem:[%s13942_s7 + $0x18b4] sm:$0xf0] }
 0x68c   : > { %v11834_v52 = vld [vmem:[%s13942_s7 + $0x1a98] sm:$0xf]  ;;  %v11579_v22 = vor.u32 %v13309_v28, %v11578_v54  ;;  %8015 = vmatpush.bf16.msrb.mxu3 %v12379_v30  ;;  %v8924_v28 = vld [vmem:[%s13942_s7 + $0x3f8] sm:$0xf0] }
 0x68d   : > { %v13373_v29 = vld [vmem:[%s13942_s7 + $0x1ab4] sm:$0xf0]  ;;  %v9180_v30 = vld [vmem:[%s13942_s7 + $0x5f8] sm:$0xf0] }
 0x68e   : > { %v12090_v34 = vld [vmem:[%s13942_s7 + $0x1c98] sm:$0xf]  ;;  %v11835_v53 = vor.u32 %v13373_v29, %v11834_v52  ;;  %7974 = vmatpush.bf16.msrb.mxu0 %v11579_v22  ;;  %v12705_v52 = vld [vmem:[%s13942_s7 + $0x5dc] sm:$0xf]  ;;  %v7685_v29 = vadd.f32 %v16136_v45, %v7671_v8  ;;  %v8671_v22 = vor.u32 %v12577_v48, %v8668_v24  ;;  %v7740_v45 = vpop.f32.mrf.mxu3 }
 0x68f   : > { %v13437_v37 = vld [vmem:[%s13942_s7 + $0x1cb4] sm:$0xf0]  ;;  %v12553_v24 = vld [vmem:[%s13942_s7 + $0x11c] sm:$0xf] }
 0x690   : > { %v12346_v11 = vld [vmem:[%s13942_s7 + $0x1e98] sm:$0xf]  ;;  %v12091_v51 = vor.u32 %v13437_v37, %v12090_v34  ;;  %7988 = vmatpush.bf16.msrb.mxu1 %v11835_v53  ;;  %v7699_v53 = vadd.f32 %v7698_v42, %v7685_v29  ;;  %v9404_v42 = vld [vmem:[%s13942_s7 + $0x7b8] sm:$0xf0] }
 0x691   : > { %v13501_v4 = vld [vmem:[%s13942_s7 + $0x1eb4] sm:$0xf0] }
 0x692   : > { %v11546_v9 = vld [vmem:[%s13942_s7 + $0x1858] sm:$0xf]  ;;  %v12347_v60 = vor.u32 %v13501_v4, %v12346_v11  ;;  %8002 = vmatpush.bf16.msrb.mxu2 %v12091_v51  ;;  %v7726_v11 = vpop.f32.mrf.mxu2  ;;  %v8927_v51 = vor.u32 %v12641_v14, %v8924_v28  ;;  %v8572_v28 = vld [vmem:[%s13942_s7 + $0x138] sm:$0xf0] }
 0x693   : > { %v13301_v56 = vld [vmem:[%s13942_s7 + $0x1874] sm:$0xf0] }
 0x694   : > { %v11802_v5 = vld [vmem:[%s13942_s7 + $0x1a58] sm:$0xf]  ;;  %v11547_v3 = vor.u32 %v13301_v56, %v11546_v9  ;;  %8016 = vmatpush.bf16.msrb.mxu3 %v12347_v60  ;;  %v9183_v9 = vor.u32 %v12705_v52, %v9180_v30  ;;  %v12569_v56 = vld [vmem:[%s13942_s7 + $0x19c] sm:$0xf] }
 0x695   : > { %v13365_v57 = vld [vmem:[%s13942_s7 + $0x1a74] sm:$0xf0]  ;;  %v12633_v60 = vld [vmem:[%s13942_s7 + $0x39c] sm:$0xf] }
 0x696   : > { %v12058_v62 = vld [vmem:[%s13942_s7 + $0x1c58] sm:$0xf]  ;;  %v11803_v26 = vor.u32 %v13365_v57, %v11802_v5  ;;  %7975 = vmatpush.bf16.msrb.mxu0 %v11547_v3  ;;  %v8636_v5 = vld [vmem:[%s13942_s7 + $0x1b8] sm:$0xf0]  ;;  %v9439_v57 = vor.u32 %v12769_v19, %v9436_v20  ;;  %v7714_v3 = vpop.f32.mrf.mxu1 }
 0x697   : > { %v13429_v63 = vld [vmem:[%s13942_s7 + $0x1c74] sm:$0xf0]  ;;  %v12617_v52 = vld [vmem:[%s13942_s7 + $0x31c] sm:$0xf] }
 0x698   : > { %v12314_v27 = vld [vmem:[%s13942_s7 + $0x1e58] sm:$0xf]  ;;  %v12059_v25 = vor.u32 %v13429_v63, %v12058_v62  ;;  %7989 = vmatpush.bf16.msrb.mxu1 %v11803_v26  ;;  %v8892_v62 = vld [vmem:[%s13942_s7 + $0x3b8] sm:$0xf0] }
 0x699   : > { %v13493_v49 = vld [vmem:[%s13942_s7 + $0x1e74] sm:$0xf0]  ;;  %v12697_v63 = vld [vmem:[%s13942_s7 + $0x59c] sm:$0xf]  ;;  %v8895_v8 = vor.u32 %v12633_v60, %v8892_v62 }
 0x69a   : > { %v11514_v12 = vld [vmem:[%s13942_s7 + $0x1818] sm:$0xf]  ;;  %v12315_v16 = vor.u32 %v13493_v49, %v12314_v27  ;;  %8003 = vmatpush.bf16.msrb.mxu2 %v12059_v25  ;;  %v7673_v27 = vadd.f32 %v7672_v59, %v7659_v2  ;;  %v7700_v49 = vpop.f32.mrf.mxu0  ;;  %v9151_v59 = vor.u32 %v12697_v63, %v9148_v33  ;;  %v12561_v26 = vld [vmem:[%s13942_s7 + $0x15c] sm:$0xf]  ;;  %v7728_v29 = vpop.f32.mrf.mxu2 }
 0x69b   : > { %v13293_v7 = vld [vmem:[%s13942_s7 + $0x1834] sm:$0xf0]  ;;  %v8604_v25 = vld [vmem:[%s13942_s7 + $0x178] sm:$0xf0] }
 0x69c   : > { %v11770_v13 = vld [vmem:[%s13942_s7 + $0x1a18] sm:$0xf]  ;;  %v11515_v54 = vor.u32 %v13293_v7, %v11514_v12  ;;  %8017 = vmatpush.bf16.msrb.mxu3 %v12315_v16  ;;  %v8639_v12 = vor.u32 %v12569_v56, %v8636_v5  ;;  %v7713_v7 = vadd.f32 %v7712_v50, %v7699_v53  ;;  %v12689_v16 = vld [vmem:[%s13942_s7 + $0x55c] sm:$0xf]  ;;  %v7687_v50 = vadd.f32 %v16166_v21, %v7673_v27 }
 0x69d   : > { %v13357_v23 = vld [vmem:[%s13942_s7 + $0x1a34] sm:$0xf0]  ;;  %v8607_v48 = vor.u32 %v12561_v26, %v8604_v25  ;;  %v8828_v30 = vld [vmem:[%s13942_s7 + $0x338] sm:$0xf0]  ;;  %v8575_v53 = vor.u32 %v12553_v24, %v8572_v28 }
 0x69e   : > { %v12026_v15 = vld [vmem:[%s13942_s7 + $0x1c18] sm:$0xf]  ;;  %v11771_v34 = vor.u32 %v13357_v23, %v11770_v13  ;;  %7976 = vmatpush.bf16.msrb.mxu0 %v11515_v54  ;;  %v12625_v13 = vld [vmem:[%s13942_s7 + $0x35c] sm:$0xf]  ;;  %v9407_v23 = vor.u32 %v12761_v55, %v9404_v42  ;;  %v7701_v14 = vadd.f32 %v7700_v49, %v7687_v50 }
 0x69f   : > { %v13421_v18 = vld [vmem:[%s13942_s7 + $0x1c34] sm:$0xf0]  ;;  %v9084_v19 = vld [vmem:[%s13942_s7 + $0x538] sm:$0xf0] }
 0x6a0   : > { %v12282_v61 = vld [vmem:[%s13942_s7 + $0x1e18] sm:$0xf]  ;;  %v12027_v37 = vor.u32 %v13421_v18, %v12026_v15  ;;  %7990 = vmatpush.bf16.msrb.mxu1 %v11771_v34  ;;  %v8860_v15 = vld [vmem:[%s13942_s7 + $0x378] sm:$0xf0]  ;;  %v7715_v56 = vadd.f32 %v7714_v3, %v7701_v14 }
 0x6a1   : > { %v13485_v6 = vld [vmem:[%s13942_s7 + $0x1e34] sm:$0xf0]  ;;  %7977 = vmatmul.bf16.vlgmr.msrb.gmra.mxu0 %v14251_v32  ;;  %v9116_v18 = vld [vmem:[%s13942_s7 + $0x578] sm:$0xf0]  ;;  %v8863_v21 = vor.u32 %v12625_v13, %v8860_v15 }
 0x6a2   : > { %v12283_v4 = vor.u32 %v13485_v6, %v12282_v61  ;;  %8004 = vmatpush.bf16.msrb.mxu2 %v12027_v37  ;;  %8025 = vmatpush.bf16.msra.mxu0 %v8671_v22  ;;  %v7727_v61 = vadd.f32 %v7726_v11, %v7713_v7  ;;  %v12753_v6 = vld [vmem:[%s13942_s7 + $0x75c] sm:$0xf]  ;;  %v9119_v54 = vor.u32 %v12689_v16, %v9116_v18  ;;  %v7742_v11 = vpop.f32.mrf.mxu3  ;;  %v7782_v16 = vpop.f32.mrf.mxu2 }
 0x6a3   : > { %7991 = vmatmul.bf16.vlgmr.msrb.gmra.mxu1 %v14258_v41  ;;  %v9375_v34 = vor.u32 %v12753_v6, %v9372_v0  ;;  %v12681_v37 = vld [vmem:[%s13942_s7 + $0x51c] sm:$0xf]  ;;  %v7729_v55 = vadd.f32 %v7728_v29, %v7715_v56 }
 0x6a4   : > { %8018 = vmatpush.bf16.msrb.mxu3 %v12283_v4  ;;  %8039 = vmatpush.bf16.msra.mxu1 %v8927_v51  ;;  %v7741_v20 = vadd.f32 %v7740_v45, %v7727_v61  ;;  %v7754_v4 = vpop.f32.mrf.mxu0  ;;  %v12745_v22 = vld [vmem:[%s13942_s7 + $0x71c] sm:$0xf]  ;;  %v8831_v51 = vor.u32 %v12617_v52, %v8828_v30  ;;  %v9087_v45 = vor.u32 %v12681_v37, %v9084_v19 }
 0x6a5   : > { %8005 = vmatmul.bf16.vlgmr.msrb.gmra.mxu2 %v14256_v38  ;;  %v9340_v2 = vld [vmem:[%s13942_s7 + $0x738] sm:$0xf0]  ;;  %v7743_v61 = vadd.f32 %v7742_v11, %v7729_v55 }
 0x6a6   : > { %8053 = vmatpush.bf16.msra.mxu2 %v9183_v9  ;;  %8026 = vmatpush.bf16.msra.mxu0 %v8639_v12  ;;  %v7768_v9 = vpop.f32.mrf.mxu1  ;;  %v7755_v5 = vadd.f32 %v7754_v4, %v7741_v20  ;;  %v12545_v60 = vld [vmem:[%s13942_s7 + $0xdc] sm:$0xf]  ;;  %v9343_v63 = vor.u32 %v12745_v22, %v9340_v2 }
 0x6a7   : > { %8019 = vmatmul.bf16.vlgmr.msrb.gmra.mxu3 %v14262_v46  ;;  %v12609_v62 = vld [vmem:[%s13942_s7 + $0x2dc] sm:$0xf] }
 0x6a8   : > { %8067 = vmatpush.bf16.msra.mxu3 %v9439_v57  ;;  %8040 = vmatpush.bf16.msra.mxu1 %v8895_v8  ;;  %v8540_v57 = vld [vmem:[%s13942_s7 + $0xf8] sm:$0xf0]  ;;  %v7769_v8 = vadd.f32 %v7768_v9, %v7755_v5 }
 0x6a9   : > { %v8796_v33 = vld [vmem:[%s13942_s7 + $0x2f8] sm:$0xf0]  ;;  %v8543_v12 = vor.u32 %v12545_v60, %v8540_v57 }
 0x6aa   : > { %8054 = vmatpush.bf16.msra.mxu2 %v9151_v59  ;;  %8027 = vmatpush.bf16.msra.mxu0 %v8607_v48  ;;  %v12673_v27 = vld [vmem:[%s13942_s7 + $0x4dc] sm:$0xf]  ;;  %v8799_v59 = vor.u32 %v12609_v62, %v8796_v33  ;;  %v7783_v6 = vadd.f32 %v7782_v16, %v7769_v8  ;;  %v7796_v48 = vpop.f32.mrf.mxu3 }
 0x6ab   : > { %v9052_v49 = vld [vmem:[%s13942_s7 + $0x4f8] sm:$0xf0] }
 0x6ac   : > { %8068 = vmatpush.bf16.msra.mxu3 %v9407_v23  ;;  %8041 = vmatpush.bf16.msra.mxu1 %v8863_v21  ;;  %v12737_v42 = vld [vmem:[%s13942_s7 + $0x6dc] sm:$0xf]  ;;  %v9055_v26 = vor.u32 %v12673_v27, %v9052_v49  ;;  %v7756_v0 = vpop.f32.mrf.mxu0  ;;  %v7797_v52 = vadd.f32 %v7796_v48, %v7783_v6  ;;  %v7784_v49 = vpop.f32.mrf.mxu2 }
 0x6ad   : > { %v9308_v3 = vld [vmem:[%s13942_s7 + $0x6f8] sm:$0xf0]  ;;  %v7757_v28 = vadd.f32 %v7756_v0, %v7743_v61 }
 0x6ae   : > { %8055 = vmatpush.bf16.msra.mxu2 %v9119_v54  ;;  %8028 = vmatpush.bf16.msra.mxu0 %v8575_v53  ;;  %v12537_v7 = vld [vmem:[%s13942_s7 + $0x9c] sm:$0xf]  ;;  %v9311_v15 = vor.u32 %v12737_v42, %v9308_v3  ;;  %v7770_v20 = vpop.f32.mrf.mxu1  ;;  %v8254_v2 = vmax.f32 %v7797_v52, 0.0 }
 0x6af   : > { %v8508_v25 = vld [vmem:[%s13942_s7 + $0xb8] sm:$0xf0]  ;;  %v7771_v60 = vadd.f32 %v7770_v20, %v7757_v28 }
 0x6b0   : > { %8069 = vmatpush.bf16.msra.mxu3 %v9375_v34  ;;  %8042 = vmatpush.bf16.msra.mxu1 %v8831_v51  ;;  %v12601_v13 = vld [vmem:[%s13942_s7 + $0x29c] sm:$0xf]  ;;  %v8511_v21 = vor.u32 %v12537_v7, %v8508_v25  ;;  %8270 = vst [vmem:[%s14637_s11 + $0x28] sm:$0xff] %v8254_v2 }
 0x6b1   : > { %v8764_v23 = vld [vmem:[%s13942_s7 + $0x2b8] sm:$0xf0] }
 0x6b2   : > { %8056 = vmatpush.bf16.msra.mxu2 %v9087_v45  ;;  %v12665_v18 = vld [vmem:[%s13942_s7 + $0x49c] sm:$0xf]  ;;  %8029 = vmatpush.bf16.msra.mxu0 %v8543_v12  ;;  %v8767_v54 = vor.u32 %v12601_v13, %v8764_v23  ;;  %v7785_v12 = vadd.f32 %v7784_v49, %v7771_v60  ;;  %v7798_v7 = vpop.f32.mrf.mxu3 }
 0x6b3   : > { %v9020_v50 = vld [vmem:[%s13942_s7 + $0x4b8] sm:$0xf0] }
 0x6b4   : > { %8070 = vmatpush.bf16.msra.mxu3 %v9343_v63  ;;  %v12729_v24 = vld [vmem:[%s13942_s7 + $0x69c] sm:$0xf]  ;;  %8043 = vmatpush.bf16.msra.mxu1 %v8799_v59  ;;  %v9023_v30 = vor.u32 %v12665_v18, %v9020_v50  ;;  %v7799_v16 = vadd.f32 %v7798_v7, %v7785_v12 }
 0x6b5   : > { %v9276_v14 = vld [vmem:[%s13942_s7 + $0x6b8] sm:$0xf0] }
 0x6b6   : > { %8057 = vmatpush.bf16.msra.mxu2 %v9055_v26  ;;  %v12529_v29 = vld [vmem:[%s13942_s7 + $0x5c] sm:$0xf]  ;;  %v9279_v19 = vor.u32 %v12729_v24, %v9276_v14  ;;  %8030 = vmatpush.bf16.msra.mxu0 %v8511_v21  ;;  %v8262_v14 = vmax.f32 %v7799_v16, 0.0 }
 0x6b7   : > { %v8476_v34 = vld [vmem:[%s13942_s7 + $0x78] sm:$0xf0] }
 0x6b8   : > { %v12593_v37 = vld [vmem:[%s13942_s7 + $0x25c] sm:$0xf]  ;;  %8071 = vmatpush.bf16.msra.mxu3 %v9311_v15  ;;  %v8479_v9 = vor.u32 %v12529_v29, %v8476_v34  ;;  %8044 = vmatpush.bf16.msra.mxu1 %v8767_v54  ;;  %8278 = vst [vmem:[%s14637_s11 + $0x68] sm:$0xff] %v8262_v14 }
 0x6b9   : > { %v8732_v11 = vld [vmem:[%s13942_s7 + $0x278] sm:$0xf0] }
 0x6ba   : > { %v12657_v4 = vld [vmem:[%s13942_s7 + $0x45c] sm:$0xf]  ;;  %8058 = vmatpush.bf16.msra.mxu2 %v9023_v30  ;;  %v8735_v57 = vor.u32 %v12593_v37, %v8732_v11  ;;  %8031 = vmatpush.bf16.msra.mxu0 %v8479_v9 }
 0x6bb   : > { %v8988_v22 = vld [vmem:[%s13942_s7 + $0x478] sm:$0xf0] }
 0x6bc   : > { %v12721_v53 = vld [vmem:[%s13942_s7 + $0x65c] sm:$0xf]  ;;  %v8991_v62 = vor.u32 %v12657_v4, %v8988_v22  ;;  %8072 = vmatpush.bf16.msra.mxu3 %v9279_v19  ;;  %8045 = vmatpush.bf16.msra.mxu1 %v8735_v57 }
 0x6bd   : > { %v9244_v51 = vld [vmem:[%s13942_s7 + $0x678] sm:$0xf0] }
 0x6be   : > { %v12521_v56 = vld [vmem:[%s13942_s7 + $0x1c] sm:$0xf]  ;;  %v9247_v27 = vor.u32 %v12721_v53, %v9244_v51  ;;  %8059 = vmatpush.bf16.msra.mxu2 %v8991_v62 }
 0x6bf   : > { %v8444_v5 = vld [vmem:[%s13942_s7 + $0x38] sm:$0xf0] }
 0x6c0   : > { %v12585_v45 = vld [vmem:[%s13942_s7 + $0x21c] sm:$0xf]  ;;  %v8447_v25 = vor.u32 %v12521_v56, %v8444_v5  ;;  %8073 = vmatpush.bf16.msra.mxu3 %v9247_v27 }
 0x6c1   : > { %v8700_v63 = vld [vmem:[%s13942_s7 + $0x238] sm:$0xf0] }
 0x6c2   : > { %v12649_v33 = vld [vmem:[%s13942_s7 + $0x41c] sm:$0xf]  ;;  %v8703_v18 = vor.u32 %v12585_v45, %v8700_v63  ;;  %8032 = vmatpush.bf16.msra.mxu0 %v8447_v25 }
 0x6c3   : > { %v8956_v55 = vld [vmem:[%s13942_s7 + $0x438] sm:$0xf0] }
 0x6c4   : > { %v12713_v42 = vld [vmem:[%s13942_s7 + $0x61c] sm:$0xf]  ;;  %v8959_v50 = vor.u32 %v12649_v33, %v8956_v55  ;;  %8046 = vmatpush.bf16.msra.mxu1 %v8703_v18 }
 0x6c5   : > { %v9212_v3 = vld [vmem:[%s13942_s7 + $0x638] sm:$0xf0]  ;;  %8033 = vmatmul.bf16.vlgmr.msra.gmra.mxu0 %v14030_v58 }
 0x6c6   : > { %v12833_v8 = vld [vmem:[%s13942_s7 + $0x9dc] sm:$0xf]  ;;  %v9215_v0 = vor.u32 %v12713_v42, %v9212_v3  ;;  %8060 = vmatpush.bf16.msra.mxu2 %v8959_v50 }
 0x6c7   : > { %v9692_v59 = vld [vmem:[%s13942_s7 + $0x9f8] sm:$0xf0]  ;;  %8047 = vmatmul.bf16.vlgmr.msra.gmra.mxu1 %v14042_v10 }
 0x6c8   : > { %v12897_v26 = vld [vmem:[%s13942_s7 + $0xbdc] sm:$0xf]  ;;  %v9695_v48 = vor.u32 %v12833_v8, %v9692_v59  ;;  %8074 = vmatpush.bf16.msra.mxu3 %v9215_v0 }
 0x6c9   : > { %v9948_v13 = vld [vmem:[%s13942_s7 + $0xbf8] sm:$0xf0]  ;;  %8061 = vmatmul.bf16.vlgmr.msra.gmra.mxu2 %v14035_v1 }
 0x6ca   : > { %v12961_v23 = vld [vmem:[%s13942_s7 + $0xddc] sm:$0xf]  ;;  %v9951_v21 = vor.u32 %v12897_v26, %v9948_v13  ;;  %8081 = vmatpush.bf16.msrb.mxu0 %v9695_v48 }
 0x6cb   : > { %v10204_v15 = vld [vmem:[%s13942_s7 + $0xdf8] sm:$0xf0]  ;;  %8075 = vmatmul.bf16.vlgmr.msra.gmra.mxu3 %v14047_v17 }
 0x6cc   : > { %v13025_v61 = vld [vmem:[%s13942_s7 + $0xfdc] sm:$0xf]  ;;  %v10207_v54 = vor.u32 %v12961_v23, %v10204_v15  ;;  %8095 = vmatpush.bf16.msrb.mxu1 %v9951_v21 }
 0x6cd   : > { %v10460_v6 = vld [vmem:[%s13942_s7 + $0xff8] sm:$0xf0] }
 0x6ce   : > { %v12825_v24 = vld [vmem:[%s13942_s7 + $0x99c] sm:$0xf]  ;;  %v10463_v30 = vor.u32 %v13025_v61, %v10460_v6  ;;  %8109 = vmatpush.bf16.msrb.mxu2 %v10207_v54 }
 0x6cf   : > { %v9660_v28 = vld [vmem:[%s13942_s7 + $0x9b8] sm:$0xf0] }
 0x6d0   : > { %v12889_v52 = vld [vmem:[%s13942_s7 + $0xb9c] sm:$0xf]  ;;  %v9663_v11 = vor.u32 %v12825_v24, %v9660_v28  ;;  %8123 = vmatpush.bf16.msrb.mxu3 %v10463_v30 }
 0x6d1   : > { %v9916_v29 = vld [vmem:[%s13942_s7 + $0xbb8] sm:$0xf0] }
 0x6d2   : > { %v12953_v34 = vld [vmem:[%s13942_s7 + $0xd9c] sm:$0xf]  ;;  %v9919_v4 = vor.u32 %v12889_v52, %v9916_v29  ;;  %8082 = vmatpush.bf16.msrb.mxu0 %v9663_v11 }
 0x6d3   : > { %v10172_v37 = vld [vmem:[%s13942_s7 + $0xdb8] sm:$0xf0] }
 0x6d4   : > { %v13017_v19 = vld [vmem:[%s13942_s7 + $0xf9c] sm:$0xf]  ;;  %v10175_v22 = vor.u32 %v12953_v34, %v10172_v37  ;;  %8096 = vmatpush.bf16.msrb.mxu1 %v9919_v4 }
 0x6d5   : > { %v10428_v20 = vld [vmem:[%s13942_s7 + $0xfb8] sm:$0xf0] }
 0x6d6   : > { %v12817_v2 = vld [vmem:[%s13942_s7 + $0x95c] sm:$0xf]  ;;  %v10431_v9 = vor.u32 %v13017_v19, %v10428_v20  ;;  %8110 = vmatpush.bf16.msrb.mxu2 %v10175_v22 }
 0x6d7   : > { %v9628_v53 = vld [vmem:[%s13942_s7 + $0x978] sm:$0xf0] }
 0x6d8   : > { %v12881_v51 = vld [vmem:[%s13942_s7 + $0xb5c] sm:$0xf]  ;;  %v9631_v62 = vor.u32 %v12817_v2, %v9628_v53  ;;  %8124 = vmatpush.bf16.msrb.mxu3 %v10431_v9 }
 0x6d9   : > { %v9884_v56 = vld [vmem:[%s13942_s7 + $0xb78] sm:$0xf0] }
 0x6da   : > { %v12945_v5 = vld [vmem:[%s13942_s7 + $0xd5c] sm:$0xf]  ;;  %v9887_v63 = vor.u32 %v12881_v51, %v9884_v56  ;;  %8083 = vmatpush.bf16.msrb.mxu0 %v9631_v62 }
 0x6db   : > { %v10140_v45 = vld [vmem:[%s13942_s7 + $0xd78] sm:$0xf0] }
 0x6dc   : > { %v13009_v60 = vld [vmem:[%s13942_s7 + $0xf5c] sm:$0xf]  ;;  %v10143_v33 = vor.u32 %v12945_v5, %v10140_v45  ;;  %8097 = vmatpush.bf16.msrb.mxu1 %v9887_v63 }
 0x6dd   : > { %v10396_v57 = vld [vmem:[%s13942_s7 + $0xf78] sm:$0xf0] }
 0x6de   : > { %v12809_v58 = vld [vmem:[%s13942_s7 + $0x91c] sm:$0xf]  ;;  %v10399_v1 = vor.u32 %v13009_v60, %v10396_v57  ;;  %8111 = vmatpush.bf16.msrb.mxu2 %v10143_v33 }
 0x6df   : > { %v9596_v27 = vld [vmem:[%s13942_s7 + $0x938] sm:$0xf0] }
 0x6e0   : > { %v12873_v49 = vld [vmem:[%s13942_s7 + $0xb1c] sm:$0xf]  ;;  %v9599_v12 = vor.u32 %v12809_v58, %v9596_v27  ;;  %8125 = vmatpush.bf16.msrb.mxu3 %v10399_v1 }
 0x6e1   : > { %v9852_v55 = vld [vmem:[%s13942_s7 + $0xb38] sm:$0xf0] }
 0x6e2   : > { %v12937_v10 = vld [vmem:[%s13942_s7 + $0xd1c] sm:$0xf]  ;;  %v9855_v7 = vor.u32 %v12873_v49, %v9852_v55  ;;  %8084 = vmatpush.bf16.msrb.mxu0 %v9599_v12 }
 0x6e3   : > { %v10108_v42 = vld [vmem:[%s13942_s7 + $0xd38] sm:$0xf0] }
 0x6e4   : > { %v13001_v3 = vld [vmem:[%s13942_s7 + $0xf1c] sm:$0xf]  ;;  %v10111_v8 = vor.u32 %v12937_v10, %v10108_v42  ;;  %8098 = vmatpush.bf16.msrb.mxu1 %v9855_v7 }
 0x6e5   : > { %v10364_v17 = vld [vmem:[%s13942_s7 + $0xf38] sm:$0xf0] }
 0x6e6   : > { %v12801_v59 = vld [vmem:[%s13942_s7 + $0x8dc] sm:$0xf]  ;;  %v10367_v13 = vor.u32 %v13001_v3, %v10364_v17  ;;  %8112 = vmatpush.bf16.msrb.mxu2 %v10111_v8 }
 0x6e7   : > { %v9564_v26 = vld [vmem:[%s13942_s7 + $0x8f8] sm:$0xf0] }
 0x6e8   : > { %v12865_v25 = vld [vmem:[%s13942_s7 + $0xadc] sm:$0xf]  ;;  %v9567_v61 = vor.u32 %v12801_v59, %v9564_v26  ;;  %8126 = vmatpush.bf16.msrb.mxu3 %v10367_v13 }
 0x6e9   : > { %v9820_v23 = vld [vmem:[%s13942_s7 + $0xaf8] sm:$0xf0] }
 0x6ea   : > { %v12929_v15 = vld [vmem:[%s13942_s7 + $0xcdc] sm:$0xf]  ;;  %v9823_v6 = vor.u32 %v12865_v25, %v9820_v23  ;;  %8085 = vmatpush.bf16.msrb.mxu0 %v9567_v61 }
 0x6eb   : > { %v10076_v16 = vld [vmem:[%s13942_s7 + $0xcf8] sm:$0xf0] }
 0x6ec   : > { %v12993_v18 = vld [vmem:[%s13942_s7 + $0xedc] sm:$0xf]  ;;  %v10079_v0 = vor.u32 %v12929_v15, %v10076_v16  ;;  %8099 = vmatpush.bf16.msrb.mxu1 %v9823_v6 }
 0x6ed   : > { %v10332_v50 = vld [vmem:[%s13942_s7 + $0xef8] sm:$0xf0] }
 0x6ee   : > { %v12793_v48 = vld [vmem:[%s13942_s7 + $0x89c] sm:$0xf]  ;;  %v10335_v21 = vor.u32 %v12993_v18, %v10332_v50  ;;  %8113 = vmatpush.bf16.msrb.mxu2 %v10079_v0 }
 0x6ef   : > { %v9532_v24 = vld [vmem:[%s13942_s7 + $0x8b8] sm:$0xf0] }
 0x6f0   : > { %v12857_v14 = vld [vmem:[%s13942_s7 + $0xa9c] sm:$0xf]  ;;  %v9535_v34 = vor.u32 %v12793_v48, %v9532_v24  ;;  %8127 = vmatpush.bf16.msrb.mxu3 %v10335_v21 }
 0x6f1   : > { %v9788_v54 = vld [vmem:[%s13942_s7 + $0xab8] sm:$0xf0] }
 0x6f2   : > { %v12921_v28 = vld [vmem:[%s13942_s7 + $0xc9c] sm:$0xf]  ;;  %v9791_v37 = vor.u32 %v12857_v14, %v9788_v54  ;;  %8086 = vmatpush.bf16.msrb.mxu0 %v9535_v34 }
 0x6f3   : > { %v10044_v52 = vld [vmem:[%s13942_s7 + $0xcb8] sm:$0xf0] }
 0x6f4   : > { %v12985_v30 = vld [vmem:[%s13942_s7 + $0xe9c] sm:$0xf]  ;;  %v10047_v19 = vor.u32 %v12921_v28, %v10044_v52  ;;  %8100 = vmatpush.bf16.msrb.mxu1 %v9791_v37 }
 0x6f5   : > { %v10300_v29 = vld [vmem:[%s13942_s7 + $0xeb8] sm:$0xf0] }
 0x6f6   : > { %v12785_v20 = vld [vmem:[%s13942_s7 + $0x85c] sm:$0xf]  ;;  %v10303_v22 = vor.u32 %v12985_v30, %v10300_v29  ;;  %8114 = vmatpush.bf16.msrb.mxu2 %v10047_v19 }
 0x6f7   : > { %v9500_v11 = vld [vmem:[%s13942_s7 + $0x878] sm:$0xf0] }
 0x6f8   : > { %v12849_v4 = vld [vmem:[%s13942_s7 + $0xa5c] sm:$0xf]  ;;  %v9503_v5 = vor.u32 %v12785_v20, %v9500_v11  ;;  %8128 = vmatpush.bf16.msrb.mxu3 %v10303_v22 }
 0x6f9   : > { %v9756_v2 = vld [vmem:[%s13942_s7 + $0xa78] sm:$0xf0] }
 0x6fa   : > { %v12913_v53 = vld [vmem:[%s13942_s7 + $0xc5c] sm:$0xf]  ;;  %v9759_v57 = vor.u32 %v12849_v4, %v9756_v2  ;;  %8087 = vmatpush.bf16.msrb.mxu0 %v9503_v5 }
 0x6fb   : > { %v10012_v51 = vld [vmem:[%s13942_s7 + $0xc78] sm:$0xf0] }
 0x6fc   : > { %v12977_v9 = vld [vmem:[%s13942_s7 + $0xe5c] sm:$0xf]  ;;  %v10015_v62 = vor.u32 %v12913_v53, %v10012_v51  ;;  %8101 = vmatpush.bf16.msrb.mxu1 %v9759_v57 }
 0x6fd   : > { %v10268_v56 = vld [vmem:[%s13942_s7 + $0xe78] sm:$0xf0] }
 0x6fe   : > { %v12777_v45 = vld [vmem:[%s13942_s7 + $0x81c] sm:$0xf]  ;;  %v10271_v27 = vor.u32 %v12977_v9, %v10268_v56  ;;  %8115 = vmatpush.bf16.msrb.mxu2 %v10015_v62 }
 0x6ff   : > { %v9468_v60 = vld [vmem:[%s13942_s7 + $0x838] sm:$0xf0] }
 0x700   : > { %v12841_v63 = vld [vmem:[%s13942_s7 + $0xa1c] sm:$0xf]  ;;  %v9471_v17 = vor.u32 %v12777_v45, %v9468_v60  ;;  %8129 = vmatpush.bf16.msrb.mxu3 %v10271_v27 }
 0x701   : > { %v9724_v33 = vld [vmem:[%s13942_s7 + $0xa38] sm:$0xf0] }
 0x702   : > { %v12905_v58 = vld [vmem:[%s13942_s7 + $0xc1c] sm:$0xf]  ;;  %v9727_v59 = vor.u32 %v12841_v63, %v9724_v33  ;;  %8088 = vmatpush.bf16.msrb.mxu0 %v9471_v17 }
 0x703   : > { %v9980_v49 = vld [vmem:[%s13942_s7 + $0xc38] sm:$0xf0] }
 0x704   : > { %v12969_v1 = vld [vmem:[%s13942_s7 + $0xe1c] sm:$0xf]  ;;  %v9983_v26 = vor.u32 %v12905_v58, %v9980_v49  ;;  %8102 = vmatpush.bf16.msrb.mxu1 %v9727_v59 }
 0x705   : > { %v10236_v55 = vld [vmem:[%s13942_s7 + $0xe38] sm:$0xf0]  ;;  %8089 = vmatmul.bf16.vlgmr.msrb.gmra.mxu0 %v14099_v39 }
 0x706   : > { %v13089_v10 = vld [vmem:[%s13942_s7 + $0x11dc] sm:$0xf]  ;;  %v10239_v23 = vor.u32 %v12969_v1, %v10236_v55  ;;  %8116 = vmatpush.bf16.msrb.mxu2 %v9983_v26 }
 0x707   : > { %v10716_v42 = vld [vmem:[%s13942_s7 + $0x11f8] sm:$0xf0]  ;;  %8103 = vmatmul.bf16.vlgmr.msrb.gmra.mxu1 %v14106_v44 }
 0x708   : > { %v13153_v3 = vld [vmem:[%s13942_s7 + $0x13dc] sm:$0xf]  ;;  %v10719_v15 = vor.u32 %v13089_v10, %v10716_v42  ;;  %8130 = vmatpush.bf16.msrb.mxu3 %v10239_v23 }
 0x709   : > { %v10972_v12 = vld [vmem:[%s13942_s7 + $0x13f8] sm:$0xf0]  ;;  %8117 = vmatmul.bf16.vlgmr.msrb.gmra.mxu2 %v14104_v43 }
 0x70a   : > { %v13217_v7 = vld [vmem:[%s13942_s7 + $0x15dc] sm:$0xf]  ;;  %v10975_v16 = vor.u32 %v13153_v3, %v10972_v12  ;;  %8137 = vmatpush.bf16.msra.mxu0 %v10719_v15  ;;  %v16362_v3 = vpop.f32.mrf.mxu0 }
 0x70b   : > { %v11228_v8 = vld [vmem:[%s13942_s7 + $0x15f8] sm:$0xf0]  ;;  %8131 = vmatmul.bf16.vlgmr.msrb.gmra.mxu3 %v14110_v47 }
 0x70c   : > { %v13281_v25 = vld [vmem:[%s13942_s7 + $0x17dc] sm:$0xf]  ;;  %v11231_v18 = vor.u32 %v13217_v7, %v11228_v8  ;;  %8151 = vmatpush.bf16.msra.mxu1 %v10975_v16  ;;  %v16366_v7 = vpop.f32.mrf.mxu1 }
 0x70d   : > { %v11484_v13 = vld [vmem:[%s13942_s7 + $0x17f8] sm:$0xf0] }
 0x70e   : > { %v13081_v50 = vld [vmem:[%s13942_s7 + $0x119c] sm:$0xf]  ;;  %v11487_v0 = vor.u32 %v13281_v25, %v11484_v13  ;;  %8165 = vmatpush.bf16.msra.mxu2 %v11231_v18 }
 0x70f   : > { %v10684_v61 = vld [vmem:[%s13942_s7 + $0x11b8] sm:$0xf0] }
 0x710   : > { %v13145_v6 = vld [vmem:[%s13942_s7 + $0x139c] sm:$0xf]  ;;  %v10687_v28 = vor.u32 %v13081_v50, %v10684_v61  ;;  %8179 = vmatpush.bf16.msra.mxu3 %v11487_v0 }
 0x711   : > { %v10940_v48 = vld [vmem:[%s13942_s7 + $0x13b8] sm:$0xf0] }
 0x712   : > { %v13209_v24 = vld [vmem:[%s13942_s7 + $0x159c] sm:$0xf]  ;;  %v10943_v52 = vor.u32 %v13145_v6, %v10940_v48  ;;  %8138 = vmatpush.bf16.msra.mxu0 %v10687_v28  ;;  %v16379_v28 = vpop.f32.mrf.mxu2 }
 0x713   : > { %v11196_v14 = vld [vmem:[%s13942_s7 + $0x15b8] sm:$0xf0] }
 0x714   : > { %v13273_v21 = vld [vmem:[%s13942_s7 + $0x179c] sm:$0xf]  ;;  %v11199_v30 = vor.u32 %v13209_v24, %v11196_v14  ;;  %8152 = vmatpush.bf16.msra.mxu1 %v10943_v52 }
 0x715   : > { %v11452_v54 = vld [vmem:[%s13942_s7 + $0x17b8] sm:$0xf0] }
 0x716   : > { %v13073_v29 = vld [vmem:[%s13942_s7 + $0x115c] sm:$0xf]  ;;  %v11455_v19 = vor.u32 %v13273_v21, %v11452_v54  ;;  %8166 = vmatpush.bf16.msra.mxu2 %v11199_v30 }
 0x717   : > { %v10652_v34 = vld [vmem:[%s13942_s7 + $0x1178] sm:$0xf0] }
 0x718   : > { %v13137_v37 = vld [vmem:[%s13942_s7 + $0x135c] sm:$0xf]  ;;  %v10655_v39 = vor.u32 %v13073_v29, %v10652_v34  ;;  %8180 = vmatpush.bf16.msra.mxu3 %v11455_v19 }
 0x719   : > { %v10908_v20 = vld [vmem:[%s13942_s7 + $0x1378] sm:$0xf0] }
 0x71a   : > { %v13201_v11 = vld [vmem:[%s13942_s7 + $0x155c] sm:$0xf]  ;;  %v10911_v53 = vor.u32 %v13137_v37, %v10908_v20  ;;  %8139 = vmatpush.bf16.msra.mxu0 %v10655_v39  ;;  %v16384_v37 = vpop.f32.mrf.mxu3 }
 0x71b   : > { %v11164_v4 = vld [vmem:[%s13942_s7 + $0x1578] sm:$0xf0] }
 0x71c   : > { %v13265_v22 = vld [vmem:[%s13942_s7 + $0x175c] sm:$0xf]  ;;  %v11167_v51 = vor.u32 %v13201_v11, %v11164_v4  ;;  %8153 = vmatpush.bf16.msra.mxu1 %v10911_v53  ;;  %v16389_v11 = vld [vmem:[%s14443_s24] sm:$0xff]  ;;  %v16394_v53 = vpop.f32.mrf.mxu0 }
 0x71d   : > { %v11420_v2 = vld [vmem:[%s13942_s7 + $0x1778] sm:$0xf0]  ;;  %v1327_v4 = vperm.slane %v16389_v11, 6 }
 0x71e   : > { %v13065_v9 = vld [vmem:[%s13942_s7 + $0x111c] sm:$0xf]  ;;  %v11423_v44 = vor.u32 %v13265_v22, %v11420_v2  ;;  %8167 = vmatpush.bf16.msra.mxu2 %v11167_v51 }
 0x71f   : > { %v10620_v43 = vld [vmem:[%s13942_s7 + $0x1138] sm:$0xf0] }
 0x720   : > { %v13129_v56 = vld [vmem:[%s13942_s7 + $0x131c] sm:$0xf]  ;;  %v10623_v62 = vor.u32 %v13065_v9, %v10620_v43  ;;  %8181 = vmatpush.bf16.msra.mxu3 %v11423_v44 }
 0x721   : > { %v10876_v5 = vld [vmem:[%s13942_s7 + $0x1338] sm:$0xf0] }
 0x722   : > { %v13193_v45 = vld [vmem:[%s13942_s7 + $0x151c] sm:$0xf]  ;;  %v10879_v63 = vor.u32 %v13129_v56, %v10876_v5  ;;  %8140 = vmatpush.bf16.msra.mxu0 %v10623_v62  ;;  %v16399_v5 = vpop.f32.mrf.mxu1 }
 0x723   : > { %v11132_v47 = vld [vmem:[%s13942_s7 + $0x1538] sm:$0xf0] }
 0x724   : > { %v13257_v60 = vld [vmem:[%s13942_s7 + $0x171c] sm:$0xf]  ;;  %v11135_v33 = vor.u32 %v13193_v45, %v11132_v47  ;;  %8154 = vmatpush.bf16.msra.mxu1 %v10879_v63 }
 0x725   : > { %v11388_v57 = vld [vmem:[%s13942_s7 + $0x1738] sm:$0xf0] }
 0x726   : > { %v13057_v58 = vld [vmem:[%s13942_s7 + $0x10dc] sm:$0xf]  ;;  %v11391_v1 = vor.u32 %v13257_v60, %v11388_v57  ;;  %8168 = vmatpush.bf16.msra.mxu2 %v11135_v33 }
 0x727   : > { %v10588_v27 = vld [vmem:[%s13942_s7 + $0x10f8] sm:$0xf0] }
 0x728   : > { %v13121_v49 = vld [vmem:[%s13942_s7 + $0x12dc] sm:$0xf]  ;;  %v10591_v8 = vor.u32 %v13057_v58, %v10588_v27  ;;  %8182 = vmatpush.bf16.msra.mxu3 %v11391_v1 }
 0x729   : > { %v10844_v55 = vld [vmem:[%s13942_s7 + $0x12f8] sm:$0xf0] }
 0x72a   : > { %v13185_v10 = vld [vmem:[%s13942_s7 + $0x14dc] sm:$0xf]  ;;  %v10847_v59 = vor.u32 %v13121_v49, %v10844_v55  ;;  %8141 = vmatpush.bf16.msra.mxu0 %v10591_v8 }
 0x72b   : > { %v11100_v42 = vld [vmem:[%s13942_s7 + $0x14f8] sm:$0xf0] }
 0x72c   : > { %v13249_v17 = vld [vmem:[%s13942_s7 + $0x16dc] sm:$0xf]  ;;  %v11103_v26 = vor.u32 %v13185_v10, %v11100_v42  ;;  %8155 = vmatpush.bf16.msra.mxu1 %v10847_v59  ;;  %v7811_v59 = vadd.f32 %v16362_v3, %v1327_v4 }
 0x72d   : > { %v11356_v12 = vld [vmem:[%s13942_s7 + $0x16f8] sm:$0xf0] }
 0x72e   : > { %v13049_v25 = vld [vmem:[%s13942_s7 + $0x109c] sm:$0xf]  ;;  %v11359_v15 = vor.u32 %v13249_v17, %v11356_v12  ;;  %8169 = vmatpush.bf16.msra.mxu2 %v11103_v26 }
 0x72f   : > { %v10556_v13 = vld [vmem:[%s13942_s7 + $0x10b8] sm:$0xf0] }
 0x730   : > { %v13113_v23 = vld [vmem:[%s13942_s7 + $0x129c] sm:$0xf]  ;;  %v10559_v0 = vor.u32 %v13049_v25, %v10556_v13  ;;  %8183 = vmatpush.bf16.msra.mxu3 %v11359_v15 }
 0x731   : > { %v10812_v16 = vld [vmem:[%s13942_s7 + $0x12b8] sm:$0xf0] }
 0x732   : > { %v13177_v18 = vld [vmem:[%s13942_s7 + $0x149c] sm:$0xf]  ;;  %v10815_v48 = vor.u32 %v13113_v23, %v10812_v16  ;;  %8142 = vmatpush.bf16.msra.mxu0 %v10559_v0  ;;  %v16418_v16 = vpop.f32.mrf.mxu2  ;;  %v16423_v0 = vpop.f32.mrf.mxu3 }
 0x733   : > { %v11068_v50 = vld [vmem:[%s13942_s7 + $0x14b8] sm:$0xf0] }
 0x734   : > { %v13241_v61 = vld [vmem:[%s13942_s7 + $0x169c] sm:$0xf]  ;;  %v11071_v24 = vor.u32 %v13177_v18, %v11068_v50  ;;  %8156 = vmatpush.bf16.msra.mxu1 %v10815_v48 }
 0x735   : > { %v11324_v6 = vld [vmem:[%s13942_s7 + $0x16b8] sm:$0xf0] }
 0x736   : > { %v13041_v14 = vld [vmem:[%s13942_s7 + $0x105c] sm:$0xf]  ;;  %v11327_v52 = vor.u32 %v13241_v61, %v11324_v6  ;;  %8170 = vmatpush.bf16.msra.mxu2 %v11071_v24 }
 0x737   : > { %v10524_v21 = vld [vmem:[%s13942_s7 + $0x1078] sm:$0xf0] }
 0x738   : > { %v13105_v54 = vld [vmem:[%s13942_s7 + $0x125c] sm:$0xf]  ;;  %v10527_v22 = vor.u32 %v13041_v14, %v10524_v21  ;;  %8184 = vmatpush.bf16.msra.mxu3 %v11327_v52  ;;  %v7825_v14 = vadd.f32 %v16366_v7, %v7811_v59  ;;  %v7866_v21 = vpop.f32.mrf.mxu0 }
 0x739   : > { %v10780_v30 = vld [vmem:[%s13942_s7 + $0x1278] sm:$0xf0] }
 0x73a   : > { %v13169_v29 = vld [vmem:[%s13942_s7 + $0x145c] sm:$0xf]  ;;  %v10783_v51 = vor.u32 %v13105_v54, %v10780_v30  ;;  %8143 = vmatpush.bf16.msra.mxu0 %v10527_v22 }
 0x73b   : > { %v11036_v34 = vld [vmem:[%s13942_s7 + $0x1478] sm:$0xf0] }
 0x73c   : > { %v13233_v19 = vld [vmem:[%s13942_s7 + $0x165c] sm:$0xf]  ;;  %v11039_v9 = vor.u32 %v13169_v29, %v11036_v34  ;;  %8157 = vmatpush.bf16.msra.mxu1 %v10783_v51 }
 0x73d   : > { %v11292_v20 = vld [vmem:[%s13942_s7 + $0x1678] sm:$0xf0] }
 0x73e   : > { %v13033_v2 = vld [vmem:[%s13942_s7 + $0x101c] sm:$0xf]  ;;  %v11295_v45 = vor.u32 %v13233_v19, %v11292_v20  ;;  %8171 = vmatpush.bf16.msra.mxu2 %v11039_v9  ;;  %v16431_v19 = vpop.f32.mrf.mxu1  ;;  %v7839_v9 = vadd.f32 %v16379_v28, %v7825_v14 }
 0x73f   : > { %v10492_v39 = vld [vmem:[%s13942_s7 + $0x1038] sm:$0xf0] }
 0x740   : > { %v13097_v43 = vld [vmem:[%s13942_s7 + $0x121c] sm:$0xf]  ;;  %v10495_v58 = vor.u32 %v13033_v2, %v10492_v39  ;;  %8185 = vmatpush.bf16.msra.mxu3 %v11295_v45 }
 0x741   : > { %v10748_v56 = vld [vmem:[%s13942_s7 + $0x1238] sm:$0xf0] }
 0x742   : > { %v13161_v44 = vld [vmem:[%s13942_s7 + $0x141c] sm:$0xf]  ;;  %v10751_v55 = vor.u32 %v13097_v43, %v10748_v56  ;;  %8144 = vmatpush.bf16.msra.mxu0 %v10495_v58  ;;  %v7853_v58 = vadd.f32 %v16384_v37, %v7839_v9 }
 0x743   : > { %v11004_v47 = vld [vmem:[%s13942_s7 + $0x1438] sm:$0xf0] }
 0x744   : > { %v13225_v60 = vld [vmem:[%s13942_s7 + $0x161c] sm:$0xf]  ;;  %v11007_v10 = vor.u32 %v13161_v44, %v11004_v47  ;;  %8158 = vmatpush.bf16.msra.mxu1 %v10751_v55 }
 0x745   : > { %v11260_v57 = vld [vmem:[%s13942_s7 + $0x1638] sm:$0xf0]  ;;  %8145 = vmatmul.bf16.vlgmr.msra.gmra.mxu0 %v14175_v31 }
 0x746   : > { %v13345_v62 = vld [vmem:[%s13942_s7 + $0x19dc] sm:$0xf]  ;;  %v11263_v12 = vor.u32 %v13225_v60, %v11260_v57  ;;  %8172 = vmatpush.bf16.msra.mxu2 %v11007_v10  ;;  %v7813_v57 = vadd.f32 %v16394_v53, %v1327_v4 }
 0x747   : > { %v11740_v63 = vld [vmem:[%s13942_s7 + $0x19f8] sm:$0xf0]  ;;  %8159 = vmatmul.bf16.vlgmr.msra.gmra.mxu1 %v14182_v36 }
 0x748   : > { %v13409_v33 = vld [vmem:[%s13942_s7 + $0x1bdc] sm:$0xf]  ;;  %v11743_v8 = vor.u32 %v13345_v62, %v11740_v63  ;;  %8186 = vmatpush.bf16.msra.mxu3 %v11263_v12  ;;  %v16454_v63 = vpop.f32.mrf.mxu2  ;;  %v7827_v37 = vadd.f32 %v16399_v5, %v7813_v57 }
 0x749   : > { %v11996_v27 = vld [vmem:[%s13942_s7 + $0x1bf8] sm:$0xf0]  ;;  %8173 = vmatmul.bf16.vlgmr.msra.gmra.mxu2 %v14180_v35 }
 0x74a   : > { %v13473_v49 = vld [vmem:[%s13942_s7 + $0x1ddc] sm:$0xf]  ;;  %v11999_v26 = vor.u32 %v13409_v33, %v11996_v27  ;;  %8193 = vmatpush.bf16.msrb.mxu0 %v11743_v8  ;;  %v16457_v27 = vpop.f32.mrf.mxu3  ;;  %v7868_v8 = vpop.f32.mrf.mxu0  ;;  %v7841_v14 = vadd.f32 %v16418_v16, %v7827_v37 }
 0x74b   : > { %v12252_v1 = vld [vmem:[%s13942_s7 + $0x1df8] sm:$0xf0]  ;;  %8187 = vmatmul.bf16.vlgmr.msra.gmra.mxu3 %v14186_v40 }
 0x74c   : > { %v13537_v42 = vld [vmem:[%s13942_s7 + $0x1fdc] sm:$0xf]  ;;  %v12255_v25 = vor.u32 %v13473_v49, %v12252_v1  ;;  %8207 = vmatpush.bf16.msrb.mxu1 %v11999_v26 }
 0x74d   : > { %v12508_v17 = vld [vmem:[%s13942_s7 + $0x1ff8] sm:$0xf0] }
 0x74e   : > { %v13337_v13 = vld [vmem:[%s13942_s7 + $0x199c] sm:$0xf]  ;;  %v12511_v18 = vor.u32 %v13537_v42, %v12508_v17  ;;  %8221 = vmatpush.bf16.msrb.mxu2 %v12255_v25  ;;  %v16468_v25 = vpop.f32.mrf.mxu1 }
 0x74f   : > { %v11708_v23 = vld [vmem:[%s13942_s7 + $0x19b8] sm:$0xf0] }
 0x750   : > { %v13401_v15 = vld [vmem:[%s13942_s7 + $0x1b9c] sm:$0xf]  ;;  %v11711_v24 = vor.u32 %v13337_v13, %v11708_v23  ;;  %8235 = vmatpush.bf16.msrb.mxu3 %v12511_v18  ;;  %v7867_v23 = vadd.f32 %v7866_v21, %v7853_v58 }
 0x751   : > { %v11964_v50 = vld [vmem:[%s13942_s7 + $0x1bb8] sm:$0xf0] }
 0x752   : > { %v13465_v61 = vld [vmem:[%s13942_s7 + $0x1d9c] sm:$0xf]  ;;  %v11967_v54 = vor.u32 %v13401_v15, %v11964_v50  ;;  %8194 = vmatpush.bf16.msrb.mxu0 %v11711_v24  ;;  %v7910_v9 = vpop.f32.mrf.mxu3 }
 0x753   : > { %v12220_v6 = vld [vmem:[%s13942_s7 + $0x1db8] sm:$0xf0] }
 0x754   : > { %v13529_v3 = vld [vmem:[%s13942_s7 + $0x1f9c] sm:$0xf]  ;;  %v12223_v52 = vor.u32 %v13465_v61, %v12220_v6  ;;  %8208 = vmatpush.bf16.msrb.mxu1 %v11967_v54 }
 0x755   : > { %v12476_v48 = vld [vmem:[%s13942_s7 + $0x1fb8] sm:$0xf0] }
 0x756   : > { %v13329_v30 = vld [vmem:[%s13942_s7 + $0x195c] sm:$0xf]  ;;  %v12479_v20 = vor.u32 %v13529_v3, %v12476_v48  ;;  %8222 = vmatpush.bf16.msrb.mxu2 %v12223_v52 }
 0x757   : > { %v11676_v29 = vld [vmem:[%s13942_s7 + $0x1978] sm:$0xf0] }
 0x758   : > { %v13393_v34 = vld [vmem:[%s13942_s7 + $0x1b5c] sm:$0xf]  ;;  %v11679_v31 = vor.u32 %v13329_v30, %v11676_v29  ;;  %8236 = vmatpush.bf16.msrb.mxu3 %v12479_v20  ;;  %v7881_v30 = vadd.f32 %v16431_v19, %v7867_v23  ;;  %v7855_v19 = vadd.f32 %v16423_v0, %v7841_v14 }
 0x759   : > { %v11932_v22 = vld [vmem:[%s13942_s7 + $0x1b78] sm:$0xf0] }
 0x75a   : > { %v13457_v7 = vld [vmem:[%s13942_s7 + $0x1d5c] sm:$0xf]  ;;  %v11935_v43 = vor.u32 %v13393_v34, %v11932_v22  ;;  %8195 = vmatpush.bf16.msrb.mxu0 %v11679_v31 }
 0x75b   : > { %v12188_v2 = vld [vmem:[%s13942_s7 + $0x1d78] sm:$0xf0] }
 0x75c   : > { %v13521_v39 = vld [vmem:[%s13942_s7 + $0x1f5c] sm:$0xf]  ;;  %v12191_v56 = vor.u32 %v13457_v7, %v12188_v2  ;;  %8209 = vmatpush.bf16.msrb.mxu1 %v11935_v43  ;;  %v7896_v2 = vpop.f32.mrf.mxu2  ;;  %v7922_v43 = vpop.f32.mrf.mxu0 }
 0x75d   : > { %v12444_v51 = vld [vmem:[%s13942_s7 + $0x1f78] sm:$0xf0] }
 0x75e   : > { %v13321_v35 = vld [vmem:[%s13942_s7 + $0x191c] sm:$0xf]  ;;  %v12447_v45 = vor.u32 %v13521_v39, %v12444_v51  ;;  %8223 = vmatpush.bf16.msrb.mxu2 %v12191_v56 }
 0x75f   : > { %v11644_v44 = vld [vmem:[%s13942_s7 + $0x1938] sm:$0xf0] }
 0x760   : > { %v13385_v36 = vld [vmem:[%s13942_s7 + $0x1b1c] sm:$0xf]  ;;  %v11647_v33 = vor.u32 %v13321_v35, %v11644_v44  ;;  %8237 = vmatpush.bf16.msrb.mxu3 %v12447_v45  ;;  %v7936_v44 = vpop.f32.mrf.mxu1  ;;  %v7895_v45 = vadd.f32 %v16454_v63, %v7881_v30 }
 0x761   : > { %v11900_v47 = vld [vmem:[%s13942_s7 + $0x1b38] sm:$0xf0] }
 0x762   : > { %v13449_v60 = vld [vmem:[%s13942_s7 + $0x1d1c] sm:$0xf]  ;;  %v11903_v49 = vor.u32 %v13385_v36, %v11900_v47  ;;  %8196 = vmatpush.bf16.msrb.mxu0 %v11647_v33 }
 0x763   : > { %v12156_v40 = vld [vmem:[%s13942_s7 + $0x1d38] sm:$0xf0] }
 0x764   : > { %v13513_v28 = vld [vmem:[%s13942_s7 + $0x1f1c] sm:$0xf]  ;;  %v12159_v1 = vor.u32 %v13449_v60, %v12156_v40  ;;  %8210 = vmatpush.bf16.msrb.mxu1 %v11903_v49  ;;  %v7869_v49 = vadd.f32 %v7868_v8, %v7855_v19  ;;  %v7924_v8 = vpop.f32.mrf.mxu0 }
 0x765   : > { %v12412_v62 = vld [vmem:[%s13942_s7 + $0x1f38] sm:$0xf0] }
 0x766   : > { %v13313_v4 = vld [vmem:[%s13942_s7 + $0x18dc] sm:$0xf]  ;;  %v12415_v10 = vor.u32 %v13513_v28, %v12412_v62  ;;  %8224 = vmatpush.bf16.msrb.mxu2 %v12159_v1 }
 0x767   : > { %v11612_v53 = vld [vmem:[%s13942_s7 + $0x18f8] sm:$0xf0] }
 0x768   : > { %v13377_v55 = vld [vmem:[%s13942_s7 + $0x1adc] sm:$0xf]  ;;  %v11615_v13 = vor.u32 %v13313_v4, %v11612_v53  ;;  %8238 = vmatpush.bf16.msrb.mxu3 %v12415_v10 }
 0x769   : > { %v11868_v42 = vld [vmem:[%s13942_s7 + $0x1af8] sm:$0xf0] }
 0x76a   : > { %v13441_v17 = vld [vmem:[%s13942_s7 + $0x1cdc] sm:$0xf]  ;;  %v11871_v15 = vor.u32 %v13377_v55, %v11868_v42  ;;  %8197 = vmatpush.bf16.msrb.mxu0 %v11615_v13  ;;  %v7909_v55 = vadd.f32 %v16457_v27, %v7895_v45  ;;  %v7950_v42 = vpop.f32.mrf.mxu2  ;;  %v7938_v13 = vpop.f32.mrf.mxu1 }
 0x76b   : > { %v12124_v12 = vld [vmem:[%s13942_s7 + $0x1cf8] sm:$0xf0] }
 0x76c   : > { %v13505_v59 = vld [vmem:[%s13942_s7 + $0x1edc] sm:$0xf]  ;;  %v12127_v18 = vor.u32 %v13441_v17, %v12124_v12  ;;  %8211 = vmatpush.bf16.msrb.mxu1 %v11871_v15  ;;  %v7883_v12 = vadd.f32 %v16468_v25, %v7869_v49  ;;  %v7923_v37 = vadd.f32 %v7922_v43, %v7909_v55  ;;  %v1328_v43 = vperm.slane %v16389_v11, 7 }
 0x76d   : > { %v12380_v26 = vld [vmem:[%s13942_s7 + $0x1ef8] sm:$0xf0] }
 0x76e   : > { %v13305_v50 = vld [vmem:[%s13942_s7 + $0x189c] sm:$0xf]  ;;  %v12383_v6 = vor.u32 %v13505_v59, %v12380_v26  ;;  %8225 = vmatpush.bf16.msrb.mxu2 %v12127_v18  ;;  %v7964_v59 = vpop.f32.mrf.mxu3  ;;  %v7897_v26 = vadd.f32 %v7896_v2, %v7883_v12  ;;  %v7937_v23 = vadd.f32 %v7936_v44, %v7923_v37 }
 0x76f   : > { %v11580_v61 = vld [vmem:[%s13942_s7 + $0x18b8] sm:$0xf0] }
 0x770   : > { %v13369_v5 = vld [vmem:[%s13942_s7 + $0x1a9c] sm:$0xf]  ;;  %v11583_v52 = vor.u32 %v13305_v50, %v11580_v61  ;;  %8239 = vmatpush.bf16.msrb.mxu3 %v12383_v6  ;;  %v7911_v27 = vadd.f32 %v7910_v9, %v7897_v26  ;;  %v7951_v15 = vadd.f32 %v7950_v42, %v7937_v23 }
 0x771   : > { %v11836_v3 = vld [vmem:[%s13942_s7 + $0x1ab8] sm:$0xf0] }
 0x772   : > { %v13433_v48 = vld [vmem:[%s13942_s7 + $0x1c9c] sm:$0xf]  ;;  %v11839_v29 = vor.u32 %v13369_v5, %v11836_v3  ;;  %8198 = vmatpush.bf16.msrb.mxu0 %v11583_v52  ;;  %v7925_v25 = vadd.f32 %v7924_v8, %v7911_v27  ;;  %v7952_v18 = vpop.f32.mrf.mxu2  ;;  %v7965_v50 = vadd.f32 %v7964_v59, %v7951_v15  ;;  %v7978_v5 = vpop.f32.mrf.mxu0 }
 0x773   : > { %v12092_v24 = vld [vmem:[%s13942_s7 + $0x1cb8] sm:$0xf0]  ;;  %v7992_v6 = vpop.f32.mrf.mxu1 }
 0x774   : > { %v13497_v54 = vld [vmem:[%s13942_s7 + $0x1e9c] sm:$0xf]  ;;  %v12095_v34 = vor.u32 %v13433_v48, %v12092_v24  ;;  %8212 = vmatpush.bf16.msrb.mxu1 %v11839_v29  ;;  %v7939_v3 = vadd.f32 %v7938_v13, %v7925_v25  ;;  %v7979_v48 = vadd.f32 %v7978_v5, %v7965_v50 }
 0x775   : > { %v12348_v21 = vld [vmem:[%s13942_s7 + $0x1eb8] sm:$0xf0] }
 0x776   : > { %v13297_v20 = vld [vmem:[%s13942_s7 + $0x185c] sm:$0xf]  ;;  %v12351_v16 = vor.u32 %v13497_v54, %v12348_v21  ;;  %8226 = vmatpush.bf16.msrb.mxu2 %v12095_v34  ;;  %v7966_v61 = vpop.f32.mrf.mxu3  ;;  %v7953_v24 = vadd.f32 %v7952_v18, %v7939_v3  ;;  %v7993_v14 = vadd.f32 %v7992_v6, %v7979_v48 }
 0x777   : > { %v11548_v22 = vld [vmem:[%s13942_s7 + $0x1878] sm:$0xf0] }
 0x778   : > { %v13361_v7 = vld [vmem:[%s13942_s7 + $0x1a5c] sm:$0xf]  ;;  %v11551_v36 = vor.u32 %v13297_v20, %v11548_v22  ;;  %8240 = vmatpush.bf16.msrb.mxu3 %v12351_v16 }
 0x779   : > { %v11804_v39 = vld [vmem:[%s13942_s7 + $0x1a78] sm:$0xf0] }
 0x77a   : > { %v13425_v51 = vld [vmem:[%s13942_s7 + $0x1c5c] sm:$0xf]  ;;  %v11807_v47 = vor.u32 %v13361_v7, %v11804_v39  ;;  %8199 = vmatpush.bf16.msrb.mxu0 %v11551_v36 }
 0x77b   : > { %v12060_v31 = vld [vmem:[%s13942_s7 + $0x1c78] sm:$0xf0] }
 0x77c   : > { %v13489_v56 = vld [vmem:[%s13942_s7 + $0x1e5c] sm:$0xf]  ;;  %v12063_v60 = vor.u32 %v13425_v51, %v12060_v31  ;;  %8213 = vmatpush.bf16.msrb.mxu1 %v11807_v47 }
 0x77d   : > { %v12316_v35 = vld [vmem:[%s13942_s7 + $0x1e78] sm:$0xf0] }
 0x77e   : > { %v13289_v40 = vld [vmem:[%s13942_s7 + $0x181c] sm:$0xf]  ;;  %v12319_v28 = vor.u32 %v13489_v56, %v12316_v35  ;;  %8227 = vmatpush.bf16.msrb.mxu2 %v12063_v60  ;;  %v8020_v21 = vpop.f32.mrf.mxu3 }
 0x77f   : > { %v11516_v0 = vld [vmem:[%s13942_s7 + $0x1838] sm:$0xf0] }
 0x780   : > { %v13353_v57 = vld [vmem:[%s13942_s7 + $0x1a1c] sm:$0xf]  ;;  %v11519_v53 = vor.u32 %v13289_v40, %v11516_v0  ;;  %8241 = vmatpush.bf16.msrb.mxu3 %v12319_v28 }
 0x781   : > { %v11772_v62 = vld [vmem:[%s13942_s7 + $0x1a38] sm:$0xf0] }
 0x782   : > { %v13417_v33 = vld [vmem:[%s13942_s7 + $0x1c1c] sm:$0xf]  ;;  %v11775_v63 = vor.u32 %v13353_v57, %v11772_v62  ;;  %8200 = vmatpush.bf16.msrb.mxu0 %v11519_v53 }
 0x783   : > { %v12028_v58 = vld [vmem:[%s13942_s7 + $0x1c38] sm:$0xf0] }
 0x784   : > { %v13481_v1 = vld [vmem:[%s13942_s7 + $0x1e1c] sm:$0xf]  ;;  %v12031_v10 = vor.u32 %v13417_v33, %v12028_v58  ;;  %8214 = vmatpush.bf16.msrb.mxu1 %v11775_v63 }
 0x785   : > { %v12284_v4 = vld [vmem:[%s13942_s7 + $0x1e38] sm:$0xf0]  ;;  %8201 = vmatmul.bf16.vlgmr.msrb.gmra.mxu0 %v14251_v32  ;;  %v8006_v32 = vpop.f32.mrf.mxu2 }
 0x786   : > { %v12287_v17 = vor.u32 %v13481_v1, %v12284_v4  ;;  %8228 = vmatpush.bf16.msrb.mxu2 %v12031_v10  ;;  %v8007_v54 = vadd.f32 %v8006_v32, %v7993_v14  ;;  %v8022_v7 = vpop.f32.mrf.mxu3 }
 0x787   : > { %8215 = vmatmul.bf16.vlgmr.msrb.gmra.mxu1 %v14258_v41  ;;  %v7967_v41 = vadd.f32 %v7966_v61, %v7953_v24 }
 0x788   : > { %8242 = vmatpush.bf16.msrb.mxu3 %v12287_v17  ;;  %v8021_v30 = vadd.f32 %v8020_v21, %v8007_v54 }
 0x789   : > { %8229 = vmatmul.bf16.vlgmr.msrb.gmra.mxu2 %v14256_v38  ;;  %v7980_v38 = vpop.f32.mrf.mxu0 }
 0x78a   : > { %v7981_v52 = vadd.f32 %v7980_v38, %v7967_v41  ;;  %v8255_v29 = vmax.f32 %v8021_v30, 0.0 }
 0x78b   : > { %8243 = vmatmul.bf16.vlgmr.msrb.gmra.mxu3 %v14262_v46  ;;  %v7994_v46 = vpop.f32.mrf.mxu1 }
 0x78c   : > { %8271 = vst [vmem:[%s14637_s11 + $0x30] sm:$0xff] %v8255_v29  ;;  %v7995_v34 = vadd.f32 %v7994_v46, %v7981_v52 }
 0x78d   : > { %v8008_v20 = vpop.f32.mrf.mxu2 }
 0x78e   : > { %v8009_v22 = vadd.f32 %v8008_v20, %v7995_v34  ;;  %v8076_v19 = vpop.f32.mrf.mxu3 }
 0x790   : > { %v8023_v2 = vadd.f32 %v8022_v7, %v8009_v22 }
 0x791   : > { %v8034_v39 = vpop.f32.mrf.mxu0 }
 0x792   : > { %v8263_v16 = vmax.f32 %v8023_v2, 0.0  ;;  %v8035_v35 = vadd.f32 %v8034_v39, %v1328_v43 }
 0x793   : > { %v8048_v51 = vpop.f32.mrf.mxu1 }
 0x794   : > { %8279 = vst [vmem:[%s14637_s11 + $0x70] sm:$0xff] %v8263_v16  ;;  %v8049_v45 = vadd.f32 %v8048_v51, %v8035_v35 }
 0x795   : > { %v8062_v31 = vpop.f32.mrf.mxu2 }
 0x796   : > { %v8078_v36 = vpop.f32.mrf.mxu3  ;;  %v8063_v40 = vadd.f32 %v8062_v31, %v8049_v45 }
 0x798   : > { %v8077_v28 = vadd.f32 %v8076_v19, %v8063_v40 }
 0x799   : > { %v8036_v9 = vpop.f32.mrf.mxu0 }
 0x79a   : > { %v8037_v0 = vadd.f32 %v8036_v9, %v1328_v43 }
 0x79b   : > { %v8050_v56 = vpop.f32.mrf.mxu1 }
 0x79c   : > { %v8051_v33 = vadd.f32 %v8050_v56, %v8037_v0 }
 0x79d   : > { %v8064_v44 = vpop.f32.mrf.mxu2 }
 0x79e   : > { %v8132_v62 = vpop.f32.mrf.mxu3  ;;  %v8065_v4 = vadd.f32 %v8064_v44, %v8051_v33 }
 0x7a0   : > { %v8079_v11 = vadd.f32 %v8078_v36, %v8065_v4 }
 0x7a1   : > { %v8090_v47 = vpop.f32.mrf.mxu0 }
 0x7a2   : > { %v8091_v49 = vadd.f32 %v8090_v47, %v8077_v28 }
 0x7a3   : > { %v8104_v60 = vpop.f32.mrf.mxu1 }
 0x7a4   : > { %v8105_v53 = vadd.f32 %v8104_v60, %v8091_v49 }
 0x7a5   : > { %v8118_v57 = vpop.f32.mrf.mxu2 }
 0x7a6   : > { %v8134_v63 = vpop.f32.mrf.mxu3  ;;  %v8119_v42 = vadd.f32 %v8118_v57, %v8105_v53 }
 0x7a8   : > { %v8133_v37 = vadd.f32 %v8132_v62, %v8119_v42 }
 0x7a9   : > { %v8092_v58 = vpop.f32.mrf.mxu0 }
 0x7aa   : > { %v8093_v12 = vadd.f32 %v8092_v58, %v8079_v11 }
 0x7ab   : > { %v8106_v1 = vpop.f32.mrf.mxu1 }
 0x7ac   : > { %v8107_v26 = vadd.f32 %v8106_v1, %v8093_v12 }
 0x7ad   : > { %v8120_v55 = vpop.f32.mrf.mxu2 }
 0x7ae   : > { %v8121_v23 = vadd.f32 %v8120_v55, %v8107_v26 }
 0x7b0   : > { %v8135_v18 = vadd.f32 %v8134_v63, %v8121_v23 }
 0x7c2   : > { %v8146_v10 = vpop.f32.mrf.mxu0 }
 0x7c3   : > { %v8147_v8 = vadd.f32 %v8146_v10, %v8133_v37 }
 0x7c4   : > { %v8160_v17 = vpop.f32.mrf.mxu1 }
 0x7c5   : > { %v8161_v15 = vadd.f32 %v8160_v17, %v8147_v8 }
 0x7ca   : > { %v8148_v27 = vpop.f32.mrf.mxu0 }
 0x7cb   : > { %v8149_v61 = vadd.f32 %v8148_v27, %v8135_v18 }
 0x7cc   : > { %v8174_v59 = vpop.f32.mrf.mxu2  ;;  %v8162_v25 = vpop.f32.mrf.mxu1 }
 0x7cd   : > { %v8175_v50 = vadd.f32 %v8174_v59, %v8161_v15  ;;  %v8163_v24 = vadd.f32 %v8162_v25, %v8149_v61 }
 0x7ce   : > { %v8188_v13 = vpop.f32.mrf.mxu3 }
 0x7cf   : > { %v8189_v6 = vadd.f32 %v8188_v13, %v8175_v50 }
 0x7d4   : > { %v8176_v5 = vpop.f32.mrf.mxu2 }
 0x7d5   : > { %v8177_v41 = vadd.f32 %v8176_v5, %v8163_v24 }
 0x7d6   : > { %v8190_v3 = vpop.f32.mrf.mxu3 }
 0x7d7   : > { %v8191_v21 = vadd.f32 %v8190_v3, %v8177_v41 }
 0x802   : > { %v8202_v48 = vpop.f32.mrf.mxu0 }
 0x803   : > { %v8203_v14 = vadd.f32 %v8202_v48, %v8189_v6 }
 0x804   : > { %v8216_v32 = vpop.f32.mrf.mxu1 }
 0x805   : > { %v8217_v54 = vadd.f32 %v8216_v32, %v8203_v14 }
 0x80a   : > { %v8204_v46 = vpop.f32.mrf.mxu0 }
 0x80b   : > { %v8205_v34 = vadd.f32 %v8204_v46, %v8191_v21 }
 0x80c   : > { %v8230_v38 = vpop.f32.mrf.mxu2  ;;  %v8218_v22 = vpop.f32.mrf.mxu1 }
 0x80d   : > { %v8231_v52 = vadd.f32 %v8230_v38, %v8217_v54  ;;  %v8219_v7 = vadd.f32 %v8218_v22, %v8205_v34 }
 0x80e   : > { %v8244_v30 = vpop.f32.mrf.mxu3 }
 0x80f   : > { %v8245_v29 = vadd.f32 %v8244_v30, %v8231_v52 }
 0x811   : > { %v8256_v20 = vmax.f32 %v8245_v29, 0.0 }
 0x813   : > { %8272 = vst [vmem:[%s14637_s11 + $0x38] sm:$0xff] %v8256_v20 }
 0x814   : > { %v8232_v2 = vpop.f32.mrf.mxu2 }
 0x815   : > { %v8233_v16 = vadd.f32 %v8232_v2, %v8219_v7 }
 0x816   : > { %v8246_v39 = vpop.f32.mrf.mxu3 }
 0x817   : > { %v8247_v51 = vadd.f32 %v8246_v39, %v8233_v16 }
 0x819   : > { %v8264_v31 = vmax.f32 %v8247_v51, 0.0 }
 0x81b   : > { %8280 = vst [vmem:[%s14637_s11 + $0x78] sm:$0xff] %v8264_v31 }
 0x81c   : > { %13735 = shalt.err (!%p13732_p3)
}
 0x81d   : > { %s13785_s17 = smov 1024   ;;  %s13786_s7 = smov 4096  }
 0x81e   : > { %s13787_s4 = smov 64  }
 0x81f   : > { %13551 = dma.vmem_to_hbm [thread:$0]  (%p13891_p9), %s8295_s6, 2048, %s8297_s21, %s8282_s22, %s13785_s17, %s13786_s7, %s13787_s4  }
 0x820 PF: > { %p13571_p4 = scmp.ge.s32.totalorder %s13778_s15, 2  ;;  %s8311_s24 = sand.u32 1, %s13766_s12  }
 0x821   : > { %s8312_s5 = scalar_lea.sflag [#allocation4], %s8311_s24 }
 0x822   : > { %p13565_p6 = pnand %p13571_p4, %p13895_p10 }
 0x824   : > { %p13566_p11 = pneg %p13565_p6 }
 0x826   : > { %13761 = dma.done.wait (%p13566_p11), %s8312_s5, 2048  }
 0x827   : > { %13763 = vsyncadd (%p13566_p11), %s8312_s5, 4294965248  ;;  %p17_p0 = scmp.ge.s32.totalorder %s13829_s16, 6   ;;  %s16553_s12 = smov %s13770_s13 }
 0x828   : > { %s16554_s13 = smov %s13774_s14  ;;  %s16555_s14 = smov %s13838_s19 }
 0x829   : > { %s16556_s15 = smov %s13829_s16  ;;  %19 = sbr.rel (!%p17_p0) target bundleno = 8 (0x8), region = 93 }
 0x82e   :  { %8318 = vsyncpa [#allocation3], 1 }
 0x82f   :  { %8320 = vsyncpa [#allocation3 + $0x1], 1 }
 0x830   :  { %8321 = vsyncpa [#allocation6], 1 }
 0x831   :  { %8323 = vsyncpa [#allocation6 + $0x1], 1 }
 0x832   :  { %8324 = vsyncpa [#allocation4], 1 }
 0x833   :  { %8326 = vsyncpa [#allocation4 + $0x1], 1 }

</bundles_post_ra>
